<compile_context>
chip_gen: v7x
topology: tpu7x:2x2x1
jax: 0.10.0
libtpu: 0.0.40
codegen_flags: <defaults>
</compile_context>

<pallas_src>
import functools

import jax
import jax.numpy as jnp
from jax.experimental import pallas as pl
from jax.experimental.pallas import tpu as pltpu

HS = 256  # hidden size hard-coded in the PyTorch module


def _round_up(x, m):
    return ((x + m - 1) // m) * m


# ----------------------------------------------------------------------------
# parameter construction (fused layout, bf16 weight storage)
# ----------------------------------------------------------------------------
def init_params(key, P, A, S, F1):
    """Builds parameters directly in the layout the fused kernel consumes.

    Note: the flattened conv-stem activations use a (position, channel)-major
    layout; the matching fc-1 weight blocks are generated in that layout, which
    is equivalent to the PyTorch module up to a fixed permutation of an
    internal representation (absorbable when converting trained weights).
    """
    NH = 2 * S                               # S policy + (S-1) prior + critic
    n_hidden = [2] * (2 * S - 1) + [1]       # hidden 256x256 layers per head after L1
    out_w = [P] * S + [S] * (S - 1) + [1]
    OUTP = _round_up(S * P + (S - 1) * S + 1, 128)   # lane-dense fused output width
    F1P = _round_up(max(F1, 1), 128)                  # x1 tail padded to 128-aligned K

    def uni(k, shape, bound):
        return jax.random.uniform(k, shape, jnp.float32, -bound, bound)

    keys = iter(jax.random.split(key, 64))
    p = {}

    # base_row: Conv2d(1, HS, (1, A)) -> weight (A, HS), bias (HS,)
    br = A ** -0.5
    w_row = uni(next(keys), (A, HS), br)
    b_row = uni(next(keys), (HS,), br)
    # base_col: Conv2d(1, HS, (P, 1)) -> weight (P, HS), bias (HS,)
    bc = P ** -0.5
    w_col = uni(next(keys), (P, HS), bc)
    b_col = uni(next(keys), (HS,), bc)

    # Fold both convs into ONE dense matmul on the flattened (B, P*A) input.
    w_conv_row = jnp.einsum("ac,pq->paqc", w_row,
                            jnp.eye(P, dtype=jnp.float32)).reshape(P * A, P * HS)
    w_conv_col = jnp.einsum("pc,ab->pabc", w_col,
                            jnp.eye(A, dtype=jnp.float32)).reshape(P * A, A * HS)
    p["w_conv"] = jnp.concatenate([w_conv_row, w_conv_col], axis=1).astype(jnp.bfloat16)
    p["b_conv"] = jnp.concatenate([jnp.tile(b_row, P), jnp.tile(b_col, A)])[None, :]

    # fc layer 1: Linear(conv_out_size, HS); conv part merged along K, x1 tail separate
    conv_out = P * HS + A * HS + F1
    bf = conv_out ** -0.5
    w_f0_row = uni(next(keys), (P * HS, HS), bf)
    w_f0_col = uni(next(keys), (A * HS, HS), bf)
    p["w_f0_conv"] = jnp.concatenate([w_f0_row, w_f0_col], axis=0).astype(jnp.bfloat16)
    p["w_f0_x1"] = jnp.zeros((F1P, HS), jnp.float32).at[:F1].set(
        uni(next(keys), (F1, HS), bf)).astype(jnp.bfloat16)
    p["b_f0"] = uni(next(keys), (1, HS), bf)

    bh = HS ** -0.5
    # fc layers 2..5
    p["w_fc"] = uni(next(keys), (4, HS, HS), bh).astype(jnp.bfloat16)
    p["b_fc"] = uni(next(keys), (4, 1, HS), bh)

    # first Linear of every head, concatenated along N
    p["w_head1"] = uni(next(keys), (HS, NH * HS), bh).astype(jnp.bfloat16)
    p["b_head1"] = uni(next(keys), (1, NH * HS), bh)
    # per-head PReLU alpha broadcast over that head's lane block (f32)
    p["a_head1"] = jnp.repeat(jnp.full((NH,), 0.25, jnp.float32), HS)[None, :]

    # remaining hidden 256x256 layers of every head
    n_hid_total = sum(n_hidden)
    p["w_hid"] = uni(next(keys), (n_hid_total, HS, HS), bh).astype(jnp.bfloat16)
    p["b_hid"] = uni(next(keys), (n_hid_total, 1, HS), bh)

    # head output layers, placed at per-head column offsets in one lane-dense slab
    w_out = jnp.zeros((NH, HS, OUTP), jnp.float32)
    b_out = jnp.zeros((1, OUTP), jnp.float32)
    off = 0
    for j, w in enumerate(out_w):
        w_out = w_out.at[j, :, off:off + w].set(uni(next(keys), (HS, w), bh))
        b_out = b_out.at[0, off:off + w].set(uni(next(keys), (w,), bh))
        off += w
    p["w_out"] = w_out.astype(jnp.bfloat16)
    p["b_out"] = b_out

    # scalar PReLU alphas (fc: 5, head hidden: 4S-1, head out: 2S) -> SMEM
    p["alphas"] = jnp.full((5 + n_hid_total + NH,), 0.25, jnp.float32)
    return p


# ----------------------------------------------------------------------------
# fused forward (single pallas_call)
# ----------------------------------------------------------------------------
@functools.partial(jax.jit, static_argnums=(3,))
def forward(params, x0, x1, S):
    B = x0.shape[0]
    P, A = x0.shape[2], x0.shape[3]
    F1 = x1.shape[1]
    F1P = params["w_f0_x1"].shape[0]
    OUTP = params["w_out"].shape[-1]
    NH = 2 * S
    n_hidden = [2] * (2 * S - 1) + [1]
    A_HID = 5
    A_OUT = 5 + sum(n_hidden)
    BP = _round_up(max(B, 1), 8)          # batch padded to a sublane multiple

    # flattened x0, padded x1, and the exact 1/(-u)+1 policy offset packed into
    # the first S*P lanes of a (BP, OUTP) lane-dense slab.
    x0f = jnp.pad(x0[:, 0].reshape(B, P * A), ((0, BP - B), (0, 0)))
    x1p = jnp.pad(x1, ((0, BP - B), (0, F1P - F1)))
    u = jnp.transpose(x0[:, 0, :, A - S:], (0, 2, 1)).reshape(B, S * P)
    u_add = jnp.zeros((BP, OUTP), jnp.float32).at[:B, :S * P].set(1.0 / (-u) + 1.0)

    def kernel(alphas_ref, x0_ref, x1_ref, uadd_ref,
               w_conv_ref, b_conv_ref,
               w_f0c_ref, w_f0x_ref, b_f0_ref,
               w_fc_ref, b_fc_ref,
               w_h1_ref, b_h1_ref, a_h1_ref,
               w_hid_ref, b_hid_ref,
               w_out_ref, b_out_ref,
               out_ref):

        def mm(x, w):
            # bf16 x bf16 MXU matmul, f32 accumulate
            return jnp.dot(x.astype(jnp.bfloat16), w,
                           preferred_element_type=jnp.float32)

        def prelu(x, a):
            return jnp.where(x >= 0.0, x, a * x)

        a0 = alphas_ref[0]

        # conv stems as one dense matmul (row/col layout matches w_f0_conv)
        conv = mm(x0_ref[...], w_conv_ref[...]) + b_conv_ref[...]   # (BP,(P+A)*HS)

        # fc layer 1 (conv part merged along K) + x1 tail
        h = (mm(prelu(conv, a0), w_f0c_ref[...])
             + mm(prelu(x1_ref[...], a0), w_f0x_ref[...])
             + b_f0_ref[...])                                        # (BP, HS)
        # fc layers 2..5
        for k in range(4):
            h = mm(prelu(h, alphas_ref[1 + k]), w_fc_ref[k]) + b_fc_ref[k]
        out_fc = h                                                   # (BP, HS)

        # first layer of all heads: ONE pass over the wide weight.
        # prelu(x, a_j) @ W_j = max(x,0)@W_j + a_j * (min(x,0)@W_j); pos/neg are
        # stacked along the batch (sublane) axis so W is pushed once.
        pos = jnp.maximum(out_fc, 0.0)
        neg = jnp.minimum(out_fc, 0.0)
        y = mm(jnp.concatenate([pos, neg], axis=0), w_h1_ref[...])   # (2BP, NH*HS)
        h1_all = y[:BP] + a_h1_ref[...] * y[BP:] + b_h1_ref[...]     # (BP, NH*HS)

        # remaining per-head layers; head outputs accumulate into one lane-dense
        # (BP, OUTP) value via column-offset-placed output weights, stored once.
        acc = uadd_ref[...] + b_out_ref[...]                          # (BP, OUTP)
        hid = 0
        for j in range(NH):
            hh = h1_all[:, j * HS:(j + 1) * HS]
            for _ in range(n_hidden[j]):
                hh = (mm(prelu(hh, alphas_ref[A_HID + hid]), w_hid_ref[hid])
                      + b_hid_ref[hid])
                hid += 1
            acc = acc + mm(prelu(hh, alphas_ref[A_OUT + j]), w_out_ref[j])
        out_ref[...] = acc

    vmem = pl.BlockSpec(memory_space=pltpu.MemorySpace.VMEM)
    smem = pl.BlockSpec(memory_space=pltpu.MemorySpace.SMEM)

    out = pl.pallas_call(
        kernel,
        out_shape=jax.ShapeDtypeStruct((BP, OUTP), jnp.float32),
        in_specs=[smem] + [vmem] * 17,
        out_specs=vmem,
        compiler_params=pltpu.CompilerParams(
            vmem_limit_bytes=32 * 1024 * 1024),
    )(params["alphas"], x0f, x1p, u_add,
      params["w_conv"], params["b_conv"],
      params["w_f0_conv"], params["w_f0_x1"], params["b_f0"],
      params["w_fc"], params["b_fc"],
      params["w_head1"], params["b_head1"], params["a_head1"],
      params["w_hid"], params["b_hid"],
      params["w_out"], params["b_out"])

    pol = out[:B, :S * P]
    pri = out[:B, S * P:S * P + (S - 1) * S]
    cri = out[:B, S * P + (S - 1) * S:S * P + (S - 1) * S + 1]
    l1 = [pol[:, i * P:(i + 1) * P] for i in range(S)]
    l2 = [pri[:, j * S:(j + 1) * S] for j in range(S - 1)]
    return (l1, l2), cri


# ----------------------------------------------------------------------------
# pure-JAX reference (same parameters, same bf16-weight math) for sanity check
# ----------------------------------------------------------------------------
def reference_forward(params, x0, x1, S):
    B = x0.shape[0]
    P, A = x0.shape[2], x0.shape[3]
    F1 = x1.shape[1]
    F1P = params["w_f0_x1"].shape[0]
    al = params["alphas"]
    NH = 2 * S
    n_hidden = [2] * (2 * S - 1) + [1]
    A_HID = 5
    A_OUT = 5 + sum(n_hidden)
    out_w = [P] * S + [S] * (S - 1) + [1]

    def mm(x, w):
        return jnp.dot(x.astype(jnp.bfloat16), w, preferred_element_type=jnp.float32)

    def prelu(x, a):
        return jnp.where(x >= 0.0, x, a * x)

    x0f = x0[:, 0].reshape(B, P * A)
    x1p = jnp.pad(x1, ((0, 0), (0, F1P - F1)))

    conv = mm(x0f, params["w_conv"]) + params["b_conv"]
    a0 = al[0]
    h = (mm(prelu(conv, a0), params["w_f0_conv"])
         + mm(prelu(x1p, a0), params["w_f0_x1"]) + params["b_f0"])
    for k in range(4):
        h = mm(prelu(h, al[1 + k]), params["w_fc"][k]) + params["b_fc"][k]

    pos, neg = jnp.maximum(h, 0.0), jnp.minimum(h, 0.0)
    h1_all = (mm(pos, params["w_head1"])
              + params["a_head1"] * mm(neg, params["w_head1"])
              + params["b_head1"])

    u3 = x0[:, 0, :, A - S:]
    l1, l2, critic = [], [], None
    hid = 0
    off = 0
    for j in range(NH):
        hh = h1_all[:, j * HS:(j + 1) * HS]
        for _ in range(n_hidden[j]):
            hh = (mm(prelu(hh, al[A_HID + hid]), params["w_hid"][hid])
                  + params["b_hid"][hid])
            hid += 1
        o_full = mm(prelu(hh, al[A_OUT + j]), params["w_out"][j])
        o = o_full[:, off:off + out_w[j]] + params["b_out"][:, off:off + out_w[j]]
        if j < S:
            l1.append(1.0 / (-u3[:, :, j]) + 1.0 + o)
        elif j < 2 * S - 1:
            l2.append(o)
        else:
            critic = o
        off += out_w[j]
    return (l1, l2), critic


if __name__ == "__main__":
    # small shapes consistent with the module:
    #   x0: (B, 1, num_processors, num_attributes), x1: (B, F1)
    B, P, A, S, F1 = 8, 8, 6, 3, 5

    key = jax.random.PRNGKey(0)
    kx0, kx1, kp = jax.random.split(key, 3)
    # keep the "u" attribute columns away from 0 so 1/(-u) stays finite
    x0 = jax.random.uniform(kx0, (B, 1, P, A), jnp.float32, 0.5, 2.0)
    x1 = jax.random.normal(kx1, (B, F1), jnp.float32)

    params = init_params(kp, P, A, S, F1)

    (l1, l2), critic = forward(params, x0, x1, S)
    jax.block_until_ready(critic)
    for t in l1 + l2:
        jax.block_until_ready(t)

    assert critic.shape == (B, 1)
    assert len(l1) == S and all(t.shape == (B, P) for t in l1)
    assert len(l2) == S - 1 and all(t.shape == (B, S) for t in l2)

    (r1, r2), rc = reference_forward(params, x0, x1, S)
    for got, want in zip(l1 + l2 + [critic], r1 + r2 + [rc]):
        err = float(jnp.max(jnp.abs(got - want)))
        assert jnp.allclose(got, want, rtol=1e-2, atol=1e-2), (
            "max abs err %f" % err)

    print("KERNEL_OK")
</pallas_src>

<mosaic_0001>
module attributes {stable_mosaic.version = 11 : i64} {
  func.func @kernel(%arg0: memref<22xf32, #tpu.memory_space<smem>>, %arg1: memref<8x48xf32, #tpu.memory_space<vmem>>, %arg2: memref<8x128xf32, #tpu.memory_space<vmem>>, %arg3: memref<8x128xf32, #tpu.memory_space<vmem>>, %arg4: memref<48x3584xbf16, #tpu.memory_space<vmem>>, %arg5: memref<1x3584xf32, #tpu.memory_space<vmem>>, %arg6: memref<3584x256xbf16, #tpu.memory_space<vmem>>, %arg7: memref<128x256xbf16, #tpu.memory_space<vmem>>, %arg8: memref<1x256xf32, #tpu.memory_space<vmem>>, %arg9: memref<4x256x256xbf16, #tpu.memory_space<vmem>>, %arg10: memref<4x1x256xf32, #tpu.memory_space<vmem>>, %arg11: memref<256x1536xbf16, #tpu.memory_space<vmem>>, %arg12: memref<1x1536xf32, #tpu.memory_space<vmem>>, %arg13: memref<1x1536xf32, #tpu.memory_space<vmem>>, %arg14: memref<11x256x256xbf16, #tpu.memory_space<vmem>>, %arg15: memref<11x1x256xf32, #tpu.memory_space<vmem>>, %arg16: memref<6x256x128xbf16, #tpu.memory_space<vmem>>, %arg17: memref<1x128xf32, #tpu.memory_space<vmem>>, %arg18: memref<8x128xf32, #tpu.memory_space<vmem>>) attributes {dimension_semantics = [], scalar_prefetch = 0 : i64, scratch_operands = 0 : i64, tpu.core_type = #tpu.core_type<tc>} {
    %c0 = arith.constant 0 : index
    %0 = memref.load %arg0[%c0] : memref<22xf32, #tpu.memory_space<smem>>
    %c0_0 = arith.constant 0 : index
    %c0_1 = arith.constant 0 : index
    %1 = vector.load %arg1[%c0_0, %c0_1] : memref<8x48xf32, #tpu.memory_space<vmem>>, vector<8x48xf32>
    %c0_2 = arith.constant 0 : index
    %c0_3 = arith.constant 0 : index
    %2 = vector.load %arg4[%c0_2, %c0_3] : memref<48x3584xbf16, #tpu.memory_space<vmem>>, vector<48x3584xbf16>
    %3 = arith.truncf %1 : vector<8x48xf32> to vector<8x48xbf16>
    %cst = arith.constant dense<0.000000e+00> : vector<8x3584xf32>
    %4 = tpu.matmul %3, %2, %cst {dimension_numbers = #tpu.dot_dimension_numbers<[1], [0], [0], [1], [0, 0, 1, 1], [], []>} : vector<8x48xbf16>, vector<48x3584xbf16>, vector<8x3584xf32> -> vector<8x3584xf32>
    %c0_4 = arith.constant 0 : index
    %c0_5 = arith.constant 0 : index
    %5 = vector.load %arg5[%c0_4, %c0_5] : memref<1x3584xf32, #tpu.memory_space<vmem>>, vector<1x3584xf32>
    %6 = vector.broadcast %5 : vector<1x3584xf32> to vector<8x3584xf32>
    %7 = arith.addf %4, %6 : vector<8x3584xf32>
    %cst_6 = arith.constant 0.000000e+00 : f32
    %8 = vector.broadcast %cst_6 : f32 to vector<8x3584xf32>
    %9 = arith.cmpf oge, %7, %8 : vector<8x3584xf32>
    %10 = vector.broadcast %0 : f32 to vector<8x3584xf32>
    %11 = arith.mulf %10, %7 : vector<8x3584xf32>
    %12 = arith.select %9, %7, %11 : vector<8x3584xi1>, vector<8x3584xf32>
    %c0_7 = arith.constant 0 : index
    %c0_8 = arith.constant 0 : index
    %13 = vector.load %arg6[%c0_7, %c0_8] : memref<3584x256xbf16, #tpu.memory_space<vmem>>, vector<3584x256xbf16>
    %14 = arith.truncf %12 : vector<8x3584xf32> to vector<8x3584xbf16>
    %cst_9 = arith.constant dense<0.000000e+00> : vector<8x256xf32>
    %15 = tpu.matmul %14, %13, %cst_9 {dimension_numbers = #tpu.dot_dimension_numbers<[1], [0], [0], [1], [0, 0, 1, 1], [], []>} : vector<8x3584xbf16>, vector<3584x256xbf16>, vector<8x256xf32> -> vector<8x256xf32>
    %c0_10 = arith.constant 0 : index
    %c0_11 = arith.constant 0 : index
    %16 = vector.load %arg2[%c0_10, %c0_11] : memref<8x128xf32, #tpu.memory_space<vmem>>, vector<8x128xf32>
    %cst_12 = arith.constant 0.000000e+00 : f32
    %17 = vector.broadcast %cst_12 : f32 to vector<8x128xf32>
    %18 = arith.cmpf oge, %16, %17 : vector<8x128xf32>
    %19 = vector.broadcast %0 : f32 to vector<8x128xf32>
    %20 = arith.mulf %19, %16 : vector<8x128xf32>
    %21 = arith.select %18, %16, %20 : vector<8x128xi1>, vector<8x128xf32>
    %c0_13 = arith.constant 0 : index
    %c0_14 = arith.constant 0 : index
    %22 = vector.load %arg7[%c0_13, %c0_14] : memref<128x256xbf16, #tpu.memory_space<vmem>>, vector<128x256xbf16>
    %23 = arith.truncf %21 : vector<8x128xf32> to vector<8x128xbf16>
    %cst_15 = arith.constant dense<0.000000e+00> : vector<8x256xf32>
    %24 = tpu.matmul %23, %22, %cst_15 {dimension_numbers = #tpu.dot_dimension_numbers<[1], [0], [0], [1], [0, 0, 1, 1], [], []>} : vector<8x128xbf16>, vector<128x256xbf16>, vector<8x256xf32> -> vector<8x256xf32>
    %25 = arith.addf %15, %24 : vector<8x256xf32>
    %c0_16 = arith.constant 0 : index
    %c0_17 = arith.constant 0 : index
    %26 = vector.load %arg8[%c0_16, %c0_17] : memref<1x256xf32, #tpu.memory_space<vmem>>, vector<1x256xf32>
    %27 = vector.broadcast %26 : vector<1x256xf32> to vector<8x256xf32>
    %28 = arith.addf %25, %27 : vector<8x256xf32>
    %c1 = arith.constant 1 : index
    %29 = memref.load %arg0[%c1] : memref<22xf32, #tpu.memory_space<smem>>
    %cst_18 = arith.constant 0.000000e+00 : f32
    %30 = vector.broadcast %cst_18 : f32 to vector<8x256xf32>
    %31 = arith.cmpf oge, %28, %30 : vector<8x256xf32>
    %32 = vector.broadcast %29 : f32 to vector<8x256xf32>
    %33 = arith.mulf %32, %28 : vector<8x256xf32>
    %34 = arith.select %31, %28, %33 : vector<8x256xi1>, vector<8x256xf32>
    %c0_19 = arith.constant 0 : index
    %c0_20 = arith.constant 0 : index
    %c0_21 = arith.constant 0 : index
    %35 = vector.load %arg9[%c0_19, %c0_20, %c0_21] : memref<4x256x256xbf16, #tpu.memory_space<vmem>>, vector<1x256x256xbf16>
    %36 = vector.shape_cast %35 : vector<1x256x256xbf16> to vector<256x256xbf16>
    %37 = arith.truncf %34 : vector<8x256xf32> to vector<8x256xbf16>
    %cst_22 = arith.constant dense<0.000000e+00> : vector<8x256xf32>
    %38 = tpu.matmul %37, %36, %cst_22 {dimension_numbers = #tpu.dot_dimension_numbers<[1], [0], [0], [1], [0, 0, 1, 1], [], []>} : vector<8x256xbf16>, vector<256x256xbf16>, vector<8x256xf32> -> vector<8x256xf32>
    %c0_23 = arith.constant 0 : index
    %c0_24 = arith.constant 0 : index
    %c0_25 = arith.constant 0 : index
    %39 = vector.load %arg10[%c0_23, %c0_24, %c0_25] : memref<4x1x256xf32, #tpu.memory_space<vmem>>, vector<1x1x256xf32>
    %40 = vector.shape_cast %39 : vector<1x1x256xf32> to vector<1x256xf32>
    %41 = vector.broadcast %40 : vector<1x256xf32> to vector<8x256xf32>
    %42 = arith.addf %38, %41 : vector<8x256xf32>
    %c2 = arith.constant 2 : index
    %43 = memref.load %arg0[%c2] : memref<22xf32, #tpu.memory_space<smem>>
    %cst_26 = arith.constant 0.000000e+00 : f32
    %44 = vector.broadcast %cst_26 : f32 to vector<8x256xf32>
    %45 = arith.cmpf oge, %42, %44 : vector<8x256xf32>
    %46 = vector.broadcast %43 : f32 to vector<8x256xf32>
    %47 = arith.mulf %46, %42 : vector<8x256xf32>
    %48 = arith.select %45, %42, %47 : vector<8x256xi1>, vector<8x256xf32>
    %c1_27 = arith.constant 1 : index
    %c0_28 = arith.constant 0 : index
    %c0_29 = arith.constant 0 : index
    %49 = vector.load %arg9[%c1_27, %c0_28, %c0_29] : memref<4x256x256xbf16, #tpu.memory_space<vmem>>, vector<1x256x256xbf16>
    %50 = vector.shape_cast %49 : vector<1x256x256xbf16> to vector<256x256xbf16>
    %51 = arith.truncf %48 : vector<8x256xf32> to vector<8x256xbf16>
    %cst_30 = arith.constant dense<0.000000e+00> : vector<8x256xf32>
    %52 = tpu.matmul %51, %50, %cst_30 {dimension_numbers = #tpu.dot_dimension_numbers<[1], [0], [0], [1], [0, 0, 1, 1], [], []>} : vector<8x256xbf16>, vector<256x256xbf16>, vector<8x256xf32> -> vector<8x256xf32>
    %c1_31 = arith.constant 1 : index
    %c0_32 = arith.constant 0 : index
    %c0_33 = arith.constant 0 : index
    %53 = vector.load %arg10[%c1_31, %c0_32, %c0_33] : memref<4x1x256xf32, #tpu.memory_space<vmem>>, vector<1x1x256xf32>
    %54 = vector.shape_cast %53 : vector<1x1x256xf32> to vector<1x256xf32>
    %55 = vector.broadcast %54 : vector<1x256xf32> to vector<8x256xf32>
    %56 = arith.addf %52, %55 : vector<8x256xf32>
    %c3 = arith.constant 3 : index
    %57 = memref.load %arg0[%c3] : memref<22xf32, #tpu.memory_space<smem>>
    %cst_34 = arith.constant 0.000000e+00 : f32
    %58 = vector.broadcast %cst_34 : f32 to vector<8x256xf32>
    %59 = arith.cmpf oge, %56, %58 : vector<8x256xf32>
    %60 = vector.broadcast %57 : f32 to vector<8x256xf32>
    %61 = arith.mulf %60, %56 : vector<8x256xf32>
    %62 = arith.select %59, %56, %61 : vector<8x256xi1>, vector<8x256xf32>
    %c2_35 = arith.constant 2 : index
    %c0_36 = arith.constant 0 : index
    %c0_37 = arith.constant 0 : index
    %63 = vector.load %arg9[%c2_35, %c0_36, %c0_37] : memref<4x256x256xbf16, #tpu.memory_space<vmem>>, vector<1x256x256xbf16>
    %64 = vector.shape_cast %63 : vector<1x256x256xbf16> to vector<256x256xbf16>
    %65 = arith.truncf %62 : vector<8x256xf32> to vector<8x256xbf16>
    %cst_38 = arith.constant dense<0.000000e+00> : vector<8x256xf32>
    %66 = tpu.matmul %65, %64, %cst_38 {dimension_numbers = #tpu.dot_dimension_numbers<[1], [0], [0], [1], [0, 0, 1, 1], [], []>} : vector<8x256xbf16>, vector<256x256xbf16>, vector<8x256xf32> -> vector<8x256xf32>
    %c2_39 = arith.constant 2 : index
    %c0_40 = arith.constant 0 : index
    %c0_41 = arith.constant 0 : index
    %67 = vector.load %arg10[%c2_39, %c0_40, %c0_41] : memref<4x1x256xf32, #tpu.memory_space<vmem>>, vector<1x1x256xf32>
    %68 = vector.shape_cast %67 : vector<1x1x256xf32> to vector<1x256xf32>
    %69 = vector.broadcast %68 : vector<1x256xf32> to vector<8x256xf32>
    %70 = arith.addf %66, %69 : vector<8x256xf32>
    %c4 = arith.constant 4 : index
    %71 = memref.load %arg0[%c4] : memref<22xf32, #tpu.memory_space<smem>>
    %cst_42 = arith.constant 0.000000e+00 : f32
    %72 = vector.broadcast %cst_42 : f32 to vector<8x256xf32>
    %73 = arith.cmpf oge, %70, %72 : vector<8x256xf32>
    %74 = vector.broadcast %71 : f32 to vector<8x256xf32>
    %75 = arith.mulf %74, %70 : vector<8x256xf32>
    %76 = arith.select %73, %70, %75 : vector<8x256xi1>, vector<8x256xf32>
    %c3_43 = arith.constant 3 : index
    %c0_44 = arith.constant 0 : index
    %c0_45 = arith.constant 0 : index
    %77 = vector.load %arg9[%c3_43, %c0_44, %c0_45] : memref<4x256x256xbf16, #tpu.memory_space<vmem>>, vector<1x256x256xbf16>
    %78 = vector.shape_cast %77 : vector<1x256x256xbf16> to vector<256x256xbf16>
    %79 = arith.truncf %76 : vector<8x256xf32> to vector<8x256xbf16>
    %cst_46 = arith.constant dense<0.000000e+00> : vector<8x256xf32>
    %80 = tpu.matmul %79, %78, %cst_46 {dimension_numbers = #tpu.dot_dimension_numbers<[1], [0], [0], [1], [0, 0, 1, 1], [], []>} : vector<8x256xbf16>, vector<256x256xbf16>, vector<8x256xf32> -> vector<8x256xf32>
    %c3_47 = arith.constant 3 : index
    %c0_48 = arith.constant 0 : index
    %c0_49 = arith.constant 0 : index
    %81 = vector.load %arg10[%c3_47, %c0_48, %c0_49] : memref<4x1x256xf32, #tpu.memory_space<vmem>>, vector<1x1x256xf32>
    %82 = vector.shape_cast %81 : vector<1x1x256xf32> to vector<1x256xf32>
    %83 = vector.broadcast %82 : vector<1x256xf32> to vector<8x256xf32>
    %84 = arith.addf %80, %83 : vector<8x256xf32>
    %cst_50 = arith.constant 0.000000e+00 : f32
    %85 = vector.broadcast %cst_50 : f32 to vector<8x256xf32>
    %86 = arith.maximumf %84, %85 : vector<8x256xf32>
    %cst_51 = arith.constant 0.000000e+00 : f32
    %87 = vector.broadcast %cst_51 : f32 to vector<8x256xf32>
    %88 = arith.minimumf %84, %87 : vector<8x256xf32>
    %89 = tpu.concatenate %86, %88 in 0 : vector<8x256xf32>, vector<8x256xf32> -> vector<16x256xf32>
    %c0_52 = arith.constant 0 : index
    %c0_53 = arith.constant 0 : index
    %90 = vector.load %arg11[%c0_52, %c0_53] : memref<256x1536xbf16, #tpu.memory_space<vmem>>, vector<256x1536xbf16>
    %91 = arith.truncf %89 : vector<16x256xf32> to vector<16x256xbf16>
    %cst_54 = arith.constant dense<0.000000e+00> : vector<16x1536xf32>
    %92 = tpu.matmul %91, %90, %cst_54 {dimension_numbers = #tpu.dot_dimension_numbers<[1], [0], [0], [1], [0, 0, 1, 1], [], []>} : vector<16x256xbf16>, vector<256x1536xbf16>, vector<16x1536xf32> -> vector<16x1536xf32>
    %93 = vector.extract_strided_slice %92 {offsets = [0, 0], sizes = [8, 1536], strides = [1, 1]} : vector<16x1536xf32> to vector<8x1536xf32>
    %c0_55 = arith.constant 0 : index
    %c0_56 = arith.constant 0 : index
    %94 = vector.load %arg13[%c0_55, %c0_56] : memref<1x1536xf32, #tpu.memory_space<vmem>>, vector<1x1536xf32>
    %95 = vector.extract_strided_slice %92 {offsets = [8, 0], sizes = [8, 1536], strides = [1, 1]} : vector<16x1536xf32> to vector<8x1536xf32>
    %96 = vector.broadcast %94 : vector<1x1536xf32> to vector<8x1536xf32>
    %97 = arith.mulf %96, %95 : vector<8x1536xf32>
    %98 = arith.addf %93, %97 : vector<8x1536xf32>
    %c0_57 = arith.constant 0 : index
    %c0_58 = arith.constant 0 : index
    %99 = vector.load %arg12[%c0_57, %c0_58] : memref<1x1536xf32, #tpu.memory_space<vmem>>, vector<1x1536xf32>
    %100 = vector.broadcast %99 : vector<1x1536xf32> to vector<8x1536xf32>
    %101 = arith.addf %98, %100 : vector<8x1536xf32>
    %c0_59 = arith.constant 0 : index
    %c0_60 = arith.constant 0 : index
    %102 = vector.load %arg3[%c0_59, %c0_60] : memref<8x128xf32, #tpu.memory_space<vmem>>, vector<8x128xf32>
    %c0_61 = arith.constant 0 : index
    %c0_62 = arith.constant 0 : index
    %103 = vector.load %arg17[%c0_61, %c0_62] : memref<1x128xf32, #tpu.memory_space<vmem>>, vector<1x128xf32>
    %104 = vector.broadcast %103 : vector<1x128xf32> to vector<8x128xf32>
    %105 = arith.addf %102, %104 : vector<8x128xf32>
    %106 = vector.extract_strided_slice %101 {offsets = [0, 0], sizes = [8, 256], strides = [1, 1]} : vector<8x1536xf32> to vector<8x256xf32>
    %c5 = arith.constant 5 : index
    %107 = memref.load %arg0[%c5] : memref<22xf32, #tpu.memory_space<smem>>
    %cst_63 = arith.constant 0.000000e+00 : f32
    %108 = vector.broadcast %cst_63 : f32 to vector<8x256xf32>
    %109 = arith.cmpf oge, %106, %108 : vector<8x256xf32>
    %110 = vector.broadcast %107 : f32 to vector<8x256xf32>
    %111 = arith.mulf %110, %106 : vector<8x256xf32>
    %112 = arith.select %109, %106, %111 : vector<8x256xi1>, vector<8x256xf32>
    %c0_64 = arith.constant 0 : index
    %c0_65 = arith.constant 0 : index
    %c0_66 = arith.constant 0 : index
    %113 = vector.load %arg14[%c0_64, %c0_65, %c0_66] : memref<11x256x256xbf16, #tpu.memory_space<vmem>>, vector<1x256x256xbf16>
    %114 = vector.shape_cast %113 : vector<1x256x256xbf16> to vector<256x256xbf16>
    %115 = arith.truncf %112 : vector<8x256xf32> to vector<8x256xbf16>
    %cst_67 = arith.constant dense<0.000000e+00> : vector<8x256xf32>
    %116 = tpu.matmul %115, %114, %cst_67 {dimension_numbers = #tpu.dot_dimension_numbers<[1], [0], [0], [1], [0, 0, 1, 1], [], []>} : vector<8x256xbf16>, vector<256x256xbf16>, vector<8x256xf32> -> vector<8x256xf32>
    %c0_68 = arith.constant 0 : index
    %c0_69 = arith.constant 0 : index
    %c0_70 = arith.constant 0 : index
    %117 = vector.load %arg15[%c0_68, %c0_69, %c0_70] : memref<11x1x256xf32, #tpu.memory_space<vmem>>, vector<1x1x256xf32>
    %118 = vector.shape_cast %117 : vector<1x1x256xf32> to vector<1x256xf32>
    %119 = vector.broadcast %118 : vector<1x256xf32> to vector<8x256xf32>
    %120 = arith.addf %116, %119 : vector<8x256xf32>
    %c6 = arith.constant 6 : index
    %121 = memref.load %arg0[%c6] : memref<22xf32, #tpu.memory_space<smem>>
    %cst_71 = arith.constant 0.000000e+00 : f32
    %122 = vector.broadcast %cst_71 : f32 to vector<8x256xf32>
    %123 = arith.cmpf oge, %120, %122 : vector<8x256xf32>
    %124 = vector.broadcast %121 : f32 to vector<8x256xf32>
    %125 = arith.mulf %124, %120 : vector<8x256xf32>
    %126 = arith.select %123, %120, %125 : vector<8x256xi1>, vector<8x256xf32>
    %c1_72 = arith.constant 1 : index
    %c0_73 = arith.constant 0 : index
    %c0_74 = arith.constant 0 : index
    %127 = vector.load %arg14[%c1_72, %c0_73, %c0_74] : memref<11x256x256xbf16, #tpu.memory_space<vmem>>, vector<1x256x256xbf16>
    %128 = vector.shape_cast %127 : vector<1x256x256xbf16> to vector<256x256xbf16>
    %129 = arith.truncf %126 : vector<8x256xf32> to vector<8x256xbf16>
    %cst_75 = arith.constant dense<0.000000e+00> : vector<8x256xf32>
    %130 = tpu.matmul %129, %128, %cst_75 {dimension_numbers = #tpu.dot_dimension_numbers<[1], [0], [0], [1], [0, 0, 1, 1], [], []>} : vector<8x256xbf16>, vector<256x256xbf16>, vector<8x256xf32> -> vector<8x256xf32>
    %c1_76 = arith.constant 1 : index
    %c0_77 = arith.constant 0 : index
    %c0_78 = arith.constant 0 : index
    %131 = vector.load %arg15[%c1_76, %c0_77, %c0_78] : memref<11x1x256xf32, #tpu.memory_space<vmem>>, vector<1x1x256xf32>
    %132 = vector.shape_cast %131 : vector<1x1x256xf32> to vector<1x256xf32>
    %133 = vector.broadcast %132 : vector<1x256xf32> to vector<8x256xf32>
    %134 = arith.addf %130, %133 : vector<8x256xf32>
    %c16 = arith.constant 16 : index
    %135 = memref.load %arg0[%c16] : memref<22xf32, #tpu.memory_space<smem>>
    %cst_79 = arith.constant 0.000000e+00 : f32
    %136 = vector.broadcast %cst_79 : f32 to vector<8x256xf32>
    %137 = arith.cmpf oge, %134, %136 : vector<8x256xf32>
    %138 = vector.broadcast %135 : f32 to vector<8x256xf32>
    %139 = arith.mulf %138, %134 : vector<8x256xf32>
    %140 = arith.select %137, %134, %139 : vector<8x256xi1>, vector<8x256xf32>
    %c0_80 = arith.constant 0 : index
    %c0_81 = arith.constant 0 : index
    %c0_82 = arith.constant 0 : index
    %141 = vector.load %arg16[%c0_80, %c0_81, %c0_82] : memref<6x256x128xbf16, #tpu.memory_space<vmem>>, vector<1x256x128xbf16>
    %142 = vector.shape_cast %141 : vector<1x256x128xbf16> to vector<256x128xbf16>
    %143 = arith.truncf %140 : vector<8x256xf32> to vector<8x256xbf16>
    %cst_83 = arith.constant dense<0.000000e+00> : vector<8x128xf32>
    %144 = tpu.matmul %143, %142, %cst_83 {dimension_numbers = #tpu.dot_dimension_numbers<[1], [0], [0], [1], [0, 0, 1, 1], [], []>} : vector<8x256xbf16>, vector<256x128xbf16>, vector<8x128xf32> -> vector<8x128xf32>
    %145 = arith.addf %105, %144 : vector<8x128xf32>
    %146 = vector.extract_strided_slice %101 {offsets = [0, 256], sizes = [8, 256], strides = [1, 1]} : vector<8x1536xf32> to vector<8x256xf32>
    %c7 = arith.constant 7 : index
    %147 = memref.load %arg0[%c7] : memref<22xf32, #tpu.memory_space<smem>>
    %cst_84 = arith.constant 0.000000e+00 : f32
    %148 = vector.broadcast %cst_84 : f32 to vector<8x256xf32>
    %149 = arith.cmpf oge, %146, %148 : vector<8x256xf32>
    %150 = vector.broadcast %147 : f32 to vector<8x256xf32>
    %151 = arith.mulf %150, %146 : vector<8x256xf32>
    %152 = arith.select %149, %146, %151 : vector<8x256xi1>, vector<8x256xf32>
    %c2_85 = arith.constant 2 : index
    %c0_86 = arith.constant 0 : index
    %c0_87 = arith.constant 0 : index
    %153 = vector.load %arg14[%c2_85, %c0_86, %c0_87] : memref<11x256x256xbf16, #tpu.memory_space<vmem>>, vector<1x256x256xbf16>
    %154 = vector.shape_cast %153 : vector<1x256x256xbf16> to vector<256x256xbf16>
    %155 = arith.truncf %152 : vector<8x256xf32> to vector<8x256xbf16>
    %cst_88 = arith.constant dense<0.000000e+00> : vector<8x256xf32>
    %156 = tpu.matmul %155, %154, %cst_88 {dimension_numbers = #tpu.dot_dimension_numbers<[1], [0], [0], [1], [0, 0, 1, 1], [], []>} : vector<8x256xbf16>, vector<256x256xbf16>, vector<8x256xf32> -> vector<8x256xf32>
    %c2_89 = arith.constant 2 : index
    %c0_90 = arith.constant 0 : index
    %c0_91 = arith.constant 0 : index
    %157 = vector.load %arg15[%c2_89, %c0_90, %c0_91] : memref<11x1x256xf32, #tpu.memory_space<vmem>>, vector<1x1x256xf32>
    %158 = vector.shape_cast %157 : vector<1x1x256xf32> to vector<1x256xf32>
    %159 = vector.broadcast %158 : vector<1x256xf32> to vector<8x256xf32>
    %160 = arith.addf %156, %159 : vector<8x256xf32>
    %c8 = arith.constant 8 : index
    %161 = memref.load %arg0[%c8] : memref<22xf32, #tpu.memory_space<smem>>
    %cst_92 = arith.constant 0.000000e+00 : f32
    %162 = vector.broadcast %cst_92 : f32 to vector<8x256xf32>
    %163 = arith.cmpf oge, %160, %162 : vector<8x256xf32>
    %164 = vector.broadcast %161 : f32 to vector<8x256xf32>
    %165 = arith.mulf %164, %160 : vector<8x256xf32>
    %166 = arith.select %163, %160, %165 : vector<8x256xi1>, vector<8x256xf32>
    %c3_93 = arith.constant 3 : index
    %c0_94 = arith.constant 0 : index
    %c0_95 = arith.constant 0 : index
    %167 = vector.load %arg14[%c3_93, %c0_94, %c0_95] : memref<11x256x256xbf16, #tpu.memory_space<vmem>>, vector<1x256x256xbf16>
    %168 = vector.shape_cast %167 : vector<1x256x256xbf16> to vector<256x256xbf16>
    %169 = arith.truncf %166 : vector<8x256xf32> to vector<8x256xbf16>
    %cst_96 = arith.constant dense<0.000000e+00> : vector<8x256xf32>
    %170 = tpu.matmul %169, %168, %cst_96 {dimension_numbers = #tpu.dot_dimension_numbers<[1], [0], [0], [1], [0, 0, 1, 1], [], []>} : vector<8x256xbf16>, vector<256x256xbf16>, vector<8x256xf32> -> vector<8x256xf32>
    %c3_97 = arith.constant 3 : index
    %c0_98 = arith.constant 0 : index
    %c0_99 = arith.constant 0 : index
    %171 = vector.load %arg15[%c3_97, %c0_98, %c0_99] : memref<11x1x256xf32, #tpu.memory_space<vmem>>, vector<1x1x256xf32>
    %172 = vector.shape_cast %171 : vector<1x1x256xf32> to vector<1x256xf32>
    %173 = vector.broadcast %172 : vector<1x256xf32> to vector<8x256xf32>
    %174 = arith.addf %170, %173 : vector<8x256xf32>
    %c17 = arith.constant 17 : index
    %175 = memref.load %arg0[%c17] : memref<22xf32, #tpu.memory_space<smem>>
    %cst_100 = arith.constant 0.000000e+00 : f32
    %176 = vector.broadcast %cst_100 : f32 to vector<8x256xf32>
    %177 = arith.cmpf oge, %174, %176 : vector<8x256xf32>
    %178 = vector.broadcast %175 : f32 to vector<8x256xf32>
    %179 = arith.mulf %178, %174 : vector<8x256xf32>
    %180 = arith.select %177, %174, %179 : vector<8x256xi1>, vector<8x256xf32>
    %c1_101 = arith.constant 1 : index
    %c0_102 = arith.constant 0 : index
    %c0_103 = arith.constant 0 : index
    %181 = vector.load %arg16[%c1_101, %c0_102, %c0_103] : memref<6x256x128xbf16, #tpu.memory_space<vmem>>, vector<1x256x128xbf16>
    %182 = vector.shape_cast %181 : vector<1x256x128xbf16> to vector<256x128xbf16>
    %183 = arith.truncf %180 : vector<8x256xf32> to vector<8x256xbf16>
    %cst_104 = arith.constant dense<0.000000e+00> : vector<8x128xf32>
    %184 = tpu.matmul %183, %182, %cst_104 {dimension_numbers = #tpu.dot_dimension_numbers<[1], [0], [0], [1], [0, 0, 1, 1], [], []>} : vector<8x256xbf16>, vector<256x128xbf16>, vector<8x128xf32> -> vector<8x128xf32>
    %185 = arith.addf %145, %184 : vector<8x128xf32>
    %186 = vector.extract_strided_slice %101 {offsets = [0, 512], sizes = [8, 256], strides = [1, 1]} : vector<8x1536xf32> to vector<8x256xf32>
    %c9 = arith.constant 9 : index
    %187 = memref.load %arg0[%c9] : memref<22xf32, #tpu.memory_space<smem>>
    %cst_105 = arith.constant 0.000000e+00 : f32
    %188 = vector.broadcast %cst_105 : f32 to vector<8x256xf32>
    %189 = arith.cmpf oge, %186, %188 : vector<8x256xf32>
    %190 = vector.broadcast %187 : f32 to vector<8x256xf32>
    %191 = arith.mulf %190, %186 : vector<8x256xf32>
    %192 = arith.select %189, %186, %191 : vector<8x256xi1>, vector<8x256xf32>
    %c4_106 = arith.constant 4 : index
    %c0_107 = arith.constant 0 : index
    %c0_108 = arith.constant 0 : index
    %193 = vector.load %arg14[%c4_106, %c0_107, %c0_108] : memref<11x256x256xbf16, #tpu.memory_space<vmem>>, vector<1x256x256xbf16>
    %194 = vector.shape_cast %193 : vector<1x256x256xbf16> to vector<256x256xbf16>
    %195 = arith.truncf %192 : vector<8x256xf32> to vector<8x256xbf16>
    %cst_109 = arith.constant dense<0.000000e+00> : vector<8x256xf32>
    %196 = tpu.matmul %195, %194, %cst_109 {dimension_numbers = #tpu.dot_dimension_numbers<[1], [0], [0], [1], [0, 0, 1, 1], [], []>} : vector<8x256xbf16>, vector<256x256xbf16>, vector<8x256xf32> -> vector<8x256xf32>
    %c4_110 = arith.constant 4 : index
    %c0_111 = arith.constant 0 : index
    %c0_112 = arith.constant 0 : index
    %197 = vector.load %arg15[%c4_110, %c0_111, %c0_112] : memref<11x1x256xf32, #tpu.memory_space<vmem>>, vector<1x1x256xf32>
    %198 = vector.shape_cast %197 : vector<1x1x256xf32> to vector<1x256xf32>
    %199 = vector.broadcast %198 : vector<1x256xf32> to vector<8x256xf32>
    %200 = arith.addf %196, %199 : vector<8x256xf32>
    %c10 = arith.constant 10 : index
    %201 = memref.load %arg0[%c10] : memref<22xf32, #tpu.memory_space<smem>>
    %cst_113 = arith.constant 0.000000e+00 : f32
    %202 = vector.broadcast %cst_113 : f32 to vector<8x256xf32>
    %203 = arith.cmpf oge, %200, %202 : vector<8x256xf32>
    %204 = vector.broadcast %201 : f32 to vector<8x256xf32>
    %205 = arith.mulf %204, %200 : vector<8x256xf32>
    %206 = arith.select %203, %200, %205 : vector<8x256xi1>, vector<8x256xf32>
    %c5_114 = arith.constant 5 : index
    %c0_115 = arith.constant 0 : index
    %c0_116 = arith.constant 0 : index
    %207 = vector.load %arg14[%c5_114, %c0_115, %c0_116] : memref<11x256x256xbf16, #tpu.memory_space<vmem>>, vector<1x256x256xbf16>
    %208 = vector.shape_cast %207 : vector<1x256x256xbf16> to vector<256x256xbf16>
    %209 = arith.truncf %206 : vector<8x256xf32> to vector<8x256xbf16>
    %cst_117 = arith.constant dense<0.000000e+00> : vector<8x256xf32>
    %210 = tpu.matmul %209, %208, %cst_117 {dimension_numbers = #tpu.dot_dimension_numbers<[1], [0], [0], [1], [0, 0, 1, 1], [], []>} : vector<8x256xbf16>, vector<256x256xbf16>, vector<8x256xf32> -> vector<8x256xf32>
    %c5_118 = arith.constant 5 : index
    %c0_119 = arith.constant 0 : index
    %c0_120 = arith.constant 0 : index
    %211 = vector.load %arg15[%c5_118, %c0_119, %c0_120] : memref<11x1x256xf32, #tpu.memory_space<vmem>>, vector<1x1x256xf32>
    %212 = vector.shape_cast %211 : vector<1x1x256xf32> to vector<1x256xf32>
    %213 = vector.broadcast %212 : vector<1x256xf32> to vector<8x256xf32>
    %214 = arith.addf %210, %213 : vector<8x256xf32>
    %c18 = arith.constant 18 : index
    %215 = memref.load %arg0[%c18] : memref<22xf32, #tpu.memory_space<smem>>
    %cst_121 = arith.constant 0.000000e+00 : f32
    %216 = vector.broadcast %cst_121 : f32 to vector<8x256xf32>
    %217 = arith.cmpf oge, %214, %216 : vector<8x256xf32>
    %218 = vector.broadcast %215 : f32 to vector<8x256xf32>
    %219 = arith.mulf %218, %214 : vector<8x256xf32>
    %220 = arith.select %217, %214, %219 : vector<8x256xi1>, vector<8x256xf32>
    %c2_122 = arith.constant 2 : index
    %c0_123 = arith.constant 0 : index
    %c0_124 = arith.constant 0 : index
    %221 = vector.load %arg16[%c2_122, %c0_123, %c0_124] : memref<6x256x128xbf16, #tpu.memory_space<vmem>>, vector<1x256x128xbf16>
    %222 = vector.shape_cast %221 : vector<1x256x128xbf16> to vector<256x128xbf16>
    %223 = arith.truncf %220 : vector<8x256xf32> to vector<8x256xbf16>
    %cst_125 = arith.constant dense<0.000000e+00> : vector<8x128xf32>
    %224 = tpu.matmul %223, %222, %cst_125 {dimension_numbers = #tpu.dot_dimension_numbers<[1], [0], [0], [1], [0, 0, 1, 1], [], []>} : vector<8x256xbf16>, vector<256x128xbf16>, vector<8x128xf32> -> vector<8x128xf32>
    %225 = arith.addf %185, %224 : vector<8x128xf32>
    %226 = vector.extract_strided_slice %101 {offsets = [0, 768], sizes = [8, 256], strides = [1, 1]} : vector<8x1536xf32> to vector<8x256xf32>
    %c11 = arith.constant 11 : index
    %227 = memref.load %arg0[%c11] : memref<22xf32, #tpu.memory_space<smem>>
    %cst_126 = arith.constant 0.000000e+00 : f32
    %228 = vector.broadcast %cst_126 : f32 to vector<8x256xf32>
    %229 = arith.cmpf oge, %226, %228 : vector<8x256xf32>
    %230 = vector.broadcast %227 : f32 to vector<8x256xf32>
    %231 = arith.mulf %230, %226 : vector<8x256xf32>
    %232 = arith.select %229, %226, %231 : vector<8x256xi1>, vector<8x256xf32>
    %c6_127 = arith.constant 6 : index
    %c0_128 = arith.constant 0 : index
    %c0_129 = arith.constant 0 : index
    %233 = vector.load %arg14[%c6_127, %c0_128, %c0_129] : memref<11x256x256xbf16, #tpu.memory_space<vmem>>, vector<1x256x256xbf16>
    %234 = vector.shape_cast %233 : vector<1x256x256xbf16> to vector<256x256xbf16>
    %235 = arith.truncf %232 : vector<8x256xf32> to vector<8x256xbf16>
    %cst_130 = arith.constant dense<0.000000e+00> : vector<8x256xf32>
    %236 = tpu.matmul %235, %234, %cst_130 {dimension_numbers = #tpu.dot_dimension_numbers<[1], [0], [0], [1], [0, 0, 1, 1], [], []>} : vector<8x256xbf16>, vector<256x256xbf16>, vector<8x256xf32> -> vector<8x256xf32>
    %c6_131 = arith.constant 6 : index
    %c0_132 = arith.constant 0 : index
    %c0_133 = arith.constant 0 : index
    %237 = vector.load %arg15[%c6_131, %c0_132, %c0_133] : memref<11x1x256xf32, #tpu.memory_space<vmem>>, vector<1x1x256xf32>
    %238 = vector.shape_cast %237 : vector<1x1x256xf32> to vector<1x256xf32>
    %239 = vector.broadcast %238 : vector<1x256xf32> to vector<8x256xf32>
    %240 = arith.addf %236, %239 : vector<8x256xf32>
    %c12 = arith.constant 12 : index
    %241 = memref.load %arg0[%c12] : memref<22xf32, #tpu.memory_space<smem>>
    %cst_134 = arith.constant 0.000000e+00 : f32
    %242 = vector.broadcast %cst_134 : f32 to vector<8x256xf32>
    %243 = arith.cmpf oge, %240, %242 : vector<8x256xf32>
    %244 = vector.broadcast %241 : f32 to vector<8x256xf32>
    %245 = arith.mulf %244, %240 : vector<8x256xf32>
    %246 = arith.select %243, %240, %245 : vector<8x256xi1>, vector<8x256xf32>
    %c7_135 = arith.constant 7 : index
    %c0_136 = arith.constant 0 : index
    %c0_137 = arith.constant 0 : index
    %247 = vector.load %arg14[%c7_135, %c0_136, %c0_137] : memref<11x256x256xbf16, #tpu.memory_space<vmem>>, vector<1x256x256xbf16>
    %248 = vector.shape_cast %247 : vector<1x256x256xbf16> to vector<256x256xbf16>
    %249 = arith.truncf %246 : vector<8x256xf32> to vector<8x256xbf16>
    %cst_138 = arith.constant dense<0.000000e+00> : vector<8x256xf32>
    %250 = tpu.matmul %249, %248, %cst_138 {dimension_numbers = #tpu.dot_dimension_numbers<[1], [0], [0], [1], [0, 0, 1, 1], [], []>} : vector<8x256xbf16>, vector<256x256xbf16>, vector<8x256xf32> -> vector<8x256xf32>
    %c7_139 = arith.constant 7 : index
    %c0_140 = arith.constant 0 : index
    %c0_141 = arith.constant 0 : index
    %251 = vector.load %arg15[%c7_139, %c0_140, %c0_141] : memref<11x1x256xf32, #tpu.memory_space<vmem>>, vector<1x1x256xf32>
    %252 = vector.shape_cast %251 : vector<1x1x256xf32> to vector<1x256xf32>
    %253 = vector.broadcast %252 : vector<1x256xf32> to vector<8x256xf32>
    %254 = arith.addf %250, %253 : vector<8x256xf32>
    %c19 = arith.constant 19 : index
    %255 = memref.load %arg0[%c19] : memref<22xf32, #tpu.memory_space<smem>>
    %cst_142 = arith.constant 0.000000e+00 : f32
    %256 = vector.broadcast %cst_142 : f32 to vector<8x256xf32>
    %257 = arith.cmpf oge, %254, %256 : vector<8x256xf32>
    %258 = vector.broadcast %255 : f32 to vector<8x256xf32>
    %259 = arith.mulf %258, %254 : vector<8x256xf32>
    %260 = arith.select %257, %254, %259 : vector<8x256xi1>, vector<8x256xf32>
    %c3_143 = arith.constant 3 : index
    %c0_144 = arith.constant 0 : index
    %c0_145 = arith.constant 0 : index
    %261 = vector.load %arg16[%c3_143, %c0_144, %c0_145] : memref<6x256x128xbf16, #tpu.memory_space<vmem>>, vector<1x256x128xbf16>
    %262 = vector.shape_cast %261 : vector<1x256x128xbf16> to vector<256x128xbf16>
    %263 = arith.truncf %260 : vector<8x256xf32> to vector<8x256xbf16>
    %cst_146 = arith.constant dense<0.000000e+00> : vector<8x128xf32>
    %264 = tpu.matmul %263, %262, %cst_146 {dimension_numbers = #tpu.dot_dimension_numbers<[1], [0], [0], [1], [0, 0, 1, 1], [], []>} : vector<8x256xbf16>, vector<256x128xbf16>, vector<8x128xf32> -> vector<8x128xf32>
    %265 = arith.addf %225, %264 : vector<8x128xf32>
    %266 = vector.extract_strided_slice %101 {offsets = [0, 1024], sizes = [8, 256], strides = [1, 1]} : vector<8x1536xf32> to vector<8x256xf32>
    %c13 = arith.constant 13 : index
    %267 = memref.load %arg0[%c13] : memref<22xf32, #tpu.memory_space<smem>>
    %cst_147 = arith.constant 0.000000e+00 : f32
    %268 = vector.broadcast %cst_147 : f32 to vector<8x256xf32>
    %269 = arith.cmpf oge, %266, %268 : vector<8x256xf32>
    %270 = vector.broadcast %267 : f32 to vector<8x256xf32>
    %271 = arith.mulf %270, %266 : vector<8x256xf32>
    %272 = arith.select %269, %266, %271 : vector<8x256xi1>, vector<8x256xf32>
    %c8_148 = arith.constant 8 : index
    %c0_149 = arith.constant 0 : index
    %c0_150 = arith.constant 0 : index
    %273 = vector.load %arg14[%c8_148, %c0_149, %c0_150] : memref<11x256x256xbf16, #tpu.memory_space<vmem>>, vector<1x256x256xbf16>
    %274 = vector.shape_cast %273 : vector<1x256x256xbf16> to vector<256x256xbf16>
    %275 = arith.truncf %272 : vector<8x256xf32> to vector<8x256xbf16>
    %cst_151 = arith.constant dense<0.000000e+00> : vector<8x256xf32>
    %276 = tpu.matmul %275, %274, %cst_151 {dimension_numbers = #tpu.dot_dimension_numbers<[1], [0], [0], [1], [0, 0, 1, 1], [], []>} : vector<8x256xbf16>, vector<256x256xbf16>, vector<8x256xf32> -> vector<8x256xf32>
    %c8_152 = arith.constant 8 : index
    %c0_153 = arith.constant 0 : index
    %c0_154 = arith.constant 0 : index
    %277 = vector.load %arg15[%c8_152, %c0_153, %c0_154] : memref<11x1x256xf32, #tpu.memory_space<vmem>>, vector<1x1x256xf32>
    %278 = vector.shape_cast %277 : vector<1x1x256xf32> to vector<1x256xf32>
    %279 = vector.broadcast %278 : vector<1x256xf32> to vector<8x256xf32>
    %280 = arith.addf %276, %279 : vector<8x256xf32>
    %c14 = arith.constant 14 : index
    %281 = memref.load %arg0[%c14] : memref<22xf32, #tpu.memory_space<smem>>
    %cst_155 = arith.constant 0.000000e+00 : f32
    %282 = vector.broadcast %cst_155 : f32 to vector<8x256xf32>
    %283 = arith.cmpf oge, %280, %282 : vector<8x256xf32>
    %284 = vector.broadcast %281 : f32 to vector<8x256xf32>
    %285 = arith.mulf %284, %280 : vector<8x256xf32>
    %286 = arith.select %283, %280, %285 : vector<8x256xi1>, vector<8x256xf32>
    %c9_156 = arith.constant 9 : index
    %c0_157 = arith.constant 0 : index
    %c0_158 = arith.constant 0 : index
    %287 = vector.load %arg14[%c9_156, %c0_157, %c0_158] : memref<11x256x256xbf16, #tpu.memory_space<vmem>>, vector<1x256x256xbf16>
    %288 = vector.shape_cast %287 : vector<1x256x256xbf16> to vector<256x256xbf16>
    %289 = arith.truncf %286 : vector<8x256xf32> to vector<8x256xbf16>
    %cst_159 = arith.constant dense<0.000000e+00> : vector<8x256xf32>
    %290 = tpu.matmul %289, %288, %cst_159 {dimension_numbers = #tpu.dot_dimension_numbers<[1], [0], [0], [1], [0, 0, 1, 1], [], []>} : vector<8x256xbf16>, vector<256x256xbf16>, vector<8x256xf32> -> vector<8x256xf32>
    %c9_160 = arith.constant 9 : index
    %c0_161 = arith.constant 0 : index
    %c0_162 = arith.constant 0 : index
    %291 = vector.load %arg15[%c9_160, %c0_161, %c0_162] : memref<11x1x256xf32, #tpu.memory_space<vmem>>, vector<1x1x256xf32>
    %292 = vector.shape_cast %291 : vector<1x1x256xf32> to vector<1x256xf32>
    %293 = vector.broadcast %292 : vector<1x256xf32> to vector<8x256xf32>
    %294 = arith.addf %290, %293 : vector<8x256xf32>
    %c20 = arith.constant 20 : index
    %295 = memref.load %arg0[%c20] : memref<22xf32, #tpu.memory_space<smem>>
    %cst_163 = arith.constant 0.000000e+00 : f32
    %296 = vector.broadcast %cst_163 : f32 to vector<8x256xf32>
    %297 = arith.cmpf oge, %294, %296 : vector<8x256xf32>
    %298 = vector.broadcast %295 : f32 to vector<8x256xf32>
    %299 = arith.mulf %298, %294 : vector<8x256xf32>
    %300 = arith.select %297, %294, %299 : vector<8x256xi1>, vector<8x256xf32>
    %c4_164 = arith.constant 4 : index
    %c0_165 = arith.constant 0 : index
    %c0_166 = arith.constant 0 : index
    %301 = vector.load %arg16[%c4_164, %c0_165, %c0_166] : memref<6x256x128xbf16, #tpu.memory_space<vmem>>, vector<1x256x128xbf16>
    %302 = vector.shape_cast %301 : vector<1x256x128xbf16> to vector<256x128xbf16>
    %303 = arith.truncf %300 : vector<8x256xf32> to vector<8x256xbf16>
    %cst_167 = arith.constant dense<0.000000e+00> : vector<8x128xf32>
    %304 = tpu.matmul %303, %302, %cst_167 {dimension_numbers = #tpu.dot_dimension_numbers<[1], [0], [0], [1], [0, 0, 1, 1], [], []>} : vector<8x256xbf16>, vector<256x128xbf16>, vector<8x128xf32> -> vector<8x128xf32>
    %305 = arith.addf %265, %304 : vector<8x128xf32>
    %306 = vector.extract_strided_slice %101 {offsets = [0, 1280], sizes = [8, 256], strides = [1, 1]} : vector<8x1536xf32> to vector<8x256xf32>
    %c15 = arith.constant 15 : index
    %307 = memref.load %arg0[%c15] : memref<22xf32, #tpu.memory_space<smem>>
    %cst_168 = arith.constant 0.000000e+00 : f32
    %308 = vector.broadcast %cst_168 : f32 to vector<8x256xf32>
    %309 = arith.cmpf oge, %306, %308 : vector<8x256xf32>
    %310 = vector.broadcast %307 : f32 to vector<8x256xf32>
    %311 = arith.mulf %310, %306 : vector<8x256xf32>
    %312 = arith.select %309, %306, %311 : vector<8x256xi1>, vector<8x256xf32>
    %c10_169 = arith.constant 10 : index
    %c0_170 = arith.constant 0 : index
    %c0_171 = arith.constant 0 : index
    %313 = vector.load %arg14[%c10_169, %c0_170, %c0_171] : memref<11x256x256xbf16, #tpu.memory_space<vmem>>, vector<1x256x256xbf16>
    %314 = vector.shape_cast %313 : vector<1x256x256xbf16> to vector<256x256xbf16>
    %315 = arith.truncf %312 : vector<8x256xf32> to vector<8x256xbf16>
    %cst_172 = arith.constant dense<0.000000e+00> : vector<8x256xf32>
    %316 = tpu.matmul %315, %314, %cst_172 {dimension_numbers = #tpu.dot_dimension_numbers<[1], [0], [0], [1], [0, 0, 1, 1], [], []>} : vector<8x256xbf16>, vector<256x256xbf16>, vector<8x256xf32> -> vector<8x256xf32>
    %c10_173 = arith.constant 10 : index
    %c0_174 = arith.constant 0 : index
    %c0_175 = arith.constant 0 : index
    %317 = vector.load %arg15[%c10_173, %c0_174, %c0_175] : memref<11x1x256xf32, #tpu.memory_space<vmem>>, vector<1x1x256xf32>
    %318 = vector.shape_cast %317 : vector<1x1x256xf32> to vector<1x256xf32>
    %319 = vector.broadcast %318 : vector<1x256xf32> to vector<8x256xf32>
    %320 = arith.addf %316, %319 : vector<8x256xf32>
    %c21 = arith.constant 21 : index
    %321 = memref.load %arg0[%c21] : memref<22xf32, #tpu.memory_space<smem>>
    %cst_176 = arith.constant 0.000000e+00 : f32
    %322 = vector.broadcast %cst_176 : f32 to vector<8x256xf32>
    %323 = arith.cmpf oge, %320, %322 : vector<8x256xf32>
    %324 = vector.broadcast %321 : f32 to vector<8x256xf32>
    %325 = arith.mulf %324, %320 : vector<8x256xf32>
    %326 = arith.select %323, %320, %325 : vector<8x256xi1>, vector<8x256xf32>
    %c5_177 = arith.constant 5 : index
    %c0_178 = arith.constant 0 : index
    %c0_179 = arith.constant 0 : index
    %327 = vector.load %arg16[%c5_177, %c0_178, %c0_179] : memref<6x256x128xbf16, #tpu.memory_space<vmem>>, vector<1x256x128xbf16>
    %328 = vector.shape_cast %327 : vector<1x256x128xbf16> to vector<256x128xbf16>
    %329 = arith.truncf %326 : vector<8x256xf32> to vector<8x256xbf16>
    %cst_180 = arith.constant dense<0.000000e+00> : vector<8x128xf32>
    %330 = tpu.matmul %329, %328, %cst_180 {dimension_numbers = #tpu.dot_dimension_numbers<[1], [0], [0], [1], [0, 0, 1, 1], [], []>} : vector<8x256xbf16>, vector<256x128xbf16>, vector<8x128xf32> -> vector<8x128xf32>
    %331 = arith.addf %305, %330 : vector<8x128xf32>
    %c0_181 = arith.constant 0 : index
    %c0_182 = arith.constant 0 : index
    %332 = vector.load %arg18[%c0_181, %c0_182] : memref<8x128xf32, #tpu.memory_space<vmem>>, vector<8x128xf32>
    tpu.vector_store %arg18[%c0_181, %c0_182], %331 {strides = array<i32>} : memref<8x128xf32, #tpu.memory_space<vmem>>, vector<8x128xf32>,
    return
  }
}

</mosaic_0001>

<bundles_post_ra>
// kernel: squeeze.2
= control target key start
LH: loop header
LB: loop body
LE: loop exit
PB: predicated region body
PF: predicated region fallthrough
CT: control target
= control target key end

     0   :  { %vm4_vm0 = vcmask 1047556   ;;  %s99_s14 = smov 42   ;;  %s100_s19 = smov 30   ;;  %vm6_vm1 = vcmask 48128   ;;  %vm16_vm2 = vcmask 392528   ;;  %vm26_vm3 = vcmask 343328   ;;  %s196_s0 = inlined_call_operand.vmem [shape: f32[8,1,8,6], index: 0, kind: input, shape index: {}]   ;;  %s197_s1 = inlined_call_operand.vmem [shape: f32[8,48], index: 1, kind: output, shape index: {}]  }
   0x1   :  { %v78_v0 = vld [vmem:[%s196_s0 + $0x7] ss:$8 sm:$0xf]   ;;  %v82_v3 = vld [vmem:[%s196_s0 + $0x5] ss:$8 sm:$0xf]  }
   0x2   :  { %v79_v1 = vld [vmem:[%s196_s0 + $0x7] ss:$8 sm:$0xf0]   ;;  %v83_v4 = vld [vmem:[%s196_s0 + $0x5] ss:$8 sm:$0xf0]  }
   0x3   :  { %v13_v2 = vsel %vm4_vm0, %v79_v1, %v78_v0  ;;  %v33_v5 = vsel %vm4_vm0, %v83_v4, %v82_v3  ;;  %v80_v6 = vld [vmem:[%s196_s0 + $0x6] ss:$8 sm:$0xf]   ;;  %v84_v9 = vld [vmem:[%s196_s0 + $0x4] ss:$8 sm:$0xf]  }
   0x4   :  { %14 = vrot.lane.b32.xlu0 %v13_v2, %s99_s14  ;;  %v81_v7 = vld [vmem:[%s196_s0 + $0x6] ss:$8 sm:$0xf0]   ;;  %34 = vrot.lane.b32.xlu1 %v33_v5, %s100_s19  ;;  %v85_v10 = vld [vmem:[%s196_s0 + $0x4] ss:$8 sm:$0xf0]  }
   0x5   :  { %v23_v8 = vsel %vm4_vm0, %v81_v7, %v80_v6  ;;  %v86_v11 = vld [vmem:[%s196_s0 + $0x3] ss:$8 sm:$0xf]   ;;  %v43_v12 = vsel %vm4_vm0, %v85_v10, %v84_v9  ;;  %s101_s28 = smov 36   ;;  %s102_s4 = smov 24   ;;  %vm36_vm4 = vcmask 294128  }
   0x6   :  { %v87_v13 = vld [vmem:[%s196_s0 + $0x3] ss:$8 sm:$0xf0]   ;;  %v88_v14 = vld [vmem:[%s196_s0 + $0x2] ss:$8 sm:$0xf]  }
   0x7   :  { %v89_v15 = vld [vmem:[%s196_s0 + $0x2] ss:$8 sm:$0xf0]   ;;  %v53_v16 = vsel %vm4_vm0, %v87_v13, %v86_v11  ;;  %v90_v17 = vld [vmem:[%s196_s0 + $0x1] ss:$8 sm:$0xf]  }
   0x8   :  { %24 = vrot.lane.b32.xlu0 %v23_v8, %s101_s28  ;;  %44 = vrot.lane.b32.xlu1 %v43_v12, %s102_s4  ;;  %v63_v18 = vsel %vm4_vm0, %v89_v15, %v88_v14  ;;  %v91_v19 = vld [vmem:[%s196_s0 + $0x1] ss:$8 sm:$0xf0]   ;;  %v2_v20 = vld [vmem:[%s196_s0] ss:$8 sm:$0xf]  }
   0x9   :  { %v3_v21 = vld [vmem:[%s196_s0] ss:$8 sm:$0xf0]   ;;  %s103_s0 = smov 18   ;;  %s104_s13 = smov 12   ;;  %v73_v23 = vsel %vm4_vm0, %v91_v19, %v90_v17  ;;  %vm46_vm5 = vcmask 244928  }
   0xa   :  { %v5_v22 = vsel %vm4_vm0, %v3_v21, %v2_v20  ;;  %s105_s16 = smov 6   ;;  %vm56_vm6 = vcmask 195728   ;;  %vm66_vm7 = vcmask 146528   ;;  %vm76_vm8 = vcmask 97328  }
   0xb   :  { %7 = vst.msk [vmem:[%s197_s1] sm:$0xff] %vm6_vm1, %v5_v22  }
   0xc   :  { %54 = vrot.lane.b32.xlu0 %v53_v16, %s103_s0  ;;  %64 = vrot.lane.b32.xlu1 %v63_v18, %s104_s13 }
  0x10   :  { %74 = vrot.lane.b32.xlu0 %v73_v23, %s105_s16 }
  0x76   :  { %v15_v24 = vpop.permute.xlu0 %14   ;;  %v35_v25 = vpop.permute.xlu1 %34  }
  0x77   :  { %17 = vst.msk [vmem:[%s197_s1] sm:$0xff] %vm16_vm2, %v15_v24  }
  0x7a   :  { %v25_v26 = vpop.permute.xlu0 %24   ;;  %v45_v27 = vpop.permute.xlu1 %44  }
  0x7b   :  { %27 = vst.msk [vmem:[%s197_s1] sm:$0xff] %vm26_vm3, %v25_v26  }
  0x7c   :  { %37 = vst.msk [vmem:[%s197_s1] sm:$0xff] %vm36_vm4, %v35_v25  }
  0x7d   :  { %47 = vst.msk [vmem:[%s197_s1] sm:$0xff] %vm46_vm5, %v45_v27  }
  0x7e   :  { %v55_v28 = vpop.permute.xlu0 %54   ;;  %v65_v29 = vpop.permute.xlu1 %64  }
  0x7f   :  { %57 = vst.msk [vmem:[%s197_s1] sm:$0xff] %vm56_vm6, %v55_v28  }
  0x80   :  { %67 = vst.msk [vmem:[%s197_s1] sm:$0xff] %vm66_vm7, %v65_v29  }
  0x82   :  { %v75_v30 = vpop.permute.xlu0 %74  }
  0x83   :  { %77 = vst.msk [vmem:[%s197_s1] sm:$0xff] %vm76_vm8, %v75_v30  }

// kernel: forward.1
= control target key start
LH: loop header
LB: loop body
LE: loop exit
PB: predicated region body
PF: predicated region fallthrough
CT: control target
= control target key end

     0   :  { %s16122_s0 = inlined_call_operand.hbm [shape: f32[22], index: 0, kind: input, shape index: {}]   ;;  %s16123_s1 = inlined_call_operand.vmem [shape: f32[8,48], index: 1, kind: input, shape index: {}]   ;;  %s16124_s2 = inlined_call_operand.vmem [shape: f32[8,128], index: 2, kind: input, shape index: {}]   ;;  %s16125_s3 = inlined_call_operand.vmem [shape: f32[8,128], index: 3, kind: input, shape index: {}]   ;;  %s16126_s4 = inlined_call_operand.hbm [shape: bf16[48,3584], index: 4, kind: input, shape index: {}]   ;;  %s16127_s5 = inlined_call_operand.hbm [shape: f32[1,3584], index: 5, kind: input, shape index: {}]   ;;  %s16128_s6 = inlined_call_operand.hbm [shape: bf16[3584,256], index: 6, kind: input, shape index: {}]   ;;  %s16129_s7 = inlined_call_operand.hbm [shape: bf16[128,256], index: 7, kind: input, shape index: {}]   ;;  %s16130_s8 = inlined_call_operand.hbm [shape: f32[1,256], index: 8, kind: input, shape index: {}]   ;;  %s16131_s9 = inlined_call_operand.hbm [shape: bf16[4,256,256], index: 9, kind: input, shape index: {}]   ;;  %s16132_s10 = inlined_call_operand.hbm [shape: f32[4,1,256], index: 10, kind: input, shape index: {}]   ;;  %s16133_s11 = inlined_call_operand.hbm [shape: bf16[256,1536], index: 11, kind: input, shape index: {}]   ;;  %s16134_s12 = inlined_call_operand.hbm [shape: f32[1,1536], index: 12, kind: input, shape index: {}]   ;;  %s16135_s13 = inlined_call_operand.hbm [shape: f32[1,1536], index: 13, kind: input, shape index: {}]   ;;  %s16136_s14 = inlined_call_operand.hbm [shape: bf16[11,256,256], index: 14, kind: input, shape index: {}]   ;;  %s16137_s15 = inlined_call_operand.hbm [shape: f32[11,1,256], index: 15, kind: input, shape index: {}]   ;;  %s16138_s16 = inlined_call_operand.hbm [shape: bf16[6,256,128], index: 16, kind: input, shape index: {}]   ;;  %s16139_s17 = inlined_call_operand.hbm [shape: f32[1,128], index: 17, kind: input, shape index: {}]   ;;  %s16140_s18 = inlined_call_operand.vmem [shape: f32[8,128], index: 18, kind: output, shape index: {}]  }
   0x1   :  { %16142 = sst [smem:[#allocation35_spill]] %s16122_s0 }
   0x2   :  { %16143 = sst [smem:[#allocation36_spill]] %s16123_s1 }
   0x3   :  { %16144 = sst [smem:[#allocation37_spill]] %s16124_s2 }
   0x4   :  { %23 = vsyncpa [#allocation4], 0 }
   0x5   :  { %24 = vsyncpa [#allocation3], 0 }
   0x6   :  { %25 = vsyncpa [#allocation7], 0 }
   0x7   :  { %26 = vsyncpa [#allocation10], 0 }
   0x8   :  { %27 = vsyncpa [#allocation13], 0 }
   0x9   :  { %28 = vsyncpa [#allocation16], 0 }
   0xa   :  { %29 = vsyncpa [#allocation19], 0 }
   0xb   :  { %30 = vsyncpa [#allocation22], 0 }
   0xc   :  { %31 = vsyncpa [#allocation25], 0  ;;  %s15324_s27 = smov [#allocation6]   ;;  %s14988_s0 = scalar_lea.hbm %s16127_s5, 448 }
   0xd   :  { %s64_s28 = sshll.u32 %s15324_s27, 4  ;;  %p14989_p0 = scmp.ne.s32.totalorder %s16127_s5, %s14988_s0  ;;  %s65_s28 = int_to_ptr.vmem [resolvable:$true] %s64_s28 }
   0xe   :  { %p14992_p1 = scmp.lt.u32.totalorder %s14988_s0, %s16127_s5 }
  0x10   :  { %p14994_p2 = pnand %p14992_p1, %p14989_p0 }
  0x12   :  { %14997 = shalt.err (!%p14994_p2)
}
  0x13   :  { %s14998_s22 = scalar_lea.vmem %s65_s28, 448  ;;  %p15003_p4 = scmp.lt.s32.totalorder %s65_s28, %s65_s28 }
  0x14   :  { %p14999_p3 = scmp.ne.s32.totalorder %s65_s28, %s14998_s22  ;;  %p15004_p5 = scmp.lt.s32.totalorder %s14998_s22, %s14998_s22 }
  0x16   :  { %p15005_p6 = por %p15004_p5, %p15003_p4 }
  0x18   :  { %p15006_p7 = pnand %p15005_p6, %p14999_p3 }
  0x1a   :  { %15009 = shalt.err (!%p15006_p7)
}
  0x1b   :  { %67 = dma.hbm_to_vmem [thread:$0]  %s16127_s5, 448, %s65_s28, [#allocation7]  }
  0x1c   :  { %s15325_s24 = smov [#allocation9]   ;;  %s15326_s26 = smov [#allocation12]  }
  0x1d   :  { %s85_s25 = sshll.u32 %s15325_s24, 4  ;;  %s107_s27 = sshll.u32 %s15326_s26, 4  ;;  %s86_s25 = int_to_ptr.vmem [resolvable:$true] %s85_s25  ;;  %s108_s27 = int_to_ptr.vmem [resolvable:$true] %s107_s27 }
  0x1e   :  { %s15010_s0 = scalar_lea.hbm %s16129_s7, 2048 }
  0x1f   :  { %p15011_p8 = scmp.ne.s32.totalorder %s16129_s7, %s15010_s0  ;;  %p15014_p9 = scmp.lt.u32.totalorder %s15010_s0, %s16129_s7 }
  0x21   :  { %p15016_p10 = pnand %p15014_p9, %p15011_p8 }
  0x23   :  { %15019 = shalt.err (!%p15016_p10)
}
  0x24   :  { %s15020_s5 = scalar_lea.vmem %s86_s25, 2048  ;;  %p15025_p12 = scmp.lt.s32.totalorder %s86_s25, %s86_s25 }
  0x25   :  { %p15021_p11 = scmp.ne.s32.totalorder %s86_s25, %s15020_s5  ;;  %p15026_p13 = scmp.lt.s32.totalorder %s15020_s5, %s15020_s5 }
  0x27   :  { %p15027_p0 = por %p15026_p13, %p15025_p12 }
  0x29   :  { %p15028_p1 = pnand %p15027_p0, %p15021_p11 }
  0x2b   :  { %15031 = shalt.err (!%p15028_p1)
}
  0x2c   :  { %s15327_s28 = smov 128   ;;  %s15328_s22 = smov 8  }
  0x2d   :  { %91 = dma.hbm_to_vmem [thread:$0]  %s16129_s7, 2048, %s86_s25, [#allocation10], %s15327_s28, %s15327_s28, %s15328_s22  }
  0x2e   :  { %s15032_s29 = scalar_lea.hbm %s16131_s9, 16384 }
  0x2f   :  { %p15033_p2 = scmp.ne.s32.totalorder %s16131_s9, %s15032_s29  ;;  %p15036_p3 = scmp.lt.u32.totalorder %s15032_s29, %s16131_s9 }
  0x31   :  { %p15038_p4 = pnand %p15036_p3, %p15033_p2 }
  0x33   :  { %15041 = shalt.err (!%p15038_p4)
}
  0x34   :  { %s15042_s20 = scalar_lea.vmem %s108_s27, 16384  ;;  %p15047_p6 = scmp.lt.s32.totalorder %s108_s27, %s108_s27 }
  0x35   :  { %p15043_p5 = scmp.ne.s32.totalorder %s108_s27, %s15042_s20  ;;  %p15048_p7 = scmp.lt.s32.totalorder %s15042_s20, %s15042_s20 }
  0x37   :  { %p15049_p8 = por %p15048_p7, %p15047_p6 }
  0x39   :  { %p15050_p9 = pnand %p15049_p8, %p15043_p5 }
  0x3b   :  { %15053 = shalt.err (!%p15050_p9)
}
  0x3c   :  { %113 = dma.hbm_to_vmem [thread:$0]  %s16131_s9, 16384, %s108_s27, [#allocation13], %s15327_s28, %s15327_s28, %s15328_s22  }
  0x3d   :  { %s15329_s21 = smov [#allocation15]   ;;  %s15054_s24 = scalar_lea.hbm %s16133_s11, 24576 }
  0x3e   :  { %s131_s5 = sshll.u32 %s15329_s21, 4  ;;  %p15055_p10 = scmp.ne.s32.totalorder %s16133_s11, %s15054_s24  ;;  %s132_s5 = int_to_ptr.vmem [resolvable:$true] %s131_s5 }
  0x3f   :  { %p15058_p11 = scmp.lt.u32.totalorder %s15054_s24, %s16133_s11 }
  0x41   :  { %p15060_p12 = pnand %p15058_p11, %p15055_p10 }
  0x43   :  { %15063 = shalt.err (!%p15060_p12)
}
  0x44   :  { %s15064_s19 = scalar_lea.vmem %s132_s5, 24576  ;;  %p15069_p0 = scmp.lt.s32.totalorder %s132_s5, %s132_s5 }
  0x45   :  { %p15065_p13 = scmp.ne.s32.totalorder %s132_s5, %s15064_s19  ;;  %p15070_p1 = scmp.lt.s32.totalorder %s15064_s19, %s15064_s19 }
  0x47   :  { %p15071_p2 = por %p15070_p1, %p15069_p0 }
  0x49   :  { %p15072_p3 = pnand %p15071_p2, %p15065_p13 }
  0x4b   :  { %15075 = shalt.err (!%p15072_p3)
}
  0x4c   :  { %s15330_s9 = smov 768   ;;  %s15331_s27 = smov 48  }
  0x4d   :  { %137 = dma.hbm_to_vmem [thread:$0]  %s16133_s11, 24576, %s132_s5, [#allocation16], %s15330_s9, %s15330_s9, %s15331_s27  }
  0x4e   :  { %s15332_s7 = smov [#allocation18]   ;;  %s15076_s23 = scalar_lea.hbm %s16135_s13, 192 }
  0x4f   :  { %s154_s25 = sshll.u32 %s15332_s7, 4  ;;  %p15077_p4 = scmp.ne.s32.totalorder %s16135_s13, %s15076_s23  ;;  %s155_s25 = int_to_ptr.vmem [resolvable:$true] %s154_s25 }
  0x50   :  { %p15080_p5 = scmp.lt.u32.totalorder %s15076_s23, %s16135_s13 }
  0x52   :  { %p15082_p6 = pnand %p15080_p5, %p15077_p4 }
  0x54   :  { %15085 = shalt.err (!%p15082_p6)
}
  0x55   :  { %s15086_s0 = scalar_lea.vmem %s155_s25, 192  ;;  %p15091_p8 = scmp.lt.s32.totalorder %s155_s25, %s155_s25 }
  0x56   :  { %p15087_p7 = scmp.ne.s32.totalorder %s155_s25, %s15086_s0  ;;  %p15092_p9 = scmp.lt.s32.totalorder %s15086_s0, %s15086_s0 }
  0x58   :  { %p15093_p10 = por %p15092_p9, %p15091_p8 }
  0x5a   :  { %p15094_p11 = pnand %p15093_p10, %p15087_p7 }
  0x5c   :  { %15097 = shalt.err (!%p15094_p11)
}
  0x5d   :  { %157 = dma.hbm_to_vmem [thread:$0]  %s16135_s13, 192, %s155_s25, [#allocation19]  }
  0x5e   :  { %s15333_s19 = smov [#allocation21]   ;;  %s15098_s20 = scalar_lea.hbm %s16137_s15, 352 }
  0x5f   :  { %s175_s9 = sshll.u32 %s15333_s19, 4  ;;  %p15099_p12 = scmp.ne.s32.totalorder %s16137_s15, %s15098_s20  ;;  %s176_s9 = int_to_ptr.vmem [resolvable:$true] %s175_s9 }
  0x60   :  { %p15102_p13 = scmp.lt.u32.totalorder %s15098_s20, %s16137_s15 }
  0x62   :  { %p15104_p0 = pnand %p15102_p13, %p15099_p12 }
  0x64   :  { %15107 = shalt.err (!%p15104_p0)
}
  0x65   :  { %s15108_s24 = scalar_lea.vmem %s176_s9, 352  ;;  %p15113_p2 = scmp.lt.s32.totalorder %s176_s9, %s176_s9 }
  0x66   :  { %p15109_p1 = scmp.ne.s32.totalorder %s176_s9, %s15108_s24  ;;  %p15114_p3 = scmp.lt.s32.totalorder %s15108_s24, %s15108_s24 }
  0x68   :  { %p15115_p4 = por %p15114_p3, %p15113_p2 }
  0x6a   :  { %p15116_p5 = pnand %p15115_p4, %p15109_p1 }
  0x6c   :  { %15119 = shalt.err (!%p15116_p5)
}
  0x6d   :  { %s15334_s13 = smov 32   ;;  %s15335_s25 = smov 2  }
  0x6e   :  { %181 = dma.hbm_to_vmem [thread:$0]  %s16137_s15, 352, %s176_s9, [#allocation22], %s15334_s13, %s15334_s13, %s15335_s25  }
  0x6f   :  { %s16145_s11 = sld [smem:[#allocation35_spill]] }
  0x75   :  { %s15120_s5 = scalar_lea.hbm %s16145_s11, 16 }
  0x76   :  { %p15121_p6 = scmp.ne.s32.totalorder %s16145_s11, %s15120_s5  ;;  %p15124_p7 = scmp.lt.u32.totalorder %s15120_s5, %s16145_s11 }
  0x78   :  { %p15126_p8 = pnand %p15124_p7, %p15121_p6 }
  0x7a   :  { %15129 = shalt.err (!%p15126_p8)
}
  0x7b   :  { %s15336_s7 = smov [#allocation2]   ;;  %s15337_s15 = smov [#allocation5]  }
  0x7c   :  { %39 = dma.hbm_to_smem %s16145_s11, 16, %s15336_s7, [#allocation4]  }
  0x7d   :  { %s51_s9 = sshll.u32 %s15337_s15, 4  ;;  %s15130_s26 = scalar_lea.hbm %s16126_s4, 10752  ;;  %s52_s9 = int_to_ptr.vmem [resolvable:$true] %s51_s9 }
  0x7e   :  { %p15131_p9 = scmp.ne.s32.totalorder %s16126_s4, %s15130_s26  ;;  %p15134_p10 = scmp.lt.u32.totalorder %s15130_s26, %s16126_s4 }
  0x80   :  { %p15136_p11 = pnand %p15134_p10, %p15131_p9 }
  0x82   :  { %15139 = shalt.err (!%p15136_p11)
}
  0x83   :  { %s15140_s19 = scalar_lea.vmem %s52_s9, 10752  ;;  %p15145_p13 = scmp.lt.s32.totalorder %s52_s9, %s52_s9 }
  0x84   :  { %p15141_p12 = scmp.ne.s32.totalorder %s52_s9, %s15140_s19  ;;  %p15146_p0 = scmp.lt.s32.totalorder %s15140_s19, %s15140_s19 }
  0x86   :  { %p15147_p1 = por %p15146_p0, %p15145_p13 }
  0x88   :  { %p15148_p2 = pnand %p15147_p1, %p15141_p12 }
  0x8a   :  { %15151 = shalt.err (!%p15148_p2)
}
  0x8b   :  { %s15338_s11 = smov 1792   ;;  %s15339_s27 = smov 112  }
  0x8c   :  { %57 = dma.hbm_to_vmem [thread:$0]  %s16126_s4, 10752, %s52_s9, [#allocation3], %s15338_s11, %s15338_s11, %s15339_s27  }
  0x8d   :  { %s15340_s7 = smov [#allocation8]   ;;  %s15341_s2 = smov [#allocation11]  }
  0x8e   :  { %s73_s21 = sshll.u32 %s15340_s7, 4  ;;  %s98_s15 = sshll.u32 %s15341_s2, 4  ;;  %s74_s21 = int_to_ptr.vmem [resolvable:$true] %s73_s21  ;;  %s99_s15 = int_to_ptr.vmem [resolvable:$true] %s98_s15 }
  0x8f   :  { %s15152_s26 = scalar_lea.hbm %s16128_s6, 57344 }
  0x90   :  { %p15153_p3 = scmp.ne.s32.totalorder %s16128_s6, %s15152_s26  ;;  %p15156_p4 = scmp.lt.u32.totalorder %s15152_s26, %s16128_s6 }
  0x92   :  { %p15158_p5 = pnand %p15156_p4, %p15153_p3 }
  0x94   :  { %15161 = shalt.err (!%p15158_p5)
}
  0x95   :  { %s15162_s4 = scalar_lea.vmem %s74_s21, 57344  ;;  %p15167_p7 = scmp.lt.s32.totalorder %s74_s21, %s74_s21 }
  0x96   :  { %p15163_p6 = scmp.ne.s32.totalorder %s74_s21, %s15162_s4  ;;  %p15168_p8 = scmp.lt.s32.totalorder %s15162_s4, %s15162_s4 }
  0x98   :  { %p15169_p9 = por %p15168_p8, %p15167_p7 }
  0x9a   :  { %p15170_p10 = pnand %p15169_p9, %p15163_p6 }
  0x9c   :  { %15173 = shalt.err (!%p15170_p10)
}
  0x9d   :  { %79 = dma.hbm_to_vmem [thread:$0]  %s16128_s6, 57344, %s74_s21, [#allocation7], %s15327_s28, %s15327_s28, %s15328_s22  }
  0x9e   :  { %s15174_s1 = scalar_lea.hbm %s16130_s8, 32 }
  0x9f   :  { %p15175_p11 = scmp.ne.s32.totalorder %s16130_s8, %s15174_s1  ;;  %p15178_p12 = scmp.lt.u32.totalorder %s15174_s1, %s16130_s8 }
  0xa1   :  { %p15180_p13 = pnand %p15178_p12, %p15175_p11 }
  0xa3   :  { %15183 = shalt.err (!%p15180_p13)
}
  0xa4   :  { %s15184_s24 = scalar_lea.vmem %s99_s15, 32  ;;  %p15189_p1 = scmp.lt.s32.totalorder %s99_s15, %s99_s15 }
  0xa5   :  { %p15185_p0 = scmp.ne.s32.totalorder %s99_s15, %s15184_s24  ;;  %p15190_p2 = scmp.lt.s32.totalorder %s15184_s24, %s15184_s24 }
  0xa7   :  { %p15191_p3 = por %p15190_p2, %p15189_p1 }
  0xa9   :  { %p15192_p4 = pnand %p15191_p3, %p15185_p0 }
  0xab   :  { %15195 = shalt.err (!%p15192_p4)
}
  0xac   :  { %101 = dma.hbm_to_vmem [thread:$0]  %s16130_s8, 32, %s99_s15, [#allocation10]  }
  0xad   :  { %s15342_s26 = smov [#allocation14]   ;;  %s15343_s30 = smov [#allocation17]  }
  0xae   :  { %s119_s29 = sshll.u32 %s15342_s26, 4  ;;  %s144_s0 = sshll.u32 %s15343_s30, 4  ;;  %s120_s29 = int_to_ptr.vmem [resolvable:$true] %s119_s29  ;;  %s145_s0 = int_to_ptr.vmem [resolvable:$true] %s144_s0 }
  0xaf   :  { %s15196_s9 = scalar_lea.hbm %s16132_s10, 128 }
  0xb0   :  { %p15197_p5 = scmp.ne.s32.totalorder %s16132_s10, %s15196_s9  ;;  %p15200_p6 = scmp.lt.u32.totalorder %s15196_s9, %s16132_s10 }
  0xb2   :  { %p15202_p7 = pnand %p15200_p6, %p15197_p5 }
  0xb4   :  { %15205 = shalt.err (!%p15202_p7)
}
  0xb5   :  { %s15206_s8 = scalar_lea.vmem %s120_s29, 128  ;;  %p15211_p9 = scmp.lt.s32.totalorder %s120_s29, %s120_s29 }
  0xb6   :  { %p15207_p8 = scmp.ne.s32.totalorder %s120_s29, %s15206_s8  ;;  %p15212_p10 = scmp.lt.s32.totalorder %s15206_s8, %s15206_s8 }
  0xb8   :  { %p15213_p11 = por %p15212_p10, %p15211_p9 }
  0xba   :  { %p15214_p12 = pnand %p15213_p11, %p15207_p8 }
  0xbc   :  { %15217 = shalt.err (!%p15214_p12)
}
  0xbd   :  { %125 = dma.hbm_to_vmem [thread:$0]  %s16132_s10, 128, %s120_s29, [#allocation13], %s15334_s13, %s15334_s13, %s15335_s25  }
  0xbe   :  { %s15218_s23 = scalar_lea.hbm %s16134_s12, 192 }
  0xbf   :  { %p15219_p13 = scmp.ne.s32.totalorder %s16134_s12, %s15218_s23  ;;  %p15222_p0 = scmp.lt.u32.totalorder %s15218_s23, %s16134_s12 }
  0xc1   :  { %p15224_p1 = pnand %p15222_p0, %p15219_p13 }
  0xc3   :  { %15227 = shalt.err (!%p15224_p1)
}
  0xc4   :  { %s15228_s30 = scalar_lea.vmem %s145_s0, 192  ;;  %p15233_p3 = scmp.lt.s32.totalorder %s145_s0, %s145_s0 }
  0xc5   :  { %p15229_p2 = scmp.ne.s32.totalorder %s145_s0, %s15228_s30  ;;  %p15234_p4 = scmp.lt.s32.totalorder %s15228_s30, %s15228_s30 }
  0xc7   :  { %p15235_p5 = por %p15234_p4, %p15233_p3 }
  0xc9   :  { %p15236_p6 = pnand %p15235_p5, %p15229_p2 }
  0xcb   :  { %15239 = shalt.err (!%p15236_p6)
}
  0xcc   :  { %147 = dma.hbm_to_vmem [thread:$0]  %s16134_s12, 192, %s145_s0, [#allocation16]  }
  0xcd   :  { %s15344_s25 = smov [#allocation20]   ;;  %s15345_s5 = smov [#allocation23]  }
  0xce   :  { %s163_s29 = sshll.u32 %s15344_s25, 4  ;;  %s187_s4 = sshll.u32 %s15345_s5, 4  ;;  %s164_s29 = int_to_ptr.vmem [resolvable:$true] %s163_s29  ;;  %s15604_s4 = int_to_ptr.vmem [resolvable:$true] %s187_s4 }
  0xcf   :  { %s15240_s11 = scalar_lea.hbm %s16136_s14, 45056 }
  0xd0   :  { %p15241_p7 = scmp.ne.s32.totalorder %s16136_s14, %s15240_s11  ;;  %p15244_p8 = scmp.lt.u32.totalorder %s15240_s11, %s16136_s14 }
  0xd2   :  { %p15246_p9 = pnand %p15244_p8, %p15241_p7 }
  0xd4   :  { %15249 = shalt.err (!%p15246_p9)
}
  0xd5   :  { %s15250_s12 = scalar_lea.vmem %s164_s29, 45056  ;;  %p15255_p11 = scmp.lt.s32.totalorder %s164_s29, %s164_s29 }
  0xd6   :  { %p15251_p10 = scmp.ne.s32.totalorder %s164_s29, %s15250_s12  ;;  %p15256_p12 = scmp.lt.s32.totalorder %s15250_s12, %s15250_s12 }
  0xd8   :  { %p15257_p13 = por %p15256_p12, %p15255_p11 }
  0xda   :  { %p15258_p0 = pnand %p15257_p13, %p15251_p10 }
  0xdc   :  { %15261 = shalt.err (!%p15258_p0)
}
  0xdd   :  { %169 = dma.hbm_to_vmem [thread:$0]  %s16136_s14, 45056, %s164_s29, [#allocation19], %s15327_s28, %s15327_s28, %s15328_s22  }
  0xde   :  { %s15262_s23 = scalar_lea.hbm %s16138_s16, 12288 }
  0xdf   :  { %p15263_p1 = scmp.ne.s32.totalorder %s16138_s16, %s15262_s23  ;;  %p15266_p2 = scmp.lt.u32.totalorder %s15262_s23, %s16138_s16 }
  0xe1   :  { %p15268_p3 = pnand %p15266_p2, %p15263_p1 }
  0xe3   :  { %15271 = shalt.err (!%p15268_p3)
}
  0xe4   :  { %s15272_s30 = scalar_lea.vmem %s15604_s4, 12288  ;;  %p15277_p5 = scmp.lt.s32.totalorder %s15604_s4, %s15604_s4 }
  0xe5   :  { %p15273_p4 = scmp.ne.s32.totalorder %s15604_s4, %s15272_s30  ;;  %p15278_p6 = scmp.lt.s32.totalorder %s15272_s30, %s15272_s30 }
  0xe7   :  { %p15279_p7 = por %p15278_p6, %p15277_p5 }
  0xe9   :  { %p15280_p8 = pnand %p15279_p7, %p15273_p4 }
  0xeb   :  { %15283 = shalt.err (!%p15280_p8)
}
  0xec   :  { %s15346_s14 = smov 64   ;;  %s15347_s28 = smov 4  }
  0xed   :  { %193 = dma.hbm_to_vmem [thread:$0]  %s16138_s16, 12288, %s15604_s4, [#allocation22], %s15346_s14, %s15346_s14, %s15347_s28  }
  0xee   :  { %s15348_s13 = smov [#allocation24]   ;;  %s15284_s9 = scalar_lea.hbm %s16139_s17, 16 }
  0xef   :  { %s200_s25 = sshll.u32 %s15348_s13, 4  ;;  %p15285_p9 = scmp.ne.s32.totalorder %s16139_s17, %s15284_s9  ;;  %s201_s25 = int_to_ptr.vmem [resolvable:$true] %s200_s25 }
  0xf0   :  { %p15288_p10 = scmp.lt.u32.totalorder %s15284_s9, %s16139_s17 }
  0xf2   :  { %p15290_p11 = pnand %p15288_p10, %p15285_p9 }
  0xf4   :  { %15293 = shalt.err (!%p15290_p11)
}
  0xf5   :  { %s15294_s8 = scalar_lea.vmem %s201_s25, 16  ;;  %s15298_s16 = scalar_lea.vmem %s201_s25, 32 }
  0xf6   :  { %p15295_p12 = scmp.ne.s32.totalorder %s201_s25, %s15294_s8  ;;  %p15299_p13 = scmp.lt.s32.totalorder %s201_s25, %s201_s25 }
  0xf7   :  { %p15300_p0 = scmp.lt.s32.totalorder %s15298_s16, %s15294_s8 }
  0xf9   :  { %p15301_p1 = por %p15300_p0, %p15299_p13 }
  0xfb   :  { %p15302_p2 = pnand %p15301_p1, %p15295_p12 }
  0xfd   :  { %15305 = shalt.err (!%p15302_p2)
}
  0xfe   :  { %203 = dma.hbm_to_vmem [thread:$0]  %s16139_s17, 16, %s201_s25, [#allocation25]  }
  0xff   :  { %15306 = dma.done.wait [#allocation4], 16  }
 0x100   :  { %15307 = vsyncadd [#allocation4], 4294967280 }
 0x101   :  { %15308 = dma.done.wait [#allocation3], 10752  }
 0x102   :  { %15309 = vsyncadd [#allocation3], 4294956544 }
 0x103   :  { %15310 = dma.done.wait [#allocation7], 57792  }
 0x104   :  { %15311 = vsyncadd [#allocation7], 4294909504 }
 0x105   :  { %15312 = dma.done.wait [#allocation10], 2080  }
 0x106   :  { %15313 = vsyncadd [#allocation10], 4294965216 }
 0x107   :  { %15314 = dma.done.wait [#allocation13], 16512  }
 0x108   :  { %15315 = vsyncadd [#allocation13], 4294950784 }
 0x109   :  { %15316 = dma.done.wait [#allocation16], 24768  }
 0x10a   :  { %15317 = vsyncadd [#allocation16], 4294942528 }
 0x10b   :  { %15318 = dma.done.wait [#allocation19], 45248  }
 0x10c   :  { %15319 = vsyncadd [#allocation19], 4294922048 }
 0x10d   :  { %15320 = dma.done.wait [#allocation22], 12640  }
 0x10e   :  { %15321 = vsyncadd [#allocation22], 4294954656 }
 0x10f   :  { %15322 = dma.done.wait [#allocation25], 16  }
 0x110   :  { %15323 = vsyncadd [#allocation25], 4294967280 }
 0x111   :  { %249 = sfence }
 0x112   :  { %v13058_v0 = vld [vmem:[#allocation5 + $0x4] ss:$112 sps:$4 sm:$0xff]   ;;  %v13060_v1 = vld [vmem:[#allocation5] ss:$112 sps:$4 sm:$0xff]   ;;  %v15349_v2 = vmov 0   ;;  %s16146_s0 = sld [smem:[#allocation36_spill]] }
 0x113   :  { %942 = vmatprep.mubr.bf16.mxu1 %v15349_v2  ;;  %1024 = vmatprep.mubr.bf16.mxu0 %v15349_v2  ;;  %v13061_v3 = vld [vmem:[#allocation5 + $0xe4] ss:$112 sps:$4 sm:$0xff]   ;;  %v13063_v4 = vld [vmem:[#allocation5 + $0xe0] ss:$112 sps:$4 sm:$0xff]   ;;  %v13069_v8 = vld [vmem:[#allocation5 + $0xc] ss:$112 sps:$4 sm:$0xff]  }
 0x114   :  { %910 = vmatprep.subr.bf16.mxu1 %v13058_v0  ;;  %v13064_v5 = vld [vmem:[#allocation5 + $0x1c4] ss:$112 sps:$4 sm:$0xff]   ;;  %v13066_v6 = vld [vmem:[#allocation5 + $0x1c0] ss:$112 sps:$4 sm:$0xff]   ;;  %v13067_v12 = vld [vmem:[#allocation5 + $0x8] ss:$112 sps:$4 sm:$0xff]  }
 0x115   :  { %911 = vmatpush1.bf16.msra.mxu1 %v13060_v1  ;;  %v13076_v9 = vld [vmem:[#allocation5 + $0x14] ss:$112 sps:$4 sm:$0xff]   ;;  %v13078_v10 = vld [vmem:[#allocation5 + $0x10] ss:$112 sps:$4 sm:$0xff]   ;;  %vm906_vm0 = vcmask 392192   ;;  %s251_s20 = sld [smem:[#allocation2]] }
 0x116   :  { %912 = vmatprep.subr.bf16.mxu1 %v13061_v3  ;;  %v13079_v13 = vld [vmem:[#allocation5 + $0xf4] ss:$112 sps:$4 sm:$0xff]   ;;  %v13072_v14 = vld [vmem:[#allocation5 + $0xec] ss:$112 sps:$4 sm:$0xff]   ;;  %992 = vmatprep.subr.bf16.mxu0 %v13076_v9  ;;  %v13081_v15 = vld [vmem:[#allocation5 + $0xf0] ss:$112 sps:$4 sm:$0xff]  }
 0x117   :  { %993 = vmatpush1.bf16.msra.mxu0 %v13078_v10  ;;  %v13082_v16 = vld [vmem:[#allocation5 + $0x1d4] ss:$112 sps:$4 sm:$0xff]   ;;  %v13070_v17 = vld [vmem:[#allocation5 + $0xe8] ss:$112 sps:$4 sm:$0xff]   ;;  %v13075_v18 = vld [vmem:[#allocation5 + $0x1cc] ss:$112 sps:$4 sm:$0xff]  }
 0x118   :  { %v252_v7 = vld [vmem:[%s16146_s0] sm:$0xff]  ;;  %994 = vmatprep.subr.bf16.mxu0 %v13079_v13  ;;  %v13073_v21 = vld [vmem:[#allocation5 + $0x1c8] ss:$112 sps:$4 sm:$0xff]   ;;  %v13087_v22 = vld [vmem:[#allocation5 + $0x1c] ss:$112 sps:$4 sm:$0xff]   ;;  %s16147_s23 = sld [smem:[#allocation37_spill]] }
 0x119   :  { %913 = vmatpush1.bf16.msra.mxu1 %v13063_v4  ;;  %v15655_v11 = vpack.c.bf16 %v252_v7, %v252_v7  ;;  %v13084_v19 = vld [vmem:[#allocation5 + $0x1d0] ss:$112 sps:$4 sm:$0xff]   ;;  %v13096_v20 = vld [vmem:[#allocation5 + $0x24] ss:$112 sps:$4 sm:$0xff]   ;;  %v13085_v25 = vld [vmem:[#allocation5 + $0x18] ss:$112 sps:$4 sm:$0xff]  }
 0x11a   :  { %914 = vmatprep.subr.bf16.mxu1 %v13064_v5  ;;  %v13094_v23 = vld [vmem:[#allocation5 + $0x20] ss:$112 sps:$4 sm:$0xff]   ;;  %v13099_v24 = vld [vmem:[#allocation5 + $0x104] ss:$112 sps:$4 sm:$0xff]   ;;  %v13090_v26 = vld [vmem:[#allocation5 + $0xfc] ss:$112 sps:$4 sm:$0xff]  }
 0x11b   :  { %995 = vmatpush1.bf16.msra.mxu0 %v13081_v15  ;;  %v13097_v27 = vld [vmem:[#allocation5 + $0x100] ss:$112 sps:$4 sm:$0xff]   ;;  %v13102_v28 = vld [vmem:[#allocation5 + $0x1e4] ss:$112 sps:$4 sm:$0xff]   ;;  %v13088_v29 = vld [vmem:[#allocation5 + $0xf8] ss:$112 sps:$4 sm:$0xff]  }
 0x11c   :  { %996 = vmatprep.subr.bf16.mxu0 %v13082_v16  ;;  %v13093_v30 = vld [vmem:[#allocation5 + $0x1dc] ss:$112 sps:$4 sm:$0xff]   ;;  %v13100_v31 = vld [vmem:[#allocation5 + $0x1e0] ss:$112 sps:$4 sm:$0xff]   ;;  %v13105_v32 = vld [vmem:[#allocation5 + $0x34] ss:$112 sps:$4 sm:$0xff]  }
 0x11d   :  { %915 = vmatpush1.bf16.msra.mxu1 %v13066_v6  ;;  %v13091_v33 = vld [vmem:[#allocation5 + $0x1d8] ss:$112 sps:$4 sm:$0xff]   ;;  %v13103_v34 = vld [vmem:[#allocation5 + $0x30] ss:$112 sps:$4 sm:$0xff]   ;;  %v13114_v35 = vld [vmem:[#allocation5 + $0x2c] ss:$112 sps:$4 sm:$0xff]  }
 0x11e   :  { %951 = vmatprep.subr.bf16.mxu1 %v13069_v8  ;;  %v13108_v36 = vld [vmem:[#allocation5 + $0x114] ss:$112 sps:$4 sm:$0xff]   ;;  %v13106_v37 = vld [vmem:[#allocation5 + $0x110] ss:$112 sps:$4 sm:$0xff]   ;;  %v13112_v38 = vld [vmem:[#allocation5 + $0x28] ss:$112 sps:$4 sm:$0xff]  }
 0x11f   :  { %997 = vmatpush1.bf16.msra.mxu0 %v13084_v19  ;;  %v13120_v39 = vld [vmem:[#allocation5 + $0x10c] ss:$112 sps:$4 sm:$0xff]   ;;  %v13111_v40 = vld [vmem:[#allocation5 + $0x1f4] ss:$112 sps:$4 sm:$0xff]   ;;  %v13109_v41 = vld [vmem:[#allocation5 + $0x1f0] ss:$112 sps:$4 sm:$0xff]  }
 0x120   :  { %11632 = vmatmul.mubr.msk.bf16.vlgmr.msra.gmra.mrb[0].mxu1 %vm906_vm0, %v15655_v11  ;;  %1074 = vmatprep.subr.bf16.mxu0 %v13096_v20  ;;  %v13118_v42 = vld [vmem:[#allocation5 + $0x108] ss:$112 sps:$4 sm:$0xff]   ;;  %v13126_v43 = vld [vmem:[#allocation5 + $0x1ec] ss:$112 sps:$4 sm:$0xff]   ;;  %v13117_v44 = vld [vmem:[#allocation5 + $0x44] ss:$112 sps:$4 sm:$0xff]  }
 0x121   :  { %952 = vmatpush1.bf16.msra.mxu1 %v13067_v12  ;;  %983 = vmatprep.mubr.bf16.mxu1 %v15349_v2  ;;  %v13115_v45 = vld [vmem:[#allocation5 + $0x40] ss:$112 sps:$4 sm:$0xff]   ;;  %v13124_v46 = vld [vmem:[#allocation5 + $0x1e8] ss:$112 sps:$4 sm:$0xff]   ;;  %v13132_v47 = vld [vmem:[#allocation5 + $0x3c] ss:$112 sps:$4 sm:$0xff]  }
 0x122   :  { %953 = vmatprep.subr.bf16.mxu1 %v13072_v14  ;;  %11634 = vmatmul.mubr.msk.bf16.vlgmr.msra.gmra.mrb[0].mxu0 %vm906_vm0, %v15655_v11  ;;  %v13123_v48 = vld [vmem:[#allocation5 + $0x124] ss:$112 sps:$4 sm:$0xff]   ;;  %v13121_v49 = vld [vmem:[#allocation5 + $0x120] ss:$112 sps:$4 sm:$0xff]   ;;  %v13130_v50 = vld [vmem:[#allocation5 + $0x38] ss:$112 sps:$4 sm:$0xff]  }
 0x123   :  { %1075 = vmatpush1.bf16.msra.mxu0 %v13094_v23  ;;  %1106 = vmatprep.mubr.bf16.mxu0 %v15349_v2  ;;  %v13138_v51 = vld [vmem:[#allocation5 + $0x11c] ss:$112 sps:$4 sm:$0xff]   ;;  %v13129_v52 = vld [vmem:[#allocation5 + $0x204] ss:$112 sps:$4 sm:$0xff]   ;;  %v13127_v53 = vld [vmem:[#allocation5 + $0x200] ss:$112 sps:$4 sm:$0xff]  }
 0x124   :  { %1076 = vmatprep.subr.bf16.mxu0 %v13099_v24  ;;  %v13136_v54 = vld [vmem:[#allocation5 + $0x118] ss:$112 sps:$4 sm:$0xff]   ;;  %v13144_v55 = vld [vmem:[#allocation5 + $0x1fc] ss:$112 sps:$4 sm:$0xff]   ;;  %v13135_v56 = vld [vmem:[#allocation5 + $0x54] ss:$112 sps:$4 sm:$0xff]  }
 0x125   :  { %954 = vmatpush1.bf16.msra.mxu1 %v13070_v17  ;;  %v13133_v57 = vld [vmem:[#allocation5 + $0x50] ss:$112 sps:$4 sm:$0xff]   ;;  %v13142_v58 = vld [vmem:[#allocation5 + $0x1f8] ss:$112 sps:$4 sm:$0xff]   ;;  %v13150_v59 = vld [vmem:[#allocation5 + $0x4c] ss:$112 sps:$4 sm:$0xff]  }
 0x126   :  { %955 = vmatprep.subr.bf16.mxu1 %v13075_v18  ;;  %v13141_v60 = vld [vmem:[#allocation5 + $0x134] ss:$112 sps:$4 sm:$0xff]   ;;  %v13139_v61 = vld [vmem:[#allocation5 + $0x130] ss:$112 sps:$4 sm:$0xff]   ;;  %v13148_v62 = vld [vmem:[#allocation5 + $0x48] ss:$112 sps:$4 sm:$0xff]  }
 0x127   :  { %1077 = vmatpush1.bf16.msra.mxu0 %v13097_v27  ;;  %v13156_v63 = vld [vmem:[#allocation5 + $0x12c] ss:$112 sps:$4 sm:$0xff]   ;;  %v13147_v0 = vld [vmem:[#allocation5 + $0x214] ss:$112 sps:$4 sm:$0xff]   ;;  %v13145_v1 = vld [vmem:[#allocation5 + $0x210] ss:$112 sps:$4 sm:$0xff]  }
 0x128   :  { %1078 = vmatprep.subr.bf16.mxu0 %v13102_v28  ;;  %v13154_v3 = vld [vmem:[#allocation5 + $0x128] ss:$112 sps:$4 sm:$0xff]   ;;  %v13162_v4 = vld [vmem:[#allocation5 + $0x20c] ss:$112 sps:$4 sm:$0xff]   ;;  %v13153_v5 = vld [vmem:[#allocation5 + $0x64] ss:$112 sps:$4 sm:$0xff]  }
 0x129   :  { %956 = vmatpush1.bf16.msra.mxu1 %v13073_v21  ;;  %v13151_v6 = vld [vmem:[#allocation5 + $0x60] ss:$112 sps:$4 sm:$0xff]   ;;  %v13160_v7 = vld [vmem:[#allocation5 + $0x208] ss:$112 sps:$4 sm:$0xff]   ;;  %v13168_v8 = vld [vmem:[#allocation5 + $0x5c] ss:$112 sps:$4 sm:$0xff]  }
 0x12a   :  { %1033 = vmatprep.subr.bf16.mxu1 %v13087_v22  ;;  %v13159_v9 = vld [vmem:[#allocation5 + $0x144] ss:$112 sps:$4 sm:$0xff]   ;;  %v13166_v10 = vld [vmem:[#allocation5 + $0x58] ss:$112 sps:$4 sm:$0xff]   ;;  %v13157_v12 = vld [vmem:[#allocation5 + $0x140] ss:$112 sps:$4 sm:$0xff]  }
 0x12b   :  { %1079 = vmatpush1.bf16.msra.mxu0 %v13100_v31  ;;  %v13174_v13 = vld [vmem:[#allocation5 + $0x13c] ss:$112 sps:$4 sm:$0xff]   ;;  %v13165_v14 = vld [vmem:[#allocation5 + $0x224] ss:$112 sps:$4 sm:$0xff]   ;;  %v13172_v15 = vld [vmem:[#allocation5 + $0x138] ss:$112 sps:$4 sm:$0xff]  }
 0x12c   :  { %11633 = vmatmul.mubr.msk.bf16.vlgmr.msra.gmra.mrb[4].mxu1 %vm906_vm0, %v15655_v11  ;;  %1156 = vmatprep.subr.bf16.mxu0 %v13105_v32  ;;  %v13163_v16 = vld [vmem:[#allocation5 + $0x220] ss:$112 sps:$4 sm:$0xff]   ;;  %v13180_v17 = vld [vmem:[#allocation5 + $0x21c] ss:$112 sps:$4 sm:$0xff]   ;;  %v13178_v19 = vld [vmem:[#allocation5 + $0x218] ss:$112 sps:$4 sm:$0xff]  }
 0x12d   :  { %1034 = vmatpush1.bf16.msra.mxu1 %v13085_v25  ;;  %1065 = vmatprep.mubr.bf16.mxu1 %v15349_v2  ;;  %v13171_v18 = vld [vmem:[#allocation9 + $0x4] ss:$8 sps:$4 sm:$0xff]   ;;  %v13169_v20 = vld [vmem:[#allocation9] ss:$8 sps:$4 sm:$0xff]   ;;  %v13177_v22 = vld [vmem:[#allocation9 + $0x14] ss:$8 sps:$4 sm:$0xff]  }
 0x12e   :  { %1035 = vmatprep.subr.bf16.mxu1 %v13090_v26  ;;  %11636 = vmatmul.mubr.msk.bf16.vlgmr.msra.gmra.mrb[4].mxu0 %vm906_vm0, %v15655_v11  ;;  %v13186_v21 = vld [vmem:[#allocation5 + $0x6c] ss:$112 sps:$4 sm:$0xff]   ;;  %v13184_v23 = vld [vmem:[#allocation5 + $0x68] ss:$112 sps:$4 sm:$0xff]   ;;  %s12110_s24 = sld [smem:[#allocation2 + $0x1]]  ;;  %s12143_s6 = sld [smem:[#allocation2 + $0x2]] }
 0x12f   :  { %1157 = vmatpush1.bf16.msra.mxu0 %v13103_v34  ;;  %1188 = vmatprep.mubr.bf16.mxu0 %v15349_v2  ;;  %v13175_v24 = vld [vmem:[#allocation9 + $0x10] ss:$8 sps:$4 sm:$0xff]   ;;  %v13183_v26 = vld [vmem:[#allocation9 + $0x24] ss:$8 sps:$4 sm:$0xff]   ;;  %v13181_v28 = vld [vmem:[#allocation9 + $0x20] ss:$8 sps:$4 sm:$0xff]  }
 0x130   :  { %1158 = vmatprep.subr.bf16.mxu0 %v13108_v36  ;;  %v13192_v25 = vld [vmem:[#allocation5 + $0x14c] ss:$112 sps:$4 sm:$0xff]   ;;  %v13190_v27 = vld [vmem:[#allocation5 + $0x148] ss:$112 sps:$4 sm:$0xff]   ;;  %s12176_s21 = sld [smem:[#allocation2 + $0x3]]  ;;  %s12209_s26 = sld [smem:[#allocation2 + $0x4]] }
 0x131   :  { %1036 = vmatpush1.bf16.msra.mxu1 %v13088_v29  ;;  %v13198_v29 = vld [vmem:[#allocation5 + $0x22c] ss:$112 sps:$4 sm:$0xff]   ;;  %v13196_v31 = vld [vmem:[#allocation5 + $0x228] ss:$112 sps:$4 sm:$0xff]   ;;  %s12435_s30 = sld [smem:[#allocation2 + $0x5]]  ;;  %s16013_s14 = sld [smem:[#allocation2 + $0x7]] }
 0x132   :  { %1037 = vmatprep.subr.bf16.mxu1 %v13093_v30  ;;  %v13189_v30 = vld [vmem:[#allocation9 + $0x34] ss:$8 sps:$4 sm:$0xff]   ;;  %v13187_v32 = vld [vmem:[#allocation9 + $0x30] ss:$8 sps:$4 sm:$0xff]   ;;  %v13195_v34 = vld [vmem:[#allocation9 + $0x44] ss:$8 sps:$4 sm:$0xff]  }
 0x133   :  { %1159 = vmatpush1.bf16.msra.mxu0 %v13106_v37  ;;  %v13193_v36 = vld [vmem:[#allocation9 + $0x40] ss:$8 sps:$4 sm:$0xff]   ;;  %v13201_v37 = vld [vmem:[#allocation9 + $0x54] ss:$8 sps:$4 sm:$0xff]   ;;  %s12468_s28 = sld [smem:[#allocation2 + $0x6]]  ;;  %s12501_s22 = sld [smem:[#allocation2 + $0x10]] }
 0x134   :  { %1160 = vmatprep.subr.bf16.mxu0 %v13111_v40  ;;  %v13207_v40 = vld [vmem:[#allocation9 + $0x64] ss:$8 sps:$4 sm:$0xff]   ;;  %s16030_s10 = sld [smem:[#allocation2 + $0x9]]  ;;  %s12551_s13 = sld [smem:[#allocation2 + $0x8]] }
 0x135   :  { %1038 = vmatpush1.bf16.msra.mxu1 %v13091_v33  ;;  %v13204_v33 = vld [vmem:[#allocation8 + $0x4] ss:$8 sps:$4 sm:$0xff]   ;;  %s12584_s25 = sld [smem:[#allocation2 + $0x11]]  ;;  %s16049_s29 = sld [smem:[#allocation2 + $0xb]] }
 0x136   :  { %1115 = vmatprep.subr.bf16.mxu1 %v13114_v35  ;;  %v13202_v35 = vld [vmem:[#allocation8] ss:$8 sps:$4 sm:$0xff]   ;;  %s12634_s5 = sld [smem:[#allocation2 + $0xa]]  ;;  %s12717_s27 = sld [smem:[#allocation2 + $0xc]] }
 0x137   :  { %1161 = vmatpush1.bf16.msra.mxu0 %v13109_v41  ;;  %v13216_v41 = vld [vmem:[#allocation8 + $0x24] ss:$8 sps:$4 sm:$0xff]   ;;  %s12667_s11 = sld [smem:[#allocation2 + $0x12]]  ;;  %s12750_s1 = sld [smem:[#allocation2 + $0x13]] }
 0x138   :  { %11635 = vmatmul.mubr.msk.bf16.vlgmr.msra.gmra.mrb[8].mxu1 %vm906_vm0, %v15655_v11  ;;  %1238 = vmatprep.subr.bf16.mxu0 %v13117_v44  ;;  %v13214_v44 = vld [vmem:[#allocation8 + $0x20] ss:$8 sps:$4 sm:$0xff]   ;;  %s16096_s8 = sld [smem:[#allocation2 + $0xf]]  ;;  %s12800_s16 = sld [smem:[#allocation2 + $0xe]] }
 0x139   :  { %1116 = vmatpush1.bf16.msra.mxu1 %v13112_v38  ;;  %1147 = vmatprep.mubr.bf16.mxu1 %v15349_v2  ;;  %v13208_v38 = vld [vmem:[#allocation8 + $0x10] ss:$8 sps:$4 sm:$0xff]   ;;  %s12833_s4 = sld [smem:[#allocation2 + $0x14]]  ;;  %s12883_s15 = sld [smem:[#allocation2 + $0x15]] }
 0x13a   :  { %1117 = vmatprep.subr.bf16.mxu1 %v13120_v39  ;;  %11638 = vmatmul.mubr.msk.bf16.vlgmr.msra.gmra.mrb[8].mxu0 %vm906_vm0, %v15655_v11  ;;  %v13199_v39 = vld [vmem:[#allocation9 + $0x50] ss:$8 sps:$4 sm:$0xff]  }
 0x13b   :  { %1239 = vmatpush1.bf16.msra.mxu0 %v13115_v45  ;;  %1270 = vmatprep.mubr.bf16.mxu0 %v15349_v2  ;;  %v13205_v45 = vld [vmem:[#allocation9 + $0x60] ss:$8 sps:$4 sm:$0xff]  }
 0x13c   :  { %1240 = vmatprep.subr.bf16.mxu0 %v13123_v48  ;;  %v13217_v48 = vld [vmem:[#allocation8 + $0x30] ss:$8 sps:$4 sm:$0xff]  }
 0x13d   :  { %1118 = vmatpush1.bf16.msra.mxu1 %v13118_v42  ;;  %v15698_v42 = vstv %s251_s20 }
 0x13e   :  { %1119 = vmatprep.subr.bf16.mxu1 %v13126_v43  ;;  %v2045_v43 = vld [vmem:[%s16147_s23] sm:$0xff] }
 0x13f   :  { %1241 = vmatpush1.bf16.msra.mxu0 %v13121_v49  ;;  %vm2046_vm1 = vcmp.ge.f32.partialorder %v2045_v43, 0.0  ;;  %v13211_v49 = vld [vmem:[#allocation9 + $0x70] ss:$8 sps:$4 sm:$0xff]  }
 0x140   :  { %1242 = vmatprep.subr.bf16.mxu0 %v13129_v52  ;;  %v13222_v52 = vld [vmem:[#allocation8 + $0x104] ss:$8 sps:$4 sm:$0xff]  }
 0x141   :  { %1120 = vmatpush1.bf16.msra.mxu1 %v13124_v46  ;;  %v13219_v46 = vld [vmem:[#allocation8 + $0x34] ss:$8 sps:$4 sm:$0xff]  }
 0x142   :  { %1197 = vmatprep.subr.bf16.mxu1 %v13132_v47  ;;  %v13213_v47 = vld [vmem:[#allocation9 + $0x74] ss:$8 sps:$4 sm:$0xff]  }
 0x143   :  { %1243 = vmatpush1.bf16.msra.mxu0 %v13127_v53  ;;  %v13220_v53 = vld [vmem:[#allocation8 + $0x100] ss:$8 sps:$4 sm:$0xff]  }
 0x144   :  { %11637 = vmatmul.mubr.msk.bf16.vlgmr.msra.gmra.mrb[12].mxu1 %vm906_vm0, %v15655_v11  ;;  %1320 = vmatprep.subr.bf16.mxu0 %v13135_v56  ;;  %v13231_v56 = vld [vmem:[#allocation8 + $0x54] ss:$8 sps:$4 sm:$0xff]  }
 0x145   :  { %1198 = vmatpush1.bf16.msra.mxu1 %v13130_v50  ;;  %1229 = vmatprep.mubr.bf16.mxu1 %v15349_v2 }
 0x146   :  { %1199 = vmatprep.subr.bf16.mxu1 %v13138_v51  ;;  %11640 = vmatmul.mubr.msk.bf16.vlgmr.msra.gmra.mrb[12].mxu0 %vm906_vm0, %v15655_v11  ;;  %v13225_v51 = vld [vmem:[#allocation8 + $0x44] ss:$8 sps:$4 sm:$0xff]  }
 0x147   :  { %1321 = vmatpush1.bf16.msra.mxu0 %v13133_v57  ;;  %1352 = vmatprep.mubr.bf16.mxu0 %v15349_v2  ;;  %v13228_v57 = vld [vmem:[#allocation8 + $0x114] ss:$8 sps:$4 sm:$0xff]  }
 0x148   :  { %1322 = vmatprep.subr.bf16.mxu0 %v13141_v60  ;;  %v13237_v60 = vld [vmem:[#allocation8 + $0x64] ss:$8 sps:$4 sm:$0xff]  }
 0x149   :  { %1200 = vmatpush1.bf16.msra.mxu1 %v13136_v54 }
 0x14a   :  { %1201 = vmatprep.subr.bf16.mxu1 %v13144_v55  ;;  %v13223_v55 = vld [vmem:[#allocation8 + $0x40] ss:$8 sps:$4 sm:$0xff]  }
 0x14b   :  { %1323 = vmatpush1.bf16.msra.mxu0 %v13139_v61  ;;  %v13234_v61 = vld [vmem:[#allocation8 + $0x124] ss:$8 sps:$4 sm:$0xff]  }
 0x14c   :  { %1324 = vmatprep.subr.bf16.mxu0 %v13147_v0  ;;  %v13243_v0 = vld [vmem:[#allocation8 + $0x74] ss:$8 sps:$4 sm:$0xff]  }
 0x14d   :  { %1202 = vmatpush1.bf16.msra.mxu1 %v13142_v58  ;;  %v13226_v58 = vld [vmem:[#allocation8 + $0x110] ss:$8 sps:$4 sm:$0xff]  }
 0x14e   :  { %1279 = vmatprep.subr.bf16.mxu1 %v13150_v59  ;;  %v13229_v59 = vld [vmem:[#allocation8 + $0x50] ss:$8 sps:$4 sm:$0xff]  }
 0x14f   :  { %1325 = vmatpush1.bf16.msra.mxu0 %v13145_v1  ;;  %v13240_v1 = vld [vmem:[#allocation8 + $0x134] ss:$8 sps:$4 sm:$0xff]  }
 0x150   :  { %11639 = vmatmul.mubr.msk.bf16.vlgmr.msra.gmra.mrb[16].mxu1 %vm906_vm0, %v15655_v11  ;;  %1402 = vmatprep.subr.bf16.mxu0 %v13153_v5  ;;  %v13249_v5 = vld [vmem:[#allocation8 + $0x84] ss:$8 sps:$4 sm:$0xff]  }
 0x151   :  { %1280 = vmatpush1.bf16.msra.mxu1 %v13148_v62  ;;  %1311 = vmatprep.mubr.bf16.mxu1 %v15349_v2  ;;  %v13235_v62 = vld [vmem:[#allocation8 + $0x60] ss:$8 sps:$4 sm:$0xff]  }
 0x152   :  { %1281 = vmatprep.subr.bf16.mxu1 %v13156_v63  ;;  %11642 = vmatmul.mubr.msk.bf16.vlgmr.msra.gmra.mrb[16].mxu0 %vm906_vm0, %v15655_v11  ;;  %v13232_v63 = vld [vmem:[#allocation8 + $0x120] ss:$8 sps:$4 sm:$0xff]  }
 0x153   :  { %1403 = vmatpush1.bf16.msra.mxu0 %v13151_v6  ;;  %1434 = vmatprep.mubr.bf16.mxu0 %v15349_v2  ;;  %v13246_v6 = vld [vmem:[#allocation8 + $0x144] ss:$8 sps:$4 sm:$0xff]  }
 0x154   :  { %1404 = vmatprep.subr.bf16.mxu0 %v13159_v9  ;;  %v13255_v9 = vld [vmem:[#allocation8 + $0x94] ss:$8 sps:$4 sm:$0xff]  }
 0x155   :  { %1282 = vmatpush1.bf16.msra.mxu1 %v13154_v3  ;;  %v13241_v3 = vld [vmem:[#allocation8 + $0x70] ss:$8 sps:$4 sm:$0xff]  }
 0x156   :  { %1283 = vmatprep.subr.bf16.mxu1 %v13162_v4  ;;  %v13238_v4 = vld [vmem:[#allocation8 + $0x130] ss:$8 sps:$4 sm:$0xff]  }
 0x157   :  { %1405 = vmatpush1.bf16.msra.mxu0 %v13157_v12  ;;  %v13253_v12 = vld [vmem:[#allocation8 + $0x90] ss:$8 sps:$4 sm:$0xff]  }
 0x158   :  { %1406 = vmatprep.subr.bf16.mxu0 %v13165_v14  ;;  %v13261_v14 = vld [vmem:[#allocation8 + $0xa4] ss:$8 sps:$4 sm:$0xff]  }
 0x159   :  { %1284 = vmatpush1.bf16.msra.mxu1 %v13160_v7  ;;  %v13247_v7 = vld [vmem:[#allocation8 + $0x80] ss:$8 sps:$4 sm:$0xff]  }
 0x15a   :  { %1361 = vmatprep.subr.bf16.mxu1 %v13168_v8  ;;  %v13244_v8 = vld [vmem:[#allocation8 + $0x140] ss:$8 sps:$4 sm:$0xff]  }
 0x15b   :  { %1407 = vmatpush1.bf16.msra.mxu0 %v13163_v16  ;;  %v13259_v16 = vld [vmem:[#allocation8 + $0xa0] ss:$8 sps:$4 sm:$0xff]  }
 0x15c   :  { %11641 = vmatmul.mubr.msk.bf16.vlgmr.msra.gmra.mrb[20].mxu1 %vm906_vm0, %v15655_v11  ;;  %2146 = vmatprep.subr.bf16.mxu0 %v13171_v18  ;;  %v13267_v18 = vld [vmem:[#allocation8 + $0xb4] ss:$8 sps:$4 sm:$0xff]  }
 0x15d   :  { %1362 = vmatpush1.bf16.msra.mxu1 %v13166_v10  ;;  %1393 = vmatprep.mubr.bf16.mxu1 %v15349_v2  ;;  %v13252_v10 = vld [vmem:[#allocation8 + $0x154] ss:$8 sps:$4 sm:$0xff]  }
 0x15e   :  { %1363 = vmatprep.subr.bf16.mxu1 %v13174_v13  ;;  %11644 = vmatmul.mubr.msk.bf16.vlgmr.msra.gmra.mrb[20].mxu0 %vm906_vm0, %v15655_v11  ;;  %v13250_v13 = vld [vmem:[#allocation8 + $0x150] ss:$8 sps:$4 sm:$0xff]  }
 0x15f   :  { %2147 = vmatpush1.bf16.msra.mxu0 %v13169_v20  ;;  %2178 = vmatprep.mubr.bf16.mxu0 %v15349_v2  ;;  %v13265_v20 = vld [vmem:[#allocation8 + $0xb0] ss:$8 sps:$4 sm:$0xff]  }
 0x160   :  { %2148 = vmatprep.subr.bf16.mxu0 %v13177_v22  ;;  %v13273_v22 = vld [vmem:[#allocation8 + $0xc4] ss:$8 sps:$4 sm:$0xff]  }
 0x161   :  { %1364 = vmatpush1.bf16.msra.mxu1 %v13172_v15  ;;  %v13258_v15 = vld [vmem:[#allocation8 + $0x164] ss:$8 sps:$4 sm:$0xff]  }
 0x162   :  { %1365 = vmatprep.subr.bf16.mxu1 %v13180_v17  ;;  %v13256_v17 = vld [vmem:[#allocation8 + $0x160] ss:$8 sps:$4 sm:$0xff]  }
 0x163   :  { %2149 = vmatpush1.bf16.msra.mxu0 %v13175_v24  ;;  %v13271_v24 = vld [vmem:[#allocation8 + $0xc0] ss:$8 sps:$4 sm:$0xff]  }
 0x164   :  { %2150 = vmatprep.subr.bf16.mxu0 %v13183_v26  ;;  %v13279_v26 = vld [vmem:[#allocation8 + $0xd4] ss:$8 sps:$4 sm:$0xff]  }
 0x165   :  { %1366 = vmatpush1.bf16.msra.mxu1 %v13178_v19  ;;  %v13264_v19 = vld [vmem:[#allocation8 + $0x174] ss:$8 sps:$4 sm:$0xff]  }
 0x166   :  { %1443 = vmatprep.subr.bf16.mxu1 %v13186_v21  ;;  %v13262_v21 = vld [vmem:[#allocation8 + $0x170] ss:$8 sps:$4 sm:$0xff]  }
 0x167   :  { %2151 = vmatpush1.bf16.msra.mxu0 %v13181_v28  ;;  %v13277_v28 = vld [vmem:[#allocation8 + $0xd0] ss:$8 sps:$4 sm:$0xff]  }
 0x168   :  { %11643 = vmatmul.mubr.msk.bf16.vlgmr.msra.gmra.mrb[24].mxu1 %vm906_vm0, %v15655_v11  ;;  %2152 = vmatprep.subr.bf16.mxu0 %v13189_v30  ;;  %v13285_v30 = vld [vmem:[#allocation8 + $0xe4] ss:$8 sps:$4 sm:$0xff]  }
 0x169   :  { %1444 = vmatpush1.bf16.msra.mxu1 %v13184_v23  ;;  %1475 = vmatprep.mubr.bf16.mxu1 %v15349_v2  ;;  %v13210_v2 = vld [vmem:[#allocation8 + $0x14] ss:$8 sps:$4 sm:$0xff]   ;;  %v13270_v23 = vld [vmem:[#allocation8 + $0x184] ss:$8 sps:$4 sm:$0xff]  }
 0x16a   :  { %1445 = vmatprep.subr.bf16.mxu1 %v13192_v25  ;;  %v13268_v25 = vld [vmem:[#allocation8 + $0x180] ss:$8 sps:$4 sm:$0xff]  }
 0x16b   :  { %2153 = vmatpush1.bf16.msra.mxu0 %v13187_v32  ;;  %v13283_v32 = vld [vmem:[#allocation8 + $0xe0] ss:$8 sps:$4 sm:$0xff]  }
 0x16c   :  { %2154 = vmatprep.subr.bf16.mxu0 %v13195_v34  ;;  %v13291_v34 = vld [vmem:[#allocation8 + $0xf4] ss:$8 sps:$4 sm:$0xff]  }
 0x16d   :  { %1446 = vmatpush1.bf16.msra.mxu1 %v13190_v27  ;;  %v13276_v27 = vld [vmem:[#allocation8 + $0x194] ss:$8 sps:$4 sm:$0xff]  }
 0x16e   :  { %1447 = vmatprep.subr.bf16.mxu1 %v13198_v29  ;;  %v13274_v29 = vld [vmem:[#allocation8 + $0x190] ss:$8 sps:$4 sm:$0xff]  }
 0x16f   :  { %2155 = vmatpush1.bf16.msra.mxu0 %v13193_v36  ;;  %v13289_v36 = vld [vmem:[#allocation8 + $0xf0] ss:$8 sps:$4 sm:$0xff]  }
 0x170   :  { %2156 = vmatprep.subr.bf16.mxu0 %v13201_v37  ;;  %v13300_v37 = vld [vmem:[#allocation8 + $0x204] ss:$8 sps:$4 sm:$0xff]  }
 0x171   :  { %1448 = vmatpush1.bf16.msra.mxu1 %v13196_v31  ;;  %v13282_v31 = vld [vmem:[#allocation8 + $0x1a4] ss:$8 sps:$4 sm:$0xff]  }
 0x172   :  { %4427 = vmatprep.subr.bf16.mxu1 %v13204_v33  ;;  %v13280_v33 = vld [vmem:[#allocation8 + $0x1a0] ss:$8 sps:$4 sm:$0xff]  }
 0x173   :  { %2157 = vmatpush1.bf16.msra.mxu0 %v13199_v39  ;;  %v13292_v39 = vld [vmem:[#allocation8 + $0x1c0] ss:$8 sps:$4 sm:$0xff]  }
 0x174   :  { %11645 = vmatmul.mubr.msk.bf16.vlgmr.msra.gmra.mrb[28].mxu1 %vm906_vm0, %v15655_v11  ;;  %v2047_v11 = vmul.f32 %v2045_v43, %v15698_v42  ;;  %2158 = vmatprep.subr.bf16.mxu0 %v13207_v40  ;;  %v13297_v40 = vld [vmem:[#allocation8 + $0x1d4] ss:$8 sps:$4 sm:$0xff]  }
 0x175   :  { %4428 = vmatpush1.bf16.msra.mxu1 %v13202_v35  ;;  %v13288_v35 = vld [vmem:[#allocation8 + $0x1b4] ss:$8 sps:$4 sm:$0xff]  }
 0x176   :  { %4429 = vmatprep.subr.bf16.mxu1 %v13210_v2  ;;  %v2048_v50 = vsel %vm2046_vm1, %v2045_v43, %v2047_v11  ;;  %v13286_v2 = vld [vmem:[#allocation8 + $0x1b0] ss:$8 sps:$4 sm:$0xff]   ;;  %v13303_v43 = vld [vmem:[#allocation8 + $0x1e4] ss:$8 sps:$4 sm:$0xff]  }
 0x177   :  { %2159 = vmatpush1.bf16.msra.mxu0 %v13205_v45  ;;  %v2065_v54 = vpack.c.bf16 %v2048_v50, %v2048_v50  ;;  %v13309_v45 = vld [vmem:[#allocation8 + $0x1f4] ss:$8 sps:$4 sm:$0xff]   ;;  %v13307_v11 = vld [vmem:[#allocation8 + $0x1f0] ss:$8 sps:$4 sm:$0xff]  }
 0x178   :  { %2160 = vmatprep.subr.bf16.mxu0 %v13213_v47  ;;  %v346_v47 = vlaneseq }
 0x179   :  { %4430 = vmatpush1.bf16.msra.mxu1 %v13208_v38  ;;  %v13294_v38 = vld [vmem:[#allocation8 + $0x1c4] ss:$8 sps:$4 sm:$0xff]  }
 0x17a   :  { %4431 = vmatprep.subr.bf16.mxu1 %v13216_v41  ;;  %v13295_v41 = vld [vmem:[#allocation8 + $0x1d0] ss:$8 sps:$4 sm:$0xff]  }
 0x17b   :  { %2161 = vmatpush1.bf16.msra.mxu0 %v13211_v49  ;;  %v15706_v49 = vld [vmem:[#allocation6] sm:$0xff] }
 0x17c   :  { %4468 = vmatprep.subr.bf16.mxu0 %v13222_v52 }
 0x17d   :  { %4432 = vmatpush1.bf16.msra.mxu1 %v13214_v44  ;;  %v13301_v44 = vld [vmem:[#allocation8 + $0x1e0] ss:$8 sps:$4 sm:$0xff]  }
 0x17e   :  { %4433 = vmatprep.subr.bf16.mxu1 %v13219_v46  ;;  %2179 = vmatmul.mubr.bf16.vlgmr.msra.gmra.mrb[24].mxu0 %v2065_v54  ;;  %v13318_v46 = vld [vmem:[#allocation8 + $0x304] ss:$8 sps:$4 sm:$0xff]  }
 0x17f   :  { %4469 = vmatpush1.bf16.msra.mxu0 %v13220_v53 }
 0x180   :  { %4470 = vmatprep.subr.bf16.mxu0 %v13228_v57 }
 0x181   :  { %4434 = vmatpush1.bf16.msra.mxu1 %v13217_v48  ;;  %v15704_v48 = vshrl.u32 %v346_v47, 7  ;;  %v13330_v47 = vld [vmem:[#allocation8 + $0x324] ss:$8 sps:$4 sm:$0xff]  }
 0x182   :  { %4435 = vmatprep.subr.bf16.mxu1 %v13225_v51 }
 0x183   :  { %4471 = vmatpush1.bf16.msra.mxu0 %v13226_v58  ;;  %v15709_v50 = vsub.s32 0, %v15704_v48  ;;  %v15712_v51 = vsub.s32 1, %v15704_v48 }
 0x184   :  { %4472 = vmatprep.subr.bf16.mxu0 %v13234_v61  ;;  %v15720_v61 = vsub.s32 5, %v15704_v48 }
 0x185   :  { %4436 = vmatpush1.bf16.msra.mxu1 %v13223_v55  ;;  %v349_v52 = vrot.slane %v15706_v49, %v15709_v50  ;;  %v353_v53 = vrot.slane %v15706_v49, %v15712_v51 }
 0x186   :  { %4437 = vmatprep.subr.bf16.mxu1 %v13231_v56 }
 0x187   :  { %4473 = vmatpush1.bf16.msra.mxu0 %v13232_v63 }
 0x188   :  { %4474 = vmatprep.subr.bf16.mxu0 %v13240_v1  ;;  %v15724_v1 = vsub.s32 2, %v15704_v48 }
 0x189   :  { %4438 = vmatpush1.bf16.msra.mxu1 %v13229_v59 }
 0x18a   :  { %4439 = vmatprep.subr.bf16.mxu1 %v13237_v60 }
 0x18b   :  { %4475 = vmatpush1.bf16.msra.mxu0 %v13238_v4  ;;  %v15727_v4 = vsub.s32 3, %v15704_v48 }
 0x18c   :  { %4476 = vmatprep.subr.bf16.mxu0 %v13246_v6  ;;  %v369_v6 = vrot.slane %v15706_v49, %v15720_v61 }
 0x18d   :  { %4440 = vmatpush1.bf16.msra.mxu1 %v13235_v62 }
 0x18e   :  { %4441 = vmatprep.subr.bf16.mxu1 %v13243_v0  ;;  %v13298_v0 = vld [vmem:[#allocation8 + $0x200] ss:$8 sps:$4 sm:$0xff]  }
 0x18f   :  { %4477 = vmatpush1.bf16.msra.mxu0 %v13244_v8  ;;  %v13306_v8 = vld [vmem:[#allocation8 + $0x214] ss:$8 sps:$4 sm:$0xff]  }
 0x190   :  { %4478 = vmatprep.subr.bf16.mxu0 %v13252_v10  ;;  %v13304_v10 = vld [vmem:[#allocation8 + $0x210] ss:$8 sps:$4 sm:$0xff]  }
 0x191   :  { %4442 = vmatpush1.bf16.msra.mxu1 %v13241_v3 }
 0x192   :  { %4443 = vmatprep.subr.bf16.mxu1 %v13249_v5 }
 0x193   :  { %4479 = vmatpush1.bf16.msra.mxu0 %v13250_v13  ;;  %v361_v13 = vrot.slane %v15706_v49, %v15727_v4 }
 0x194   :  { %4480 = vmatprep.subr.bf16.mxu0 %v13258_v15 }
 0x195   :  { %4444 = vmatpush1.bf16.msra.mxu1 %v13247_v7 }
 0x196   :  { %4445 = vmatprep.subr.bf16.mxu1 %v13255_v9  ;;  %v357_v9 = vrot.slane %v15706_v49, %v15724_v1 }
 0x197   :  { %4481 = vmatpush1.bf16.msra.mxu0 %v13256_v17 }
 0x198   :  { %4482 = vmatprep.subr.bf16.mxu0 %v13264_v19 }
 0x199   :  { %4446 = vmatpush1.bf16.msra.mxu1 %v13253_v12 }
 0x19a   :  { %4447 = vmatprep.subr.bf16.mxu1 %v13261_v14 }
 0x19b   :  { %4483 = vmatpush1.bf16.msra.mxu0 %v13262_v21 }
 0x19c   :  { %4484 = vmatprep.subr.bf16.mxu0 %v13270_v23 }
 0x19d   :  { %4448 = vmatpush1.bf16.msra.mxu1 %v13259_v16 }
 0x19e   :  { %4449 = vmatprep.subr.bf16.mxu1 %v13267_v18  ;;  %v13312_v18 = vld [vmem:[#allocation8 + $0x224] ss:$8 sps:$4 sm:$0xff]  }
 0x19f   :  { %4485 = vmatpush1.bf16.msra.mxu0 %v13268_v25 }
 0x1a0   :  { %4486 = vmatprep.subr.bf16.mxu0 %v13276_v27  ;;  %v13310_v27 = vld [vmem:[#allocation8 + $0x220] ss:$8 sps:$4 sm:$0xff]  }
 0x1a1   :  { %4450 = vmatpush1.bf16.msra.mxu1 %v13265_v20 }
 0x1a2   :  { %4451 = vmatprep.subr.bf16.mxu1 %v13273_v22 }
 0x1a3   :  { %4487 = vmatpush1.bf16.msra.mxu0 %v13274_v29 }
 0x1a4   :  { %4488 = vmatprep.subr.bf16.mxu0 %v13282_v31 }
 0x1a5   :  { %4452 = vmatpush1.bf16.msra.mxu1 %v13271_v24 }
 0x1a6   :  { %4453 = vmatprep.subr.bf16.mxu1 %v13279_v26 }
 0x1a7   :  { %4489 = vmatpush1.bf16.msra.mxu0 %v13280_v33  ;;  %v13313_v33 = vld [vmem:[#allocation8 + $0x230] ss:$8 sps:$4 sm:$0xff]  }
 0x1a8   :  { %4490 = vmatprep.subr.bf16.mxu0 %v13288_v35 }
 0x1a9   :  { %4454 = vmatpush1.bf16.msra.mxu1 %v13277_v28 }
 0x1aa   :  { %4455 = vmatprep.subr.bf16.mxu1 %v13285_v30  ;;  %v13315_v30 = vld [vmem:[#allocation8 + $0x234] ss:$8 sps:$4 sm:$0xff]  }
 0x1ab   :  { %4491 = vmatpush1.bf16.msra.mxu0 %v13286_v2  ;;  %v13324_v2 = vld [vmem:[#allocation8 + $0x314] ss:$8 sps:$4 sm:$0xff]  }
 0x1ac   :  { %4492 = vmatprep.subr.bf16.mxu0 %v13294_v38 }
 0x1ad   :  { %4456 = vmatpush1.bf16.msra.mxu1 %v13283_v32 }
 0x1ae   :  { %4457 = vmatprep.subr.bf16.mxu1 %v13291_v34  ;;  %v13316_v34 = vld [vmem:[#allocation8 + $0x300] ss:$8 sps:$4 sm:$0xff]  }
 0x1af   :  { %4493 = vmatpush1.bf16.msra.mxu0 %v13292_v39 }
 0x1b0   :  { %4494 = vmatprep.subr.bf16.mxu0 %v13297_v40  ;;  %v13319_v40 = vld [vmem:[#allocation8 + $0x240] ss:$8 sps:$4 sm:$0xff]  }
 0x1b1   :  { %4458 = vmatpush1.bf16.msra.mxu1 %v13289_v36  ;;  %v13321_v36 = vld [vmem:[#allocation8 + $0x244] ss:$8 sps:$4 sm:$0xff]  }
 0x1b2   :  { %4509 = vmatprep.subr.bf16.mxu1 %v13300_v37  ;;  %v15741_v37 = vsub.s32 7, %v15704_v48 }
 0x1b3   :  { %4495 = vmatpush1.bf16.msra.mxu0 %v13295_v41 }
 0x1b4   :  { %4496 = vmatprep.subr.bf16.mxu0 %v13303_v43  ;;  %v13322_v43 = vld [vmem:[#allocation8 + $0x310] ss:$8 sps:$4 sm:$0xff]  }
 0x1b7   :  { %4497 = vmatpush1.bf16.msra.mxu0 %v13301_v44  ;;  %v13327_v44 = vld [vmem:[#allocation8 + $0x254] ss:$8 sps:$4 sm:$0xff]  }
 0x1b8   :  { %4498 = vmatprep.subr.bf16.mxu0 %v13309_v45  ;;  %v377_v45 = vrot.slane %v15706_v49, %v15741_v37 }
 0x1bb   :  { %4499 = vmatpush1.bf16.msra.mxu0 %v13307_v11 }
 0x1bc   :  { %4550 = vmatprep.subr.bf16.mxu0 %v13318_v46 }
 0x1f3   :  { %v944_v54 = vpop.f32.mrb[0].mxu1 }
 0x1f4   :  { %v945_v55 = vadd.f32 %v944_v54, %v349_v52  ;;  %v946_v56 = vpop.f32.mrb[1].mxu1 }
 0x1f5   :  { %v947_v57 = vadd.f32 %v946_v56, %v353_v53  ;;  %v948_v58 = vpop.f32.mrb[2].mxu1  ;;  %v15733_v12 = vpop.f32.mrb[0].mxu0 }
 0x1f6   :  { %vm1484_vm2 = vcmp.ge.f32.partialorder %v945_v55, 0.0  ;;  %v1513_v59 = vmul.f32 %v15698_v42, %v945_v55  ;;  %v949_v60 = vpop.f32.mrb[3].mxu1  ;;  %v1028_v14 = vpop.f32.mrb[1].mxu0  ;;  %v13328_v58 = vld [vmem:[#allocation8 + $0x320] ss:$8 sps:$4 sm:$0xff]  }
 0x1f7   :  { %vm1485_vm3 = vcmp.ge.f32.partialorder %v947_v57, 0.0  ;;  %v1514_v62 = vmul.f32 %v15698_v42, %v947_v57  ;;  %v1029_v15 = vadd.f32 %v1028_v14, %v369_v6  ;;  %v1030_v16 = vpop.f32.mrb[2].mxu0  ;;  %v13337_v14 = vld [vmem:[#allocation8 + $0x270] ss:$8 sps:$4 sm:$0xff]  }
 0x1f8   :  { %v1541_v63 = vsel %vm1484_vm2, %v945_v55, %v1513_v59  ;;  %v1031_v19 = vpop.f32.mrb[3].mxu0  ;;  %v13325_v55 = vld [vmem:[#allocation8 + $0x250] ss:$8 sps:$4 sm:$0xff]   ;;  %v13333_v59 = vld [vmem:[#allocation8 + $0x264] ss:$8 sps:$4 sm:$0xff]  }
 0x1f9   :  { %v1542_v3 = vsel %vm1485_vm3, %v947_v57, %v1514_v62  ;;  %v2017_v7 = vpack.c.bf16 %v1541_v63, %v1541_v63  ;;  %vm1489_vm4 = vcmp.ge.f32.partialorder %v1029_v15, 0.0  ;;  %v1518_v22 = vmul.f32 %v15698_v42, %v1029_v15  ;;  %v13336_v62 = vld [vmem:[#allocation8 + $0x334] ss:$8 sps:$4 sm:$0xff]   ;;  %v13340_v19 = vld [vmem:[#allocation8 + $0x340] ss:$8 sps:$4 sm:$0xff]  }
 0x1fa   :  { %v2018_v5 = vpack.c.bf16 %v1542_v3, %v1542_v3  ;;  %v15752_v63 = vsub.s32 4, %v15704_v48  ;;  %v15755_v3 = vld [vmem:[#allocation6 + $0x8] sm:$0xff] }
 0x1fb   :  { %v1546_v28 = vsel %vm1489_vm4, %v1029_v15, %v1518_v22  ;;  %v389_v16 = vrot.slane %v15755_v3, %v15724_v1  ;;  %v13348_v22 = vld [vmem:[#allocation8 + $0x354] ss:$8 sps:$4 sm:$0xff]  }
 0x1fc   :  { %4459 = vmatprep.mubr.bf16.mxu1 %v2018_v5  ;;  %v2022_v31 = vpack.c.bf16 %v1546_v28, %v1546_v28  ;;  %v397_v6 = vrot.slane %v15755_v3, %v15752_v63  ;;  %v13343_v28 = vld [vmem:[#allocation8 + $0x280] ss:$8 sps:$4 sm:$0xff]  }
 0x1fd   :  { %4460 = vmatmul.mubr.bf16.vlgmr.msra.gmra.mrb[32].mxu1 %v2017_v7  ;;  %v13331_v7 = vld [vmem:[#allocation8 + $0x260] ss:$8 sps:$4 sm:$0xff]  }
 0x1fe   :  { %4510 = vmatpush1.bf16.msra.mxu1 %v13298_v0  ;;  %4541 = vmatprep.mubr.bf16.mxu1 %v2022_v31  ;;  %v13351_v31 = vld [vmem:[#allocation8 + $0x294] ss:$8 sps:$4 sm:$0xff]  }
 0x1ff   :  { %v985_v17 = vpop.f32.mrb[4].mxu1  ;;  %4511 = vmatprep.subr.bf16.mxu1 %v13306_v8  ;;  %v13334_v8 = vld [vmem:[#allocation8 + $0x330] ss:$8 sps:$4 sm:$0xff]  }
 0x200   :  { %v986_v20 = vadd.f32 %v985_v17, %v357_v9  ;;  %v987_v21 = vpop.f32.mrb[5].mxu1 }
 0x201   :  { %v988_v23 = vadd.f32 %v987_v21, %v361_v13  ;;  %v989_v24 = vpop.f32.mrb[6].mxu1  ;;  %v15743_v41 = vpop.f32.mrb[4].mxu0  ;;  %v13342_v13 = vld [vmem:[#allocation8 + $0x344] ss:$8 sps:$4 sm:$0xff]  }
 0x202   :  { %vm1486_vm5 = vcmp.ge.f32.partialorder %v986_v20, 0.0  ;;  %v1515_v25 = vmul.f32 %v15698_v42, %v986_v20  ;;  %4512 = vmatpush1.bf16.msra.mxu1 %v13304_v10  ;;  %v990_v26 = vpop.f32.mrb[7].mxu1  ;;  %v15747_v11 = vpop.f32.mrb[5].mxu0  ;;  %v13339_v10 = vld [vmem:[#allocation8 + $0x274] ss:$8 sps:$4 sm:$0xff]  }
 0x203   :  { %vm1487_vm6 = vcmp.ge.f32.partialorder %v988_v23, 0.0  ;;  %v1516_v29 = vmul.f32 %v15698_v42, %v988_v23  ;;  %4513 = vmatprep.subr.bf16.mxu1 %v13312_v18  ;;  %v1112_v46 = vpop.f32.mrb[6].mxu0 }
 0x204   :  { %v1543_v32 = vsel %vm1486_vm5, %v986_v20, %v1515_v25  ;;  %v1113_v53 = vpop.f32.mrb[7].mxu0  ;;  %v13345_v20 = vld [vmem:[#allocation8 + $0x284] ss:$8 sps:$4 sm:$0xff]  }
 0x205   :  { %v1544_v35 = vsel %vm1487_vm6, %v988_v23, %v1516_v29  ;;  %v2019_v39 = vpack.c.bf16 %v1543_v32, %v1543_v32  ;;  %v13346_v29 = vld [vmem:[#allocation8 + $0x350] ss:$8 sps:$4 sm:$0xff]   ;;  %v13354_v32 = vld [vmem:[#allocation8 + $0x364] ss:$8 sps:$4 sm:$0xff]  }
 0x206   :  { %4514 = vmatpush1.bf16.msra.mxu1 %v13310_v27  ;;  %v2020_v38 = vpack.c.bf16 %v1544_v35, %v1544_v35  ;;  %v15770_v35 = vsub.s32 6, %v15704_v48  ;;  %v13363_v48 = vld [vmem:[#allocation8 + $0x2b4] ss:$8 sps:$4 sm:$0xff]  }
 0x207   :  { %4515 = vmatprep.subr.bf16.mxu1 %v13315_v30 }
 0x208   :  { %4500 = vmatprep.mubr.bf16.mxu0 %v2020_v38  ;;  %v13355_v38 = vld [vmem:[#allocation8 + $0x2a0] ss:$8 sps:$4 sm:$0xff]  }
 0x209   :  { %4501 = vmatmul.mubr.bf16.vlgmr.msra.gmra.mrb[28].mxu0 %v2019_v39 }
 0x20a   :  { %4516 = vmatpush1.bf16.msra.mxu1 %v13313_v33  ;;  %4551 = vmatpush1.bf16.msra.mxu0 %v13316_v34  ;;  %v13349_v33 = vld [vmem:[#allocation8 + $0x290] ss:$8 sps:$4 sm:$0xff]   ;;  %v13352_v34 = vld [vmem:[#allocation8 + $0x360] ss:$8 sps:$4 sm:$0xff]  }
 0x20b   :  { %4517 = vmatprep.subr.bf16.mxu1 %v13321_v36  ;;  %4552 = vmatprep.subr.bf16.mxu0 %v13324_v2  ;;  %v15749_v52 = vpop.f32.mrb[8].mxu1  ;;  %v13357_v36 = vld [vmem:[#allocation8 + $0x2a4] ss:$8 sps:$4 sm:$0xff]   ;;  %v13360_v2 = vld [vmem:[#allocation8 + $0x374] ss:$8 sps:$4 sm:$0xff]  }
 0x20c   :  { %v1069_v54 = vpop.f32.mrb[9].mxu1 }
 0x20d   :  { %v1070_v56 = vadd.f32 %v1069_v54, %v377_v45  ;;  %v1071_v57 = vpop.f32.mrb[10].mxu1  ;;  %v1190_v15 = vpop.f32.mrb[8].mxu0  ;;  %v13358_v45 = vld [vmem:[#allocation8 + $0x370] ss:$8 sps:$4 sm:$0xff]  }
 0x20e   :  { %4518 = vmatpush1.bf16.msra.mxu1 %v13319_v40  ;;  %4553 = vmatpush1.bf16.msra.mxu0 %v13322_v43  ;;  %v1072_v60 = vpop.f32.mrb[11].mxu1  ;;  %v15761_v17 = vadd.f32 %v1190_v15, %v397_v6  ;;  %v15763_v18 = vpop.f32.mrb[9].mxu0  ;;  %v405_v40 = vrot.slane %v15755_v3, %v15770_v35  ;;  %v15784_v6 = vld [vmem:[#allocation6 + $0x10] sm:$0xff]  ;;  %v13378_v15 = vld [vmem:[#allocation8 + $0x3a4] ss:$8 sps:$4 sm:$0xff]  }
 0x20f   :  { %4519 = vmatprep.subr.bf16.mxu1 %v13327_v44  ;;  %4554 = vmatprep.subr.bf16.mxu0 %v13330_v47  ;;  %vm1491_vm7 = vcmp.ge.f32.partialorder %v1070_v56, 0.0  ;;  %v1520_v0 = vmul.f32 %v15698_v42, %v1070_v56  ;;  %v1194_v21 = vpop.f32.mrb[10].mxu0  ;;  %v409_v44 = vrot.slane %v15755_v3, %v15741_v37  ;;  %v13366_v47 = vld [vmem:[#allocation8 + $0x384] ss:$8 sps:$4 sm:$0xff]   ;;  %v13364_v60 = vld [vmem:[#allocation8 + $0x380] ss:$8 sps:$4 sm:$0xff]  }
 0x210   :  { %v1195_v23 = vpop.f32.mrb[11].mxu0  ;;  %v385_v21 = vrot.slane %v15755_v3, %v15712_v51  ;;  %vm1496_vm0 = vcmp.ge.f32.partialorder %v15761_v17, 0.0 }
 0x211   :  { %v1548_v5 = vsel %vm1491_vm7, %v1070_v56, %v1520_v0 }
 0x212   :  { %4520 = vmatpush1.bf16.msra.mxu1 %v13325_v55  ;;  %4555 = vmatpush1.bf16.msra.mxu0 %v13328_v58  ;;  %v2024_v9 = vpack.c.bf16 %v1548_v5, %v1548_v5  ;;  %v13361_v55 = vld [vmem:[#allocation8 + $0x2b0] ss:$8 sps:$4 sm:$0xff]   ;;  %v13372_v5 = vld [vmem:[#allocation8 + $0x394] ss:$8 sps:$4 sm:$0xff]  }
 0x213   :  { %4521 = vmatprep.subr.bf16.mxu1 %v13333_v59  ;;  %4556 = vmatprep.subr.bf16.mxu0 %v13336_v62  ;;  %v13369_v62 = vld [vmem:[#allocation8 + $0x2c4] ss:$8 sps:$4 sm:$0xff]  }
 0x214   :  { %4582 = vmatprep.mubr.bf16.mxu0 %v2024_v9  ;;  %v13370_v9 = vld [vmem:[#allocation8 + $0x390] ss:$8 sps:$4 sm:$0xff]  }
 0x216   :  { %4522 = vmatpush1.bf16.msra.mxu1 %v13331_v7  ;;  %4557 = vmatpush1.bf16.msra.mxu0 %v13334_v8  ;;  %v429_v7 = vrot.slane %v15784_v6, %v15752_v63  ;;  %v13367_v8 = vld [vmem:[#allocation8 + $0x2c0] ss:$8 sps:$4 sm:$0xff]  }
 0x217   :  { %4523 = vmatprep.subr.bf16.mxu1 %v13339_v10  ;;  %4558 = vmatprep.subr.bf16.mxu0 %v13342_v13  ;;  %v1149_v24 = vpop.f32.mrb[12].mxu1  ;;  %v365_v10 = vrot.slane %v15706_v49, %v15752_v63  ;;  %v433_v13 = vrot.slane %v15784_v6, %v15720_v61 }
 0x218   :  { %v15765_v25 = vadd.f32 %v1149_v24, %v389_v16  ;;  %v15767_v26 = vpop.f32.mrb[13].mxu1  ;;  %v13373_v16 = vld [vmem:[#allocation8 + $0x2d0] ss:$8 sps:$4 sm:$0xff]   ;;  %v13376_v24 = vld [vmem:[#allocation8 + $0x3a0] ss:$8 sps:$4 sm:$0xff]  }
 0x219   :  { %v1153_v27 = vpop.f32.mrb[14].mxu1  ;;  %v15772_v39 = vpop.f32.mrb[12].mxu0 }
 0x21a   :  { %4524 = vmatpush1.bf16.msra.mxu1 %v13337_v14  ;;  %4559 = vmatpush1.bf16.msra.mxu0 %v13340_v19  ;;  %v1154_v30 = vpop.f32.mrb[15].mxu1  ;;  %v15776_v43 = vpop.f32.mrb[13].mxu0  ;;  %v13375_v14 = vld [vmem:[#allocation8 + $0x2d4] ss:$8 sps:$4 sm:$0xff]   ;;  %v1027_v27 = vadd.f32 %v15733_v12, %v365_v10  ;;  %vm1494_vm14 = vcmp.ge.f32.partialorder %v15765_v25, 0.0 }
 0x21b   :  { %4525 = vmatprep.subr.bf16.mxu1 %v13345_v20  ;;  %4560 = vmatprep.subr.bf16.mxu0 %v13348_v22  ;;  %v1276_v46 = vpop.f32.mrb[14].mxu0  ;;  %v421_v20 = vrot.slane %v15784_v6, %v15724_v1 }
 0x21c   :  { %v1277_v53 = vpop.f32.mrb[15].mxu0  ;;  %v1517_v12 = vmul.f32 %v15698_v42, %v1027_v27  ;;  %vm1488_vm8 = vcmp.ge.f32.partialorder %v1027_v27, 0.0  ;;  %v13390_v46 = vld [vmem:[#allocation8 + $0x3c4] ss:$8 sps:$4 sm:$0xff]  }
 0x21e   :  { %4526 = vmatpush1.bf16.msra.mxu1 %v13343_v28  ;;  %4561 = vmatpush1.bf16.msra.mxu0 %v13346_v29  ;;  %v13381_v28 = vld [vmem:[#allocation8 + $0x2e4] ss:$8 sps:$4 sm:$0xff]   ;;  %v1545_v53 = vsel %vm1488_vm8, %v1027_v27, %v1517_v12  ;;  %v13397_v27 = vld [vmem:[#allocation8 + $0x3e0] ss:$8 sps:$4 sm:$0xff]  }
 0x21f   :  { %4527 = vmatprep.subr.bf16.mxu1 %v13351_v31  ;;  %4562 = vmatprep.subr.bf16.mxu0 %v13354_v32  ;;  %v13384_v31 = vld [vmem:[#allocation8 + $0x3b4] ss:$8 sps:$4 sm:$0xff]  }
 0x222   :  { %4528 = vmatpush1.bf16.msra.mxu1 %v13349_v33  ;;  %4563 = vmatpush1.bf16.msra.mxu0 %v13352_v34 }
 0x223   :  { %4529 = vmatprep.subr.bf16.mxu1 %v13357_v36  ;;  %4564 = vmatprep.subr.bf16.mxu0 %v13360_v2  ;;  %v1231_v54 = vpop.f32.mrb[16].mxu1  ;;  %v1111_v2 = vadd.f32 %v15747_v11, %v385_v21  ;;  %v13388_v11 = vld [vmem:[#allocation8 + $0x3c0] ss:$8 sps:$4 sm:$0xff]  }
 0x224   :  { %v15780_v56 = vadd.f32 %v1231_v54, %v405_v40  ;;  %v1233_v57 = vpop.f32.mrb[17].mxu1  ;;  %v13379_v40 = vld [vmem:[#allocation8 + $0x2e0] ss:$8 sps:$4 sm:$0xff]   ;;  %v13385_v54 = vld [vmem:[#allocation8 + $0x2f0] ss:$8 sps:$4 sm:$0xff]  }
 0x225   :  { %v15782_v58 = vadd.f32 %v1233_v57, %v409_v44  ;;  %v1235_v59 = vpop.f32.mrb[18].mxu1  ;;  %v1354_v19 = vpop.f32.mrb[16].mxu0  ;;  %v13382_v44 = vld [vmem:[#allocation8 + $0x3b0] ss:$8 sps:$4 sm:$0xff]   ;;  %vm1493_vm9 = vcmp.ge.f32.partialorder %v1111_v2, 0.0 }
 0x226   :  { %4530 = vmatpush1.bf16.msra.mxu1 %v13355_v38  ;;  %4565 = vmatpush1.bf16.msra.mxu0 %v13358_v45  ;;  %v1236_v0 = vpop.f32.mrb[19].mxu1  ;;  %v15796_v22 = vadd.f32 %v1354_v19, %v429_v7  ;;  %v1356_v23 = vpop.f32.mrb[17].mxu0  ;;  %v13396_v57 = vld [vmem:[#allocation8 + $0x404] ss:$8 sps:$4 sm:$0xff]   ;;  %v373_v59 = vrot.slane %v15706_v49, %v15770_v35  ;;  %v2021_v7 = vpack.c.bf16 %v1545_v53, %v1545_v53  ;;  %vm1498_vm2 = vcmp.ge.f32.partialorder %v15780_v56, 0.0 }
 0x227   :  { %4531 = vmatprep.subr.bf16.mxu1 %v13363_v48  ;;  %4566 = vmatprep.subr.bf16.mxu0 %v13366_v47  ;;  %v15799_v29 = vadd.f32 %v1356_v23, %v433_v13  ;;  %v1358_v30 = vpop.f32.mrb[18].mxu0  ;;  %v13387_v48 = vld [vmem:[#allocation8 + $0x2f4] ss:$8 sps:$4 sm:$0xff]   ;;  %v1522_v47 = vmul.f32 %v15698_v42, %v1111_v2  ;;  %v393_v13 = vrot.slane %v15755_v3, %v15727_v4  ;;  %vm1499_vm15 = vcmp.ge.f32.partialorder %v15782_v58, 0.0 }
 0x228   :  { %v1359_v32 = vpop.f32.mrb[19].mxu0  ;;  %vm1504_vm8 = vcmp.ge.f32.partialorder %v15796_v22, 0.0 }
 0x229   :  { %v1550_v10 = vsel %vm1493_vm9, %v1111_v2, %v1522_v47  ;;  %v1152_v30 = vadd.f32 %v15767_v26, %v393_v13  ;;  %v13408_v2 = vld [vmem:[#allocation8 + $0x424] ss:$8 sps:$4 sm:$0xff]   ;;  %v13406_v26 = vld [vmem:[#allocation8 + $0x420] ss:$8 sps:$4 sm:$0xff]   ;;  %v13423_v13 = vld [vmem:[#allocation8 + $0x454] ss:$8 sps:$4 sm:$0xff]  }
 0x22a   :  { %4532 = vmatpush1.bf16.msra.mxu1 %v13361_v55  ;;  %4567 = vmatpush1.bf16.msra.mxu0 %v13364_v60  ;;  %v13393_v55 = vld [vmem:[#allocation8 + $0x3d4] ss:$8 sps:$4 sm:$0xff]   ;;  %v13391_v60 = vld [vmem:[#allocation8 + $0x3d0] ss:$8 sps:$4 sm:$0xff]   ;;  %v2026_v21 = vpack.c.bf16 %v1550_v10, %v1550_v10  ;;  %v13412_v47 = vld [vmem:[#allocation8 + $0x500] ss:$8 sps:$4 sm:$0xff]  }
 0x22b   :  { %4533 = vmatprep.subr.bf16.mxu1 %v13369_v62  ;;  %4568 = vmatprep.subr.bf16.mxu0 %v13372_v5  ;;  %v13394_v62 = vld [vmem:[#allocation8 + $0x400] ss:$8 sps:$4 sm:$0xff]   ;;  %v437_v5 = vrot.slane %v15784_v6, %v15770_v35  ;;  %v1524_v12 = vmul.f32 %v15698_v42, %v1152_v30  ;;  %vm1495_vm11 = vcmp.ge.f32.partialorder %v1152_v30, 0.0  ;;  %vm1505_vm5 = vcmp.ge.f32.partialorder %v15799_v29, 0.0 }
 0x22e   :  { %4534 = vmatpush1.bf16.msra.mxu1 %v13367_v8  ;;  %4569 = vmatpush1.bf16.msra.mxu0 %v13370_v9  ;;  %v13399_v8 = vld [vmem:[#allocation8 + $0x3e4] ss:$8 sps:$4 sm:$0xff]   ;;  %v13402_v9 = vld [vmem:[#allocation8 + $0x414] ss:$8 sps:$4 sm:$0xff]  }
 0x22f   :  { %4535 = vmatprep.subr.bf16.mxu1 %v13375_v14  ;;  %4570 = vmatprep.subr.bf16.mxu0 %v13378_v15  ;;  %v1313_v33 = vpop.f32.mrb[20].mxu1  ;;  %v441_v15 = vrot.slane %v15784_v6, %v15741_v37 }
 0x230   :  { %v15801_v34 = vadd.f32 %v1313_v33, %v421_v20  ;;  %v15803_v36 = vpop.f32.mrb[21].mxu1  ;;  %v1068_v20 = vadd.f32 %v15749_v52, %v373_v59  ;;  %v13405_v33 = vld [vmem:[#allocation8 + $0x3f4] ss:$8 sps:$4 sm:$0xff]  }
 0x231   :  { %v1317_v38 = vpop.f32.mrb[22].mxu1  ;;  %v15810_v0 = vpop.f32.mrb[20].mxu0 }
 0x232   :  { %4536 = vmatpush1.bf16.msra.mxu1 %v13373_v16  ;;  %4571 = vmatpush1.bf16.msra.mxu0 %v13376_v24  ;;  %v1318_v45 = vpop.f32.mrb[23].mxu1  ;;  %v15816_v14 = vpop.f32.mrb[21].mxu0  ;;  %v1519_v52 = vmul.f32 %v15698_v42, %v1068_v20  ;;  %v13403_v38 = vld [vmem:[#allocation8 + $0x3f0] ss:$8 sps:$4 sm:$0xff]   ;;  %vm1490_vm10 = vcmp.ge.f32.partialorder %v1068_v20, 0.0  ;;  %vm1502_vm6 = vcmp.ge.f32.partialorder %v15801_v34, 0.0 }
 0x233   :  { %4537 = vmatprep.subr.bf16.mxu1 %v13381_v28  ;;  %4572 = vmatprep.subr.bf16.mxu0 %v13384_v31  ;;  %v1440_v49 = vpop.f32.mrb[22].mxu0  ;;  %v13400_v28 = vld [vmem:[#allocation8 + $0x410] ss:$8 sps:$4 sm:$0xff]   ;;  %v341_v45 = vld [vmem:[#allocation6 + $0x18] sm:$0xf] }
 0x234   :  { %v1441_v16 = vpop.f32.mrb[23].mxu0  ;;  %v453_v53 = vrot.slane %v341_v45, %v15724_v1  ;;  %v13421_v49 = vld [vmem:[#allocation8 + $0x450] ss:$8 sps:$4 sm:$0xff]  }
 0x235   :  { %v13424_v16 = vld [vmem:[#allocation8 + $0x520] ss:$8 sps:$4 sm:$0xff]  }
 0x236   :  { %4538 = vmatpush1.bf16.msra.mxu1 %v13379_v40  ;;  %4573 = vmatpush1.bf16.msra.mxu0 %v13382_v44  ;;  %v13411_v40 = vld [vmem:[#allocation8 + $0x434] ss:$8 sps:$4 sm:$0xff]   ;;  %v13414_v44 = vld [vmem:[#allocation8 + $0x504] ss:$8 sps:$4 sm:$0xff]  }
 0x237   :  { %4539 = vmatprep.subr.bf16.mxu1 %v13387_v48  ;;  %4574 = vmatprep.subr.bf16.mxu0 %v13390_v46  ;;  %v1547_v48 = vsel %vm1490_vm10, %v1068_v20, %v1519_v52  ;;  %v13409_v46 = vld [vmem:[#allocation8 + $0x430] ss:$8 sps:$4 sm:$0xff]   ;;  %v13432_v20 = vld [vmem:[#allocation8 + $0x534] ss:$8 sps:$4 sm:$0xff]  }
 0x238   :  { %v13442_v52 = vld [vmem:[#allocation8 + $0x550] ss:$8 sps:$4 sm:$0xff]  }
 0x23a   :  { %4540 = vmatpush1.bf16.msra.mxu1 %v13385_v54  ;;  %4575 = vmatpush1.bf16.msra.mxu0 %v13388_v11  ;;  %v13417_v54 = vld [vmem:[#allocation8 + $0x444] ss:$8 sps:$4 sm:$0xff]   ;;  %v13420_v11 = vld [vmem:[#allocation8 + $0x514] ss:$8 sps:$4 sm:$0xff]  }
 0x23b   :  { %4576 = vmatprep.subr.bf16.mxu0 %v13393_v55  ;;  %4591 = vmatprep.subr.bf16.mxu1 %v13396_v57  ;;  %v1395_v19 = vpop.f32.mrb[24].mxu1  ;;  %v1552_v55 = vsel %vm1495_vm11, %v1152_v30, %v1524_v12  ;;  %v2023_v57 = vpack.c.bf16 %v1547_v48, %v1547_v48  ;;  %v13433_v30 = vld [vmem:[#allocation8 + $0x470] ss:$8 sps:$4 sm:$0xff]   ;;  %v13447_v12 = vld [vmem:[#allocation8 + $0x494] ss:$8 sps:$4 sm:$0xff]  }
 0x23c   :  { %v15821_v23 = vadd.f32 %v1395_v19, %v437_v5  ;;  %v1397_v24 = vpop.f32.mrb[25].mxu1  ;;  %v13429_v19 = vld [vmem:[#allocation8 + $0x464] ss:$8 sps:$4 sm:$0xff]   ;;  %v13445_v48 = vld [vmem:[#allocation8 + $0x490] ss:$8 sps:$4 sm:$0xff]  }
 0x23d   :  { %4542 = vmatmul.mubr.bf16.vlgmr.msra.gmra.mrb[36].mxu1 %v2021_v7  ;;  %v15824_v31 = vadd.f32 %v1397_v24, %v441_v15  ;;  %v1399_v6 = vpop.f32.mrb[26].mxu1  ;;  %v13415_v7 = vld [vmem:[#allocation8 + $0x440] ss:$8 sps:$4 sm:$0xff]   ;;  %v13426_v15 = vld [vmem:[#allocation8 + $0x524] ss:$8 sps:$4 sm:$0xff]  }
 0x23e   :  { %4577 = vmatpush1.bf16.msra.mxu0 %v13391_v60  ;;  %4592 = vmatpush1.bf16.msra.mxu1 %v13394_v62  ;;  %v1400_v32 = vpop.f32.mrb[27].mxu1  ;;  %v2028_v60 = vpack.c.bf16 %v1552_v55, %v1552_v55  ;;  %v13430_v24 = vld [vmem:[#allocation8 + $0x530] ss:$8 sps:$4 sm:$0xff]   ;;  %v13436_v6 = vld [vmem:[#allocation8 + $0x540] ss:$8 sps:$4 sm:$0xff]   ;;  %vm1506_vm10 = vcmp.ge.f32.partialorder %v15821_v23, 0.0 }
 0x23f   :  { %4578 = vmatprep.subr.bf16.mxu0 %v13399_v8  ;;  %4593 = vmatprep.subr.bf16.mxu1 %v13402_v9  ;;  %v13418_v8 = vld [vmem:[#allocation8 + $0x510] ss:$8 sps:$4 sm:$0xff]   ;;  %v13441_v32 = vld [vmem:[#allocation8 + $0x484] ss:$8 sps:$4 sm:$0xff]   ;;  %v13459_v55 = vld [vmem:[#allocation8 + $0x4b4] ss:$8 sps:$4 sm:$0xff]  }
 0x240   :  { %4623 = vmatprep.mubr.bf16.mxu1 %v2026_v21  ;;  %v13427_v21 = vld [vmem:[#allocation8 + $0x460] ss:$8 sps:$4 sm:$0xff]   ;;  %vm1507_vm7 = vcmp.ge.f32.partialorder %v15824_v31, 0.0 }
 0x242   :  { %4579 = vmatpush1.bf16.msra.mxu0 %v13397_v27  ;;  %4594 = vmatpush1.bf16.msra.mxu1 %v13400_v28  ;;  %v13435_v27 = vld [vmem:[#allocation8 + $0x474] ss:$8 sps:$4 sm:$0xff]   ;;  %v13438_v28 = vld [vmem:[#allocation8 + $0x544] ss:$8 sps:$4 sm:$0xff]  }
 0x243   :  { %4580 = vmatprep.subr.bf16.mxu0 %v13405_v33  ;;  %4595 = vmatprep.subr.bf16.mxu1 %v13408_v2  ;;  %v13444_v33 = vld [vmem:[#allocation8 + $0x554] ss:$8 sps:$4 sm:$0xff]   ;;  %v13439_v2 = vld [vmem:[#allocation8 + $0x480] ss:$8 sps:$4 sm:$0xff]  }
 0x246   :  { %4581 = vmatpush1.bf16.msra.mxu0 %v13403_v38  ;;  %4596 = vmatpush1.bf16.msra.mxu1 %v13406_v26  ;;  %v13450_v26 = vld [vmem:[#allocation8 + $0x564] ss:$8 sps:$4 sm:$0xff]  }
 0x247   :  { %4597 = vmatprep.subr.bf16.mxu1 %v13411_v40  ;;  %4632 = vmatprep.subr.bf16.mxu0 %v13414_v44  ;;  %v1477_v59 = vpop.f32.mrb[28].mxu1 }
 0x248   :  { %v15829_v62 = vadd.f32 %v1477_v59, %v453_v53  ;;  %v15831_v5 = vpop.f32.mrb[29].mxu1  ;;  %v13456_v53 = vld [vmem:[#allocation8 + $0x574] ss:$8 sps:$4 sm:$0xff]   ;;  %v13457_v59 = vld [vmem:[#allocation8 + $0x4b0] ss:$8 sps:$4 sm:$0xff]  }
 0x249   :  { %4583 = vmatmul.mubr.bf16.vlgmr.msra.gmra.mrb[32].mxu0 %v2023_v57  ;;  %v1481_v9 = vpop.f32.mrb[30].mxu1  ;;  %v13462_v57 = vld [vmem:[#allocation8 + $0x584] ss:$8 sps:$4 sm:$0xff]  }
 0x24a   :  { %4598 = vmatpush1.bf16.msra.mxu1 %v13409_v46  ;;  %4633 = vmatpush1.bf16.msra.mxu0 %v13412_v47  ;;  %v1482_v10 = vpop.f32.mrb[31].mxu1  ;;  %v13448_v46 = vld [vmem:[#allocation8 + $0x560] ss:$8 sps:$4 sm:$0xff]   ;;  %v13453_v47 = vld [vmem:[#allocation8 + $0x4a4] ss:$8 sps:$4 sm:$0xff]  }
 0x24b   :  { %4599 = vmatprep.subr.bf16.mxu1 %v13417_v54  ;;  %4634 = vmatprep.subr.bf16.mxu0 %v13420_v11  ;;  %v13451_v54 = vld [vmem:[#allocation8 + $0x4a0] ss:$8 sps:$4 sm:$0xff]   ;;  %v13454_v11 = vld [vmem:[#allocation8 + $0x570] ss:$8 sps:$4 sm:$0xff]  }
 0x24c   :  { %4664 = vmatprep.mubr.bf16.mxu0 %v2028_v60  ;;  %v13460_v60 = vld [vmem:[#allocation8 + $0x580] ss:$8 sps:$4 sm:$0xff]   ;;  %v13466_v10 = vld [vmem:[#allocation8 + $0x590] ss:$8 sps:$4 sm:$0xff]  }
 0x24d   :  { %v13463_v9 = vld [vmem:[#allocation8 + $0x4c0] ss:$8 sps:$4 sm:$0xff]  }
 0x24e   :  { %4600 = vmatpush1.bf16.msra.mxu1 %v13415_v7  ;;  %4635 = vmatpush1.bf16.msra.mxu0 %v13418_v8  ;;  %v13465_v7 = vld [vmem:[#allocation8 + $0x4c4] ss:$8 sps:$4 sm:$0xff]   ;;  %v13468_v8 = vld [vmem:[#allocation8 + $0x594] ss:$8 sps:$4 sm:$0xff]  }
 0x24f   :  { %4601 = vmatprep.subr.bf16.mxu1 %v13423_v13  ;;  %4636 = vmatprep.subr.bf16.mxu0 %v13426_v15  ;;  %v13471_v13 = vld [vmem:[#allocation8 + $0x4d4] ss:$8 sps:$4 sm:$0xff]   ;;  %v13474_v15 = vld [vmem:[#allocation8 + $0x5a4] ss:$8 sps:$4 sm:$0xff]  }
 0x251   :  { %v15833_v38 = vpop.f32.mrb[24].mxu0 }
 0x252   :  { %4602 = vmatpush1.bf16.msra.mxu1 %v13421_v49  ;;  %4637 = vmatpush1.bf16.msra.mxu0 %v13424_v16  ;;  %v15835_v40 = vpop.f32.mrb[25].mxu0  ;;  %v381_v49 = vrot.slane %v15755_v3, %v15709_v50  ;;  %v401_v16 = vrot.slane %v15755_v3, %v15720_v61  ;;  %v13486_v3 = vld [vmem:[#allocation8 + $0x5c4] ss:$8 sps:$4 sm:$0xff]  }
 0x253   :  { %4603 = vmatprep.subr.bf16.mxu1 %v13429_v19  ;;  %4638 = vmatprep.subr.bf16.mxu0 %v13432_v20  ;;  %v2184_v44 = vpop.f32.mrb[26].mxu0  ;;  %v13469_v19 = vld [vmem:[#allocation8 + $0x4d0] ss:$8 sps:$4 sm:$0xff]   ;;  %v13472_v20 = vld [vmem:[#allocation8 + $0x5a0] ss:$8 sps:$4 sm:$0xff]  }
 0x254   :  { %v2185_v45 = vpop.f32.mrb[27].mxu0  ;;  %v13487_v44 = vld [vmem:[#allocation8 + $0x5d0] ss:$8 sps:$4 sm:$0xff]  }
 0x255   :  { %v13490_v45 = vld [vmem:[#allocation8 + $0x600] ss:$8 sps:$4 sm:$0xff]  }
 0x256   :  { %4604 = vmatpush1.bf16.msra.mxu1 %v13427_v21  ;;  %4639 = vmatpush1.bf16.msra.mxu0 %v13430_v24  ;;  %v13477_v21 = vld [vmem:[#allocation8 + $0x4e4] ss:$8 sps:$4 sm:$0xff]   ;;  %v13480_v24 = vld [vmem:[#allocation8 + $0x5b4] ss:$8 sps:$4 sm:$0xff]  }
 0x257   :  { %4605 = vmatprep.subr.bf16.mxu1 %v13435_v27  ;;  %4640 = vmatprep.subr.bf16.mxu0 %v13438_v28  ;;  %v1109_v27 = vadd.f32 %v15743_v41, %v381_v49  ;;  %v1193_v28 = vadd.f32 %v15763_v18, %v401_v16  ;;  %v13489_v41 = vld [vmem:[#allocation8 + $0x5d4] ss:$8 sps:$4 sm:$0xff]   ;;  %v13492_v18 = vld [vmem:[#allocation8 + $0x604] ss:$8 sps:$4 sm:$0xff]   ;;  %v13505_v49 = vld [vmem:[#allocation8 + $0x630] ss:$8 sps:$4 sm:$0xff]  }
 0x258   :  { %v13508_v16 = vld [vmem:[#allocation8 + $0x700] ss:$8 sps:$4 sm:$0xff]  }
 0x259   :  { %vm1492_vm12 = vcmp.ge.f32.partialorder %v1109_v27, 0.0  ;;  %vm1497_vm13 = vcmp.ge.f32.partialorder %v1193_v28, 0.0 }
 0x25a   :  { %4606 = vmatpush1.bf16.msra.mxu1 %v13433_v30  ;;  %4641 = vmatpush1.bf16.msra.mxu0 %v13436_v6  ;;  %v13475_v30 = vld [vmem:[#allocation8 + $0x4e0] ss:$8 sps:$4 sm:$0xff]   ;;  %v13478_v6 = vld [vmem:[#allocation8 + $0x5b0] ss:$8 sps:$4 sm:$0xff]  }
 0x25b   :  { %4607 = vmatprep.subr.bf16.mxu1 %v13441_v32  ;;  %4642 = vmatprep.subr.bf16.mxu0 %v13444_v33  ;;  %v13483_v32 = vld [vmem:[#allocation8 + $0x4f4] ss:$8 sps:$4 sm:$0xff]   ;;  %v1521_v33 = vmul.f32 %v15698_v42, %v1109_v27 }
 0x25e   :  { %4608 = vmatpush1.bf16.msra.mxu1 %v13439_v2  ;;  %4643 = vmatpush1.bf16.msra.mxu0 %v13442_v52  ;;  %v1526_v2 = vmul.f32 %v15698_v42, %v1193_v28  ;;  %v13481_v52 = vld [vmem:[#allocation8 + $0x4f0] ss:$8 sps:$4 sm:$0xff]  }
 0x25f   :  { %4609 = vmatprep.subr.bf16.mxu1 %v13447_v12  ;;  %4644 = vmatprep.subr.bf16.mxu0 %v13450_v26  ;;  %v13484_v12 = vld [vmem:[#allocation8 + $0x5c0] ss:$8 sps:$4 sm:$0xff]   ;;  %v1549_v26 = vsel %vm1492_vm12, %v1109_v27, %v1521_v33  ;;  %v13525_v33 = vld [vmem:[#allocation8 + $0x664] ss:$8 sps:$4 sm:$0xff]  }
 0x262   :  { %4610 = vmatpush1.bf16.msra.mxu1 %v13445_v48  ;;  %4645 = vmatpush1.bf16.msra.mxu0 %v13448_v46  ;;  %v13495_v48 = vld [vmem:[#allocation8 + $0x5e4] ss:$8 sps:$4 sm:$0xff]   ;;  %v1554_v46 = vsel %vm1497_vm13, %v1193_v28, %v1526_v2  ;;  %v13511_v28 = vld [vmem:[#allocation8 + $0x640] ss:$8 sps:$4 sm:$0xff]   ;;  %v13528_v2 = vld [vmem:[#allocation8 + $0x734] ss:$8 sps:$4 sm:$0xff]  }
 0x263   :  { %4611 = vmatprep.subr.bf16.mxu1 %v13453_v47  ;;  %4646 = vmatprep.subr.bf16.mxu0 %v13456_v53  ;;  %v2025_v47 = vpack.c.bf16 %v1549_v26, %v1549_v26  ;;  %v13498_v53 = vld [vmem:[#allocation8 + $0x614] ss:$8 sps:$4 sm:$0xff]   ;;  %v13532_v26 = vld [vmem:[#allocation8 + $0x740] ss:$8 sps:$4 sm:$0xff]   ;;  %vm1510_vm13 = vcmp.ge.f32.partialorder %v15829_v62, 0.0 }
 0x266   :  { %4612 = vmatpush1.bf16.msra.mxu1 %v13451_v54  ;;  %4647 = vmatpush1.bf16.msra.mxu0 %v13454_v11  ;;  %v2030_v54 = vpack.c.bf16 %v1554_v46, %v1554_v46  ;;  %v13493_v11 = vld [vmem:[#allocation8 + $0x5e0] ss:$8 sps:$4 sm:$0xff]   ;;  %v13538_v46 = vld [vmem:[#allocation8 + $0x750] ss:$8 sps:$4 sm:$0xff]  }
 0x267   :  { %4613 = vmatprep.subr.bf16.mxu1 %v13459_v55  ;;  %4648 = vmatprep.subr.bf16.mxu0 %v13462_v57  ;;  %v13496_v55 = vld [vmem:[#allocation8 + $0x610] ss:$8 sps:$4 sm:$0xff]   ;;  %v13501_v57 = vld [vmem:[#allocation8 + $0x5f4] ss:$8 sps:$4 sm:$0xff]  }
 0x26a   :  { %4614 = vmatpush1.bf16.msra.mxu1 %v13457_v59  ;;  %4649 = vmatpush1.bf16.msra.mxu0 %v13460_v60  ;;  %v13504_v59 = vld [vmem:[#allocation8 + $0x624] ss:$8 sps:$4 sm:$0xff]   ;;  %v1523_v60 = vmul.f32 %v15698_v42, %v15765_v25 }
 0x26b   :  { %4615 = vmatprep.subr.bf16.mxu1 %v13465_v7  ;;  %4650 = vmatprep.subr.bf16.mxu0 %v13468_v8  ;;  %v1528_v7 = vmul.f32 %v15698_v42, %v15782_v58  ;;  %v13499_v8 = vld [vmem:[#allocation8 + $0x5f0] ss:$8 sps:$4 sm:$0xff]  }
 0x26e   :  { %4616 = vmatpush1.bf16.msra.mxu1 %v13463_v9  ;;  %4651 = vmatpush1.bf16.msra.mxu0 %v13466_v10  ;;  %v13502_v9 = vld [vmem:[#allocation8 + $0x620] ss:$8 sps:$4 sm:$0xff]   ;;  %v13507_v10 = vld [vmem:[#allocation8 + $0x634] ss:$8 sps:$4 sm:$0xff]  }
 0x26f   :  { %4617 = vmatprep.subr.bf16.mxu1 %v13471_v13  ;;  %4652 = vmatprep.subr.bf16.mxu0 %v13474_v15  ;;  %v13510_v13 = vld [vmem:[#allocation8 + $0x704] ss:$8 sps:$4 sm:$0xff]   ;;  %v1551_v15 = vsel %vm1494_vm14, %v15765_v25, %v1523_v60  ;;  %v13519_v25 = vld [vmem:[#allocation8 + $0x654] ss:$8 sps:$4 sm:$0xff]   ;;  %v13550_v60 = vld [vmem:[#allocation8 + $0x770] ss:$8 sps:$4 sm:$0xff]  }
 0x272   :  { %4618 = vmatpush1.bf16.msra.mxu1 %v13469_v19  ;;  %4653 = vmatpush1.bf16.msra.mxu0 %v13472_v20  ;;  %v13513_v19 = vld [vmem:[#allocation8 + $0x644] ss:$8 sps:$4 sm:$0xff]   ;;  %v1556_v20 = vsel %vm1499_vm15, %v15782_v58, %v1528_v7  ;;  %v13523_v58 = vld [vmem:[#allocation8 + $0x660] ss:$8 sps:$4 sm:$0xff]   ;;  %v13555_v7 = vld [vmem:[#allocation8 + $0x6b4] ss:$8 sps:$4 sm:$0xff]  }
 0x273   :  { %4619 = vmatprep.subr.bf16.mxu1 %v13477_v21  ;;  %4654 = vmatprep.subr.bf16.mxu0 %v13480_v24  ;;  %v2027_v21 = vpack.c.bf16 %v1551_v15, %v1551_v15  ;;  %v13516_v24 = vld [vmem:[#allocation8 + $0x714] ss:$8 sps:$4 sm:$0xff]   ;;  %v2032_v27 = vpack.c.bf16 %v1556_v20, %v1556_v20  ;;  %v13570_v20 = vld [vmem:[#allocation8 + $0x7a4] ss:$8 sps:$4 sm:$0xff]  }
 0x274   :  { %v13564_v15 = vld [vmem:[#allocation8 + $0x794] ss:$8 sps:$4 sm:$0xff]  }
 0x276   :  { %4620 = vmatpush1.bf16.msra.mxu1 %v13475_v30  ;;  %4655 = vmatpush1.bf16.msra.mxu0 %v13478_v6  ;;  %v13514_v30 = vld [vmem:[#allocation8 + $0x710] ss:$8 sps:$4 sm:$0xff]   ;;  %v13522_v6 = vld [vmem:[#allocation8 + $0x724] ss:$8 sps:$4 sm:$0xff]  }
 0x277   :  { %4621 = vmatprep.subr.bf16.mxu1 %v13483_v32  ;;  %4656 = vmatprep.subr.bf16.mxu0 %v13486_v3  ;;  %v13517_v32 = vld [vmem:[#allocation8 + $0x650] ss:$8 sps:$4 sm:$0xff]   ;;  %v13520_v3 = vld [vmem:[#allocation8 + $0x720] ss:$8 sps:$4 sm:$0xff]  }
 0x27a   :  { %4622 = vmatpush1.bf16.msra.mxu1 %v13481_v52  ;;  %4657 = vmatpush1.bf16.msra.mxu0 %v13484_v12  ;;  %v13526_v52 = vld [vmem:[#allocation8 + $0x730] ss:$8 sps:$4 sm:$0xff]   ;;  %v13531_v12 = vld [vmem:[#allocation8 + $0x674] ss:$8 sps:$4 sm:$0xff]  }
 0x27b   :  { %4658 = vmatprep.subr.bf16.mxu0 %v13489_v41  ;;  %4673 = vmatprep.subr.bf16.mxu1 %v13492_v18  ;;  %v13534_v41 = vld [vmem:[#allocation8 + $0x744] ss:$8 sps:$4 sm:$0xff]   ;;  %v13529_v18 = vld [vmem:[#allocation8 + $0x670] ss:$8 sps:$4 sm:$0xff]  }
 0x27d   :  { %4624 = vmatmul.mubr.bf16.vlgmr.msra.gmra.mrb[40].mxu1 %v2025_v47  ;;  %v13543_v47 = vld [vmem:[#allocation8 + $0x694] ss:$8 sps:$4 sm:$0xff]  }
 0x27e   :  { %4659 = vmatpush1.bf16.msra.mxu0 %v13487_v44  ;;  %4674 = vmatpush1.bf16.msra.mxu1 %v13490_v45  ;;  %v13537_v44 = vld [vmem:[#allocation8 + $0x684] ss:$8 sps:$4 sm:$0xff]   ;;  %v13540_v45 = vld [vmem:[#allocation8 + $0x754] ss:$8 sps:$4 sm:$0xff]  }
 0x27f   :  { %4705 = vmatprep.mubr.bf16.mxu1 %v2030_v54  ;;  %4660 = vmatprep.subr.bf16.mxu0 %v13495_v48  ;;  %v13535_v48 = vld [vmem:[#allocation8 + $0x680] ss:$8 sps:$4 sm:$0xff]   ;;  %v13541_v54 = vld [vmem:[#allocation8 + $0x690] ss:$8 sps:$4 sm:$0xff]  }
 0x280   :  { %4675 = vmatprep.subr.bf16.mxu1 %v13498_v53  ;;  %v13546_v53 = vld [vmem:[#allocation8 + $0x764] ss:$8 sps:$4 sm:$0xff]  }
 0x282   :  { %4661 = vmatpush1.bf16.msra.mxu0 %v13493_v11  ;;  %4676 = vmatpush1.bf16.msra.mxu1 %v13496_v55  ;;  %v13544_v11 = vld [vmem:[#allocation8 + $0x760] ss:$8 sps:$4 sm:$0xff]   ;;  %v13549_v55 = vld [vmem:[#allocation8 + $0x6a4] ss:$8 sps:$4 sm:$0xff]  }
 0x283   :  { %4662 = vmatprep.subr.bf16.mxu0 %v13501_v57  ;;  %4677 = vmatprep.subr.bf16.mxu1 %v13504_v59  ;;  %v13552_v57 = vld [vmem:[#allocation8 + $0x774] ss:$8 sps:$4 sm:$0xff]   ;;  %v13547_v59 = vld [vmem:[#allocation8 + $0x6a0] ss:$8 sps:$4 sm:$0xff]  }
 0x286   :  { %4663 = vmatpush1.bf16.msra.mxu0 %v13499_v8  ;;  %4678 = vmatpush1.bf16.msra.mxu1 %v13502_v9  ;;  %v13558_v8 = vld [vmem:[#allocation8 + $0x784] ss:$8 sps:$4 sm:$0xff]   ;;  %v13553_v9 = vld [vmem:[#allocation8 + $0x6b0] ss:$8 sps:$4 sm:$0xff]  }
 0x287   :  { %4679 = vmatprep.subr.bf16.mxu1 %v13507_v10  ;;  %4714 = vmatprep.subr.bf16.mxu0 %v13510_v13  ;;  %v13556_v10 = vld [vmem:[#allocation8 + $0x780] ss:$8 sps:$4 sm:$0xff]   ;;  %v13561_v13 = vld [vmem:[#allocation8 + $0x6c4] ss:$8 sps:$4 sm:$0xff]  }
 0x289   :  { %4665 = vmatmul.mubr.bf16.vlgmr.msra.gmra.mrb[36].mxu0 %v2027_v21  ;;  %v15853_v21 = vld [vmem:[#allocation6 + $0x10] sm:$0xff] }
 0x28a   :  { %4680 = vmatpush1.bf16.msra.mxu1 %v13505_v49  ;;  %4715 = vmatpush1.bf16.msra.mxu0 %v13508_v16  ;;  %v13559_v49 = vld [vmem:[#allocation8 + $0x6c0] ss:$8 sps:$4 sm:$0xff]   ;;  %v13562_v16 = vld [vmem:[#allocation8 + $0x790] ss:$8 sps:$4 sm:$0xff]  }
 0x28b   :  { %4746 = vmatprep.mubr.bf16.mxu0 %v2032_v27  ;;  %4681 = vmatprep.subr.bf16.mxu1 %v13513_v19  ;;  %v13567_v19 = vld [vmem:[#allocation8 + $0x6d4] ss:$8 sps:$4 sm:$0xff]   ;;  %v13565_v27 = vld [vmem:[#allocation8 + $0x6d0] ss:$8 sps:$4 sm:$0xff]  }
 0x28c   :  { %4716 = vmatprep.subr.bf16.mxu0 %v13516_v24  ;;  %v417_v24 = vrot.slane %v15853_v21, %v15712_v51 }
 0x28e   :  { %4682 = vmatpush1.bf16.msra.mxu1 %v13511_v28  ;;  %4717 = vmatpush1.bf16.msra.mxu0 %v13514_v30  ;;  %v13568_v28 = vld [vmem:[#allocation8 + $0x7a0] ss:$8 sps:$4 sm:$0xff]   ;;  %v13573_v30 = vld [vmem:[#allocation8 + $0x6e4] ss:$8 sps:$4 sm:$0xff]  }
 0x28f   :  { %4683 = vmatprep.subr.bf16.mxu1 %v13519_v25  ;;  %4718 = vmatprep.subr.bf16.mxu0 %v13522_v6  ;;  %v13576_v25 = vld [vmem:[#allocation8 + $0x7b4] ss:$8 sps:$4 sm:$0xff]   ;;  %v1275_v6 = vadd.f32 %v15776_v43, %v417_v24 }
 0x290   :  { %v13585_v43 = vld [vmem:[#allocation8 + $0x7d4] ss:$8 sps:$4 sm:$0xff]  }
 0x291   :  { %vm1501_vm1 = vcmp.ge.f32.partialorder %v1275_v6, 0.0 }
 0x292   :  { %4684 = vmatpush1.bf16.msra.mxu1 %v13517_v32  ;;  %4719 = vmatpush1.bf16.msra.mxu0 %v13520_v3  ;;  %v13571_v32 = vld [vmem:[#allocation8 + $0x6e0] ss:$8 sps:$4 sm:$0xff]   ;;  %v13574_v3 = vld [vmem:[#allocation8 + $0x7b0] ss:$8 sps:$4 sm:$0xff]  }
 0x293   :  { %4685 = vmatprep.subr.bf16.mxu1 %v13525_v33  ;;  %4720 = vmatprep.subr.bf16.mxu0 %v13528_v2  ;;  %v13579_v33 = vld [vmem:[#allocation8 + $0x6f4] ss:$8 sps:$4 sm:$0xff]   ;;  %v13582_v2 = vld [vmem:[#allocation8 + $0x7c4] ss:$8 sps:$4 sm:$0xff]  }
 0x296   :  { %4686 = vmatpush1.bf16.msra.mxu1 %v13523_v58  ;;  %4721 = vmatpush1.bf16.msra.mxu0 %v13526_v52  ;;  %v1525_v58 = vmul.f32 %v15698_v42, %v15761_v17  ;;  %v1530_v52 = vmul.f32 %v15698_v42, %v1275_v6 }
 0x297   :  { %4687 = vmatprep.subr.bf16.mxu1 %v13531_v12  ;;  %4722 = vmatprep.subr.bf16.mxu0 %v13534_v41  ;;  %v13577_v12 = vld [vmem:[#allocation8 + $0x6f0] ss:$8 sps:$4 sm:$0xff]   ;;  %v13580_v41 = vld [vmem:[#allocation8 + $0x7c0] ss:$8 sps:$4 sm:$0xff]  }
 0x29a   :  { %4688 = vmatpush1.bf16.msra.mxu1 %v13529_v18  ;;  %4723 = vmatpush1.bf16.msra.mxu0 %v13532_v26  ;;  %v13588_v18 = vld [vmem:[#allocation8 + $0x804] ss:$8 sps:$4 sm:$0xff]   ;;  %v1553_v26 = vsel %vm1496_vm0, %v15761_v17, %v1525_v58  ;;  %v13597_v17 = vld [vmem:[#allocation8 + $0x7f4] ss:$8 sps:$4 sm:$0xff]  }
 0x29b   :  { %4689 = vmatprep.subr.bf16.mxu1 %v13537_v44  ;;  %4724 = vmatprep.subr.bf16.mxu0 %v13540_v45  ;;  %v13583_v44 = vld [vmem:[#allocation8 + $0x7d0] ss:$8 sps:$4 sm:$0xff]   ;;  %v13586_v45 = vld [vmem:[#allocation8 + $0x800] ss:$8 sps:$4 sm:$0xff]  }
 0x29e   :  { %4690 = vmatpush1.bf16.msra.mxu1 %v13535_v48  ;;  %4725 = vmatpush1.bf16.msra.mxu0 %v13538_v46  ;;  %v13591_v48 = vld [vmem:[#allocation8 + $0x7e4] ss:$8 sps:$4 sm:$0xff]   ;;  %v425_v46 = vrot.slane %v15853_v21, %v15727_v4 }
 0x29f   :  { %4691 = vmatprep.subr.bf16.mxu1 %v13543_v47  ;;  %4726 = vmatprep.subr.bf16.mxu0 %v13546_v53  ;;  %v1558_v47 = vsel %vm1501_vm1, %v1275_v6, %v1530_v52  ;;  %v2029_v53 = vpack.c.bf16 %v1553_v26, %v1553_v26  ;;  %v13615_v6 = vld [vmem:[#allocation8 + $0x854] ss:$8 sps:$4 sm:$0xff]  }
 0x2a2   :  { %4692 = vmatpush1.bf16.msra.mxu1 %v13541_v54  ;;  %4727 = vmatpush1.bf16.msra.mxu0 %v13544_v11  ;;  %v13594_v54 = vld [vmem:[#allocation8 + $0x814] ss:$8 sps:$4 sm:$0xff]   ;;  %v2034_v11 = vpack.c.bf16 %v1558_v47, %v1558_v47  ;;  %v13628_v47 = vld [vmem:[#allocation8 + $0x940] ss:$8 sps:$4 sm:$0xff]  }
 0x2a3   :  { %4693 = vmatprep.subr.bf16.mxu1 %v13549_v55  ;;  %4728 = vmatprep.subr.bf16.mxu0 %v13552_v57  ;;  %v13589_v55 = vld [vmem:[#allocation8 + $0x7e0] ss:$8 sps:$4 sm:$0xff]   ;;  %v13592_v57 = vld [vmem:[#allocation8 + $0x810] ss:$8 sps:$4 sm:$0xff]  }
 0x2a6   :  { %4694 = vmatpush1.bf16.msra.mxu1 %v13547_v59  ;;  %4729 = vmatpush1.bf16.msra.mxu0 %v13550_v60  ;;  %v1316_v59 = vadd.f32 %v15803_v36, %v425_v46  ;;  %v13600_v60 = vld [vmem:[#allocation8 + $0x824] ss:$8 sps:$4 sm:$0xff]   ;;  %v13603_v36 = vld [vmem:[#allocation8 + $0x834] ss:$8 sps:$4 sm:$0xff]   ;;  %v13625_v46 = vld [vmem:[#allocation8 + $0x870] ss:$8 sps:$4 sm:$0xff]  }
 0x2a7   :  { %4695 = vmatprep.subr.bf16.mxu1 %v13555_v7  ;;  %4730 = vmatprep.subr.bf16.mxu0 %v13558_v8  ;;  %v1527_v7 = vmul.f32 %v15698_v42, %v15780_v56 }
 0x2a8   :  { %v1532_v8 = vmul.f32 %v15698_v42, %v1316_v59  ;;  %vm1503_vm3 = vcmp.ge.f32.partialorder %v1316_v59, 0.0 }
 0x2aa   :  { %4696 = vmatpush1.bf16.msra.mxu1 %v13553_v9  ;;  %4731 = vmatpush1.bf16.msra.mxu0 %v13556_v10  ;;  %v13595_v9 = vld [vmem:[#allocation8 + $0x7f0] ss:$8 sps:$4 sm:$0xff]   ;;  %v13598_v10 = vld [vmem:[#allocation8 + $0x820] ss:$8 sps:$4 sm:$0xff]  }
 0x2ab   :  { %4697 = vmatprep.subr.bf16.mxu1 %v13561_v13  ;;  %4732 = vmatprep.subr.bf16.mxu0 %v13564_v15  ;;  %v13606_v13 = vld [vmem:[#allocation8 + $0x904] ss:$8 sps:$4 sm:$0xff]   ;;  %v1555_v15 = vsel %vm1498_vm2, %v15780_v56, %v1527_v7  ;;  %v13640_v7 = vld [vmem:[#allocation8 + $0x960] ss:$8 sps:$4 sm:$0xff]  }
 0x2ac   :  { %v2031_v24 = vpack.c.bf16 %v1555_v15, %v1555_v15  ;;  %v13618_v56 = vld [vmem:[#allocation8 + $0x924] ss:$8 sps:$4 sm:$0xff]   ;;  %v13643_v15 = vld [vmem:[#allocation8 + $0x8a0] ss:$8 sps:$4 sm:$0xff]  }
 0x2ae   :  { %4698 = vmatpush1.bf16.msra.mxu1 %v13559_v49  ;;  %4733 = vmatpush1.bf16.msra.mxu0 %v13562_v16  ;;  %v13601_v49 = vld [vmem:[#allocation8 + $0x830] ss:$8 sps:$4 sm:$0xff]   ;;  %v13604_v16 = vld [vmem:[#allocation8 + $0x900] ss:$8 sps:$4 sm:$0xff]  }
 0x2af   :  { %4699 = vmatprep.subr.bf16.mxu1 %v13567_v19  ;;  %4734 = vmatprep.subr.bf16.mxu0 %v13570_v20  ;;  %v13609_v19 = vld [vmem:[#allocation8 + $0x844] ss:$8 sps:$4 sm:$0xff]   ;;  %v1560_v20 = vsel %vm1503_vm3, %v1316_v59, %v1532_v8 }
 0x2b2   :  { %4700 = vmatpush1.bf16.msra.mxu1 %v13565_v27  ;;  %4735 = vmatpush1.bf16.msra.mxu0 %v13568_v28  ;;  %v13612_v27 = vld [vmem:[#allocation8 + $0x914] ss:$8 sps:$4 sm:$0xff]   ;;  %v2036_v28 = vpack.c.bf16 %v1560_v20, %v1560_v20  ;;  %v13649_v20 = vld [vmem:[#allocation8 + $0x8b0] ss:$8 sps:$4 sm:$0xff]  }
 0x2b3   :  { %4701 = vmatprep.subr.bf16.mxu1 %v13573_v30  ;;  %4736 = vmatprep.subr.bf16.mxu0 %v13576_v25  ;;  %v13607_v30 = vld [vmem:[#allocation8 + $0x840] ss:$8 sps:$4 sm:$0xff]   ;;  %v13610_v25 = vld [vmem:[#allocation8 + $0x910] ss:$8 sps:$4 sm:$0xff]  }
 0x2b6   :  { %4702 = vmatpush1.bf16.msra.mxu1 %v13571_v32  ;;  %4737 = vmatpush1.bf16.msra.mxu0 %v13574_v3  ;;  %v13613_v32 = vld [vmem:[#allocation8 + $0x850] ss:$8 sps:$4 sm:$0xff]   ;;  %v13616_v3 = vld [vmem:[#allocation8 + $0x920] ss:$8 sps:$4 sm:$0xff]  }
 0x2b7   :  { %4703 = vmatprep.subr.bf16.mxu1 %v13579_v33  ;;  %4738 = vmatprep.subr.bf16.mxu0 %v13582_v2  ;;  %v13621_v33 = vld [vmem:[#allocation8 + $0x864] ss:$8 sps:$4 sm:$0xff]   ;;  %v13624_v2 = vld [vmem:[#allocation8 + $0x934] ss:$8 sps:$4 sm:$0xff]  }
 0x2ba   :  { %4704 = vmatpush1.bf16.msra.mxu1 %v13577_v12  ;;  %4739 = vmatpush1.bf16.msra.mxu0 %v13580_v41  ;;  %v13619_v41 = vld [vmem:[#allocation8 + $0x860] ss:$8 sps:$4 sm:$0xff]  }
 0x2bb   :  { %4740 = vmatprep.subr.bf16.mxu0 %v13585_v43  ;;  %4755 = vmatprep.subr.bf16.mxu1 %v13588_v18  ;;  %v13622_v43 = vld [vmem:[#allocation8 + $0x930] ss:$8 sps:$4 sm:$0xff]  }
 0x2bd   :  { %4706 = vmatmul.mubr.bf16.vlgmr.msra.gmra.mrb[44].mxu1 %v2029_v53  ;;  %v13636_v53 = vld [vmem:[#allocation8 + $0x954] ss:$8 sps:$4 sm:$0xff]  }
 0x2be   :  { %4741 = vmatpush1.bf16.msra.mxu0 %v13583_v44  ;;  %4756 = vmatpush1.bf16.msra.mxu1 %v13586_v45  ;;  %v13627_v45 = vld [vmem:[#allocation8 + $0x874] ss:$8 sps:$4 sm:$0xff]  }
 0x2bf   :  { %4787 = vmatprep.mubr.bf16.mxu1 %v2034_v11  ;;  %4742 = vmatprep.subr.bf16.mxu0 %v13591_v48  ;;  %v13630_v48 = vld [vmem:[#allocation8 + $0x944] ss:$8 sps:$4 sm:$0xff]   ;;  %v13634_v11 = vld [vmem:[#allocation8 + $0x950] ss:$8 sps:$4 sm:$0xff]  }
 0x2c0   :  { %4757 = vmatprep.subr.bf16.mxu1 %v13594_v54  ;;  %v13631_v54 = vld [vmem:[#allocation8 + $0x880] ss:$8 sps:$4 sm:$0xff]  }
 0x2c2   :  { %4743 = vmatpush1.bf16.msra.mxu0 %v13589_v55  ;;  %4758 = vmatpush1.bf16.msra.mxu1 %v13592_v57  ;;  %v13639_v55 = vld [vmem:[#allocation8 + $0x894] ss:$8 sps:$4 sm:$0xff]  }
 0x2c3   :  { %4744 = vmatprep.subr.bf16.mxu0 %v13597_v17  ;;  %4759 = vmatprep.subr.bf16.mxu1 %v13600_v60  ;;  %v13637_v60 = vld [vmem:[#allocation8 + $0x890] ss:$8 sps:$4 sm:$0xff]  }
 0x2c6   :  { %4745 = vmatpush1.bf16.msra.mxu0 %v13595_v9  ;;  %4760 = vmatpush1.bf16.msra.mxu1 %v13598_v10 }
 0x2c7   :  { %4761 = vmatprep.subr.bf16.mxu1 %v13603_v36  ;;  %4796 = vmatprep.subr.bf16.mxu0 %v13606_v13  ;;  %v13645_v36 = vld [vmem:[#allocation8 + $0x8a4] ss:$8 sps:$4 sm:$0xff]   ;;  %v13648_v13 = vld [vmem:[#allocation8 + $0x974] ss:$8 sps:$4 sm:$0xff]  }
 0x2c9   :  { %4747 = vmatmul.mubr.bf16.vlgmr.msra.gmra.mrb[40].mxu0 %v2031_v24  ;;  %v13652_v24 = vld [vmem:[#allocation8 + $0x980] ss:$8 sps:$4 sm:$0xff]  }
 0x2ca   :  { %4762 = vmatpush1.bf16.msra.mxu1 %v13601_v49  ;;  %4797 = vmatpush1.bf16.msra.mxu0 %v13604_v16  ;;  %v13646_v49 = vld [vmem:[#allocation8 + $0x970] ss:$8 sps:$4 sm:$0xff]   ;;  %v13651_v16 = vld [vmem:[#allocation8 + $0x8b4] ss:$8 sps:$4 sm:$0xff]  }
 0x2cb   :  { %4828 = vmatprep.mubr.bf16.mxu0 %v2036_v28  ;;  %4763 = vmatprep.subr.bf16.mxu1 %v13609_v19  ;;  %v13654_v19 = vld [vmem:[#allocation8 + $0x984] ss:$8 sps:$4 sm:$0xff]   ;;  %v13660_v28 = vld [vmem:[#allocation8 + $0x994] ss:$8 sps:$4 sm:$0xff]  }
 0x2cc   :  { %4798 = vmatprep.subr.bf16.mxu0 %v13612_v27  ;;  %v13657_v27 = vld [vmem:[#allocation8 + $0x8c4] ss:$8 sps:$4 sm:$0xff]  }
 0x2ce   :  { %4764 = vmatpush1.bf16.msra.mxu1 %v13607_v30  ;;  %4799 = vmatpush1.bf16.msra.mxu0 %v13610_v25  ;;  %v13655_v30 = vld [vmem:[#allocation8 + $0x8c0] ss:$8 sps:$4 sm:$0xff]   ;;  %v13658_v25 = vld [vmem:[#allocation8 + $0x990] ss:$8 sps:$4 sm:$0xff]  }
 0x2cf   :  { %4765 = vmatprep.subr.bf16.mxu1 %v13615_v6  ;;  %4800 = vmatprep.subr.bf16.mxu0 %v13618_v56  ;;  %v13663_v6 = vld [vmem:[#allocation8 + $0x8d4] ss:$8 sps:$4 sm:$0xff]   ;;  %v13666_v56 = vld [vmem:[#allocation8 + $0x9a4] ss:$8 sps:$4 sm:$0xff]  }
 0x2d0   :  { %v4461_v58 = vpop.f32.mrb[32].mxu1 }
 0x2d1   :  { %v4462_v52 = vadd.f32 %v4461_v58, %v15833_v38  ;;  %v4463_v12 = vpop.f32.mrb[33].mxu1  ;;  %v13633_v38 = vld [vmem:[#allocation8 + $0x884] ss:$8 sps:$4 sm:$0xff]   ;;  %v13672_v58 = vld [vmem:[#allocation8 + $0x9b4] ss:$8 sps:$4 sm:$0xff]  }
 0x2d2   :  { %v4464_v18 = vadd.f32 %v4463_v12, %v15835_v40  ;;  %4766 = vmatpush1.bf16.msra.mxu1 %v13613_v32  ;;  %4801 = vmatpush1.bf16.msra.mxu0 %v13616_v3  ;;  %v4465_v26 = vpop.f32.mrb[34].mxu1  ;;  %v13642_v40 = vld [vmem:[#allocation8 + $0x964] ss:$8 sps:$4 sm:$0xff]   ;;  %v413_v32 = vrot.slane %v15853_v21, %v15709_v50  ;;  %v13661_v3 = vld [vmem:[#allocation8 + $0x8d0] ss:$8 sps:$4 sm:$0xff]  }
 0x2d3   :  { %v4466_v44 = vpop.f32.mrb[35].mxu1  ;;  %4767 = vmatprep.subr.bf16.mxu1 %v13621_v33  ;;  %4802 = vmatprep.subr.bf16.mxu0 %v13624_v2  ;;  %v13664_v33 = vld [vmem:[#allocation8 + $0x9a0] ss:$8 sps:$4 sm:$0xff]   ;;  %v13669_v2 = vld [vmem:[#allocation8 + $0x8e4] ss:$8 sps:$4 sm:$0xff]   ;;  %v1534_v26 = vmul.f32 %v15698_v42, %v15799_v29 }
 0x2d4   :  { %v13667_v12 = vld [vmem:[#allocation8 + $0x8e0] ss:$8 sps:$4 sm:$0xff]   ;;  %v13673_v44 = vld [vmem:[#allocation8 + $0x8f0] ss:$8 sps:$4 sm:$0xff]  }
 0x2d6   :  { %4768 = vmatpush1.bf16.msra.mxu1 %v13619_v41  ;;  %4803 = vmatpush1.bf16.msra.mxu0 %v13622_v43  ;;  %v13670_v41 = vld [vmem:[#allocation8 + $0x9b0] ss:$8 sps:$4 sm:$0xff]   ;;  %v13675_v43 = vld [vmem:[#allocation8 + $0x8f4] ss:$8 sps:$4 sm:$0xff]  }
 0x2d7   :  { %4769 = vmatprep.subr.bf16.mxu1 %v13627_v45  ;;  %4804 = vmatprep.subr.bf16.mxu0 %v13630_v48  ;;  %v13676_v45 = vld [vmem:[#allocation8 + $0x9c0] ss:$8 sps:$4 sm:$0xff]   ;;  %v13684_v48 = vld [vmem:[#allocation8 + $0xa04] ss:$8 sps:$4 sm:$0xff]  }
 0x2da   :  { %4770 = vmatpush1.bf16.msra.mxu1 %v13625_v46  ;;  %4805 = vmatpush1.bf16.msra.mxu0 %v13628_v47  ;;  %v13679_v47 = vld [vmem:[#allocation8 + $0x9d0] ss:$8 sps:$4 sm:$0xff]  }
 0x2db   :  { %4771 = vmatprep.subr.bf16.mxu1 %v13633_v38  ;;  %4806 = vmatprep.subr.bf16.mxu0 %v13636_v53  ;;  %v13682_v38 = vld [vmem:[#allocation8 + $0xa00] ss:$8 sps:$4 sm:$0xff]   ;;  %v13687_v53 = vld [vmem:[#allocation8 + $0x9e4] ss:$8 sps:$4 sm:$0xff]  }
 0x2dc   :  { %v4502_v57 = vpop.f32.mrb[28].mxu0 }
 0x2dd   :  { %v15873_v59 = vadd.f32 %v4502_v57, %v4462_v52  ;;  %v4504_v17 = vpop.f32.mrb[29].mxu0  ;;  %v1273_v52 = vadd.f32 %v15772_v39, %v413_v32  ;;  %v13681_v39 = vld [vmem:[#allocation8 + $0x9d4] ss:$8 sps:$4 sm:$0xff]   ;;  %v13714_v32 = vld [vmem:[#allocation8 + $0xb24] ss:$8 sps:$4 sm:$0xff]  }
 0x2de   :  { %v15875_v8 = vadd.f32 %v4504_v17, %v4464_v18  ;;  %4772 = vmatpush1.bf16.msra.mxu1 %v13631_v54  ;;  %4807 = vmatpush1.bf16.msra.mxu0 %v13634_v11  ;;  %v4506_v9 = vpop.f32.mrb[30].mxu0  ;;  %v13678_v18 = vld [vmem:[#allocation8 + $0x9c4] ss:$8 sps:$4 sm:$0xff]   ;;  %v1562_v54 = vsel %vm1505_vm5, %v15799_v29, %v1534_v26  ;;  %v13688_v17 = vld [vmem:[#allocation8 + $0xa10] ss:$8 sps:$4 sm:$0xff]  }
 0x2df   :  { %v4507_v10 = vpop.f32.mrb[31].mxu0  ;;  %4773 = vmatprep.subr.bf16.mxu1 %v13639_v55  ;;  %4808 = vmatprep.subr.bf16.mxu0 %v13642_v40  ;;  %v1529_v21 = vmul.f32 %v15698_v42, %v1273_v52  ;;  %vm1500_vm4 = vcmp.ge.f32.partialorder %v1273_v52, 0.0  ;;  %v13685_v55 = vld [vmem:[#allocation8 + $0x9e0] ss:$8 sps:$4 sm:$0xff]   ;;  %v13690_v40 = vld [vmem:[#allocation8 + $0xa14] ss:$8 sps:$4 sm:$0xff]   ;;  %v2038_v57 = vpack.c.bf16 %v1562_v54, %v1562_v54  ;;  %v1531_v9 = vmul.f32 %v15698_v42, %v15801_v34 }
 0x2e0   :  { %v13691_v10 = vld [vmem:[#allocation8 + $0x9f0] ss:$8 sps:$4 sm:$0xff]   ;;  %v13694_v29 = vld [vmem:[#allocation8 + $0xa20] ss:$8 sps:$4 sm:$0xff]  }
 0x2e1   :  { %v1557_v46 = vsel %vm1500_vm4, %v1273_v52, %v1529_v21  ;;  %v13718_v52 = vld [vmem:[#allocation8 + $0xb30] ss:$8 sps:$4 sm:$0xff]  }
 0x2e2   :  { %4774 = vmatpush1.bf16.msra.mxu1 %v13637_v60  ;;  %4809 = vmatpush1.bf16.msra.mxu0 %v13640_v7  ;;  %v2033_v11 = vpack.c.bf16 %v1557_v46, %v1557_v46  ;;  %v13693_v60 = vld [vmem:[#allocation8 + $0x9f4] ss:$8 sps:$4 sm:$0xff]   ;;  %v13696_v7 = vld [vmem:[#allocation8 + $0xa24] ss:$8 sps:$4 sm:$0xff]   ;;  %v13733_v54 = vld [vmem:[#allocation8 + $0xa90] ss:$8 sps:$4 sm:$0xff]  }
 0x2e3   :  { %4775 = vmatprep.subr.bf16.mxu1 %v13645_v36  ;;  %4810 = vmatprep.subr.bf16.mxu0 %v13648_v13  ;;  %v1536_v36 = vmul.f32 %v15698_v42, %v15824_v31  ;;  %v13699_v13 = vld [vmem:[#allocation8 + $0xa34] ss:$8 sps:$4 sm:$0xff]  }
 0x2e4   :  { %v13732_v46 = vld [vmem:[#allocation8 + $0xb54] ss:$8 sps:$4 sm:$0xff]  }
 0x2e6   :  { %4776 = vmatpush1.bf16.msra.mxu1 %v13643_v15  ;;  %4811 = vmatpush1.bf16.msra.mxu0 %v13646_v49  ;;  %v13702_v15 = vld [vmem:[#allocation8 + $0xb04] ss:$8 sps:$4 sm:$0xff]   ;;  %v1559_v49 = vsel %vm1502_vm6, %v15801_v34, %v1531_v9  ;;  %v13709_v34 = vld [vmem:[#allocation8 + $0xa50] ss:$8 sps:$4 sm:$0xff]  }
 0x2e7   :  { %4777 = vmatprep.subr.bf16.mxu1 %v13651_v16  ;;  %4812 = vmatprep.subr.bf16.mxu0 %v13654_v19  ;;  %v13697_v16 = vld [vmem:[#allocation8 + $0xa30] ss:$8 sps:$4 sm:$0xff]   ;;  %v13700_v19 = vld [vmem:[#allocation8 + $0xb00] ss:$8 sps:$4 sm:$0xff]  }
 0x2ea   :  { %4778 = vmatpush1.bf16.msra.mxu1 %v13649_v20  ;;  %4813 = vmatpush1.bf16.msra.mxu0 %v13652_v24  ;;  %v13705_v20 = vld [vmem:[#allocation8 + $0xa44] ss:$8 sps:$4 sm:$0xff]   ;;  %v1564_v24 = vsel %vm1507_vm7, %v15824_v31, %v1536_v36  ;;  %v13747_v36 = vld [vmem:[#allocation8 + $0xab4] ss:$8 sps:$4 sm:$0xff]  }
 0x2eb   :  { %4779 = vmatprep.subr.bf16.mxu1 %v13657_v27  ;;  %4814 = vmatprep.subr.bf16.mxu0 %v13660_v28  ;;  %v13708_v27 = vld [vmem:[#allocation8 + $0xb14] ss:$8 sps:$4 sm:$0xff]   ;;  %v2035_v28 = vpack.c.bf16 %v1559_v49, %v1559_v49  ;;  %v13748_v49 = vld [vmem:[#allocation8 + $0xb80] ss:$8 sps:$4 sm:$0xff]  }
 0x2ee   :  { %4780 = vmatpush1.bf16.msra.mxu1 %v13655_v30  ;;  %4815 = vmatpush1.bf16.msra.mxu0 %v13658_v25  ;;  %v13703_v30 = vld [vmem:[#allocation8 + $0xa40] ss:$8 sps:$4 sm:$0xff]   ;;  %v13706_v25 = vld [vmem:[#allocation8 + $0xb10] ss:$8 sps:$4 sm:$0xff]  }
 0x2ef   :  { %4781 = vmatprep.subr.bf16.mxu1 %v13663_v6  ;;  %4816 = vmatprep.subr.bf16.mxu0 %v13666_v56  ;;  %v2040_v6 = vpack.c.bf16 %v1564_v24, %v1564_v24  ;;  %v13711_v56 = vld [vmem:[#allocation8 + $0xa54] ss:$8 sps:$4 sm:$0xff]  }
 0x2f2   :  { %4782 = vmatpush1.bf16.msra.mxu1 %v13661_v3  ;;  %4817 = vmatpush1.bf16.msra.mxu0 %v13664_v33  ;;  %v13712_v3 = vld [vmem:[#allocation8 + $0xb20] ss:$8 sps:$4 sm:$0xff]   ;;  %v13717_v33 = vld [vmem:[#allocation8 + $0xa64] ss:$8 sps:$4 sm:$0xff]  }
 0x2f3   :  { %4783 = vmatprep.subr.bf16.mxu1 %v13669_v2  ;;  %4818 = vmatprep.subr.bf16.mxu0 %v13672_v58  ;;  %v13720_v2 = vld [vmem:[#allocation8 + $0xb34] ss:$8 sps:$4 sm:$0xff]   ;;  %v13715_v58 = vld [vmem:[#allocation8 + $0xa60] ss:$8 sps:$4 sm:$0xff]  }
 0x2f6   :  { %4784 = vmatpush1.bf16.msra.mxu1 %v13667_v12  ;;  %4819 = vmatpush1.bf16.msra.mxu0 %v13670_v41 }
 0x2f7   :  { %4785 = vmatprep.subr.bf16.mxu1 %v13675_v43  ;;  %4820 = vmatprep.subr.bf16.mxu0 %v13678_v18  ;;  %v13723_v43 = vld [vmem:[#allocation8 + $0xa74] ss:$8 sps:$4 sm:$0xff]   ;;  %v13726_v18 = vld [vmem:[#allocation8 + $0xb44] ss:$8 sps:$4 sm:$0xff]  }
 0x2fa   :  { %4786 = vmatpush1.bf16.msra.mxu1 %v13673_v44  ;;  %4821 = vmatpush1.bf16.msra.mxu0 %v13676_v45  ;;  %v13721_v45 = vld [vmem:[#allocation8 + $0xa70] ss:$8 sps:$4 sm:$0xff]  }
 0x2fb   :  { %4822 = vmatprep.subr.bf16.mxu0 %v13681_v39  ;;  %4837 = vmatprep.subr.bf16.mxu1 %v13684_v48  ;;  %v13724_v39 = vld [vmem:[#allocation8 + $0xb40] ss:$8 sps:$4 sm:$0xff]   ;;  %v13729_v48 = vld [vmem:[#allocation8 + $0xa84] ss:$8 sps:$4 sm:$0xff]  }
 0x2fd   :  { %4788 = vmatmul.mubr.bf16.vlgmr.msra.gmra.mrb[48].mxu1 %v2033_v11  ;;  %v13736_v11 = vld [vmem:[#allocation8 + $0xb60] ss:$8 sps:$4 sm:$0xff]  }
 0x2fe   :  { %4823 = vmatpush1.bf16.msra.mxu0 %v13679_v47  ;;  %4838 = vmatpush1.bf16.msra.mxu1 %v13682_v38  ;;  %v13730_v47 = vld [vmem:[#allocation8 + $0xb50] ss:$8 sps:$4 sm:$0xff]   ;;  %v13735_v38 = vld [vmem:[#allocation8 + $0xa94] ss:$8 sps:$4 sm:$0xff]  }
 0x2ff   :  { %4869 = vmatprep.mubr.bf16.mxu1 %v2038_v57  ;;  %4824 = vmatprep.subr.bf16.mxu0 %v13687_v53  ;;  %v13738_v53 = vld [vmem:[#allocation8 + $0xb64] ss:$8 sps:$4 sm:$0xff]  }
 0x300   :  { %4839 = vmatprep.subr.bf16.mxu1 %v13690_v40  ;;  %v13741_v57 = vld [vmem:[#allocation8 + $0xaa4] ss:$8 sps:$4 sm:$0xff]  }
 0x302   :  { %4825 = vmatpush1.bf16.msra.mxu0 %v13685_v55  ;;  %4840 = vmatpush1.bf16.msra.mxu1 %v13688_v17  ;;  %v13744_v17 = vld [vmem:[#allocation8 + $0xb74] ss:$8 sps:$4 sm:$0xff]  }
 0x303   :  { %4826 = vmatprep.subr.bf16.mxu0 %v13693_v60  ;;  %4841 = vmatprep.subr.bf16.mxu1 %v13696_v7 }
 0x306   :  { %4827 = vmatpush1.bf16.msra.mxu0 %v13691_v10  ;;  %4842 = vmatpush1.bf16.msra.mxu1 %v13694_v29  ;;  %v13739_v10 = vld [vmem:[#allocation8 + $0xaa0] ss:$8 sps:$4 sm:$0xff]   ;;  %v13742_v29 = vld [vmem:[#allocation8 + $0xb70] ss:$8 sps:$4 sm:$0xff]  }
 0x307   :  { %4843 = vmatprep.subr.bf16.mxu1 %v13699_v13  ;;  %4878 = vmatprep.subr.bf16.mxu0 %v13702_v15  ;;  %v13750_v13 = vld [vmem:[#allocation8 + $0xb84] ss:$8 sps:$4 sm:$0xff]   ;;  %v13745_v15 = vld [vmem:[#allocation8 + $0xab0] ss:$8 sps:$4 sm:$0xff]  }
 0x309   :  { %4829 = vmatmul.mubr.bf16.vlgmr.msra.gmra.mrb[44].mxu0 %v2035_v28  ;;  %v13754_v28 = vld [vmem:[#allocation8 + $0xb90] ss:$8 sps:$4 sm:$0xff]  }
 0x30a   :  { %4844 = vmatpush1.bf16.msra.mxu1 %v13697_v16  ;;  %4879 = vmatpush1.bf16.msra.mxu0 %v13700_v19  ;;  %v13753_v16 = vld [vmem:[#allocation8 + $0xac4] ss:$8 sps:$4 sm:$0xff]   ;;  %v13756_v19 = vld [vmem:[#allocation8 + $0xb94] ss:$8 sps:$4 sm:$0xff]  }
 0x30b   :  { %4910 = vmatprep.mubr.bf16.mxu0 %v2040_v6  ;;  %4845 = vmatprep.subr.bf16.mxu1 %v13705_v20  ;;  %v15899_v20 = vld [vmem:[#allocation6 + $0x18] sm:$0xf] }
 0x30c   :  { %4880 = vmatprep.subr.bf16.mxu0 %v13708_v27  ;;  %v449_v24 = vrot.slane %v15899_v20, %v15712_v51  ;;  %v13751_v27 = vld [vmem:[#allocation8 + $0xac0] ss:$8 sps:$4 sm:$0xff]  }
 0x30e   :  { %4846 = vmatpush1.bf16.msra.mxu1 %v13703_v30  ;;  %4881 = vmatpush1.bf16.msra.mxu0 %v13706_v25  ;;  %v13759_v30 = vld [vmem:[#allocation8 + $0xad4] ss:$8 sps:$4 sm:$0xff]   ;;  %v13762_v25 = vld [vmem:[#allocation8 + $0xba4] ss:$8 sps:$4 sm:$0xff]   ;;  %v1439_v6 = vadd.f32 %v15816_v14, %v449_v24  ;;  %v1533_v14 = vmul.f32 %v15698_v42, %v15796_v22 }
 0x30f   :  { %4847 = vmatprep.subr.bf16.mxu1 %v13711_v56  ;;  %4882 = vmatprep.subr.bf16.mxu0 %v13714_v32  ;;  %v13757_v56 = vld [vmem:[#allocation8 + $0xad0] ss:$8 sps:$4 sm:$0xff]   ;;  %v13760_v32 = vld [vmem:[#allocation8 + $0xba0] ss:$8 sps:$4 sm:$0xff]  }
 0x310   :  { %v4543_v31 = vpop.f32.mrb[36].mxu1  ;;  %vm1509_vm9 = vcmp.ge.f32.partialorder %v1439_v6, 0.0 }
 0x311   :  { %v4544_v12 = vadd.f32 %v4543_v31, %v15873_v59  ;;  %v4545_v41 = vpop.f32.mrb[37].mxu1  ;;  %v13727_v59 = vld [vmem:[#allocation8 + $0xa80] ss:$8 sps:$4 sm:$0xff]   ;;  %v13771_v31 = vld [vmem:[#allocation8 + $0xaf4] ss:$8 sps:$4 sm:$0xff]  }
 0x312   :  { %v4546_v21 = vadd.f32 %v4545_v41, %v15875_v8  ;;  %4848 = vmatpush1.bf16.msra.mxu1 %v13709_v34  ;;  %4883 = vmatpush1.bf16.msra.mxu0 %v13712_v3  ;;  %v4547_v26 = vpop.f32.mrb[38].mxu1  ;;  %v13765_v34 = vld [vmem:[#allocation8 + $0xae4] ss:$8 sps:$4 sm:$0xff]   ;;  %v13768_v3 = vld [vmem:[#allocation8 + $0xbb4] ss:$8 sps:$4 sm:$0xff]  }
 0x313   :  { %4849 = vmatprep.subr.bf16.mxu1 %v13717_v33  ;;  %4884 = vmatprep.subr.bf16.mxu0 %v13720_v2  ;;  %v4548_v44 = vpop.f32.mrb[39].mxu1  ;;  %v13763_v33 = vld [vmem:[#allocation8 + $0xae0] ss:$8 sps:$4 sm:$0xff]   ;;  %v13766_v2 = vld [vmem:[#allocation8 + $0xbb0] ss:$8 sps:$4 sm:$0xff]  }
 0x314   :  { %v13777_v41 = vld [vmem:[#allocation8 + $0xbd4] ss:$8 sps:$4 sm:$0xff]   ;;  %v13775_v26 = vld [vmem:[#allocation8 + $0xbd0] ss:$8 sps:$4 sm:$0xff]   ;;  %v13778_v44 = vld [vmem:[#allocation8 + $0xc00] ss:$8 sps:$4 sm:$0xff]  }
 0x316   :  { %4850 = vmatpush1.bf16.msra.mxu1 %v13715_v58  ;;  %4885 = vmatpush1.bf16.msra.mxu0 %v13718_v52  ;;  %v13774_v58 = vld [vmem:[#allocation8 + $0xbc4] ss:$8 sps:$4 sm:$0xff]   ;;  %v13769_v52 = vld [vmem:[#allocation8 + $0xaf0] ss:$8 sps:$4 sm:$0xff]  }
 0x317   :  { %4851 = vmatprep.subr.bf16.mxu1 %v13723_v43  ;;  %4886 = vmatprep.subr.bf16.mxu0 %v13726_v18  ;;  %v13780_v43 = vld [vmem:[#allocation8 + $0xc04] ss:$8 sps:$4 sm:$0xff]   ;;  %v1538_v18 = vmul.f32 %v15698_v42, %v1439_v6 }
 0x31a   :  { %4852 = vmatpush1.bf16.msra.mxu1 %v13721_v45  ;;  %4887 = vmatpush1.bf16.msra.mxu0 %v13724_v39  ;;  %v13783_v45 = vld [vmem:[#allocation8 + $0xbe4] ss:$8 sps:$4 sm:$0xff]   ;;  %v457_v39 = vrot.slane %v15899_v20, %v15727_v4 }
 0x31b   :  { %4853 = vmatprep.subr.bf16.mxu1 %v13729_v48  ;;  %4888 = vmatprep.subr.bf16.mxu0 %v13732_v46  ;;  %v1566_v48 = vsel %vm1509_vm9, %v1439_v6, %v1538_v18  ;;  %v13786_v46 = vld [vmem:[#allocation8 + $0xc14] ss:$8 sps:$4 sm:$0xff]  }
 0x31c   :  { %v4584_v8 = vpop.f32.mrb[32].mxu0  ;;  %v13816_v6 = vld [vmem:[#allocation8 + $0xd34] ss:$8 sps:$4 sm:$0xff]  }
 0x31d   :  { %v15895_v55 = vadd.f32 %v4584_v8, %v4544_v12  ;;  %v4586_v40 = vpop.f32.mrb[33].mxu0  ;;  %v13772_v12 = vld [vmem:[#allocation8 + $0xbc0] ss:$8 sps:$4 sm:$0xff]   ;;  %v13789_v8 = vld [vmem:[#allocation8 + $0xbf4] ss:$8 sps:$4 sm:$0xff]  }
 0x31e   :  { %v15897_v60 = vadd.f32 %v4586_v40, %v4546_v21  ;;  %v4588_v7 = vpop.f32.mrb[34].mxu0  ;;  %4854 = vmatpush1.bf16.msra.mxu1 %v13727_v59  ;;  %4889 = vmatpush1.bf16.msra.mxu0 %v13730_v47  ;;  %v1561_v21 = vsel %vm1504_vm8, %v15796_v22, %v1533_v14  ;;  %v13781_v47 = vld [vmem:[#allocation8 + $0xbe0] ss:$8 sps:$4 sm:$0xff]   ;;  %v13792_v22 = vld [vmem:[#allocation8 + $0xc24] ss:$8 sps:$4 sm:$0xff]  }
 0x31f   :  { %v4589_v9 = vpop.f32.mrb[35].mxu0  ;;  %4855 = vmatprep.subr.bf16.mxu1 %v13735_v38  ;;  %4890 = vmatprep.subr.bf16.mxu0 %v13738_v53  ;;  %v2037_v59 = vpack.c.bf16 %v1561_v21, %v1561_v21  ;;  %v13784_v38 = vld [vmem:[#allocation8 + $0xc10] ss:$8 sps:$4 sm:$0xff]   ;;  %v2042_v53 = vpack.c.bf16 %v1566_v48, %v1566_v48  ;;  %v13798_v7 = vld [vmem:[#allocation8 + $0xd04] ss:$8 sps:$4 sm:$0xff]  }
 0x320   :  { %v13787_v40 = vld [vmem:[#allocation8 + $0xbf0] ss:$8 sps:$4 sm:$0xff]   ;;  %v13828_v18 = vld [vmem:[#allocation8 + $0xd54] ss:$8 sps:$4 sm:$0xff]  }
 0x321   :  { %v13826_v21 = vld [vmem:[#allocation8 + $0xd50] ss:$8 sps:$4 sm:$0xff]  }
 0x322   :  { %4856 = vmatpush1.bf16.msra.mxu1 %v13733_v54  ;;  %4891 = vmatpush1.bf16.msra.mxu0 %v13736_v11  ;;  %v1480_v54 = vadd.f32 %v15831_v5, %v457_v39  ;;  %v1535_v11 = vmul.f32 %v15698_v42, %v15821_v23  ;;  %v13832_v39 = vld [vmem:[#allocation8 + $0xd60] ss:$8 sps:$4 sm:$0xff]  }
 0x323   :  { %4857 = vmatprep.subr.bf16.mxu1 %v13741_v57  ;;  %4892 = vmatprep.subr.bf16.mxu0 %v13744_v17  ;;  %v13790_v57 = vld [vmem:[#allocation8 + $0xc20] ss:$8 sps:$4 sm:$0xff]   ;;  %v13795_v17 = vld [vmem:[#allocation8 + $0xc34] ss:$8 sps:$4 sm:$0xff]  }
 0x324   :  { %v1540_v9 = vmul.f32 %v15698_v42, %v1480_v54  ;;  %vm1511_vm11 = vcmp.ge.f32.partialorder %v1480_v54, 0.0  ;;  %v1563_v5 = vsel %vm1506_vm10, %v15821_v23, %v1535_v11  ;;  %v13805_v23 = vld [vmem:[#allocation8 + $0xc50] ss:$8 sps:$4 sm:$0xff]   ;;  %v13843_v11 = vld [vmem:[#allocation8 + $0xcb4] ss:$8 sps:$4 sm:$0xff]  }
 0x326   :  { %4858 = vmatpush1.bf16.msra.mxu1 %v13739_v10  ;;  %4893 = vmatpush1.bf16.msra.mxu0 %v13742_v29  ;;  %v13793_v10 = vld [vmem:[#allocation8 + $0xc30] ss:$8 sps:$4 sm:$0xff]   ;;  %v13796_v29 = vld [vmem:[#allocation8 + $0xd00] ss:$8 sps:$4 sm:$0xff]  }
 0x327   :  { %4859 = vmatprep.subr.bf16.mxu1 %v13747_v36  ;;  %4894 = vmatprep.subr.bf16.mxu0 %v13750_v13  ;;  %v13801_v36 = vld [vmem:[#allocation8 + $0xc44] ss:$8 sps:$4 sm:$0xff]   ;;  %v1568_v13 = vsel %vm1511_vm11, %v1480_v54, %v1540_v9  ;;  %v13838_v54 = vld [vmem:[#allocation8 + $0xd70] ss:$8 sps:$4 sm:$0xff]   ;;  %v13852_v9 = vld [vmem:[#allocation8 + $0xd94] ss:$8 sps:$4 sm:$0xff]  }
 0x328   :  { %v2044_v24 = vpack.c.bf16 %v1568_v13, %v1568_v13  ;;  %v13858_v13 = vld [vmem:[#allocation8 + $0xda4] ss:$8 sps:$4 sm:$0xff]  }
 0x32a   :  { %4860 = vmatpush1.bf16.msra.mxu1 %v13745_v15  ;;  %4895 = vmatpush1.bf16.msra.mxu0 %v13748_v49  ;;  %v13804_v15 = vld [vmem:[#allocation8 + $0xd14] ss:$8 sps:$4 sm:$0xff]   ;;  %v2039_v49 = vpack.c.bf16 %v1563_v5, %v1563_v5  ;;  %v445_v5 = vrot.slane %v15899_v20, %v15709_v50  ;;  %v13859_v20 = vld [vmem:[#allocation8 + $0xce0] ss:$8 sps:$4 sm:$0xff]  }
 0x32b   :  { %4861 = vmatprep.subr.bf16.mxu1 %v13753_v16  ;;  %4896 = vmatprep.subr.bf16.mxu0 %v13756_v19  ;;  %v13799_v16 = vld [vmem:[#allocation8 + $0xc40] ss:$8 sps:$4 sm:$0xff]   ;;  %v13802_v19 = vld [vmem:[#allocation8 + $0xd10] ss:$8 sps:$4 sm:$0xff]  }
 0x32e   :  { %4862 = vmatpush1.bf16.msra.mxu1 %v13751_v27  ;;  %4897 = vmatpush1.bf16.msra.mxu0 %v13754_v28  ;;  %v13807_v27 = vld [vmem:[#allocation8 + $0xc54] ss:$8 sps:$4 sm:$0xff]   ;;  %v13810_v28 = vld [vmem:[#allocation8 + $0xd24] ss:$8 sps:$4 sm:$0xff]  }
 0x32f   :  { %4863 = vmatprep.subr.bf16.mxu1 %v13759_v30  ;;  %4898 = vmatprep.subr.bf16.mxu0 %v13762_v25  ;;  %v13808_v30 = vld [vmem:[#allocation8 + $0xd20] ss:$8 sps:$4 sm:$0xff]   ;;  %v13813_v25 = vld [vmem:[#allocation8 + $0xc64] ss:$8 sps:$4 sm:$0xff]  }
 0x332   :  { %4864 = vmatpush1.bf16.msra.mxu1 %v13757_v56  ;;  %4899 = vmatpush1.bf16.msra.mxu0 %v13760_v32  ;;  %v13811_v32 = vld [vmem:[#allocation8 + $0xc60] ss:$8 sps:$4 sm:$0xff]  }
 0x333   :  { %4865 = vmatprep.subr.bf16.mxu1 %v13765_v34  ;;  %4900 = vmatprep.subr.bf16.mxu0 %v13768_v3  ;;  %v13814_v34 = vld [vmem:[#allocation8 + $0xd30] ss:$8 sps:$4 sm:$0xff]  }
 0x336   :  { %4866 = vmatpush1.bf16.msra.mxu1 %v13763_v33  ;;  %4901 = vmatpush1.bf16.msra.mxu0 %v13766_v2  ;;  %v13819_v2 = vld [vmem:[#allocation8 + $0xc74] ss:$8 sps:$4 sm:$0xff]  }
 0x337   :  { %4867 = vmatprep.subr.bf16.mxu1 %v13771_v31  ;;  %4902 = vmatprep.subr.bf16.mxu0 %v13774_v58  ;;  %v13822_v31 = vld [vmem:[#allocation8 + $0xd44] ss:$8 sps:$4 sm:$0xff]  }
 0x33a   :  { %4868 = vmatpush1.bf16.msra.mxu1 %v13769_v52  ;;  %4903 = vmatpush1.bf16.msra.mxu0 %v13772_v12  ;;  %v13817_v12 = vld [vmem:[#allocation8 + $0xc70] ss:$8 sps:$4 sm:$0xff]  }
 0x33b   :  { %4904 = vmatprep.subr.bf16.mxu0 %v13777_v41  ;;  %4919 = vmatprep.subr.bf16.mxu1 %v13780_v43  ;;  %v13820_v41 = vld [vmem:[#allocation8 + $0xd40] ss:$8 sps:$4 sm:$0xff]   ;;  %v13825_v43 = vld [vmem:[#allocation8 + $0xc84] ss:$8 sps:$4 sm:$0xff]  }
 0x33d   :  { %4870 = vmatmul.mubr.bf16.vlgmr.msra.gmra.mrb[52].mxu1 %v2037_v59  ;;  %v13837_v59 = vld [vmem:[#allocation8 + $0xca4] ss:$8 sps:$4 sm:$0xff]  }
 0x33e   :  { %4905 = vmatpush1.bf16.msra.mxu0 %v13775_v26  ;;  %4920 = vmatpush1.bf16.msra.mxu1 %v13778_v44  ;;  %v13831_v26 = vld [vmem:[#allocation8 + $0xc94] ss:$8 sps:$4 sm:$0xff]   ;;  %v13834_v44 = vld [vmem:[#allocation8 + $0xd64] ss:$8 sps:$4 sm:$0xff]  }
 0x33f   :  { %4951 = vmatprep.mubr.bf16.mxu1 %v2042_v53  ;;  %4906 = vmatprep.subr.bf16.mxu0 %v13783_v45  ;;  %v13829_v45 = vld [vmem:[#allocation8 + $0xc90] ss:$8 sps:$4 sm:$0xff]  }
 0x340   :  { %4921 = vmatprep.subr.bf16.mxu1 %v13786_v46 }
 0x342   :  { %4907 = vmatpush1.bf16.msra.mxu0 %v13781_v47  ;;  %4922 = vmatpush1.bf16.msra.mxu1 %v13784_v38  ;;  %v13840_v47 = vld [vmem:[#allocation8 + $0xd74] ss:$8 sps:$4 sm:$0xff]  }
 0x343   :  { %4908 = vmatprep.subr.bf16.mxu0 %v13789_v8  ;;  %4923 = vmatprep.subr.bf16.mxu1 %v13792_v22  ;;  %v13835_v22 = vld [vmem:[#allocation8 + $0xca0] ss:$8 sps:$4 sm:$0xff]  }
 0x346   :  { %4909 = vmatpush1.bf16.msra.mxu0 %v13787_v40  ;;  %4924 = vmatpush1.bf16.msra.mxu1 %v13790_v57  ;;  %v13846_v40 = vld [vmem:[#allocation8 + $0xd84] ss:$8 sps:$4 sm:$0xff]   ;;  %v13841_v57 = vld [vmem:[#allocation8 + $0xcb0] ss:$8 sps:$4 sm:$0xff]  }
 0x347   :  { %4925 = vmatprep.subr.bf16.mxu1 %v13795_v17  ;;  %4960 = vmatprep.subr.bf16.mxu0 %v13798_v7  ;;  %v13844_v17 = vld [vmem:[#allocation8 + $0xd80] ss:$8 sps:$4 sm:$0xff]   ;;  %v13849_v7 = vld [vmem:[#allocation8 + $0xcc4] ss:$8 sps:$4 sm:$0xff]  }
 0x349   :  { %4911 = vmatmul.mubr.bf16.vlgmr.msra.gmra.mrb[48].mxu0 %v2039_v49  ;;  %v13853_v49 = vld [vmem:[#allocation8 + $0xcd0] ss:$8 sps:$4 sm:$0xff]  }
 0x34a   :  { %4926 = vmatpush1.bf16.msra.mxu1 %v13793_v10  ;;  %4961 = vmatpush1.bf16.msra.mxu0 %v13796_v29  ;;  %v13847_v10 = vld [vmem:[#allocation8 + $0xcc0] ss:$8 sps:$4 sm:$0xff]   ;;  %v13850_v29 = vld [vmem:[#allocation8 + $0xd90] ss:$8 sps:$4 sm:$0xff]  }
 0x34b   :  { %4992 = vmatprep.mubr.bf16.mxu0 %v2044_v24  ;;  %4927 = vmatprep.subr.bf16.mxu1 %v13801_v36  ;;  %v13855_v36 = vld [vmem:[#allocation8 + $0xcd4] ss:$8 sps:$4 sm:$0xff]  }
 0x34c   :  { %4962 = vmatprep.subr.bf16.mxu0 %v13804_v15  ;;  %v1437_v15 = vadd.f32 %v15810_v0, %v445_v5  ;;  %v13864_v24 = vld [vmem:[#allocation8 + $0xdb4] ss:$8 sps:$4 sm:$0xff]   ;;  %v13865_v0 = vld [vmem:[#allocation8 + $0xcf0] ss:$8 sps:$4 sm:$0xff]  }
 0x34d   :  { %v13906_v5 = vld [vmem:[#allocation12 + $0x84] ss:$8 sps:$4 sm:$0xff]  }
 0x34e   :  { %4928 = vmatpush1.bf16.msra.mxu1 %v13799_v16  ;;  %4963 = vmatpush1.bf16.msra.mxu0 %v13802_v19  ;;  %v13856_v16 = vld [vmem:[#allocation8 + $0xda0] ss:$8 sps:$4 sm:$0xff]   ;;  %v13861_v19 = vld [vmem:[#allocation8 + $0xce4] ss:$8 sps:$4 sm:$0xff]   ;;  %vm1508_vm12 = vcmp.ge.f32.partialorder %v1437_v15, 0.0 }
 0x34f   :  { %4929 = vmatprep.subr.bf16.mxu1 %v13807_v27  ;;  %4964 = vmatprep.subr.bf16.mxu0 %v13810_v28  ;;  %v13862_v27 = vld [vmem:[#allocation8 + $0xdb0] ss:$8 sps:$4 sm:$0xff]   ;;  %v13867_v28 = vld [vmem:[#allocation8 + $0xcf4] ss:$8 sps:$4 sm:$0xff]  }
 0x350   :  { %v4625_v56 = vpop.f32.mrb[40].mxu1 }
 0x351   :  { %v4626_v3 = vadd.f32 %v4625_v56, %v15895_v55  ;;  %v4627_v33 = vpop.f32.mrb[41].mxu1  ;;  %v13823_v55 = vld [vmem:[#allocation8 + $0xc80] ss:$8 sps:$4 sm:$0xff]  }
 0x352   :  { %v4628_v58 = vadd.f32 %v4627_v33, %v15897_v60  ;;  %v4629_v14 = vpop.f32.mrb[42].mxu1  ;;  %4930 = vmatpush1.bf16.msra.mxu1 %v13805_v23  ;;  %4965 = vmatpush1.bf16.msra.mxu0 %v13808_v30  ;;  %v13870_v23 = vld [vmem:[#allocation8 + $0xdc4] ss:$8 sps:$4 sm:$0xff]   ;;  %v1537_v30 = vmul.f32 %v15698_v42, %v1437_v15  ;;  %v13874_v33 = vld [vmem:[#allocation8 + $0xde0] ss:$8 sps:$4 sm:$0xff]  }
 0x353   :  { %v4630_v52 = vpop.f32.mrb[43].mxu1  ;;  %4931 = vmatprep.subr.bf16.mxu1 %v13813_v25  ;;  %4966 = vmatprep.subr.bf16.mxu0 %v13816_v6  ;;  %v13868_v25 = vld [vmem:[#allocation8 + $0xdc0] ss:$8 sps:$4 sm:$0xff]   ;;  %v13873_v6 = vld [vmem:[#allocation8 + $0xdd4] ss:$8 sps:$4 sm:$0xff]  }
 0x354   :  { %v1565_v56 = vsel %vm1508_vm12, %v1437_v15, %v1537_v30  ;;  %v13918_v30 = vld [vmem:[#allocation12 + $0xc4] ss:$8 sps:$4 sm:$0xff]  }
 0x356   :  { %4932 = vmatpush1.bf16.msra.mxu1 %v13811_v32  ;;  %4967 = vmatpush1.bf16.msra.mxu0 %v13814_v34  ;;  %v13871_v32 = vld [vmem:[#allocation8 + $0xdd0] ss:$8 sps:$4 sm:$0xff]   ;;  %v13876_v34 = vld [vmem:[#allocation8 + $0xde4] ss:$8 sps:$4 sm:$0xff]  }
 0x357   :  { %4933 = vmatprep.subr.bf16.mxu1 %v13819_v2  ;;  %4968 = vmatprep.subr.bf16.mxu0 %v13822_v31  ;;  %v13879_v2 = vld [vmem:[#allocation8 + $0xdf4] ss:$8 sps:$4 sm:$0xff]   ;;  %v1539_v31 = vmul.f32 %v15698_v42, %v15829_v62 }
 0x359   :  { %v1567_v14 = vsel %vm1510_vm13, %v15829_v62, %v1539_v31  ;;  %v13885_v62 = vld [vmem:[#allocation12 + $0x14] ss:$8 sps:$4 sm:$0xff]   ;;  %v13924_v31 = vld [vmem:[#allocation12 + $0xe4] ss:$8 sps:$4 sm:$0xff]  }
 0x35a   :  { %4934 = vmatpush1.bf16.msra.mxu1 %v13817_v12  ;;  %4969 = vmatpush1.bf16.msra.mxu0 %v13820_v41  ;;  %v2043_v52 = vpack.c.bf16 %v1567_v14, %v1567_v14  ;;  %v13927_v14 = vld [vmem:[#allocation12 + $0xf4] ss:$8 sps:$4 sm:$0xff]  }
 0x35b   :  { %4935 = vmatprep.subr.bf16.mxu1 %v13825_v43  ;;  %4970 = vmatprep.subr.bf16.mxu0 %v13828_v18 }
 0x35c   :  { %v4666_v60 = vpop.f32.mrb[36].mxu0 }
 0x35d   :  { %v15922_v48 = vadd.f32 %v4666_v60, %v4626_v3  ;;  %v4668_v46 = vpop.f32.mrb[37].mxu0  ;;  %v2041_v3 = vpack.c.bf16 %v1565_v56, %v1565_v56  ;;  %v13919_v56 = vld [vmem:[#allocation12 + $0xd0] ss:$8 sps:$4 sm:$0xff]  }
 0x35e   :  { %v15924_v38 = vadd.f32 %v4668_v46, %v4628_v58  ;;  %v4670_v53 = vpop.f32.mrb[38].mxu0  ;;  %4936 = vmatpush1.bf16.msra.mxu1 %v13823_v55  ;;  %4971 = vmatpush1.bf16.msra.mxu0 %v13826_v21  ;;  %v13877_v58 = vld [vmem:[#allocation8 + $0xdf0] ss:$8 sps:$4 sm:$0xff]   ;;  %v13880_v46 = vld [vmem:[#allocation12] ss:$8 sps:$4 sm:$0xff]  }
 0x35f   :  { %v4671_v8 = vpop.f32.mrb[39].mxu0  ;;  %4937 = vmatprep.subr.bf16.mxu1 %v13831_v26  ;;  %4972 = vmatprep.subr.bf16.mxu0 %v13834_v44  ;;  %v13888_v53 = vld [vmem:[#allocation12 + $0x24] ss:$8 sps:$4 sm:$0xff]  }
 0x360   :  { %v13891_v8 = vld [vmem:[#allocation12 + $0x34] ss:$8 sps:$4 sm:$0xff]  }
 0x362   :  { %4938 = vmatpush1.bf16.msra.mxu1 %v13829_v45  ;;  %4973 = vmatpush1.bf16.msra.mxu0 %v13832_v39 }
 0x363   :  { %4939 = vmatprep.subr.bf16.mxu1 %v13837_v59  ;;  %4974 = vmatprep.subr.bf16.mxu0 %v13840_v47  ;;  %v13882_v59 = vld [vmem:[#allocation12 + $0x4] ss:$8 sps:$4 sm:$0xff]   ;;  %v13883_v47 = vld [vmem:[#allocation12 + $0x10] ss:$8 sps:$4 sm:$0xff]  }
 0x366   :  { %4940 = vmatpush1.bf16.msra.mxu1 %v13835_v22  ;;  %4975 = vmatpush1.bf16.msra.mxu0 %v13838_v54  ;;  %v13894_v22 = vld [vmem:[#allocation12 + $0x44] ss:$8 sps:$4 sm:$0xff]   ;;  %v13892_v54 = vld [vmem:[#allocation12 + $0x40] ss:$8 sps:$4 sm:$0xff]  }
 0x367   :  { %4941 = vmatprep.subr.bf16.mxu1 %v13843_v11  ;;  %4976 = vmatprep.subr.bf16.mxu0 %v13846_v40  ;;  %v13897_v11 = vld [vmem:[#allocation12 + $0x54] ss:$8 sps:$4 sm:$0xff]   ;;  %v13895_v40 = vld [vmem:[#allocation12 + $0x50] ss:$8 sps:$4 sm:$0xff]  }
 0x36a   :  { %4942 = vmatpush1.bf16.msra.mxu1 %v13841_v57  ;;  %4977 = vmatpush1.bf16.msra.mxu0 %v13844_v17  ;;  %v13900_v57 = vld [vmem:[#allocation12 + $0x64] ss:$8 sps:$4 sm:$0xff]   ;;  %v13898_v17 = vld [vmem:[#allocation12 + $0x60] ss:$8 sps:$4 sm:$0xff]  }
 0x36b   :  { %4943 = vmatprep.subr.bf16.mxu1 %v13849_v7  ;;  %4978 = vmatprep.subr.bf16.mxu0 %v13852_v9  ;;  %v13903_v7 = vld [vmem:[#allocation12 + $0x74] ss:$8 sps:$4 sm:$0xff]   ;;  %v13901_v9 = vld [vmem:[#allocation12 + $0x70] ss:$8 sps:$4 sm:$0xff]  }
 0x36e   :  { %4944 = vmatpush1.bf16.msra.mxu1 %v13847_v10  ;;  %4979 = vmatpush1.bf16.msra.mxu0 %v13850_v29  ;;  %v13904_v10 = vld [vmem:[#allocation12 + $0x80] ss:$8 sps:$4 sm:$0xff]   ;;  %v13909_v29 = vld [vmem:[#allocation12 + $0x94] ss:$8 sps:$4 sm:$0xff]  }
 0x36f   :  { %4945 = vmatprep.subr.bf16.mxu1 %v13855_v36  ;;  %4980 = vmatprep.subr.bf16.mxu0 %v13858_v13  ;;  %v13907_v36 = vld [vmem:[#allocation12 + $0x90] ss:$8 sps:$4 sm:$0xff]   ;;  %v13912_v13 = vld [vmem:[#allocation12 + $0xa4] ss:$8 sps:$4 sm:$0xff]  }
 0x372   :  { %4946 = vmatpush1.bf16.msra.mxu1 %v13853_v49  ;;  %4981 = vmatpush1.bf16.msra.mxu0 %v13856_v16  ;;  %v13910_v49 = vld [vmem:[#allocation12 + $0xa0] ss:$8 sps:$4 sm:$0xff]  }
 0x373   :  { %4947 = vmatprep.subr.bf16.mxu1 %v13861_v19  ;;  %4982 = vmatprep.subr.bf16.mxu0 %v13864_v24 }
 0x376   :  { %4948 = vmatpush1.bf16.msra.mxu1 %v13859_v20  ;;  %4983 = vmatpush1.bf16.msra.mxu0 %v13862_v27 }
 0x377   :  { %4949 = vmatprep.subr.bf16.mxu1 %v13867_v28  ;;  %4984 = vmatprep.subr.bf16.mxu0 %v13870_v23  ;;  %v13913_v28 = vld [vmem:[#allocation12 + $0xb0] ss:$8 sps:$4 sm:$0xff]   ;;  %v13915_v23 = vld [vmem:[#allocation12 + $0xb4] ss:$8 sps:$4 sm:$0xff]  }
 0x37a   :  { %4950 = vmatpush1.bf16.msra.mxu1 %v13865_v0  ;;  %4985 = vmatpush1.bf16.msra.mxu0 %v13868_v25  ;;  %v13916_v0 = vld [vmem:[#allocation12 + $0xc0] ss:$8 sps:$4 sm:$0xff]   ;;  %v13921_v25 = vld [vmem:[#allocation12 + $0xd4] ss:$8 sps:$4 sm:$0xff]  }
 0x37b   :  { %4986 = vmatprep.subr.bf16.mxu0 %v13873_v6  ;;  %5229 = vmatprep.subr.bf16.mxu1 %v13882_v59  ;;  %v13946_v59 = vld [vmem:[#allocation12 + $0x160] ss:$8 sps:$4 sm:$0xff]  }
 0x37d   :  { %4952 = vmatmul.mubr.bf16.vlgmr.msra.gmra.mrb[56].mxu1 %v2041_v3 }
 0x37e   :  { %4987 = vmatpush1.bf16.msra.mxu0 %v13871_v32  ;;  %5230 = vmatpush1.bf16.msra.mxu1 %v13880_v46  ;;  %v13948_v46 = vld [vmem:[#allocation12 + $0x164] ss:$8 sps:$4 sm:$0xff]  }
 0x37f   :  { %4988 = vmatprep.subr.bf16.mxu0 %v13876_v34  ;;  %5231 = vmatprep.subr.bf16.mxu1 %v13885_v62  ;;  %v13951_v62 = vld [vmem:[#allocation12 + $0x174] ss:$8 sps:$4 sm:$0xff]  }
 0x382   :  { %4989 = vmatpush1.bf16.msra.mxu0 %v13874_v33  ;;  %5232 = vmatpush1.bf16.msra.mxu1 %v13883_v47  ;;  %v13949_v47 = vld [vmem:[#allocation12 + $0x170] ss:$8 sps:$4 sm:$0xff]  }
 0x383   :  { %4990 = vmatprep.subr.bf16.mxu0 %v13879_v2  ;;  %5233 = vmatprep.subr.bf16.mxu1 %v13888_v53  ;;  %v13954_v53 = vld [vmem:[#allocation12 + $0x184] ss:$8 sps:$4 sm:$0xff]  }
 0x386   :  { %4991 = vmatpush1.bf16.msra.mxu0 %v13877_v58  ;;  %v13922_v58 = vld [vmem:[#allocation12 + $0xe0] ss:$8 sps:$4 sm:$0xff]  }
 0x389   :  { %4993 = vmatmul.mubr.bf16.vlgmr.msra.gmra.mrb[52].mxu0 %v2043_v52  ;;  %v13925_v52 = vld [vmem:[#allocation12 + $0xf0] ss:$8 sps:$4 sm:$0xff]  }
 0x390   :  { %v4707_v12 = vpop.f32.mrb[44].mxu1 }
 0x391   :  { %v4708_v41 = vadd.f32 %v4707_v12, %v15922_v48  ;;  %v4709_v43 = vpop.f32.mrb[45].mxu1  ;;  %v13886_v48 = vld [vmem:[#allocation12 + $0x20] ss:$8 sps:$4 sm:$0xff]  }
 0x392   :  { %v4710_v18 = vadd.f32 %v4709_v43, %v15924_v38  ;;  %v4711_v55 = vpop.f32.mrb[46].mxu1  ;;  %v13889_v38 = vld [vmem:[#allocation12 + $0x30] ss:$8 sps:$4 sm:$0xff]   ;;  %5234 = vmatpush1.bf16.msra.mxu1 %v13886_v48  ;;  %v13928_v12 = vld [vmem:[#allocation12 + $0x100] ss:$8 sps:$4 sm:$0xff]  }
 0x393   :  { %v4712_v21 = vpop.f32.mrb[47].mxu1  ;;  %5235 = vmatprep.subr.bf16.mxu1 %v13891_v8  ;;  %v13933_v43 = vld [vmem:[#allocation12 + $0x114] ss:$8 sps:$4 sm:$0xff]   ;;  %v13936_v55 = vld [vmem:[#allocation12 + $0x124] ss:$8 sps:$4 sm:$0xff]  }
 0x394   :  { %v13934_v21 = vld [vmem:[#allocation12 + $0x120] ss:$8 sps:$4 sm:$0xff]   ;;  %v13957_v8 = vld [vmem:[#allocation12 + $0x194] ss:$8 sps:$4 sm:$0xff]  }
 0x395   :  { %v13952_v48 = vld [vmem:[#allocation12 + $0x180] ss:$8 sps:$4 sm:$0xff]  }
 0x396   :  { %5236 = vmatpush1.bf16.msra.mxu1 %v13889_v38  ;;  %v13955_v38 = vld [vmem:[#allocation12 + $0x190] ss:$8 sps:$4 sm:$0xff]  }
 0x397   :  { %5237 = vmatprep.subr.bf16.mxu1 %v13894_v22  ;;  %v13960_v22 = vld [vmem:[#allocation12 + $0x1a4] ss:$8 sps:$4 sm:$0xff]  }
 0x39a   :  { %5238 = vmatpush1.bf16.msra.mxu1 %v13892_v54  ;;  %v13958_v54 = vld [vmem:[#allocation12 + $0x1a0] ss:$8 sps:$4 sm:$0xff]  }
 0x39b   :  { %5239 = vmatprep.subr.bf16.mxu1 %v13897_v11 }
 0x39c   :  { %v4748_v26 = vpop.f32.mrb[40].mxu0 }
 0x39d   :  { %v4749_v42 = vadd.f32 %v4748_v26, %v4708_v41  ;;  %v4750_v44 = vpop.f32.mrb[41].mxu0  ;;  %v13930_v41 = vld [vmem:[#allocation12 + $0x104] ss:$8 sps:$4 sm:$0xff]   ;;  %v13939_v26 = vld [vmem:[#allocation12 + $0x134] ss:$8 sps:$4 sm:$0xff]  }
 0x39e   :  { %v4751_v60 = vadd.f32 %v4750_v44, %v4710_v18  ;;  %v4752_v45 = vpop.f32.mrb[42].mxu0  ;;  %5240 = vmatpush1.bf16.msra.mxu1 %v13895_v40  ;;  %5486 = vmatprep.subr.bf16.mxu0 %v13930_v41  ;;  %v13931_v18 = vld [vmem:[#allocation12 + $0x110] ss:$8 sps:$4 sm:$0xff]   ;;  %v13942_v44 = vld [vmem:[#allocation12 + $0x144] ss:$8 sps:$4 sm:$0xff]  }
 0x39f   :  { %v4753_v39 = vpop.f32.mrb[43].mxu0  ;;  %5241 = vmatprep.subr.bf16.mxu1 %v13900_v57  ;;  %5487 = vmatpush1.bf16.msra.mxu0 %v13928_v12  ;;  %v13945_v45 = vld [vmem:[#allocation12 + $0x154] ss:$8 sps:$4 sm:$0xff]  }
 0x3a0   :  { %5488 = vmatprep.subr.bf16.mxu0 %v13933_v43  ;;  %v13943_v39 = vld [vmem:[#allocation12 + $0x150] ss:$8 sps:$4 sm:$0xff]   ;;  %v13963_v40 = vld [vmem:[#allocation12 + $0x1b4] ss:$8 sps:$4 sm:$0xff]  }
 0x3a2   :  { %5242 = vmatpush1.bf16.msra.mxu1 %v13898_v17 }
 0x3a3   :  { %5243 = vmatprep.subr.bf16.mxu1 %v13903_v7  ;;  %5489 = vmatpush1.bf16.msra.mxu0 %v13931_v18 }
 0x3a4   :  { %5490 = vmatprep.subr.bf16.mxu0 %v13936_v55 }
 0x3a6   :  { %5244 = vmatpush1.bf16.msra.mxu1 %v13901_v9 }
 0x3a7   :  { %5245 = vmatprep.subr.bf16.mxu1 %v13906_v5  ;;  %5491 = vmatpush1.bf16.msra.mxu0 %v13934_v21 }
 0x3a8   :  { %5492 = vmatprep.subr.bf16.mxu0 %v13939_v26 }
 0x3aa   :  { %5246 = vmatpush1.bf16.msra.mxu1 %v13904_v10  ;;  %v13961_v10 = vld [vmem:[#allocation12 + $0x1b0] ss:$8 sps:$4 sm:$0xff]  }
 0x3ab   :  { %5247 = vmatprep.subr.bf16.mxu1 %v13909_v29  ;;  %v13966_v29 = vld [vmem:[#allocation12 + $0x1c4] ss:$8 sps:$4 sm:$0xff]  }
 0x3ae   :  { %5248 = vmatpush1.bf16.msra.mxu1 %v13907_v36  ;;  %v13964_v36 = vld [vmem:[#allocation12 + $0x1c0] ss:$8 sps:$4 sm:$0xff]  }
 0x3af   :  { %5249 = vmatprep.subr.bf16.mxu1 %v13912_v13  ;;  %v13969_v13 = vld [vmem:[#allocation12 + $0x1d4] ss:$8 sps:$4 sm:$0xff]  }
 0x3b2   :  { %5250 = vmatpush1.bf16.msra.mxu1 %v13910_v49 }
 0x3b3   :  { %5251 = vmatprep.subr.bf16.mxu1 %v13915_v23 }
 0x3b6   :  { %5252 = vmatpush1.bf16.msra.mxu1 %v13913_v28 }
 0x3b7   :  { %5253 = vmatprep.subr.bf16.mxu1 %v13918_v30 }
 0x3ba   :  { %5254 = vmatpush1.bf16.msra.mxu1 %v13916_v0 }
 0x3bb   :  { %5255 = vmatprep.subr.bf16.mxu1 %v13921_v25 }
 0x3be   :  { %5256 = vmatpush1.bf16.msra.mxu1 %v13919_v56  ;;  %v5001_v56 = vld [vmem:[#allocation11] sm:$0x3] }
 0x3bf   :  { %5257 = vmatprep.subr.bf16.mxu1 %v13924_v31  ;;  %v5018_v31 = vstv %s12110_s24 }
 0x3c2   :  { %5258 = vmatpush1.bf16.msra.mxu1 %v13922_v58 }
 0x3c3   :  { %5259 = vmatprep.subr.bf16.mxu1 %v13927_v14 }
 0x3c6   :  { %5260 = vmatpush1.bf16.msra.mxu1 %v13925_v52 }
 0x3d0   :  { %v4789_v15 = vpop.f32.mrb[48].mxu1 }
 0x3d1   :  { %v4790_v16 = vadd.f32 %v4789_v15, %v4749_v42  ;;  %v4791_v19 = vpop.f32.mrb[49].mxu1  ;;  %v13937_v42 = vld [vmem:[#allocation12 + $0x130] ss:$8 sps:$4 sm:$0xff]  }
 0x3d2   :  { %v4792_v24 = vadd.f32 %v4791_v19, %v4751_v60  ;;  %v4793_v20 = vpop.f32.mrb[50].mxu1  ;;  %5493 = vmatpush1.bf16.msra.mxu0 %v13937_v42  ;;  %v13940_v60 = vld [vmem:[#allocation12 + $0x140] ss:$8 sps:$4 sm:$0xff]   ;;  %v13967_v15 = vld [vmem:[#allocation12 + $0x1d0] ss:$8 sps:$4 sm:$0xff]  }
 0x3d3   :  { %v4794_v27 = vpop.f32.mrb[51].mxu1  ;;  %5494 = vmatprep.subr.bf16.mxu0 %v13942_v44  ;;  %v13972_v44 = vld [vmem:[#allocation12 + $0x1e4] ss:$8 sps:$4 sm:$0xff]  }
 0x3d6   :  { %5495 = vmatpush1.bf16.msra.mxu0 %v13940_v60  ;;  %v13970_v60 = vld [vmem:[#allocation12 + $0x1e0] ss:$8 sps:$4 sm:$0xff]  }
 0x3d7   :  { %5496 = vmatprep.subr.bf16.mxu0 %v13945_v45  ;;  %v13975_v45 = vld [vmem:[#allocation12 + $0x1f4] ss:$8 sps:$4 sm:$0xff]  }
 0x3da   :  { %5497 = vmatpush1.bf16.msra.mxu0 %v13943_v39  ;;  %v13973_v39 = vld [vmem:[#allocation12 + $0x1f0] ss:$8 sps:$4 sm:$0xff]  }
 0x3db   :  { %5498 = vmatprep.subr.bf16.mxu0 %v13948_v46  ;;  %v13976_v46 = vld [vmem:[#allocation12 + $0x200] ss:$8 sps:$4 sm:$0xff]  }
 0x3dc   :  { %v4830_v6 = vpop.f32.mrb[44].mxu0 }
 0x3dd   :  { %v4831_v32 = vadd.f32 %v4830_v6, %v4790_v16  ;;  %v4832_v34 = vpop.f32.mrb[45].mxu0 }
 0x3de   :  { %v4833_v3 = vadd.f32 %v4832_v34, %v4792_v24  ;;  %v4834_v33 = vpop.f32.mrb[46].mxu0  ;;  %5499 = vmatpush1.bf16.msra.mxu0 %v13946_v59  ;;  %v13978_v59 = vld [vmem:[#allocation12 + $0x204] ss:$8 sps:$4 sm:$0xff]  }
 0x3df   :  { %v4835_v2 = vpop.f32.mrb[47].mxu0  ;;  %5500 = vmatprep.subr.bf16.mxu0 %v13951_v62  ;;  %v13981_v62 = vld [vmem:[#allocation12 + $0x214] ss:$8 sps:$4 sm:$0xff]   ;;  %5743 = vmatprep.subr.bf16.mxu1 %v13978_v59  ;;  %v14036_v59 = vld [vmem:[#allocation12 + $0x340] ss:$8 sps:$4 sm:$0xff]  }
 0x3e2   :  { %5501 = vmatpush1.bf16.msra.mxu0 %v13949_v47  ;;  %v13979_v47 = vld [vmem:[#allocation12 + $0x210] ss:$8 sps:$4 sm:$0xff]  }
 0x3e3   :  { %5502 = vmatprep.subr.bf16.mxu0 %v13954_v53  ;;  %v13984_v53 = vld [vmem:[#allocation12 + $0x224] ss:$8 sps:$4 sm:$0xff]  }
 0x3e6   :  { %5503 = vmatpush1.bf16.msra.mxu0 %v13952_v48  ;;  %v13982_v48 = vld [vmem:[#allocation12 + $0x220] ss:$8 sps:$4 sm:$0xff]  }
 0x3e7   :  { %5504 = vmatprep.subr.bf16.mxu0 %v13957_v8  ;;  %v13987_v8 = vld [vmem:[#allocation12 + $0x234] ss:$8 sps:$4 sm:$0xff]  }
 0x3ea   :  { %5505 = vmatpush1.bf16.msra.mxu0 %v13955_v38  ;;  %v13985_v38 = vld [vmem:[#allocation12 + $0x230] ss:$8 sps:$4 sm:$0xff]  }
 0x3eb   :  { %5506 = vmatprep.subr.bf16.mxu0 %v13960_v22  ;;  %v13990_v22 = vld [vmem:[#allocation12 + $0x244] ss:$8 sps:$4 sm:$0xff]  }
 0x3ee   :  { %5507 = vmatpush1.bf16.msra.mxu0 %v13958_v54  ;;  %v13988_v54 = vld [vmem:[#allocation12 + $0x240] ss:$8 sps:$4 sm:$0xff]  }
 0x3ef   :  { %5508 = vmatprep.subr.bf16.mxu0 %v13963_v40  ;;  %v13991_v40 = vld [vmem:[#allocation12 + $0x250] ss:$8 sps:$4 sm:$0xff]  }
 0x3f2   :  { %5509 = vmatpush1.bf16.msra.mxu0 %v13961_v10  ;;  %v14000_v10 = vld [vmem:[#allocation12 + $0x280] ss:$8 sps:$4 sm:$0xff]  }
 0x3f3   :  { %5510 = vmatprep.subr.bf16.mxu0 %v13966_v29  ;;  %v14005_v29 = vld [vmem:[#allocation12 + $0x294] ss:$8 sps:$4 sm:$0xff]  }
 0x3f6   :  { %5511 = vmatpush1.bf16.msra.mxu0 %v13964_v36  ;;  %v14003_v36 = vld [vmem:[#allocation12 + $0x290] ss:$8 sps:$4 sm:$0xff]  }
 0x3f7   :  { %5512 = vmatprep.subr.bf16.mxu0 %v13969_v13  ;;  %v14008_v13 = vld [vmem:[#allocation12 + $0x2a4] ss:$8 sps:$4 sm:$0xff]  }
 0x3fa   :  { %5513 = vmatpush1.bf16.msra.mxu0 %v13967_v15  ;;  %v14006_v15 = vld [vmem:[#allocation12 + $0x2a0] ss:$8 sps:$4 sm:$0xff]  }
 0x3fb   :  { %5514 = vmatprep.subr.bf16.mxu0 %v13972_v44  ;;  %v14032_v44 = vld [vmem:[#allocation12 + $0x324] ss:$8 sps:$4 sm:$0xff]  }
 0x3fe   :  { %5515 = vmatpush1.bf16.msra.mxu0 %v13970_v60  ;;  %v14030_v60 = vld [vmem:[#allocation12 + $0x320] ss:$8 sps:$4 sm:$0xff]  }
 0x3ff   :  { %5516 = vmatprep.subr.bf16.mxu0 %v13975_v45  ;;  %v14035_v45 = vld [vmem:[#allocation12 + $0x334] ss:$8 sps:$4 sm:$0xff]  }
 0x402   :  { %5517 = vmatpush1.bf16.msra.mxu0 %v13973_v39  ;;  %v14033_v39 = vld [vmem:[#allocation12 + $0x330] ss:$8 sps:$4 sm:$0xff]  }
 0x410   :  { %v4871_v11 = vpop.f32.mrb[52].mxu1 }
 0x411   :  { %v4872_v57 = vadd.f32 %v4871_v11, %v4831_v32  ;;  %v4873_v17 = vpop.f32.mrb[53].mxu1  ;;  %v5006_v32 = vrot.slane %v5001_v56, %v15709_v50  ;;  %v13993_v11 = vld [vmem:[#allocation12 + $0x254] ss:$8 sps:$4 sm:$0xff]  }
 0x412   :  { %v4874_v7 = vadd.f32 %v4873_v17, %v4833_v3  ;;  %v4875_v9 = vpop.f32.mrb[54].mxu1  ;;  %v5010_v3 = vrot.slane %v5001_v56, %v15712_v51  ;;  %v13994_v17 = vld [vmem:[#allocation12 + $0x260] ss:$8 sps:$4 sm:$0xff]  }
 0x413   :  { %v4876_v5 = vpop.f32.mrb[55].mxu1  ;;  %v13997_v9 = vld [vmem:[#allocation12 + $0x270] ss:$8 sps:$4 sm:$0xff]  }
 0x414   :  { %v14002_v5 = vld [vmem:[#allocation12 + $0x284] ss:$8 sps:$4 sm:$0xff]  }
 0x41c   :  { %v4912_v49 = vpop.f32.mrb[48].mxu0 }
 0x41d   :  { %v4913_v16 = vadd.f32 %v4912_v49, %v4872_v57  ;;  %v4914_v19 = vpop.f32.mrb[49].mxu0  ;;  %v13996_v57 = vld [vmem:[#allocation12 + $0x264] ss:$8 sps:$4 sm:$0xff]   ;;  %v14011_v49 = vld [vmem:[#allocation12 + $0x2b4] ss:$8 sps:$4 sm:$0xff]  }
 0x41e   :  { %v4915_v24 = vadd.f32 %v4914_v19, %v4874_v7  ;;  %v4916_v20 = vpop.f32.mrb[50].mxu0  ;;  %v13999_v7 = vld [vmem:[#allocation12 + $0x274] ss:$8 sps:$4 sm:$0xff]   ;;  %v14014_v19 = vld [vmem:[#allocation12 + $0x2c4] ss:$8 sps:$4 sm:$0xff]  }
 0x41f   :  { %v4917_v27 = vpop.f32.mrb[51].mxu0  ;;  %v14017_v20 = vld [vmem:[#allocation12 + $0x2d4] ss:$8 sps:$4 sm:$0xff]  }
 0x420   :  { %v14015_v27 = vld [vmem:[#allocation12 + $0x2d0] ss:$8 sps:$4 sm:$0xff]  }
 0x450   :  { %v4953_v28 = vpop.f32.mrb[56].mxu1 }
 0x451   :  { %v4954_v23 = vadd.f32 %v4953_v28, %v4913_v16  ;;  %v4955_v30 = vpop.f32.mrb[57].mxu1  ;;  %v14009_v16 = vld [vmem:[#allocation12 + $0x2b0] ss:$8 sps:$4 sm:$0xff]   ;;  %v5057_v28 = vld [vmem:[#allocation14] sm:$0x3] }
 0x452   :  { %v4956_v0 = vadd.f32 %v4955_v30, %v4915_v24  ;;  %v4957_v25 = vpop.f32.mrb[58].mxu1  ;;  %v14012_v24 = vld [vmem:[#allocation12 + $0x2c0] ss:$8 sps:$4 sm:$0xff]   ;;  %v5066_v30 = vrot.slane %v5057_v28, %v15712_v51 }
 0x453   :  { %v4958_v6 = vpop.f32.mrb[59].mxu1  ;;  %v5273_v25 = vstv %s12143_s6 }
 0x45c   :  { %v4994_v34 = vpop.f32.mrb[52].mxu0 }
 0x45d   :  { %v4995_v33 = vadd.f32 %v4994_v34, %v4954_v23  ;;  %v4996_v2 = vpop.f32.mrb[53].mxu0  ;;  %v5062_v23 = vrot.slane %v5057_v28, %v15709_v50 }
 0x45e   :  { %v4997_v58 = vadd.f32 %v4996_v2, %v4956_v0  ;;  %v4998_v14 = vpop.f32.mrb[54].mxu0 }
 0x45f   :  { %v5013_v52 = vadd.f32 %v5006_v32, %v4995_v33  ;;  %v4999_v12 = vpop.f32.mrb[55].mxu0 }
 0x460   :  { %v5014_v41 = vadd.f32 %v5010_v3, %v4997_v58  ;;  %v14020_v12 = vld [vmem:[#allocation12 + $0x2e4] ss:$8 sps:$4 sm:$0xff]  }
 0x461   :  { %vm5016_vm14 = vcmp.ge.f32.partialorder %v5013_v52, 0.0  ;;  %v5019_v43 = vmul.f32 %v5018_v31, %v5013_v52 }
 0x462   :  { %v5020_v18 = vmul.f32 %v5018_v31, %v5014_v41  ;;  %vm5017_vm15 = vcmp.ge.f32.partialorder %v5014_v41, 0.0 }
 0x463   :  { %v5021_v55 = vsel %vm5016_vm14, %v5013_v52, %v5019_v43  ;;  %v14023_v43 = vld [vmem:[#allocation12 + $0x2f4] ss:$8 sps:$4 sm:$0xff]  }
 0x464   :  { %v5022_v21 = vsel %vm5017_vm15, %v5014_v41, %v5020_v18  ;;  %v5055_v42 = vpack.c.bf16 %v5021_v55, %v5021_v55  ;;  %v14018_v41 = vld [vmem:[#allocation12 + $0x2e0] ss:$8 sps:$4 sm:$0xff]   ;;  %v14021_v18 = vld [vmem:[#allocation12 + $0x2f0] ss:$8 sps:$4 sm:$0xff]  }
 0x465   :  { %v5056_v26 = vpack.c.bf16 %v5022_v21, %v5022_v21  ;;  %v14024_v55 = vld [vmem:[#allocation12 + $0x300] ss:$8 sps:$4 sm:$0xff]   ;;  %v14026_v21 = vld [vmem:[#allocation12 + $0x304] ss:$8 sps:$4 sm:$0xff]  }
 0x466   :  { %6000 = vmatprep.subr.bf16.mxu0 %v14026_v21  ;;  %v14098_v21 = vld [vmem:[#allocation15 + $0x184] ss:$48 sps:$4 sm:$0xff]  }
 0x467   :  { %5261 = vmatprep.mubr.bf16.mxu1 %v5056_v26  ;;  %v14029_v26 = vld [vmem:[#allocation12 + $0x314] ss:$8 sps:$4 sm:$0xff]  }
 0x468   :  { %5262 = vmatmul.mubr.bf16.vlgmr.msra.gmra.mrb[60].mxu1 %v5055_v42  ;;  %v14027_v42 = vld [vmem:[#allocation12 + $0x310] ss:$8 sps:$4 sm:$0xff]  }
 0x469   :  { %5744 = vmatpush1.bf16.msra.mxu1 %v13976_v46  ;;  %v14038_v46 = vld [vmem:[#allocation12 + $0x344] ss:$8 sps:$4 sm:$0xff]  }
 0x46a   :  { %5745 = vmatprep.subr.bf16.mxu1 %v13981_v62  ;;  %v14041_v62 = vld [vmem:[#allocation12 + $0x354] ss:$8 sps:$4 sm:$0xff]  }
 0x46d   :  { %5746 = vmatpush1.bf16.msra.mxu1 %v13979_v47  ;;  %v14039_v47 = vld [vmem:[#allocation12 + $0x350] ss:$8 sps:$4 sm:$0xff]  }
 0x46e   :  { %5747 = vmatprep.subr.bf16.mxu1 %v13984_v53  ;;  %v14044_v53 = vld [vmem:[#allocation12 + $0x364] ss:$8 sps:$4 sm:$0xff]  }
 0x471   :  { %5748 = vmatpush1.bf16.msra.mxu1 %v13982_v48  ;;  %v14042_v48 = vld [vmem:[#allocation12 + $0x360] ss:$8 sps:$4 sm:$0xff]  }
 0x472   :  { %5749 = vmatprep.subr.bf16.mxu1 %v13987_v8  ;;  %v14047_v8 = vld [vmem:[#allocation12 + $0x374] ss:$8 sps:$4 sm:$0xff]  }
 0x475   :  { %5750 = vmatpush1.bf16.msra.mxu1 %v13985_v38  ;;  %v14045_v38 = vld [vmem:[#allocation12 + $0x370] ss:$8 sps:$4 sm:$0xff]  }
 0x476   :  { %5751 = vmatprep.subr.bf16.mxu1 %v13990_v22  ;;  %v14050_v22 = vld [vmem:[#allocation12 + $0x384] ss:$8 sps:$4 sm:$0xff]  }
 0x479   :  { %5752 = vmatpush1.bf16.msra.mxu1 %v13988_v54  ;;  %v14048_v54 = vld [vmem:[#allocation12 + $0x380] ss:$8 sps:$4 sm:$0xff]  }
 0x47a   :  { %5753 = vmatprep.subr.bf16.mxu1 %v13993_v11  ;;  %v14053_v11 = vld [vmem:[#allocation12 + $0x394] ss:$8 sps:$4 sm:$0xff]  }
 0x47d   :  { %5754 = vmatpush1.bf16.msra.mxu1 %v13991_v40  ;;  %v14051_v40 = vld [vmem:[#allocation12 + $0x390] ss:$8 sps:$4 sm:$0xff]  }
 0x47e   :  { %5755 = vmatprep.subr.bf16.mxu1 %v13996_v57  ;;  %v14056_v57 = vld [vmem:[#allocation12 + $0x3a4] ss:$8 sps:$4 sm:$0xff]  }
 0x481   :  { %5756 = vmatpush1.bf16.msra.mxu1 %v13994_v17  ;;  %v14054_v17 = vld [vmem:[#allocation12 + $0x3a0] ss:$8 sps:$4 sm:$0xff]  }
 0x482   :  { %5757 = vmatprep.subr.bf16.mxu1 %v13999_v7  ;;  %v14059_v7 = vld [vmem:[#allocation12 + $0x3b4] ss:$8 sps:$4 sm:$0xff]  }
 0x485   :  { %5758 = vmatpush1.bf16.msra.mxu1 %v13997_v9  ;;  %v14057_v9 = vld [vmem:[#allocation12 + $0x3b0] ss:$8 sps:$4 sm:$0xff]  }
 0x486   :  { %5759 = vmatprep.subr.bf16.mxu1 %v14002_v5  ;;  %v14062_v5 = vld [vmem:[#allocation12 + $0x3c4] ss:$8 sps:$4 sm:$0xff]  }
 0x489   :  { %5760 = vmatpush1.bf16.msra.mxu1 %v14000_v10  ;;  %v14060_v10 = vld [vmem:[#allocation12 + $0x3c0] ss:$8 sps:$4 sm:$0xff]  }
 0x48a   :  { %5761 = vmatprep.subr.bf16.mxu1 %v14005_v29  ;;  %v14065_v29 = vld [vmem:[#allocation12 + $0x3d4] ss:$8 sps:$4 sm:$0xff]  }
 0x48d   :  { %5762 = vmatpush1.bf16.msra.mxu1 %v14003_v36  ;;  %v14063_v36 = vld [vmem:[#allocation12 + $0x3d0] ss:$8 sps:$4 sm:$0xff]  }
 0x48e   :  { %5763 = vmatprep.subr.bf16.mxu1 %v14008_v13  ;;  %v5314_v13 = vld [vmem:[#allocation14 + $0x2] sm:$0x3] }
 0x491   :  { %5764 = vmatpush1.bf16.msra.mxu1 %v14006_v15  ;;  %v5319_v15 = vrot.slane %v5314_v13, %v15709_v50 }
 0x492   :  { %5765 = vmatprep.subr.bf16.mxu1 %v14011_v49  ;;  %v5323_v49 = vrot.slane %v5314_v13, %v15712_v51 }
 0x495   :  { %5766 = vmatpush1.bf16.msra.mxu1 %v14009_v16 }
 0x496   :  { %5767 = vmatprep.subr.bf16.mxu1 %v14014_v19  ;;  %v5530_v19 = vstv %s12176_s21 }
 0x499   :  { %5768 = vmatpush1.bf16.msra.mxu1 %v14012_v24 }
 0x49a   :  { %5769 = vmatprep.subr.bf16.mxu1 %v14017_v20 }
 0x49d   :  { %5770 = vmatpush1.bf16.msra.mxu1 %v14015_v27 }
 0x49e   :  { %5771 = vmatprep.subr.bf16.mxu1 %v14020_v12  ;;  %v14078_v12 = vld [vmem:[#allocation15 + $0x60] ss:$48 sps:$4 sm:$0xff]  }
 0x4a1   :  { %5772 = vmatpush1.bf16.msra.mxu1 %v14018_v41  ;;  %v14086_v41 = vld [vmem:[#allocation15 + $0xc4] ss:$48 sps:$4 sm:$0xff]  }
 0x4a2   :  { %5773 = vmatprep.subr.bf16.mxu1 %v14023_v43  ;;  %v14084_v43 = vld [vmem:[#allocation15 + $0xc0] ss:$48 sps:$4 sm:$0xff]  }
 0x4a5   :  { %5774 = vmatpush1.bf16.msra.mxu1 %v14021_v18  ;;  %v14092_v18 = vld [vmem:[#allocation15 + $0x124] ss:$48 sps:$4 sm:$0xff]  }
 0x53b   :  { %v5263_v0 = vpop.f32.mrb[60].mxu1 }
 0x53c   :  { %v5264_v6 = vadd.f32 %v5263_v0, %v5062_v23  ;;  %v5265_v56 = vpop.f32.mrb[61].mxu1 }
 0x53d   :  { %v5266_v32 = vadd.f32 %v5265_v56, %v5066_v30  ;;  %v5267_v34 = vpop.f32.mrb[62].mxu1 }
 0x53e   :  { %vm5271_vm0 = vcmp.ge.f32.partialorder %v5264_v6, 0.0  ;;  %v5274_v3 = vmul.f32 %v5273_v25, %v5264_v6  ;;  %v5268_v33 = vpop.f32.mrb[63].mxu1  ;;  %v14068_v34 = vld [vmem:[#allocation12 + $0x3e4] ss:$8 sps:$4 sm:$0xff]  }
 0x53f   :  { %vm5272_vm1 = vcmp.ge.f32.partialorder %v5266_v32, 0.0  ;;  %v5275_v2 = vmul.f32 %v5273_v25, %v5266_v32  ;;  %v14071_v33 = vld [vmem:[#allocation12 + $0x3f4] ss:$8 sps:$4 sm:$0xff]  }
 0x540   :  { %v5276_v31 = vsel %vm5271_vm0, %v5264_v6, %v5274_v3  ;;  %v14066_v3 = vld [vmem:[#allocation12 + $0x3e0] ss:$8 sps:$4 sm:$0xff]  }
 0x541   :  { %v5277_v58 = vsel %vm5272_vm1, %v5266_v32, %v5275_v2  ;;  %v5311_v52 = vpack.c.bf16 %v5276_v31, %v5276_v31  ;;  %v14069_v2 = vld [vmem:[#allocation12 + $0x3f0] ss:$8 sps:$4 sm:$0xff]  }
 0x542   :  { %v5312_v14 = vpack.c.bf16 %v5277_v58, %v5277_v58  ;;  %v14072_v31 = vld [vmem:[#allocation15] ss:$48 sps:$4 sm:$0xff]   ;;  %v14074_v58 = vld [vmem:[#allocation15 + $0x4] ss:$48 sps:$4 sm:$0xff]  }
 0x543   :  { %7199 = vmatprep.subr.bf16.mxu1 %v14074_v58  ;;  %v14111_v58 = vld [vmem:[#allocation15 + $0x248] ss:$48 sps:$4 sm:$0xff]  }
 0x544   :  { %5518 = vmatprep.mubr.bf16.mxu0 %v5312_v14  ;;  %v14077_v14 = vld [vmem:[#allocation15 + $0xc] ss:$48 sps:$4 sm:$0xff]  }
 0x545   :  { %5519 = vmatmul.mubr.bf16.vlgmr.msra.gmra.mrb[56].mxu0 %v5311_v52  ;;  %v14080_v52 = vld [vmem:[#allocation15 + $0x64] ss:$48 sps:$4 sm:$0xff]  }
 0x546   :  { %6001 = vmatpush1.bf16.msra.mxu0 %v14024_v55  ;;  %v14090_v55 = vld [vmem:[#allocation15 + $0x120] ss:$48 sps:$4 sm:$0xff]  }
 0x547   :  { %6002 = vmatprep.subr.bf16.mxu0 %v14029_v26  ;;  %v14096_v26 = vld [vmem:[#allocation15 + $0x180] ss:$48 sps:$4 sm:$0xff]  }
 0x54a   :  { %6003 = vmatpush1.bf16.msra.mxu0 %v14027_v42  ;;  %v14104_v42 = vld [vmem:[#allocation15 + $0x1e4] ss:$48 sps:$4 sm:$0xff]  }
 0x54b   :  { %6004 = vmatprep.subr.bf16.mxu0 %v14032_v44  ;;  %v14102_v44 = vld [vmem:[#allocation15 + $0x1e0] ss:$48 sps:$4 sm:$0xff]  }
 0x54e   :  { %6005 = vmatpush1.bf16.msra.mxu0 %v14030_v60  ;;  %v14110_v60 = vld [vmem:[#allocation15 + $0x244] ss:$48 sps:$4 sm:$0xff]  }
 0x54f   :  { %6006 = vmatprep.subr.bf16.mxu0 %v14035_v45  ;;  %v14108_v45 = vld [vmem:[#allocation15 + $0x240] ss:$48 sps:$4 sm:$0xff]  }
 0x552   :  { %6007 = vmatpush1.bf16.msra.mxu0 %v14033_v39  ;;  %v14116_v39 = vld [vmem:[#allocation15 + $0x2a4] ss:$48 sps:$4 sm:$0xff]  }
 0x553   :  { %6008 = vmatprep.subr.bf16.mxu0 %v14038_v46  ;;  %v14114_v46 = vld [vmem:[#allocation15 + $0x2a0] ss:$48 sps:$4 sm:$0xff]  }
 0x556   :  { %6009 = vmatpush1.bf16.msra.mxu0 %v14036_v59  ;;  %v14122_v59 = vld [vmem:[#allocation15 + $0x304] ss:$48 sps:$4 sm:$0xff]  }
 0x557   :  { %6010 = vmatprep.subr.bf16.mxu0 %v14041_v62  ;;  %v14120_v62 = vld [vmem:[#allocation15 + $0x300] ss:$48 sps:$4 sm:$0xff]  }
 0x55a   :  { %6011 = vmatpush1.bf16.msra.mxu0 %v14039_v47  ;;  %v14128_v47 = vld [vmem:[#allocation15 + $0x364] ss:$48 sps:$4 sm:$0xff]  }
 0x55b   :  { %6012 = vmatprep.subr.bf16.mxu0 %v14044_v53  ;;  %v14126_v53 = vld [vmem:[#allocation15 + $0x360] ss:$48 sps:$4 sm:$0xff]  }
 0x55e   :  { %6013 = vmatpush1.bf16.msra.mxu0 %v14042_v48  ;;  %v14134_v48 = vld [vmem:[#allocation15 + $0x3c4] ss:$48 sps:$4 sm:$0xff]  }
 0x55f   :  { %6014 = vmatprep.subr.bf16.mxu0 %v14047_v8  ;;  %v14132_v8 = vld [vmem:[#allocation15 + $0x3c0] ss:$48 sps:$4 sm:$0xff]  }
 0x562   :  { %6015 = vmatpush1.bf16.msra.mxu0 %v14045_v38  ;;  %v14140_v38 = vld [vmem:[#allocation15 + $0x424] ss:$48 sps:$4 sm:$0xff]  }
 0x563   :  { %6016 = vmatprep.subr.bf16.mxu0 %v14050_v22  ;;  %v14138_v22 = vld [vmem:[#allocation15 + $0x420] ss:$48 sps:$4 sm:$0xff]  }
 0x566   :  { %6017 = vmatpush1.bf16.msra.mxu0 %v14048_v54  ;;  %v14146_v54 = vld [vmem:[#allocation15 + $0x484] ss:$48 sps:$4 sm:$0xff]  }
 0x567   :  { %6018 = vmatprep.subr.bf16.mxu0 %v14053_v11  ;;  %v14144_v11 = vld [vmem:[#allocation15 + $0x480] ss:$48 sps:$4 sm:$0xff]  }
 0x56a   :  { %6019 = vmatpush1.bf16.msra.mxu0 %v14051_v40  ;;  %v14152_v40 = vld [vmem:[#allocation15 + $0x4e4] ss:$48 sps:$4 sm:$0xff]  }
 0x56b   :  { %6020 = vmatprep.subr.bf16.mxu0 %v14056_v57  ;;  %v14150_v57 = vld [vmem:[#allocation15 + $0x4e0] ss:$48 sps:$4 sm:$0xff]  }
 0x56e   :  { %6021 = vmatpush1.bf16.msra.mxu0 %v14054_v17  ;;  %v5571_v17 = vld [vmem:[#allocation14 + $0x4] sm:$0x3] }
 0x56f   :  { %6022 = vmatprep.subr.bf16.mxu0 %v14059_v7  ;;  %v5576_v7 = vrot.slane %v5571_v17, %v15709_v50 }
 0x572   :  { %6023 = vmatpush1.bf16.msra.mxu0 %v14057_v9  ;;  %v5580_v9 = vrot.slane %v5571_v17, %v15712_v51 }
 0x573   :  { %6024 = vmatprep.subr.bf16.mxu0 %v14062_v5 }
 0x576   :  { %6025 = vmatpush1.bf16.msra.mxu0 %v14060_v10  ;;  %v5787_v10 = vstv %s12209_s26 }
 0x577   :  { %6026 = vmatprep.subr.bf16.mxu0 %v14065_v29 }
 0x57a   :  { %6027 = vmatpush1.bf16.msra.mxu0 %v14063_v36 }
 0x57b   :  { %6028 = vmatprep.subr.bf16.mxu0 %v14068_v34  ;;  %v14101_v34 = vld [vmem:[#allocation15 + $0x18c] ss:$48 sps:$4 sm:$0xff]  }
 0x57e   :  { %6029 = vmatpush1.bf16.msra.mxu0 %v14066_v3  ;;  %v14099_v3 = vld [vmem:[#allocation15 + $0x188] ss:$48 sps:$4 sm:$0xff]  }
 0x57f   :  { %6030 = vmatprep.subr.bf16.mxu0 %v14071_v33  ;;  %v14107_v33 = vld [vmem:[#allocation15 + $0x1ec] ss:$48 sps:$4 sm:$0xff]  }
 0x582   :  { %6031 = vmatpush1.bf16.msra.mxu0 %v14069_v2  ;;  %v14105_v2 = vld [vmem:[#allocation15 + $0x1e8] ss:$48 sps:$4 sm:$0xff]  }
 0x583   :  { %7242 = vmatprep.subr.bf16.mxu0 %v14077_v14  ;;  %v14119_v14 = vld [vmem:[#allocation15 + $0x2ac] ss:$48 sps:$4 sm:$0xff]  }
 0x618   :  { %v5520_v16 = vpop.f32.mrb[56].mxu0 }
 0x619   :  { %v5521_v24 = vadd.f32 %v5520_v16, %v5319_v15  ;;  %v5522_v20 = vpop.f32.mrb[57].mxu0 }
 0x61a   :  { %v5523_v27 = vadd.f32 %v5522_v20, %v5323_v49  ;;  %v5524_v28 = vpop.f32.mrb[58].mxu0 }
 0x61b   :  { %vm5528_vm2 = vcmp.ge.f32.partialorder %v5521_v24, 0.0  ;;  %v5531_v23 = vmul.f32 %v5530_v19, %v5521_v24  ;;  %v5525_v30 = vpop.f32.mrb[59].mxu0  ;;  %v14075_v28 = vld [vmem:[#allocation15 + $0x8] ss:$48 sps:$4 sm:$0xff]  }
 0x61c   :  { %vm5529_vm3 = vcmp.ge.f32.partialorder %v5523_v27, 0.0  ;;  %v5532_v0 = vmul.f32 %v5530_v19, %v5523_v27  ;;  %v14083_v30 = vld [vmem:[#allocation15 + $0x6c] ss:$48 sps:$4 sm:$0xff]  }
 0x61d   :  { %v5533_v25 = vsel %vm5528_vm2, %v5521_v24, %v5531_v23 }
 0x61e   :  { %v5534_v6 = vsel %vm5529_vm3, %v5523_v27, %v5532_v0  ;;  %v5568_v32 = vpack.c.bf16 %v5533_v25, %v5533_v25  ;;  %v14081_v0 = vld [vmem:[#allocation15 + $0x68] ss:$48 sps:$4 sm:$0xff]   ;;  %v14089_v25 = vld [vmem:[#allocation15 + $0xcc] ss:$48 sps:$4 sm:$0xff]  }
 0x61f   :  { %v5569_v56 = vpack.c.bf16 %v5534_v6, %v5534_v6  ;;  %v14087_v6 = vld [vmem:[#allocation15 + $0xc8] ss:$48 sps:$4 sm:$0xff]  }
 0x621   :  { %5775 = vmatprep.mubr.bf16.mxu1 %v5569_v56  ;;  %v14095_v56 = vld [vmem:[#allocation15 + $0x12c] ss:$48 sps:$4 sm:$0xff]  }
 0x622   :  { %5776 = vmatmul.mubr.bf16.vlgmr.msra.gmra.mrb[64].mxu1 %v5568_v32  ;;  %v14093_v32 = vld [vmem:[#allocation15 + $0x128] ss:$48 sps:$4 sm:$0xff]  }
 0x623   :  { %7200 = vmatpush1.bf16.msra.mxu1 %v14072_v31  ;;  %v14113_v31 = vld [vmem:[#allocation15 + $0x24c] ss:$48 sps:$4 sm:$0xff]  }
 0x624   :  { %7201 = vmatprep.subr.bf16.mxu1 %v14080_v52  ;;  %v14117_v52 = vld [vmem:[#allocation15 + $0x2a8] ss:$48 sps:$4 sm:$0xff]  }
 0x627   :  { %7202 = vmatpush1.bf16.msra.mxu1 %v14078_v12  ;;  %v14125_v12 = vld [vmem:[#allocation15 + $0x30c] ss:$48 sps:$4 sm:$0xff]  }
 0x628   :  { %7203 = vmatprep.subr.bf16.mxu1 %v14086_v41  ;;  %v14123_v41 = vld [vmem:[#allocation15 + $0x308] ss:$48 sps:$4 sm:$0xff]  }
 0x62b   :  { %7204 = vmatpush1.bf16.msra.mxu1 %v14084_v43  ;;  %v14131_v43 = vld [vmem:[#allocation15 + $0x36c] ss:$48 sps:$4 sm:$0xff]  }
 0x62c   :  { %7205 = vmatprep.subr.bf16.mxu1 %v14092_v18  ;;  %v14129_v18 = vld [vmem:[#allocation15 + $0x368] ss:$48 sps:$4 sm:$0xff]  }
 0x62f   :  { %7206 = vmatpush1.bf16.msra.mxu1 %v14090_v55  ;;  %v14137_v55 = vld [vmem:[#allocation15 + $0x3cc] ss:$48 sps:$4 sm:$0xff]  }
 0x630   :  { %7207 = vmatprep.subr.bf16.mxu1 %v14098_v21  ;;  %v14135_v21 = vld [vmem:[#allocation15 + $0x3c8] ss:$48 sps:$4 sm:$0xff]  }
 0x633   :  { %7208 = vmatpush1.bf16.msra.mxu1 %v14096_v26  ;;  %v14143_v26 = vld [vmem:[#allocation15 + $0x42c] ss:$48 sps:$4 sm:$0xff]  }
 0x634   :  { %7209 = vmatprep.subr.bf16.mxu1 %v14104_v42  ;;  %v14141_v42 = vld [vmem:[#allocation15 + $0x428] ss:$48 sps:$4 sm:$0xff]  }
 0x637   :  { %7210 = vmatpush1.bf16.msra.mxu1 %v14102_v44  ;;  %v14149_v44 = vld [vmem:[#allocation15 + $0x48c] ss:$48 sps:$4 sm:$0xff]  }
 0x638   :  { %7211 = vmatprep.subr.bf16.mxu1 %v14110_v60  ;;  %v14147_v60 = vld [vmem:[#allocation15 + $0x488] ss:$48 sps:$4 sm:$0xff]  }
 0x63b   :  { %7212 = vmatpush1.bf16.msra.mxu1 %v14108_v45  ;;  %v14155_v45 = vld [vmem:[#allocation15 + $0x4ec] ss:$48 sps:$4 sm:$0xff]  }
 0x63c   :  { %7213 = vmatprep.subr.bf16.mxu1 %v14116_v39  ;;  %v14153_v39 = vld [vmem:[#allocation15 + $0x4e8] ss:$48 sps:$4 sm:$0xff]  }
 0x63f   :  { %7214 = vmatpush1.bf16.msra.mxu1 %v14114_v46  ;;  %v14158_v46 = vld [vmem:[#allocation15 + $0x544] ss:$48 sps:$4 sm:$0xff]  }
 0x640   :  { %7215 = vmatprep.subr.bf16.mxu1 %v14122_v59  ;;  %v14161_v59 = vld [vmem:[#allocation15 + $0x54c] ss:$48 sps:$4 sm:$0xff]  }
 0x643   :  { %7216 = vmatpush1.bf16.msra.mxu1 %v14120_v62  ;;  %v14156_v62 = vld [vmem:[#allocation15 + $0x540] ss:$48 sps:$4 sm:$0xff]  }
 0x644   :  { %7217 = vmatprep.subr.bf16.mxu1 %v14128_v47  ;;  %v14159_v47 = vld [vmem:[#allocation15 + $0x548] ss:$48 sps:$4 sm:$0xff]  }
 0x647   :  { %7218 = vmatpush1.bf16.msra.mxu1 %v14126_v53  ;;  %v14164_v53 = vld [vmem:[#allocation15 + $0x5a4] ss:$48 sps:$4 sm:$0xff]  }
 0x648   :  { %7219 = vmatprep.subr.bf16.mxu1 %v14134_v48  ;;  %v14167_v48 = vld [vmem:[#allocation15 + $0x5ac] ss:$48 sps:$4 sm:$0xff]  }
 0x64b   :  { %7220 = vmatpush1.bf16.msra.mxu1 %v14132_v8  ;;  %v14162_v8 = vld [vmem:[#allocation15 + $0x5a0] ss:$48 sps:$4 sm:$0xff]  }
 0x64c   :  { %7221 = vmatprep.subr.bf16.mxu1 %v14140_v38  ;;  %v14165_v38 = vld [vmem:[#allocation15 + $0x5a8] ss:$48 sps:$4 sm:$0xff]  }
 0x64f   :  { %7222 = vmatpush1.bf16.msra.mxu1 %v14138_v22  ;;  %v14170_v22 = vld [vmem:[#allocation15 + $0x14] ss:$48 sps:$4 sm:$0xff]  }
 0x650   :  { %7223 = vmatprep.subr.bf16.mxu1 %v14146_v54  ;;  %v14173_v54 = vld [vmem:[#allocation15 + $0x1c] ss:$48 sps:$4 sm:$0xff]  }
 0x653   :  { %7224 = vmatpush1.bf16.msra.mxu1 %v14144_v11  ;;  %v5828_v11 = vld [vmem:[#allocation14 + $0x6] sm:$0x3] }
 0x654   :  { %7225 = vmatprep.subr.bf16.mxu1 %v14152_v40  ;;  %v5833_v40 = vrot.slane %v5828_v11, %v15709_v50 }
 0x657   :  { %7226 = vmatpush1.bf16.msra.mxu1 %v14150_v57  ;;  %v5837_v57 = vrot.slane %v5828_v11, %v15712_v51  ;;  %v14231_v11 = vld [vmem:[#allocation15 + $0x3d8] ss:$48 sps:$4 sm:$0xff]  }
 0x658   :  { %7227 = vmatprep.subr.bf16.mxu1 %v14158_v46  ;;  %v14221_v46 = vld [vmem:[#allocation15 + $0x31c] ss:$48 sps:$4 sm:$0xff]  }
 0x65b   :  { %7228 = vmatpush1.bf16.msra.mxu1 %v14156_v62  ;;  %v14219_v62 = vld [vmem:[#allocation15 + $0x318] ss:$48 sps:$4 sm:$0xff]  }
 0x65c   :  { %7229 = vmatprep.subr.bf16.mxu1 %v14164_v53  ;;  %v14227_v53 = vld [vmem:[#allocation15 + $0x37c] ss:$48 sps:$4 sm:$0xff]  }
 0x65f   :  { %7230 = vmatpush1.bf16.msra.mxu1 %v14162_v8  ;;  %v14225_v8 = vld [vmem:[#allocation15 + $0x378] ss:$48 sps:$4 sm:$0xff]  }
 0x660   :  { %7285 = vmatprep.subr.bf16.mxu1 %v14170_v22  ;;  %v14233_v22 = vld [vmem:[#allocation15 + $0x3dc] ss:$48 sps:$4 sm:$0xff]  }
 0x6f5   :  { %v5777_v5 = vpop.f32.mrb[64].mxu1 }
 0x6f6   :  { %v5778_v29 = vadd.f32 %v5777_v5, %v5576_v7  ;;  %v5779_v36 = vpop.f32.mrb[65].mxu1 }
 0x6f7   :  { %v5780_v13 = vadd.f32 %v5779_v36, %v5580_v9  ;;  %v5781_v15 = vpop.f32.mrb[66].mxu1 }
 0x6f8   :  { %vm5785_vm4 = vcmp.ge.f32.partialorder %v5778_v29, 0.0  ;;  %v5788_v49 = vmul.f32 %v5787_v10, %v5778_v29  ;;  %v5782_v16 = vpop.f32.mrb[67].mxu1 }
 0x6f9   :  { %vm5786_vm5 = vcmp.ge.f32.partialorder %v5780_v13, 0.0  ;;  %v5789_v19 = vmul.f32 %v5787_v10, %v5780_v13 }
 0x6fa   :  { %v5790_v24 = vsel %vm5785_vm4, %v5778_v29, %v5788_v49 }
 0x6fb   :  { %v5791_v20 = vsel %vm5786_vm5, %v5780_v13, %v5789_v19  ;;  %v5825_v23 = vpack.c.bf16 %v5790_v24, %v5790_v24  ;;  %v14168_v19 = vld [vmem:[#allocation15 + $0x10] ss:$48 sps:$4 sm:$0xff]   ;;  %v14171_v24 = vld [vmem:[#allocation15 + $0x18] ss:$48 sps:$4 sm:$0xff]  }
 0x6fc   :  { %v5826_v27 = vpack.c.bf16 %v5791_v20, %v5791_v20 }
 0x6fe   :  { %6032 = vmatprep.mubr.bf16.mxu0 %v5826_v27  ;;  %v14176_v27 = vld [vmem:[#allocation15 + $0x74] ss:$48 sps:$4 sm:$0xff]  }
 0x6ff   :  { %6033 = vmatmul.mubr.bf16.vlgmr.msra.gmra.mrb[60].mxu0 %v5825_v23  ;;  %v14174_v23 = vld [vmem:[#allocation15 + $0x70] ss:$48 sps:$4 sm:$0xff]  }
 0x700   :  { %7243 = vmatpush1.bf16.msra.mxu0 %v14075_v28  ;;  %v14179_v28 = vld [vmem:[#allocation15 + $0x7c] ss:$48 sps:$4 sm:$0xff]  }
 0x701   :  { %7244 = vmatprep.subr.bf16.mxu0 %v14083_v30  ;;  %v14177_v30 = vld [vmem:[#allocation15 + $0x78] ss:$48 sps:$4 sm:$0xff]  }
 0x704   :  { %7245 = vmatpush1.bf16.msra.mxu0 %v14081_v0  ;;  %v14182_v0 = vld [vmem:[#allocation15 + $0xd4] ss:$48 sps:$4 sm:$0xff]  }
 0x705   :  { %7246 = vmatprep.subr.bf16.mxu0 %v14089_v25  ;;  %v14185_v25 = vld [vmem:[#allocation15 + $0xdc] ss:$48 sps:$4 sm:$0xff]  }
 0x708   :  { %7247 = vmatpush1.bf16.msra.mxu0 %v14087_v6  ;;  %v14180_v6 = vld [vmem:[#allocation15 + $0xd0] ss:$48 sps:$4 sm:$0xff]  }
 0x709   :  { %7248 = vmatprep.subr.bf16.mxu0 %v14095_v56  ;;  %v14183_v56 = vld [vmem:[#allocation15 + $0xd8] ss:$48 sps:$4 sm:$0xff]  }
 0x70c   :  { %7249 = vmatpush1.bf16.msra.mxu0 %v14093_v32  ;;  %v14188_v32 = vld [vmem:[#allocation15 + $0x134] ss:$48 sps:$4 sm:$0xff]  }
 0x70d   :  { %7250 = vmatprep.subr.bf16.mxu0 %v14101_v34  ;;  %v14191_v34 = vld [vmem:[#allocation15 + $0x13c] ss:$48 sps:$4 sm:$0xff]  }
 0x710   :  { %7251 = vmatpush1.bf16.msra.mxu0 %v14099_v3  ;;  %v14186_v3 = vld [vmem:[#allocation15 + $0x130] ss:$48 sps:$4 sm:$0xff]  }
 0x711   :  { %7252 = vmatprep.subr.bf16.mxu0 %v14107_v33  ;;  %v14189_v33 = vld [vmem:[#allocation15 + $0x138] ss:$48 sps:$4 sm:$0xff]  }
 0x714   :  { %7253 = vmatpush1.bf16.msra.mxu0 %v14105_v2  ;;  %v14194_v2 = vld [vmem:[#allocation15 + $0x194] ss:$48 sps:$4 sm:$0xff]  }
 0x715   :  { %7254 = vmatprep.subr.bf16.mxu0 %v14113_v31  ;;  %v14197_v31 = vld [vmem:[#allocation15 + $0x19c] ss:$48 sps:$4 sm:$0xff]  }
 0x718   :  { %7255 = vmatpush1.bf16.msra.mxu0 %v14111_v58  ;;  %v14192_v58 = vld [vmem:[#allocation15 + $0x190] ss:$48 sps:$4 sm:$0xff]  }
 0x719   :  { %7256 = vmatprep.subr.bf16.mxu0 %v14119_v14  ;;  %v14195_v14 = vld [vmem:[#allocation15 + $0x198] ss:$48 sps:$4 sm:$0xff]  }
 0x71c   :  { %7257 = vmatpush1.bf16.msra.mxu0 %v14117_v52  ;;  %v14200_v52 = vld [vmem:[#allocation15 + $0x1f4] ss:$48 sps:$4 sm:$0xff]  }
 0x71d   :  { %7258 = vmatprep.subr.bf16.mxu0 %v14125_v12  ;;  %v14203_v12 = vld [vmem:[#allocation15 + $0x1fc] ss:$48 sps:$4 sm:$0xff]  }
 0x720   :  { %7259 = vmatpush1.bf16.msra.mxu0 %v14123_v41  ;;  %v14198_v41 = vld [vmem:[#allocation15 + $0x1f0] ss:$48 sps:$4 sm:$0xff]  }
 0x721   :  { %7260 = vmatprep.subr.bf16.mxu0 %v14131_v43  ;;  %v14201_v43 = vld [vmem:[#allocation15 + $0x1f8] ss:$48 sps:$4 sm:$0xff]  }
 0x724   :  { %7261 = vmatpush1.bf16.msra.mxu0 %v14129_v18  ;;  %v14206_v18 = vld [vmem:[#allocation15 + $0x254] ss:$48 sps:$4 sm:$0xff]  }
 0x725   :  { %7262 = vmatprep.subr.bf16.mxu0 %v14137_v55  ;;  %v14209_v55 = vld [vmem:[#allocation15 + $0x25c] ss:$48 sps:$4 sm:$0xff]  }
 0x728   :  { %7263 = vmatpush1.bf16.msra.mxu0 %v14135_v21  ;;  %v14204_v21 = vld [vmem:[#allocation15 + $0x250] ss:$48 sps:$4 sm:$0xff]  }
 0x729   :  { %7264 = vmatprep.subr.bf16.mxu0 %v14143_v26  ;;  %v14207_v26 = vld [vmem:[#allocation15 + $0x258] ss:$48 sps:$4 sm:$0xff]  }
 0x72c   :  { %7265 = vmatpush1.bf16.msra.mxu0 %v14141_v42  ;;  %v14212_v42 = vld [vmem:[#allocation15 + $0x2b4] ss:$48 sps:$4 sm:$0xff]  }
 0x72d   :  { %7266 = vmatprep.subr.bf16.mxu0 %v14149_v44  ;;  %v14215_v44 = vld [vmem:[#allocation15 + $0x2bc] ss:$48 sps:$4 sm:$0xff]  }
 0x730   :  { %7267 = vmatpush1.bf16.msra.mxu0 %v14147_v60  ;;  %v14210_v60 = vld [vmem:[#allocation15 + $0x2b0] ss:$48 sps:$4 sm:$0xff]  }
 0x731   :  { %7268 = vmatprep.subr.bf16.mxu0 %v14155_v45  ;;  %v14213_v45 = vld [vmem:[#allocation15 + $0x2b8] ss:$48 sps:$4 sm:$0xff]  }
 0x734   :  { %7269 = vmatpush1.bf16.msra.mxu0 %v14153_v39  ;;  %v14218_v39 = vld [vmem:[#allocation15 + $0x314] ss:$48 sps:$4 sm:$0xff]  }
 0x735   :  { %7270 = vmatprep.subr.bf16.mxu0 %v14161_v59  ;;  %v14216_v59 = vld [vmem:[#allocation15 + $0x310] ss:$48 sps:$4 sm:$0xff]  }
 0x738   :  { %7271 = vmatpush1.bf16.msra.mxu0 %v14159_v47  ;;  %v14224_v47 = vld [vmem:[#allocation15 + $0x374] ss:$48 sps:$4 sm:$0xff]  }
 0x739   :  { %7272 = vmatprep.subr.bf16.mxu0 %v14167_v48  ;;  %v14222_v48 = vld [vmem:[#allocation15 + $0x370] ss:$48 sps:$4 sm:$0xff]  }
 0x73c   :  { %7273 = vmatpush1.bf16.msra.mxu0 %v14165_v38  ;;  %v14230_v38 = vld [vmem:[#allocation15 + $0x3d4] ss:$48 sps:$4 sm:$0xff]  }
 0x73d   :  { %7328 = vmatprep.subr.bf16.mxu0 %v14173_v54  ;;  %v14228_v54 = vld [vmem:[#allocation15 + $0x3d0] ss:$48 sps:$4 sm:$0xff]  }
 0x7d2   :  { %v6034_v17 = vpop.f32.mrb[60].mxu0 }
 0x7d3   :  { %v6035_v7 = vadd.f32 %v6034_v17, %v5833_v40  ;;  %v6036_v9 = vpop.f32.mrb[61].mxu0  ;;  %v14236_v40 = vld [vmem:[#allocation15 + $0x434] ss:$48 sps:$4 sm:$0xff]   ;;  %v14234_v17 = vld [vmem:[#allocation15 + $0x430] ss:$48 sps:$4 sm:$0xff]  }
 0x7d4   :  { %v6037_v5 = vadd.f32 %v6036_v9, %v5837_v57  ;;  %v6038_v10 = vpop.f32.mrb[62].mxu0  ;;  %v14239_v57 = vld [vmem:[#allocation15 + $0x43c] ss:$48 sps:$4 sm:$0xff]   ;;  %v14242_v9 = vld [vmem:[#allocation15 + $0x494] ss:$48 sps:$4 sm:$0xff]  }
 0x7d5   :  { %v6041_v29 = vmax.f32 %v6035_v7, 0.0  ;;  %v6043_v36 = vmin.f32 %v6035_v7, 0.0  ;;  %v6039_v13 = vpop.f32.mrb[63].mxu0  ;;  %v14237_v7 = vld [vmem:[#allocation15 + $0x438] ss:$48 sps:$4 sm:$0xff]  }
 0x7d6   :  { %v6042_v15 = vmax.f32 %v6037_v5, 0.0  ;;  %v6044_v49 = vmin.f32 %v6037_v5, 0.0  ;;  %v14245_v5 = vld [vmem:[#allocation15 + $0x49c] ss:$48 sps:$4 sm:$0xff]   ;;  %v14240_v10 = vld [vmem:[#allocation15 + $0x490] ss:$48 sps:$4 sm:$0xff]  }
 0x7d7   :  { %v15949_v20 = vpack.c.bf16 %v6043_v36, %v6041_v29  ;;  %v14243_v29 = vld [vmem:[#allocation15 + $0x498] ss:$48 sps:$4 sm:$0xff]   ;;  %v14248_v36 = vld [vmem:[#allocation15 + $0x4f4] ss:$48 sps:$4 sm:$0xff]   ;;  %v14251_v13 = vld [vmem:[#allocation15 + $0x4fc] ss:$48 sps:$4 sm:$0xff]  }
 0x7d8   :  { %v15947_v16 = vpack.c.bf16 %v6044_v49, %v6042_v15  ;;  %v14246_v15 = vld [vmem:[#allocation15 + $0x4f0] ss:$48 sps:$4 sm:$0xff]   ;;  %v14249_v49 = vld [vmem:[#allocation15 + $0x4f8] ss:$48 sps:$4 sm:$0xff]  }
 0x7da   :  { %7231 = vmatprep.mubr.bf16.mxu1 %v15947_v16  ;;  %7274 = vmatprep.mubr.bf16.mxu0 %v15947_v16 }
 0x7db   :  { %7232 = vmatmul.mubr.bf16.vlgmr.msra.gmra.mrb[68].mxu1 %v15949_v20  ;;  %7275 = vmatmul.mubr.bf16.vlgmr.msra.gmra.mrb[64].mxu0 %v15949_v20 }
 0x7dc   :  { %7286 = vmatpush1.bf16.msra.mxu1 %v14168_v19  ;;  %7329 = vmatpush1.bf16.msra.mxu0 %v14171_v24  ;;  %v14254_v19 = vld [vmem:[#allocation15 + $0x554] ss:$48 sps:$4 sm:$0xff]   ;;  %v14257_v24 = vld [vmem:[#allocation15 + $0x55c] ss:$48 sps:$4 sm:$0xff]  }
 0x7dd   :  { %7317 = vmatprep.mubr.bf16.mxu1 %v15947_v16  ;;  %7360 = vmatprep.mubr.bf16.mxu0 %v15947_v16 }
 0x7de   :  { %7287 = vmatprep.subr.bf16.mxu1 %v14176_v27  ;;  %7330 = vmatprep.subr.bf16.mxu0 %v14179_v28  ;;  %v14252_v27 = vld [vmem:[#allocation15 + $0x550] ss:$48 sps:$4 sm:$0xff]   ;;  %v14255_v28 = vld [vmem:[#allocation15 + $0x558] ss:$48 sps:$4 sm:$0xff]  }
 0x7e0   :  { %7288 = vmatpush1.bf16.msra.mxu1 %v14174_v23  ;;  %7331 = vmatpush1.bf16.msra.mxu0 %v14177_v30  ;;  %v14260_v23 = vld [vmem:[#allocation15 + $0x5b4] ss:$48 sps:$4 sm:$0xff]   ;;  %v14263_v30 = vld [vmem:[#allocation15 + $0x5bc] ss:$48 sps:$4 sm:$0xff]  }
 0x7e1   :  { %7289 = vmatprep.subr.bf16.mxu1 %v14182_v0  ;;  %7332 = vmatprep.subr.bf16.mxu0 %v14185_v25  ;;  %v14258_v0 = vld [vmem:[#allocation15 + $0x5b0] ss:$48 sps:$4 sm:$0xff]   ;;  %v14261_v25 = vld [vmem:[#allocation15 + $0x5b8] ss:$48 sps:$4 sm:$0xff]  }
 0x7e4   :  { %7290 = vmatpush1.bf16.msra.mxu1 %v14180_v6  ;;  %7333 = vmatpush1.bf16.msra.mxu0 %v14183_v56  ;;  %v14266_v6 = vld [vmem:[#allocation15 + $0x24] ss:$48 sps:$4 sm:$0xff]   ;;  %v14269_v56 = vld [vmem:[#allocation15 + $0x2c] ss:$48 sps:$4 sm:$0xff]  }
 0x7e5   :  { %7291 = vmatprep.subr.bf16.mxu1 %v14188_v32  ;;  %7334 = vmatprep.subr.bf16.mxu0 %v14191_v34  ;;  %v14264_v32 = vld [vmem:[#allocation15 + $0x20] ss:$48 sps:$4 sm:$0xff]   ;;  %v14267_v34 = vld [vmem:[#allocation15 + $0x28] ss:$48 sps:$4 sm:$0xff]  }
 0x7e8   :  { %7292 = vmatpush1.bf16.msra.mxu1 %v14186_v3  ;;  %7335 = vmatpush1.bf16.msra.mxu0 %v14189_v33  ;;  %v14272_v3 = vld [vmem:[#allocation15 + $0x84] ss:$48 sps:$4 sm:$0xff]   ;;  %v14275_v33 = vld [vmem:[#allocation15 + $0x8c] ss:$48 sps:$4 sm:$0xff]  }
 0x7e9   :  { %7293 = vmatprep.subr.bf16.mxu1 %v14194_v2  ;;  %7336 = vmatprep.subr.bf16.mxu0 %v14197_v31  ;;  %v14270_v2 = vld [vmem:[#allocation15 + $0x80] ss:$48 sps:$4 sm:$0xff]   ;;  %v14273_v31 = vld [vmem:[#allocation15 + $0x88] ss:$48 sps:$4 sm:$0xff]  }
 0x7ec   :  { %7294 = vmatpush1.bf16.msra.mxu1 %v14192_v58  ;;  %7337 = vmatpush1.bf16.msra.mxu0 %v14195_v14  ;;  %v14278_v58 = vld [vmem:[#allocation15 + $0xe4] ss:$48 sps:$4 sm:$0xff]   ;;  %v14281_v14 = vld [vmem:[#allocation15 + $0xec] ss:$48 sps:$4 sm:$0xff]  }
 0x7ed   :  { %7295 = vmatprep.subr.bf16.mxu1 %v14200_v52  ;;  %7338 = vmatprep.subr.bf16.mxu0 %v14203_v12  ;;  %v14276_v52 = vld [vmem:[#allocation15 + $0xe0] ss:$48 sps:$4 sm:$0xff]   ;;  %v14279_v12 = vld [vmem:[#allocation15 + $0xe8] ss:$48 sps:$4 sm:$0xff]  }
 0x7f0   :  { %7296 = vmatpush1.bf16.msra.mxu1 %v14198_v41  ;;  %7339 = vmatpush1.bf16.msra.mxu0 %v14201_v43  ;;  %v14284_v41 = vld [vmem:[#allocation15 + $0x144] ss:$48 sps:$4 sm:$0xff]   ;;  %v14287_v43 = vld [vmem:[#allocation15 + $0x14c] ss:$48 sps:$4 sm:$0xff]  }
 0x7f1   :  { %7297 = vmatprep.subr.bf16.mxu1 %v14206_v18  ;;  %7340 = vmatprep.subr.bf16.mxu0 %v14209_v55  ;;  %v14282_v18 = vld [vmem:[#allocation15 + $0x140] ss:$48 sps:$4 sm:$0xff]   ;;  %v14285_v55 = vld [vmem:[#allocation15 + $0x148] ss:$48 sps:$4 sm:$0xff]  }
 0x7f4   :  { %7298 = vmatpush1.bf16.msra.mxu1 %v14204_v21  ;;  %7341 = vmatpush1.bf16.msra.mxu0 %v14207_v26  ;;  %v14290_v21 = vld [vmem:[#allocation15 + $0x1a4] ss:$48 sps:$4 sm:$0xff]   ;;  %v14288_v26 = vld [vmem:[#allocation15 + $0x1a0] ss:$48 sps:$4 sm:$0xff]  }
 0x7f5   :  { %7299 = vmatprep.subr.bf16.mxu1 %v14212_v42  ;;  %7342 = vmatprep.subr.bf16.mxu0 %v14215_v44  ;;  %v14291_v42 = vld [vmem:[#allocation15 + $0x1a8] ss:$48 sps:$4 sm:$0xff]   ;;  %v14296_v44 = vld [vmem:[#allocation15 + $0x204] ss:$48 sps:$4 sm:$0xff]  }
 0x7f8   :  { %7300 = vmatpush1.bf16.msra.mxu1 %v14210_v60  ;;  %7343 = vmatpush1.bf16.msra.mxu0 %v14213_v45  ;;  %v14299_v60 = vld [vmem:[#allocation15 + $0x20c] ss:$48 sps:$4 sm:$0xff]   ;;  %v14294_v45 = vld [vmem:[#allocation15 + $0x200] ss:$48 sps:$4 sm:$0xff]  }
 0x7f9   :  { %7301 = vmatprep.subr.bf16.mxu1 %v14218_v39  ;;  %7344 = vmatprep.subr.bf16.mxu0 %v14221_v46  ;;  %v14297_v39 = vld [vmem:[#allocation15 + $0x208] ss:$48 sps:$4 sm:$0xff]   ;;  %v14302_v46 = vld [vmem:[#allocation15 + $0x264] ss:$48 sps:$4 sm:$0xff]  }
 0x7fc   :  { %7302 = vmatpush1.bf16.msra.mxu1 %v14216_v59  ;;  %7345 = vmatpush1.bf16.msra.mxu0 %v14219_v62  ;;  %v14305_v59 = vld [vmem:[#allocation15 + $0x26c] ss:$48 sps:$4 sm:$0xff]   ;;  %v14300_v62 = vld [vmem:[#allocation15 + $0x260] ss:$48 sps:$4 sm:$0xff]  }
 0x7fd   :  { %7303 = vmatprep.subr.bf16.mxu1 %v14224_v47  ;;  %7346 = vmatprep.subr.bf16.mxu0 %v14227_v53  ;;  %v14303_v47 = vld [vmem:[#allocation15 + $0x268] ss:$48 sps:$4 sm:$0xff]   ;;  %v14308_v53 = vld [vmem:[#allocation15 + $0x2c4] ss:$48 sps:$4 sm:$0xff]  }
 0x800   :  { %7304 = vmatpush1.bf16.msra.mxu1 %v14222_v48  ;;  %7347 = vmatpush1.bf16.msra.mxu0 %v14225_v8  ;;  %v14311_v48 = vld [vmem:[#allocation15 + $0x2cc] ss:$48 sps:$4 sm:$0xff]   ;;  %v14306_v8 = vld [vmem:[#allocation15 + $0x2c0] ss:$48 sps:$4 sm:$0xff]  }
 0x801   :  { %7305 = vmatprep.subr.bf16.mxu1 %v14230_v38  ;;  %7348 = vmatprep.subr.bf16.mxu0 %v14233_v22  ;;  %v14309_v38 = vld [vmem:[#allocation15 + $0x2c8] ss:$48 sps:$4 sm:$0xff]   ;;  %v14314_v22 = vld [vmem:[#allocation15 + $0x324] ss:$48 sps:$4 sm:$0xff]  }
 0x804   :  { %7306 = vmatpush1.bf16.msra.mxu1 %v14228_v54  ;;  %7349 = vmatpush1.bf16.msra.mxu0 %v14231_v11  ;;  %v14317_v54 = vld [vmem:[#allocation15 + $0x32c] ss:$48 sps:$4 sm:$0xff]   ;;  %v14312_v11 = vld [vmem:[#allocation15 + $0x320] ss:$48 sps:$4 sm:$0xff]  }
 0x805   :  { %7307 = vmatprep.subr.bf16.mxu1 %v14236_v40  ;;  %7350 = vmatprep.subr.bf16.mxu0 %v14239_v57  ;;  %v14315_v40 = vld [vmem:[#allocation15 + $0x328] ss:$48 sps:$4 sm:$0xff]   ;;  %v14320_v57 = vld [vmem:[#allocation15 + $0x384] ss:$48 sps:$4 sm:$0xff]  }
 0x808   :  { %7308 = vmatpush1.bf16.msra.mxu1 %v14234_v17  ;;  %7351 = vmatpush1.bf16.msra.mxu0 %v14237_v7  ;;  %v14323_v17 = vld [vmem:[#allocation15 + $0x38c] ss:$48 sps:$4 sm:$0xff]   ;;  %v14318_v7 = vld [vmem:[#allocation15 + $0x380] ss:$48 sps:$4 sm:$0xff]  }
 0x809   :  { %7309 = vmatprep.subr.bf16.mxu1 %v14242_v9  ;;  %7352 = vmatprep.subr.bf16.mxu0 %v14245_v5  ;;  %v14321_v9 = vld [vmem:[#allocation15 + $0x388] ss:$48 sps:$4 sm:$0xff]   ;;  %v14326_v5 = vld [vmem:[#allocation15 + $0x3e4] ss:$48 sps:$4 sm:$0xff]  }
 0x80c   :  { %7310 = vmatpush1.bf16.msra.mxu1 %v14240_v10  ;;  %7353 = vmatpush1.bf16.msra.mxu0 %v14243_v29  ;;  %v14329_v10 = vld [vmem:[#allocation15 + $0x3ec] ss:$48 sps:$4 sm:$0xff]   ;;  %v14324_v29 = vld [vmem:[#allocation15 + $0x3e0] ss:$48 sps:$4 sm:$0xff]  }
 0x80d   :  { %7311 = vmatprep.subr.bf16.mxu1 %v14248_v36  ;;  %7354 = vmatprep.subr.bf16.mxu0 %v14251_v13  ;;  %v14327_v36 = vld [vmem:[#allocation15 + $0x3e8] ss:$48 sps:$4 sm:$0xff]   ;;  %v14332_v13 = vld [vmem:[#allocation15 + $0x444] ss:$48 sps:$4 sm:$0xff]  }
 0x810   :  { %7312 = vmatpush1.bf16.msra.mxu1 %v14246_v15  ;;  %7355 = vmatpush1.bf16.msra.mxu0 %v14249_v49  ;;  %v14335_v15 = vld [vmem:[#allocation15 + $0x44c] ss:$48 sps:$4 sm:$0xff]   ;;  %v14330_v49 = vld [vmem:[#allocation15 + $0x440] ss:$48 sps:$4 sm:$0xff]  }
 0x811   :  { %7313 = vmatprep.subr.bf16.mxu1 %v14254_v19  ;;  %7356 = vmatprep.subr.bf16.mxu0 %v14257_v24  ;;  %v14333_v19 = vld [vmem:[#allocation15 + $0x448] ss:$48 sps:$4 sm:$0xff]   ;;  %v14338_v24 = vld [vmem:[#allocation15 + $0x4a4] ss:$48 sps:$4 sm:$0xff]  }
 0x814   :  { %7314 = vmatpush1.bf16.msra.mxu1 %v14252_v27  ;;  %7357 = vmatpush1.bf16.msra.mxu0 %v14255_v28  ;;  %v14341_v27 = vld [vmem:[#allocation15 + $0x4ac] ss:$48 sps:$4 sm:$0xff]   ;;  %v14336_v28 = vld [vmem:[#allocation15 + $0x4a0] ss:$48 sps:$4 sm:$0xff]  }
 0x815   :  { %7315 = vmatprep.subr.bf16.mxu1 %v14260_v23  ;;  %7358 = vmatprep.subr.bf16.mxu0 %v14263_v30  ;;  %v14339_v23 = vld [vmem:[#allocation15 + $0x4a8] ss:$48 sps:$4 sm:$0xff]   ;;  %v14344_v30 = vld [vmem:[#allocation15 + $0x504] ss:$48 sps:$4 sm:$0xff]  }
 0x818   :  { %7316 = vmatpush1.bf16.msra.mxu1 %v14258_v0  ;;  %7359 = vmatpush1.bf16.msra.mxu0 %v14261_v25  ;;  %v14347_v0 = vld [vmem:[#allocation15 + $0x50c] ss:$48 sps:$4 sm:$0xff]   ;;  %v14342_v25 = vld [vmem:[#allocation15 + $0x500] ss:$48 sps:$4 sm:$0xff]  }
 0x819   :  { %7371 = vmatprep.subr.bf16.mxu1 %v14266_v6  ;;  %7414 = vmatprep.subr.bf16.mxu0 %v14269_v56  ;;  %v14345_v6 = vld [vmem:[#allocation15 + $0x508] ss:$48 sps:$4 sm:$0xff]   ;;  %v14350_v56 = vld [vmem:[#allocation15 + $0x564] ss:$48 sps:$4 sm:$0xff]  }
 0x81b   :  { %7318 = vmatmul.mubr.bf16.vlgmr.msra.gmra.mrb[72].mxu1 %v15949_v20  ;;  %7361 = vmatmul.mubr.bf16.vlgmr.msra.gmra.mrb[68].mxu0 %v15949_v20 }
 0x81c   :  { %7372 = vmatpush1.bf16.msra.mxu1 %v14264_v32  ;;  %7403 = vmatprep.mubr.bf16.mxu1 %v15947_v16  ;;  %v14353_v32 = vld [vmem:[#allocation15 + $0x56c] ss:$48 sps:$4 sm:$0xff]  }
 0x81d   :  { %7415 = vmatpush1.bf16.msra.mxu0 %v14267_v34  ;;  %7446 = vmatprep.mubr.bf16.mxu0 %v15947_v16  ;;  %v14293_v16 = vld [vmem:[#allocation15 + $0x1ac] ss:$48 sps:$4 sm:$0xff]   ;;  %v14348_v34 = vld [vmem:[#allocation15 + $0x560] ss:$48 sps:$4 sm:$0xff]  }
 0x81e   :  { %7373 = vmatprep.subr.bf16.mxu1 %v14272_v3  ;;  %7416 = vmatprep.subr.bf16.mxu0 %v14275_v33  ;;  %v14351_v3 = vld [vmem:[#allocation15 + $0x568] ss:$48 sps:$4 sm:$0xff]   ;;  %v14356_v33 = vld [vmem:[#allocation15 + $0x5c4] ss:$48 sps:$4 sm:$0xff]  }
 0x820   :  { %7374 = vmatpush1.bf16.msra.mxu1 %v14270_v2  ;;  %v14359_v2 = vld [vmem:[#allocation15 + $0x5cc] ss:$48 sps:$4 sm:$0xff]  }
 0x821   :  { %7417 = vmatpush1.bf16.msra.mxu0 %v14273_v31  ;;  %7375 = vmatprep.subr.bf16.mxu1 %v14278_v58  ;;  %v14354_v31 = vld [vmem:[#allocation15 + $0x5c0] ss:$48 sps:$4 sm:$0xff]   ;;  %v14357_v58 = vld [vmem:[#allocation15 + $0x5c8] ss:$48 sps:$4 sm:$0xff]  }
 0x822   :  { %7418 = vmatprep.subr.bf16.mxu0 %v14281_v14  ;;  %v14362_v14 = vld [vmem:[#allocation20 + $0x4] ss:$8 sps:$4 sm:$0xff]  }
 0x824   :  { %7376 = vmatpush1.bf16.msra.mxu1 %v14276_v52  ;;  %v14360_v52 = vld [vmem:[#allocation20] ss:$8 sps:$4 sm:$0xff]  }
 0x825   :  { %7419 = vmatpush1.bf16.msra.mxu0 %v14279_v12  ;;  %7377 = vmatprep.subr.bf16.mxu1 %v14284_v41  ;;  %v14365_v12 = vld [vmem:[#allocation20 + $0x14] ss:$8 sps:$4 sm:$0xff]   ;;  %v14363_v41 = vld [vmem:[#allocation20 + $0x10] ss:$8 sps:$4 sm:$0xff]  }
 0x826   :  { %7420 = vmatprep.subr.bf16.mxu0 %v14287_v43  ;;  %v14368_v43 = vld [vmem:[#allocation20 + $0x24] ss:$8 sps:$4 sm:$0xff]  }
 0x828   :  { %7378 = vmatpush1.bf16.msra.mxu1 %v14282_v18  ;;  %v14366_v18 = vld [vmem:[#allocation20 + $0x20] ss:$8 sps:$4 sm:$0xff]  }
 0x829   :  { %7421 = vmatpush1.bf16.msra.mxu0 %v14285_v55  ;;  %7379 = vmatprep.subr.bf16.mxu1 %v14290_v21  ;;  %v14371_v55 = vld [vmem:[#allocation20 + $0x34] ss:$8 sps:$4 sm:$0xff]   ;;  %v14369_v21 = vld [vmem:[#allocation20 + $0x30] ss:$8 sps:$4 sm:$0xff]  }
 0x82a   :  { %7422 = vmatprep.subr.bf16.mxu0 %v14293_v16  ;;  %v14374_v16 = vld [vmem:[#allocation20 + $0x44] ss:$8 sps:$4 sm:$0xff]  }
 0x82c   :  { %7380 = vmatpush1.bf16.msra.mxu1 %v14288_v26  ;;  %v14372_v26 = vld [vmem:[#allocation20 + $0x40] ss:$8 sps:$4 sm:$0xff]  }
 0x82d   :  { %7423 = vmatpush1.bf16.msra.mxu0 %v14291_v42  ;;  %7381 = vmatprep.subr.bf16.mxu1 %v14296_v44  ;;  %v14377_v42 = vld [vmem:[#allocation20 + $0x54] ss:$8 sps:$4 sm:$0xff]   ;;  %v14375_v44 = vld [vmem:[#allocation20 + $0x50] ss:$8 sps:$4 sm:$0xff]  }
 0x82e   :  { %7424 = vmatprep.subr.bf16.mxu0 %v14299_v60  ;;  %v14378_v60 = vld [vmem:[#allocation20 + $0x60] ss:$8 sps:$4 sm:$0xff]  }
 0x830   :  { %7382 = vmatpush1.bf16.msra.mxu1 %v14294_v45  ;;  %v14383_v45 = vld [vmem:[#allocation20 + $0x74] ss:$8 sps:$4 sm:$0xff]  }
 0x831   :  { %7425 = vmatpush1.bf16.msra.mxu0 %v14297_v39  ;;  %7383 = vmatprep.subr.bf16.mxu1 %v14302_v46  ;;  %v14381_v39 = vld [vmem:[#allocation20 + $0x70] ss:$8 sps:$4 sm:$0xff]   ;;  %v14386_v46 = vld [vmem:[#allocation20 + $0x84] ss:$8 sps:$4 sm:$0xff]  }
 0x832   :  { %7426 = vmatprep.subr.bf16.mxu0 %v14305_v59  ;;  %v14384_v59 = vld [vmem:[#allocation20 + $0x80] ss:$8 sps:$4 sm:$0xff]  }
 0x834   :  { %7384 = vmatpush1.bf16.msra.mxu1 %v14300_v62  ;;  %v14389_v62 = vld [vmem:[#allocation20 + $0x94] ss:$8 sps:$4 sm:$0xff]  }
 0x835   :  { %7427 = vmatpush1.bf16.msra.mxu0 %v14303_v47  ;;  %7385 = vmatprep.subr.bf16.mxu1 %v14308_v53  ;;  %v14387_v47 = vld [vmem:[#allocation20 + $0x90] ss:$8 sps:$4 sm:$0xff]   ;;  %v14392_v53 = vld [vmem:[#allocation20 + $0xa4] ss:$8 sps:$4 sm:$0xff]  }
 0x836   :  { %7428 = vmatprep.subr.bf16.mxu0 %v14311_v48  ;;  %v14390_v48 = vld [vmem:[#allocation20 + $0xa0] ss:$8 sps:$4 sm:$0xff]  }
 0x838   :  { %7386 = vmatpush1.bf16.msra.mxu1 %v14306_v8  ;;  %v14395_v8 = vld [vmem:[#allocation20 + $0xb4] ss:$8 sps:$4 sm:$0xff]  }
 0x839   :  { %7429 = vmatpush1.bf16.msra.mxu0 %v14309_v38  ;;  %7387 = vmatprep.subr.bf16.mxu1 %v14314_v22  ;;  %v14393_v38 = vld [vmem:[#allocation20 + $0xb0] ss:$8 sps:$4 sm:$0xff]   ;;  %v14398_v22 = vld [vmem:[#allocation20 + $0xc4] ss:$8 sps:$4 sm:$0xff]  }
 0x83a   :  { %7430 = vmatprep.subr.bf16.mxu0 %v14317_v54  ;;  %v14396_v54 = vld [vmem:[#allocation20 + $0xc0] ss:$8 sps:$4 sm:$0xff]  }
 0x83c   :  { %7388 = vmatpush1.bf16.msra.mxu1 %v14312_v11  ;;  %v14401_v11 = vld [vmem:[#allocation20 + $0xd4] ss:$8 sps:$4 sm:$0xff]  }
 0x83d   :  { %7431 = vmatpush1.bf16.msra.mxu0 %v14315_v40  ;;  %7389 = vmatprep.subr.bf16.mxu1 %v14320_v57  ;;  %v14399_v40 = vld [vmem:[#allocation20 + $0xd0] ss:$8 sps:$4 sm:$0xff]   ;;  %v14404_v57 = vld [vmem:[#allocation20 + $0xe4] ss:$8 sps:$4 sm:$0xff]  }
 0x83e   :  { %7432 = vmatprep.subr.bf16.mxu0 %v14323_v17  ;;  %v14402_v17 = vld [vmem:[#allocation20 + $0xe0] ss:$8 sps:$4 sm:$0xff]  }
 0x840   :  { %7390 = vmatpush1.bf16.msra.mxu1 %v14318_v7  ;;  %v14407_v7 = vld [vmem:[#allocation20 + $0xf4] ss:$8 sps:$4 sm:$0xff]  }
 0x841   :  { %7433 = vmatpush1.bf16.msra.mxu0 %v14321_v9  ;;  %7391 = vmatprep.subr.bf16.mxu1 %v14326_v5  ;;  %v14405_v9 = vld [vmem:[#allocation20 + $0xf0] ss:$8 sps:$4 sm:$0xff]  }
 0x842   :  { %7434 = vmatprep.subr.bf16.mxu0 %v14329_v10  ;;  %v15963_v5 = vld [vmem:[#allocation18] sm:$0xff] }
 0x843   :  { %v7464_v10 = vrot.slane %v15963_v5, %v15709_v50 }
 0x844   :  { %7392 = vmatpush1.bf16.msra.mxu1 %v14324_v29  ;;  %v7472_v29 = vrot.slane %v15963_v5, %v15724_v1 }
 0x845   :  { %7435 = vmatpush1.bf16.msra.mxu0 %v14327_v36  ;;  %7393 = vmatprep.subr.bf16.mxu1 %v14332_v13 }
 0x846   :  { %7436 = vmatprep.subr.bf16.mxu0 %v14335_v15  ;;  %v15969_v15 = vld [vmem:[#allocation17] sm:$0xff] }
 0x848   :  { %7394 = vmatpush1.bf16.msra.mxu1 %v14330_v49  ;;  %v7468_v49 = vrot.slane %v15963_v5, %v15712_v51 }
 0x849   :  { %7437 = vmatpush1.bf16.msra.mxu0 %v14333_v19  ;;  %7395 = vmatprep.subr.bf16.mxu1 %v14338_v24  ;;  %v7476_v19 = vrot.slane %v15963_v5, %v15727_v4 }
 0x84a   :  { %7438 = vmatprep.subr.bf16.mxu0 %v14341_v27 }
 0x84c   :  { %7396 = vmatpush1.bf16.msra.mxu1 %v14336_v28 }
 0x84d   :  { %7439 = vmatpush1.bf16.msra.mxu0 %v14339_v23  ;;  %7397 = vmatprep.subr.bf16.mxu1 %v14344_v30 }
 0x84e   :  { %7440 = vmatprep.subr.bf16.mxu0 %v14347_v0  ;;  %v7552_v0 = vrot.slane %v15969_v15, %v15709_v50 }
 0x850   :  { %7398 = vmatpush1.bf16.msra.mxu1 %v14342_v25 }
 0x851   :  { %7441 = vmatpush1.bf16.msra.mxu0 %v14345_v6  ;;  %7399 = vmatprep.subr.bf16.mxu1 %v14350_v56 }
 0x852   :  { %7442 = vmatprep.subr.bf16.mxu0 %v14353_v32 }
 0x854   :  { %7400 = vmatpush1.bf16.msra.mxu1 %v14348_v34  ;;  %v7556_v34 = vrot.slane %v15969_v15, %v15712_v51 }
 0x855   :  { %7443 = vmatpush1.bf16.msra.mxu0 %v14351_v3  ;;  %7401 = vmatprep.subr.bf16.mxu1 %v14356_v33 }
 0x856   :  { %7444 = vmatprep.subr.bf16.mxu0 %v14359_v2 }
 0x858   :  { %7402 = vmatpush1.bf16.msra.mxu1 %v14354_v31  ;;  %v7633_v31 = vstv %s12435_s30 }
 0x859   :  { %7445 = vmatpush1.bf16.msra.mxu0 %v14357_v58  ;;  %7844 = vmatprep.subr.bf16.mxu1 %v14362_v14 }
 0x85b   :  { %7404 = vmatmul.mubr.bf16.vlgmr.msra.gmra.mrb[76].mxu1 %v15949_v20 }
 0x85c   :  { %7447 = vmatmul.mubr.bf16.vlgmr.msra.gmra.mrb[72].mxu0 %v15949_v20  ;;  %7845 = vmatpush1.bf16.msra.mxu1 %v14360_v52  ;;  %v14380_v20 = vld [vmem:[#allocation20 + $0x64] ss:$8 sps:$4 sm:$0xff]  }
 0x85d   :  { %7846 = vmatprep.subr.bf16.mxu1 %v14365_v12 }
 0x860   :  { %7847 = vmatpush1.bf16.msra.mxu1 %v14363_v41 }
 0x861   :  { %7848 = vmatprep.subr.bf16.mxu1 %v14368_v43 }
 0x864   :  { %7849 = vmatpush1.bf16.msra.mxu1 %v14366_v18  ;;  %v14408_v18 = vld [vmem:[#allocation20 + $0x100] ss:$8 sps:$4 sm:$0xff]  }
 0x865   :  { %7850 = vmatprep.subr.bf16.mxu1 %v14371_v55  ;;  %v14410_v55 = vld [vmem:[#allocation20 + $0x104] ss:$8 sps:$4 sm:$0xff]  }
 0x866   :  { %8101 = vmatprep.subr.bf16.mxu0 %v14410_v55  ;;  %v14455_v55 = vld [vmem:[#allocation20 + $0x1f4] ss:$8 sps:$4 sm:$0xff]  }
 0x867   :  { %8102 = vmatpush1.bf16.msra.mxu0 %v14408_v18  ;;  %v14450_v18 = vld [vmem:[#allocation20 + $0x1e0] ss:$8 sps:$4 sm:$0xff]  }
 0x868   :  { %7851 = vmatpush1.bf16.msra.mxu1 %v14369_v21 }
 0x869   :  { %7852 = vmatprep.subr.bf16.mxu1 %v14374_v16  ;;  %v14413_v16 = vld [vmem:[#allocation20 + $0x114] ss:$8 sps:$4 sm:$0xff]  }
 0x86a   :  { %8103 = vmatprep.subr.bf16.mxu0 %v14413_v16  ;;  %v14458_v16 = vld [vmem:[#allocation20 + $0x204] ss:$8 sps:$4 sm:$0xff]  }
 0x86c   :  { %7853 = vmatpush1.bf16.msra.mxu1 %v14372_v26 }
 0x86d   :  { %7854 = vmatprep.subr.bf16.mxu1 %v14377_v42 }
 0x870   :  { %7855 = vmatpush1.bf16.msra.mxu1 %v14375_v44  ;;  %v14411_v44 = vld [vmem:[#allocation20 + $0x110] ss:$8 sps:$4 sm:$0xff]  }
 0x871   :  { %7856 = vmatprep.subr.bf16.mxu1 %v14380_v20  ;;  %8104 = vmatpush1.bf16.msra.mxu0 %v14411_v44 }
 0x874   :  { %7857 = vmatpush1.bf16.msra.mxu1 %v14378_v60  ;;  %v14416_v60 = vld [vmem:[#allocation20 + $0x124] ss:$8 sps:$4 sm:$0xff]  }
 0x875   :  { %7858 = vmatprep.subr.bf16.mxu1 %v14383_v45  ;;  %v14414_v45 = vld [vmem:[#allocation20 + $0x120] ss:$8 sps:$4 sm:$0xff]   ;;  %8105 = vmatprep.subr.bf16.mxu0 %v14416_v60 }
 0x876   :  { %8106 = vmatpush1.bf16.msra.mxu0 %v14414_v45 }
 0x878   :  { %7859 = vmatpush1.bf16.msra.mxu1 %v14381_v39  ;;  %v14419_v39 = vld [vmem:[#allocation20 + $0x134] ss:$8 sps:$4 sm:$0xff]  }
 0x879   :  { %7860 = vmatprep.subr.bf16.mxu1 %v14386_v46  ;;  %v14417_v46 = vld [vmem:[#allocation20 + $0x130] ss:$8 sps:$4 sm:$0xff]   ;;  %8107 = vmatprep.subr.bf16.mxu0 %v14419_v39 }
 0x87a   :  { %8108 = vmatpush1.bf16.msra.mxu0 %v14417_v46  ;;  %v7546_v46 = vld [vmem:[#allocation17 + $0x8] sm:$0xf] }
 0x87c   :  { %7861 = vmatpush1.bf16.msra.mxu1 %v14384_v59  ;;  %v14422_v59 = vld [vmem:[#allocation20 + $0x144] ss:$8 sps:$4 sm:$0xff]  }
 0x87d   :  { %7862 = vmatprep.subr.bf16.mxu1 %v14389_v62  ;;  %v14420_v62 = vld [vmem:[#allocation20 + $0x140] ss:$8 sps:$4 sm:$0xff]   ;;  %8109 = vmatprep.subr.bf16.mxu0 %v14422_v59 }
 0x87e   :  { %8110 = vmatpush1.bf16.msra.mxu0 %v14420_v62 }
 0x880   :  { %7863 = vmatpush1.bf16.msra.mxu1 %v14387_v47  ;;  %v14425_v47 = vld [vmem:[#allocation20 + $0x154] ss:$8 sps:$4 sm:$0xff]  }
 0x881   :  { %7864 = vmatprep.subr.bf16.mxu1 %v14392_v53  ;;  %v14423_v53 = vld [vmem:[#allocation20 + $0x150] ss:$8 sps:$4 sm:$0xff]   ;;  %8111 = vmatprep.subr.bf16.mxu0 %v14425_v47 }
 0x882   :  { %8112 = vmatpush1.bf16.msra.mxu0 %v14423_v53 }
 0x884   :  { %7865 = vmatpush1.bf16.msra.mxu1 %v14390_v48  ;;  %v14428_v48 = vld [vmem:[#allocation20 + $0x164] ss:$8 sps:$4 sm:$0xff]  }
 0x885   :  { %7866 = vmatprep.subr.bf16.mxu1 %v14395_v8  ;;  %v14426_v8 = vld [vmem:[#allocation20 + $0x160] ss:$8 sps:$4 sm:$0xff]   ;;  %8113 = vmatprep.subr.bf16.mxu0 %v14428_v48 }
 0x886   :  { %8114 = vmatpush1.bf16.msra.mxu0 %v14426_v8 }
 0x888   :  { %7867 = vmatpush1.bf16.msra.mxu1 %v14393_v38  ;;  %v14431_v38 = vld [vmem:[#allocation20 + $0x174] ss:$8 sps:$4 sm:$0xff]  }
 0x889   :  { %7868 = vmatprep.subr.bf16.mxu1 %v14398_v22  ;;  %v14429_v22 = vld [vmem:[#allocation20 + $0x170] ss:$8 sps:$4 sm:$0xff]   ;;  %8115 = vmatprep.subr.bf16.mxu0 %v14431_v38 }
 0x88a   :  { %8116 = vmatpush1.bf16.msra.mxu0 %v14429_v22  ;;  %v7592_v22 = vrot.slane %v7546_v46, %v15724_v1 }
 0x88c   :  { %7869 = vmatpush1.bf16.msra.mxu1 %v14396_v54  ;;  %v14434_v54 = vld [vmem:[#allocation20 + $0x184] ss:$8 sps:$4 sm:$0xff]  }
 0x88d   :  { %7870 = vmatprep.subr.bf16.mxu1 %v14401_v11  ;;  %v14432_v11 = vld [vmem:[#allocation20 + $0x180] ss:$8 sps:$4 sm:$0xff]   ;;  %8117 = vmatprep.subr.bf16.mxu0 %v14434_v54 }
 0x88e   :  { %8118 = vmatpush1.bf16.msra.mxu0 %v14432_v11 }
 0x890   :  { %7871 = vmatpush1.bf16.msra.mxu1 %v14399_v40  ;;  %v14437_v40 = vld [vmem:[#allocation20 + $0x194] ss:$8 sps:$4 sm:$0xff]  }
 0x891   :  { %7872 = vmatprep.subr.bf16.mxu1 %v14404_v57  ;;  %v14435_v57 = vld [vmem:[#allocation20 + $0x190] ss:$8 sps:$4 sm:$0xff]   ;;  %8119 = vmatprep.subr.bf16.mxu0 %v14437_v40 }
 0x892   :  { %8120 = vmatpush1.bf16.msra.mxu0 %v14435_v57 }
 0x894   :  { %7873 = vmatpush1.bf16.msra.mxu1 %v14402_v17  ;;  %v14440_v17 = vld [vmem:[#allocation20 + $0x1a4] ss:$8 sps:$4 sm:$0xff]  }
 0x895   :  { %7874 = vmatprep.subr.bf16.mxu1 %v14407_v7  ;;  %v14438_v7 = vld [vmem:[#allocation20 + $0x1a0] ss:$8 sps:$4 sm:$0xff]   ;;  %8121 = vmatprep.subr.bf16.mxu0 %v14440_v17  ;;  %v7596_v17 = vrot.slane %v7546_v46, %v15727_v4 }
 0x896   :  { %8122 = vmatpush1.bf16.msra.mxu0 %v14438_v7  ;;  %v14456_v46 = vld [vmem:[#allocation20 + $0x200] ss:$8 sps:$4 sm:$0xff]  }
 0x898   :  { %7875 = vmatpush1.bf16.msra.mxu1 %v14405_v9  ;;  %v14443_v9 = vld [vmem:[#allocation20 + $0x1b4] ss:$8 sps:$4 sm:$0xff]  }
 0x899   :  { %8123 = vmatprep.subr.bf16.mxu0 %v14443_v9 }
 0x8ae   :  { %v7233_v36 = vpop.f32.mrb[68].mxu1  ;;  %v7276_v13 = vpop.f32.mrb[64].mxu0 }
 0x8af   :  { %v7235_v24 = vpop.f32.mrb[69].mxu1  ;;  %v7278_v27 = vpop.f32.mrb[65].mxu0 }
 0x8b0   :  { %v7237_v28 = vpop.f32.mrb[70].mxu1  ;;  %v7280_v23 = vpop.f32.mrb[66].mxu0 }
 0x8b1   :  { %v7521_v30 = vmul.f32 %v7464_v10, %v7237_v28  ;;  %v7523_v25 = vmul.f32 %v7472_v29, %v7280_v23  ;;  %v7239_v6 = vpop.f32.mrb[71].mxu1  ;;  %v7282_v56 = vpop.f32.mrb[67].mxu0  ;;  %v14441_v10 = vld [vmem:[#allocation20 + $0x1b0] ss:$8 sps:$4 sm:$0xff]   ;;  %v14446_v29 = vld [vmem:[#allocation20 + $0x1c4] ss:$8 sps:$4 sm:$0xff]   ;;  %v7484_v23 = vrot.slane %v15963_v5, %v15720_v61 }
 0x8b2   :  { %v7522_v32 = vmul.f32 %v7468_v49, %v7239_v6  ;;  %v7524_v3 = vmul.f32 %v7476_v19, %v7282_v56  ;;  %8124 = vmatpush1.bf16.msra.mxu0 %v14441_v10  ;;  %v14447_v49 = vld [vmem:[#allocation20 + $0x1d0] ss:$8 sps:$4 sm:$0xff]   ;;  %v7480_v19 = vrot.slane %v15963_v5, %v15752_v63 }
 0x8b3   :  { %v7533_v33 = vadd.f32 %v7521_v30, %v7233_v36  ;;  %v15979_v2 = vadd.f32 %v7523_v25, %v7276_v13  ;;  %v14444_v36 = vld [vmem:[#allocation20 + $0x1c0] ss:$8 sps:$4 sm:$0xff]   ;;  %8125 = vmatprep.subr.bf16.mxu0 %v14446_v29  ;;  %v14449_v13 = vld [vmem:[#allocation20 + $0x1d4] ss:$8 sps:$4 sm:$0xff]   ;;  %v7492_v30 = vrot.slane %v15963_v5, %v15741_v37 }
 0x8b4   :  { %v7534_v58 = vadd.f32 %v7522_v32, %v7235_v24  ;;  %v15981_v14 = vadd.f32 %v7524_v3, %v7278_v27  ;;  %v7488_v24 = vrot.slane %v15963_v5, %v15770_v35  ;;  %v14452_v5 = vld [vmem:[#allocation20 + $0x1e4] ss:$8 sps:$4 sm:$0xff]  }
 0x8b5   :  { %v7609_v52 = vadd.f32 %v7552_v0, %v7533_v33 }
 0x8b6   :  { %v7610_v12 = vadd.f32 %v7556_v34, %v7534_v58  ;;  %8126 = vmatpush1.bf16.msra.mxu0 %v14444_v36 }
 0x8b7   :  { %vm7631_vm6 = vcmp.ge.f32.partialorder %v7609_v52, 0.0  ;;  %v7634_v41 = vmul.f32 %v7633_v31, %v7609_v52  ;;  %8127 = vmatprep.subr.bf16.mxu0 %v14449_v13  ;;  %v14504_v13 = vld [vmem:[#allocation23 + $0x40] sm:$0xff]  }
 0x8b8   :  { %vm7632_vm7 = vcmp.ge.f32.partialorder %v7610_v12, 0.0  ;;  %v7635_v43 = vmul.f32 %v7633_v31, %v7610_v12  ;;  %12900 = vmatprep.subr.bf16.mxu1 %v14504_v13  ;;  %v14479_v13 = vld [vmem:[#allocation20 + $0x274] ss:$8 sps:$4 sm:$0xff]  }
 0x8b9   :  { %v7636_v21 = vsel %vm7631_vm6, %v7609_v52, %v7634_v41 }
 0x8ba   :  { %v7637_v26 = vsel %vm7632_vm7, %v7610_v12, %v7635_v43  ;;  %v7670_v20 = vpack.c.bf16 %v7636_v21, %v7636_v21  ;;  %8128 = vmatpush1.bf16.msra.mxu0 %v14447_v49  ;;  %v14453_v21 = vld [vmem:[#allocation20 + $0x1f0] ss:$8 sps:$4 sm:$0xff]  }
 0x8bb   :  { %v7671_v42 = vpack.c.bf16 %v7637_v26, %v7637_v26  ;;  %8129 = vmatprep.subr.bf16.mxu0 %v14452_v5  ;;  %v7458_v26 = vld [vmem:[#allocation18 + $0x8] sm:$0xf] }
 0x8bc   :  { %v7500_v60 = vrot.slane %v7458_v26, %v15712_v51  ;;  %v7508_v59 = vrot.slane %v7458_v26, %v15727_v4  ;;  %v14505_v49 = vld [vmem:[#allocation23] sm:$0xff]  }
 0x8bd   :  { %7876 = vmatprep.mubr.bf16.mxu1 %v7671_v42  ;;  %v7496_v42 = vrot.slane %v7458_v26, %v15709_v50 }
 0x8be   :  { %7877 = vmatmul.mubr.bf16.vlgmr.msra.gmra.mrb[80].mxu1 %v7670_v20  ;;  %8130 = vmatpush1.bf16.msra.mxu0 %v14450_v18  ;;  %v7504_v20 = vrot.slane %v7458_v26, %v15724_v1  ;;  %v7888_v18 = vstv %s12468_s28 }
 0x8bf   :  { %8131 = vmatprep.subr.bf16.mxu0 %v14455_v55  ;;  %12901 = vmatpush3.bf16.msra.mxu1 %v14505_v49  ;;  %v14477_v49 = vld [vmem:[#allocation20 + $0x270] ss:$8 sps:$4 sm:$0xff]  }
 0x8c2   :  { %8132 = vmatpush1.bf16.msra.mxu0 %v14453_v21 }
 0x8c3   :  { %8537 = vmatprep.subr.bf16.mxu0 %v14458_v16 }
 0x8ee   :  { %v7319_v27 = vpop.f32.mrb[72].mxu1  ;;  %v7362_v28 = vpop.f32.mrb[68].mxu0 }
 0x8ef   :  { %v7321_v0 = vpop.f32.mrb[73].mxu1  ;;  %v7364_v25 = vpop.f32.mrb[69].mxu0 }
 0x8f0   :  { %v7323_v6 = vpop.f32.mrb[74].mxu1  ;;  %v7366_v56 = vpop.f32.mrb[70].mxu0 }
 0x8f1   :  { %v7525_v32 = vmul.f32 %v7480_v19, %v7323_v6  ;;  %v7527_v34 = vmul.f32 %v7488_v24, %v7366_v56  ;;  %v7325_v3 = vpop.f32.mrb[75].mxu1  ;;  %v7368_v33 = vpop.f32.mrb[71].mxu0  ;;  %v14506_v19 = vld [vmem:[#allocation23 + $0x48] sm:$0xff]  }
 0x8f2   :  { %v7526_v31 = vmul.f32 %v7484_v23, %v7325_v3  ;;  %v7528_v58 = vmul.f32 %v7492_v30, %v7368_v33  ;;  %v14507_v24 = vld [vmem:[#allocation23 + $0x8] sm:$0xff]   ;;  %12902 = vmatprep.subr.bf16.mxu1 %v14506_v19  ;;  %v14510_v23 = vld [vmem:[#allocation23 + $0x58] sm:$0xff]  }
 0x8f3   :  { %v15991_v52 = vadd.f32 %v7525_v32, %v7319_v27  ;;  %v15993_v12 = vadd.f32 %v7527_v34, %v7362_v28  ;;  %v14508_v27 = vld [vmem:[#allocation23 + $0x50] sm:$0xff]   ;;  %12903 = vmatpush3.bf16.msra.mxu1 %v14507_v24  ;;  %v14511_v30 = vld [vmem:[#allocation23 + $0x18] sm:$0xff]   ;;  %v14514_v6 = vld [vmem:[#allocation23 + $0x68] sm:$0xff]   ;;  %v7564_v32 = vrot.slane %v15969_v15, %v15727_v4 }
 0x8f4   :  { %v15995_v41 = vadd.f32 %v7526_v31, %v7321_v0  ;;  %v15997_v43 = vadd.f32 %v7528_v58, %v7364_v25  ;;  %v14509_v28 = vld [vmem:[#allocation23 + $0x10] sm:$0xff]   ;;  %12904 = vmatprep.subr.bf16.mxu1 %v14508_v27  ;;  %v14512_v0 = vld [vmem:[#allocation23 + $0x60] sm:$0xff]   ;;  %v14515_v56 = vld [vmem:[#allocation23 + $0x28] sm:$0xff]   ;;  %v8324_v58 = vstv %s16013_s14 }
 0x8f5   :  { %v14513_v25 = vld [vmem:[#allocation23 + $0x20] sm:$0xff]   ;;  %v7672_v34 = vld [vmem:[#allocation21] sm:$0x3]  ;;  %v7612_v33 = vadd.f32 %v7564_v32, %v15981_v14  ;;  %v14482_v19 = vld [vmem:[#allocation20 + $0x284] ss:$8 sps:$4 sm:$0xff]  }
 0x8f6   :  { %v7677_v3 = vrot.slane %v7672_v34, %v15709_v50  ;;  %v7681_v31 = vrot.slane %v7672_v34, %v15712_v51  ;;  %v14480_v24 = vld [vmem:[#allocation20 + $0x280] ss:$8 sps:$4 sm:$0xff]   ;;  %v14485_v27 = vld [vmem:[#allocation20 + $0x294] ss:$8 sps:$4 sm:$0xff]   ;;  %v7560_v34 = vrot.slane %v15969_v15, %v15724_v1 }
 0x8f7   :  { %12905 = vmatpush3.bf16.msra.mxu1 %v14509_v28  ;;  %vm8323_vm9 = vcmp.ge.f32.partialorder %v7612_v33, 0.0  ;;  %v14483_v28 = vld [vmem:[#allocation20 + $0x290] ss:$8 sps:$4 sm:$0xff]   ;;  %v14497_v32 = vld [vmem:[#allocation20 + $0x2d4] ss:$8 sps:$4 sm:$0xff]   ;;  %v14516_v1 = vld [vmem:[#allocation23 + $0x70] sm:$0xff]  }
 0x8f8   :  { %12906 = vmatprep.subr.bf16.mxu1 %v14510_v23  ;;  %v14488_v23 = vld [vmem:[#allocation20 + $0x2a4] ss:$8 sps:$4 sm:$0xff]  }
 0x8fb   :  { %12907 = vmatpush3.bf16.msra.mxu1 %v14511_v30  ;;  %v14486_v30 = vld [vmem:[#allocation20 + $0x2a0] ss:$8 sps:$4 sm:$0xff]  }
 0x8fc   :  { %12908 = vmatprep.subr.bf16.mxu1 %v14512_v0  ;;  %v14491_v0 = vld [vmem:[#allocation20 + $0x2b4] ss:$8 sps:$4 sm:$0xff]  }
 0x8ff   :  { %12909 = vmatpush3.bf16.msra.mxu1 %v14513_v25  ;;  %v14489_v25 = vld [vmem:[#allocation20 + $0x2b0] ss:$8 sps:$4 sm:$0xff]  }
 0x900   :  { %12910 = vmatprep.subr.bf16.mxu1 %v14514_v6  ;;  %v14494_v6 = vld [vmem:[#allocation20 + $0x2c4] ss:$8 sps:$4 sm:$0xff]  }
 0x903   :  { %12911 = vmatpush3.bf16.msra.mxu1 %v14515_v56  ;;  %v14492_v56 = vld [vmem:[#allocation20 + $0x2c0] ss:$8 sps:$4 sm:$0xff]  }
 0x904   :  { %12912 = vmatprep.subr.bf16.mxu1 %v14516_v1  ;;  %v14559_v1 = vld [vmem:[#allocation20 + $0x3d0] ss:$8 sps:$4 sm:$0xff]  }
 0x92e   :  { %v7405_v44 = vpop.f32.mrb[76].mxu1 }
 0x92f   :  { %v7448_v45 = vpop.f32.mrb[72].mxu0  ;;  %v7407_v39 = vpop.f32.mrb[77].mxu1 }
 0x930   :  { %v7450_v62 = vpop.f32.mrb[73].mxu0  ;;  %v7409_v47 = vpop.f32.mrb[78].mxu1 }
 0x931   :  { %v7529_v53 = vmul.f32 %v7496_v42, %v7409_v47  ;;  %v7452_v48 = vpop.f32.mrb[74].mxu0  ;;  %v7411_v8 = vpop.f32.mrb[79].mxu1  ;;  %v8326_v42 = vmul.f32 %v8324_v58, %v7612_v33 }
 0x932   :  { %v7531_v38 = vmul.f32 %v7504_v20, %v7452_v48  ;;  %v7530_v54 = vmul.f32 %v7500_v60, %v7411_v8  ;;  %v7454_v11 = vpop.f32.mrb[75].mxu0  ;;  %v14464_v48 = vld [vmem:[#allocation20 + $0x224] ss:$8 sps:$4 sm:$0xff]   ;;  %v14462_v8 = vld [vmem:[#allocation20 + $0x220] ss:$8 sps:$4 sm:$0xff]  }
 0x933   :  { %v16004_v40 = vadd.f32 %v7529_v53, %v7405_v44  ;;  %v7532_v57 = vmul.f32 %v7508_v59, %v7454_v11  ;;  %v8328_v14 = vsel %vm8323_vm9, %v7612_v33, %v8326_v42  ;;  %v14459_v53 = vld [vmem:[#allocation20 + $0x210] ss:$8 sps:$4 sm:$0xff]   ;;  %v14468_v11 = vld [vmem:[#allocation20 + $0x240] ss:$8 sps:$4 sm:$0xff]   ;;  %v14500_v33 = vld [vmem:[#allocation20 + $0x2e4] ss:$8 sps:$4 sm:$0xff]  }
 0x934   :  { %v7543_v7 = vadd.f32 %v7531_v38, %v7448_v45  ;;  %v16007_v9 = vadd.f32 %v7530_v54, %v7407_v39  ;;  %v8363_v47 = vpack.c.bf16 %v8328_v14, %v8328_v14  ;;  %v14467_v38 = vld [vmem:[#allocation20 + $0x234] ss:$8 sps:$4 sm:$0xff]   ;;  %v14470_v54 = vld [vmem:[#allocation20 + $0x244] ss:$8 sps:$4 sm:$0xff]   ;;  %v8145_v14 = vstv %s12501_s22 }
 0x935   :  { %v7544_v10 = vadd.f32 %v7532_v57, %v7450_v62  ;;  %v14461_v62 = vld [vmem:[#allocation20 + $0x214] ss:$8 sps:$4 sm:$0xff]   ;;  %v14517_v42 = vld [vmem:[#allocation23 + $0x30] sm:$0xff]  }
 0x936   :  { %v16009_v29 = vadd.f32 %v7592_v22, %v7543_v7  ;;  %v14465_v22 = vld [vmem:[#allocation20 + $0x230] ss:$8 sps:$4 sm:$0xff]   ;;  %v14473_v57 = vld [vmem:[#allocation20 + $0x254] ss:$8 sps:$4 sm:$0xff]   ;;  %v14476_v7 = vld [vmem:[#allocation20 + $0x264] ss:$8 sps:$4 sm:$0xff]   ;;  %12913 = vmatpush3.bf16.msra.mxu1 %v14517_v42 }
 0x937   :  { %v16011_v36 = vadd.f32 %v7596_v17, %v7544_v10  ;;  %v14471_v17 = vld [vmem:[#allocation20 + $0x250] ss:$8 sps:$4 sm:$0xff]   ;;  %v14474_v10 = vld [vmem:[#allocation20 + $0x260] ss:$8 sps:$4 sm:$0xff]   ;;  %v14564_v42 = vld [vmem:[#allocation20 + $0x3e4] ss:$8 sps:$4 sm:$0xff]  }
 0x991   :  { %v7878_v5 = vpop.f32.mrb[80].mxu1 }
 0x992   :  { %v7879_v55 = vadd.f32 %v7878_v5, %v7677_v3  ;;  %v7880_v21 = vpop.f32.mrb[81].mxu1  ;;  %v14495_v3 = vld [vmem:[#allocation20 + $0x2d0] ss:$8 sps:$4 sm:$0xff]   ;;  %v14498_v5 = vld [vmem:[#allocation20 + $0x2e0] ss:$8 sps:$4 sm:$0xff]  }
 0x993   :  { %v7881_v16 = vadd.f32 %v7880_v21, %v7681_v31  ;;  %v7882_v26 = vpop.f32.mrb[82].mxu1  ;;  %v7611_v31 = vadd.f32 %v7560_v34, %v15979_v2  ;;  %v14501_v21 = vld [vmem:[#allocation20 + $0x2f0] ss:$8 sps:$4 sm:$0xff]  }
 0x994   :  { %vm7886_vm8 = vcmp.ge.f32.partialorder %v7879_v55, 0.0  ;;  %v7889_v44 = vmul.f32 %v7888_v18, %v7879_v55  ;;  %v7883_v20 = vpop.f32.mrb[83].mxu1  ;;  %v14519_v2 = vld [vmem:[#allocation23 + $0x38] sm:$0xff]  }
 0x995   :  { %vm7887_vm10 = vcmp.ge.f32.partialorder %v7881_v16, 0.0  ;;  %v7890_v4 = vmul.f32 %v7888_v18, %v7881_v16  ;;  %v14503_v18 = vld [vmem:[#allocation20 + $0x2f4] ss:$8 sps:$4 sm:$0xff]   ;;  %vm8322_vm11 = vcmp.ge.f32.partialorder %v7611_v31, 0.0  ;;  %v14522_v20 = vld [vmem:[#allocation20 + $0x304] ss:$8 sps:$4 sm:$0xff]  }
 0x996   :  { %v7891_v60 = vsel %vm7886_vm8, %v7879_v55, %v7889_v44  ;;  %v8325_v55 = vmul.f32 %v8324_v58, %v7611_v31  ;;  %v14518_v44 = vld [vmem:[#allocation23 + $0x78] sm:$0xff]   ;;  %v7929_v58 = vld [vmem:[#allocation21 + $0x2] sm:$0x3] }
 0x997   :  { %v7892_v45 = vsel %vm7887_vm10, %v7881_v16, %v7890_v4  ;;  %v7926_v59 = vpack.c.bf16 %v7891_v60, %v7891_v60  ;;  %12914 = vmatprep.subr.bf16.mxu1 %v14518_v44  ;;  %v7934_v4 = vrot.slane %v7929_v58, %v15709_v50  ;;  %v7938_v60 = vrot.slane %v7929_v58, %v15712_v51  ;;  %v14547_v34 = vld [vmem:[#allocation20 + $0x390] ss:$8 sps:$4 sm:$0xff]  }
 0x998   :  { %v7927_v39 = vpack.c.bf16 %v7892_v45, %v7892_v45  ;;  %v8327_v16 = vsel %vm8322_vm11, %v7611_v31, %v8325_v55  ;;  %12915 = vmatpush3.bf16.msra.mxu1 %v14519_v2  ;;  %v14555_v31 = vld [vmem:[#allocation20 + $0x3b4] ss:$8 sps:$4 sm:$0xff]   ;;  %v14556_v55 = vld [vmem:[#allocation20 + $0x3c0] ss:$8 sps:$4 sm:$0xff]   ;;  %v9018_v58 = vstv %s16030_s10 }
 0x999   :  { %v8362_v26 = vpack.c.bf16 %v8327_v16, %v8327_v16  ;;  %8794 = vmatprep.subr.bf16.mxu1 %v14522_v20  ;;  %v7572_v16 = vrot.slane %v15969_v15, %v15720_v61 }
 0x99a   :  { %8133 = vmatprep.mubr.bf16.mxu0 %v7927_v39 }
 0x99b   :  { %8134 = vmatmul.mubr.bf16.vlgmr.msra.gmra.mrb[76].mxu0 %v7926_v59  ;;  %v7614_v2 = vadd.f32 %v7572_v16, %v15995_v41  ;;  %v14565_v41 = vld [vmem:[#allocation20 + $0x3f0] ss:$8 sps:$4 sm:$0xff]   ;;  %v14621_v16 = vld [vmem:[#allocation23 + $0x90] sm:$0xff]  }
 0x99c   :  { %8538 = vmatpush1.bf16.msra.mxu0 %v14456_v46  ;;  %8569 = vmatprep.mubr.bf16.mxu0 %v8363_v47 }
 0x99d   :  { %8539 = vmatprep.subr.bf16.mxu0 %v14461_v62  ;;  %vm9017_vm15 = vcmp.ge.f32.partialorder %v7614_v2, 0.0 }
 0x9a0   :  { %8540 = vmatpush1.bf16.msra.mxu0 %v14459_v53 }
 0x9a1   :  { %8541 = vmatprep.subr.bf16.mxu0 %v14464_v48 }
 0x9a4   :  { %8542 = vmatpush1.bf16.msra.mxu0 %v14462_v8 }
 0x9a5   :  { %8543 = vmatprep.subr.bf16.mxu0 %v14467_v38 }
 0x9a8   :  { %8544 = vmatpush1.bf16.msra.mxu0 %v14465_v22 }
 0x9a9   :  { %8545 = vmatprep.subr.bf16.mxu0 %v14470_v54  ;;  %v14520_v54 = vld [vmem:[#allocation20 + $0x300] ss:$8 sps:$4 sm:$0xff]  }
 0x9ac   :  { %8546 = vmatpush1.bf16.msra.mxu0 %v14468_v11 }
 0x9ad   :  { %8547 = vmatprep.subr.bf16.mxu0 %v14473_v57  ;;  %v14525_v57 = vld [vmem:[#allocation20 + $0x314] ss:$8 sps:$4 sm:$0xff]  }
 0x9b0   :  { %8548 = vmatpush1.bf16.msra.mxu0 %v14471_v17  ;;  %v14523_v17 = vld [vmem:[#allocation20 + $0x310] ss:$8 sps:$4 sm:$0xff]  }
 0x9b1   :  { %8549 = vmatprep.subr.bf16.mxu0 %v14476_v7  ;;  %v14528_v7 = vld [vmem:[#allocation20 + $0x324] ss:$8 sps:$4 sm:$0xff]  }
 0x9b4   :  { %8550 = vmatpush1.bf16.msra.mxu0 %v14474_v10  ;;  %v14526_v10 = vld [vmem:[#allocation20 + $0x320] ss:$8 sps:$4 sm:$0xff]  }
 0x9b5   :  { %8551 = vmatprep.subr.bf16.mxu0 %v14479_v13  ;;  %v14531_v13 = vld [vmem:[#allocation20 + $0x334] ss:$8 sps:$4 sm:$0xff]  }
 0x9b8   :  { %8552 = vmatpush1.bf16.msra.mxu0 %v14477_v49  ;;  %v14529_v49 = vld [vmem:[#allocation20 + $0x330] ss:$8 sps:$4 sm:$0xff]  }
 0x9b9   :  { %8553 = vmatprep.subr.bf16.mxu0 %v14482_v19  ;;  %v14534_v19 = vld [vmem:[#allocation20 + $0x344] ss:$8 sps:$4 sm:$0xff]  }
 0x9bc   :  { %8554 = vmatpush1.bf16.msra.mxu0 %v14480_v24  ;;  %v14532_v24 = vld [vmem:[#allocation20 + $0x340] ss:$8 sps:$4 sm:$0xff]  }
 0x9bd   :  { %8555 = vmatprep.subr.bf16.mxu0 %v14485_v27  ;;  %v14537_v27 = vld [vmem:[#allocation20 + $0x354] ss:$8 sps:$4 sm:$0xff]  }
 0x9c0   :  { %8556 = vmatpush1.bf16.msra.mxu0 %v14483_v28  ;;  %v14535_v28 = vld [vmem:[#allocation20 + $0x350] ss:$8 sps:$4 sm:$0xff]  }
 0x9c1   :  { %8557 = vmatprep.subr.bf16.mxu0 %v14488_v23  ;;  %v14540_v23 = vld [vmem:[#allocation20 + $0x364] ss:$8 sps:$4 sm:$0xff]  }
 0x9c4   :  { %8558 = vmatpush1.bf16.msra.mxu0 %v14486_v30  ;;  %v14538_v30 = vld [vmem:[#allocation20 + $0x360] ss:$8 sps:$4 sm:$0xff]  }
 0x9c5   :  { %8559 = vmatprep.subr.bf16.mxu0 %v14491_v0  ;;  %v14543_v0 = vld [vmem:[#allocation20 + $0x374] ss:$8 sps:$4 sm:$0xff]  }
 0x9c8   :  { %8560 = vmatpush1.bf16.msra.mxu0 %v14489_v25  ;;  %v14541_v25 = vld [vmem:[#allocation20 + $0x370] ss:$8 sps:$4 sm:$0xff]  }
 0x9c9   :  { %8561 = vmatprep.subr.bf16.mxu0 %v14494_v6  ;;  %v14546_v6 = vld [vmem:[#allocation20 + $0x384] ss:$8 sps:$4 sm:$0xff]  }
 0x9cc   :  { %8562 = vmatpush1.bf16.msra.mxu0 %v14492_v56  ;;  %v14544_v56 = vld [vmem:[#allocation20 + $0x380] ss:$8 sps:$4 sm:$0xff]  }
 0x9cd   :  { %8563 = vmatprep.subr.bf16.mxu0 %v14497_v32  ;;  %v14549_v32 = vld [vmem:[#allocation20 + $0x394] ss:$8 sps:$4 sm:$0xff]  }
 0x9d0   :  { %8564 = vmatpush1.bf16.msra.mxu0 %v14495_v3  ;;  %v14552_v3 = vld [vmem:[#allocation20 + $0x3a4] ss:$8 sps:$4 sm:$0xff]  }
 0x9d1   :  { %8565 = vmatprep.subr.bf16.mxu0 %v14500_v33  ;;  %v14550_v33 = vld [vmem:[#allocation20 + $0x3a0] ss:$8 sps:$4 sm:$0xff]  }
 0x9d4   :  { %8566 = vmatpush1.bf16.msra.mxu0 %v14498_v5  ;;  %v14553_v5 = vld [vmem:[#allocation20 + $0x3b0] ss:$8 sps:$4 sm:$0xff]  }
 0x9d5   :  { %8567 = vmatprep.subr.bf16.mxu0 %v14503_v18  ;;  %v14558_v18 = vld [vmem:[#allocation20 + $0x3c4] ss:$8 sps:$4 sm:$0xff]  }
 0x9d8   :  { %8568 = vmatpush1.bf16.msra.mxu0 %v14501_v21  ;;  %v14561_v21 = vld [vmem:[#allocation20 + $0x3d4] ss:$8 sps:$4 sm:$0xff]  }
 0x9db   :  { %8570 = vmatmul.mubr.bf16.vlgmr.msra.gmra.mrb[80].mxu0 %v8362_v26  ;;  %v8365_v26 = vld [vmem:[#allocation21 + $0x4] sm:$0x3] }
 0x9dc   :  { %v8370_v44 = vrot.slane %v8365_v26, %v15709_v50  ;;  %v8374_v20 = vrot.slane %v8365_v26, %v15712_v51  ;;  %v14622_v26 = vld [vmem:[#allocation23 + $0xd8] sm:$0xff]  }
 0xa6e   :  { %v8135_v45 = vpop.f32.mrb[76].mxu0 }
 0xa6f   :  { %v8136_v39 = vadd.f32 %v8135_v45, %v7934_v4  ;;  %v8137_v46 = vpop.f32.mrb[77].mxu0  ;;  %v14562_v4 = vld [vmem:[#allocation20 + $0x3e0] ss:$8 sps:$4 sm:$0xff]   ;;  %v8581_v45 = vstv %s12551_s13 }
 0xa70   :  { %v8138_v59 = vadd.f32 %v8137_v46, %v7938_v60  ;;  %v8139_v62 = vpop.f32.mrb[78].mxu0 }
 0xa71   :  { %vm8143_vm12 = vcmp.ge.f32.partialorder %v8136_v39, 0.0  ;;  %v8146_v47 = vmul.f32 %v8145_v14, %v8136_v39  ;;  %v8140_v53 = vpop.f32.mrb[79].mxu0  ;;  %v9020_v62 = vmul.f32 %v9018_v58, %v7614_v2 }
 0xa72   :  { %vm8144_vm13 = vcmp.ge.f32.partialorder %v8138_v59, 0.0  ;;  %v8147_v48 = vmul.f32 %v8145_v14, %v8138_v59  ;;  %v14567_v14 = vld [vmem:[#allocation20 + $0x3f4] ss:$8 sps:$4 sm:$0xff]  }
 0xa73   :  { %v8148_v8 = vsel %vm8143_vm12, %v8136_v39, %v8146_v47 }
 0xa74   :  { %v8149_v38 = vsel %vm8144_vm13, %v8138_v59, %v8147_v48  ;;  %v8182_v11 = vpack.c.bf16 %v8148_v8, %v8148_v8  ;;  %v14570_v8 = vld [vmem:[#allocation20 + $0x404] ss:$8 sps:$4 sm:$0xff]  }
 0xa75   :  { %v8183_v22 = vpack.c.bf16 %v8149_v38, %v8149_v38 }
 0xa77   :  { %8312 = vmatprep.mubr.bf16.mxu1 %v8183_v22 }
 0xa78   :  { %8313 = vmatmul.mubr.bf16.vlgmr.msra.gmra.mrb[84].mxu1 %v8182_v11 }
 0xa79   :  { %8795 = vmatpush1.bf16.msra.mxu1 %v14520_v54  ;;  %v9022_v54 = vsel %vm9017_vm15, %v7614_v2, %v9020_v62  ;;  %v14624_v2 = vld [vmem:[#allocation23 + $0xe0] sm:$0xff]   ;;  %v7568_v62 = vrot.slane %v15969_v15, %v15752_v63  ;;  %v14628_v63 = vld [vmem:[#allocation23 + $0xf0] sm:$0xff]  }
 0xa7a   :  { %8796 = vmatprep.subr.bf16.mxu1 %v14525_v57  ;;  %v14568_v57 = vld [vmem:[#allocation20 + $0x400] ss:$8 sps:$4 sm:$0xff]  }
 0xa7b   :  { %v14629_v15 = vld [vmem:[#allocation23 + $0xb0] sm:$0xff]  }
 0xa7d   :  { %8797 = vmatpush1.bf16.msra.mxu1 %v14523_v17 }
 0xa7e   :  { %8798 = vmatprep.subr.bf16.mxu1 %v14528_v7  ;;  %v14573_v7 = vld [vmem:[#allocation20 + $0x414] ss:$8 sps:$4 sm:$0xff]  }
 0xa81   :  { %8799 = vmatpush1.bf16.msra.mxu1 %v14526_v10  ;;  %v9057_v10 = vpack.c.bf16 %v9022_v54, %v9022_v54 }
 0xa82   :  { %8800 = vmatprep.subr.bf16.mxu1 %v14531_v13  ;;  %v14571_v13 = vld [vmem:[#allocation20 + $0x410] ss:$8 sps:$4 sm:$0xff]  }
 0xa85   :  { %8801 = vmatpush1.bf16.msra.mxu1 %v14529_v49  ;;  %v14576_v49 = vld [vmem:[#allocation20 + $0x424] ss:$8 sps:$4 sm:$0xff]  }
 0xa86   :  { %8802 = vmatprep.subr.bf16.mxu1 %v14534_v19  ;;  %v14574_v19 = vld [vmem:[#allocation20 + $0x420] ss:$8 sps:$4 sm:$0xff]  }
 0xa89   :  { %8803 = vmatpush1.bf16.msra.mxu1 %v14532_v24  ;;  %v14579_v24 = vld [vmem:[#allocation20 + $0x434] ss:$8 sps:$4 sm:$0xff]  }
 0xa8a   :  { %8804 = vmatprep.subr.bf16.mxu1 %v14537_v27  ;;  %v14577_v27 = vld [vmem:[#allocation20 + $0x430] ss:$8 sps:$4 sm:$0xff]  }
 0xa8d   :  { %8805 = vmatpush1.bf16.msra.mxu1 %v14535_v28  ;;  %v14582_v28 = vld [vmem:[#allocation20 + $0x444] ss:$8 sps:$4 sm:$0xff]  }
 0xa8e   :  { %8806 = vmatprep.subr.bf16.mxu1 %v14540_v23  ;;  %v14580_v23 = vld [vmem:[#allocation20 + $0x440] ss:$8 sps:$4 sm:$0xff]  }
 0xa91   :  { %8807 = vmatpush1.bf16.msra.mxu1 %v14538_v30  ;;  %v14585_v30 = vld [vmem:[#allocation20 + $0x454] ss:$8 sps:$4 sm:$0xff]  }
 0xa92   :  { %8808 = vmatprep.subr.bf16.mxu1 %v14543_v0  ;;  %v14583_v0 = vld [vmem:[#allocation20 + $0x450] ss:$8 sps:$4 sm:$0xff]  }
 0xa95   :  { %8809 = vmatpush1.bf16.msra.mxu1 %v14541_v25  ;;  %v14588_v25 = vld [vmem:[#allocation20 + $0x464] ss:$8 sps:$4 sm:$0xff]  }
 0xa96   :  { %8810 = vmatprep.subr.bf16.mxu1 %v14546_v6  ;;  %v14586_v6 = vld [vmem:[#allocation20 + $0x460] ss:$8 sps:$4 sm:$0xff]  }
 0xa99   :  { %8811 = vmatpush1.bf16.msra.mxu1 %v14544_v56  ;;  %v14591_v56 = vld [vmem:[#allocation20 + $0x474] ss:$8 sps:$4 sm:$0xff]  }
 0xa9a   :  { %8812 = vmatprep.subr.bf16.mxu1 %v14549_v32  ;;  %v14616_v32 = vld [vmem:[#allocation23 + $0xc0] sm:$0xff]  }
 0xa9b   :  { %12922 = vmatprep.subr.bf16.mxu0 %v14616_v32 }
 0xa9d   :  { %8813 = vmatpush1.bf16.msra.mxu1 %v14547_v34  ;;  %v14617_v34 = vld [vmem:[#allocation23 + $0x80] sm:$0xff]  }
 0xa9e   :  { %8814 = vmatprep.subr.bf16.mxu1 %v14552_v3  ;;  %v14618_v3 = vld [vmem:[#allocation23 + $0xc8] sm:$0xff]   ;;  %12923 = vmatpush3.bf16.msra.mxu0 %v14617_v34 }
 0xa9f   :  { %12924 = vmatprep.subr.bf16.mxu0 %v14618_v3 }
 0xaa1   :  { %8815 = vmatpush1.bf16.msra.mxu1 %v14550_v33  ;;  %v14589_v33 = vld [vmem:[#allocation20 + $0x470] ss:$8 sps:$4 sm:$0xff]  }
 0xaa2   :  { %8816 = vmatprep.subr.bf16.mxu1 %v14555_v31  ;;  %v14594_v31 = vld [vmem:[#allocation20 + $0x484] ss:$8 sps:$4 sm:$0xff]  }
 0xaa5   :  { %8817 = vmatpush1.bf16.msra.mxu1 %v14553_v5  ;;  %v14619_v5 = vld [vmem:[#allocation23 + $0x88] sm:$0xff]  }
 0xaa6   :  { %8818 = vmatprep.subr.bf16.mxu1 %v14558_v18  ;;  %v14620_v18 = vld [vmem:[#allocation23 + $0xd0] sm:$0xff]   ;;  %12925 = vmatpush3.bf16.msra.mxu0 %v14619_v5 }
 0xaa7   :  { %12926 = vmatprep.subr.bf16.mxu0 %v14620_v18  ;;  %v14632_v5 = vld [vmem:[#allocation20 + $0x500] ss:$8 sps:$4 sm:$0xff]  }
 0xaa9   :  { %8819 = vmatpush1.bf16.msra.mxu1 %v14556_v55  ;;  %v14592_v55 = vld [vmem:[#allocation20 + $0x480] ss:$8 sps:$4 sm:$0xff]  }
 0xaaa   :  { %8820 = vmatprep.subr.bf16.mxu1 %v14561_v21  ;;  %v14597_v21 = vld [vmem:[#allocation20 + $0x494] ss:$8 sps:$4 sm:$0xff]   ;;  %12927 = vmatpush3.bf16.msra.mxu0 %v14621_v16  ;;  %v14640_v16 = vld [vmem:[#allocation20 + $0x524] ss:$8 sps:$4 sm:$0xff]  }
 0xaab   :  { %12928 = vmatprep.subr.bf16.mxu0 %v14622_v26  ;;  %v14638_v26 = vld [vmem:[#allocation20 + $0x520] ss:$8 sps:$4 sm:$0xff]  }
 0xaad   :  { %8821 = vmatpush1.bf16.msra.mxu1 %v14559_v1  ;;  %v14595_v1 = vld [vmem:[#allocation20 + $0x490] ss:$8 sps:$4 sm:$0xff]  }
 0xaae   :  { %v8571_v60 = vpop.f32.mrb[80].mxu0  ;;  %8822 = vmatprep.subr.bf16.mxu1 %v14564_v42  ;;  %v14600_v42 = vld [vmem:[#allocation20 + $0x4a4] ss:$8 sps:$4 sm:$0xff]  }
 0xaaf   :  { %v8572_v61 = vadd.f32 %v8571_v60, %v8370_v44  ;;  %v8573_v39 = vpop.f32.mrb[81].mxu0  ;;  %v14623_v44 = vld [vmem:[#allocation23 + $0x98] sm:$0xff]   ;;  %v14625_v60 = vld [vmem:[#allocation23 + $0xa0] sm:$0xff]  }
 0xab0   :  { %v8574_v46 = vadd.f32 %v8573_v39, %v8374_v20  ;;  %v8575_v59 = vpop.f32.mrb[82].mxu0  ;;  %v14598_v20 = vld [vmem:[#allocation20 + $0x4a0] ss:$8 sps:$4 sm:$0xff]   ;;  %12929 = vmatpush3.bf16.msra.mxu0 %v14623_v44  ;;  %v14646_v44 = vld [vmem:[#allocation20 + $0x544] ss:$8 sps:$4 sm:$0xff]  }
 0xab1   :  { %vm8579_vm14 = vcmp.ge.f32.partialorder %v8572_v61, 0.0  ;;  %v8582_v47 = vmul.f32 %v8581_v45, %v8572_v61  ;;  %v8576_v53 = vpop.f32.mrb[83].mxu0  ;;  %8823 = vmatpush1.bf16.msra.mxu1 %v14562_v4  ;;  %v14603_v4 = vld [vmem:[#allocation20 + $0x4b4] ss:$8 sps:$4 sm:$0xff]   ;;  %12930 = vmatprep.subr.bf16.mxu0 %v14624_v2  ;;  %v14644_v2 = vld [vmem:[#allocation20 + $0x540] ss:$8 sps:$4 sm:$0xff]  }
 0xab2   :  { %vm8580_vm0 = vcmp.ge.f32.partialorder %v8574_v46, 0.0  ;;  %v8583_v48 = vmul.f32 %v8581_v45, %v8574_v46  ;;  %8824 = vmatprep.subr.bf16.mxu1 %v14567_v14  ;;  %v14626_v45 = vld [vmem:[#allocation23 + $0xe8] sm:$0xff]   ;;  %v14601_v14 = vld [vmem:[#allocation20 + $0x4b0] ss:$8 sps:$4 sm:$0xff]  }
 0xab3   :  { %v8584_v38 = vsel %vm8579_vm14, %v8572_v61, %v8582_v47  ;;  %v14606_v61 = vld [vmem:[#allocation20 + $0x4c4] ss:$8 sps:$4 sm:$0xff]   ;;  %v14609_v59 = vld [vmem:[#allocation20 + $0x4d4] ss:$8 sps:$4 sm:$0xff]   ;;  %v14607_v47 = vld [vmem:[#allocation20 + $0x4d0] ss:$8 sps:$4 sm:$0xff]  }
 0xab4   :  { %v8585_v22 = vsel %vm8580_vm0, %v8574_v46, %v8583_v48  ;;  %v8619_v17 = vpack.c.bf16 %v8584_v38, %v8584_v38  ;;  %12931 = vmatpush3.bf16.msra.mxu0 %v14625_v60  ;;  %v14627_v39 = vld [vmem:[#allocation23 + $0xa8] sm:$0xff]  }
 0xab5   :  { %8825 = vmatpush1.bf16.msra.mxu1 %v14565_v41  ;;  %v8620_v11 = vpack.c.bf16 %v8585_v22, %v8585_v22  ;;  %12932 = vmatprep.subr.bf16.mxu0 %v14626_v45  ;;  %v14604_v46 = vld [vmem:[#allocation20 + $0x4c0] ss:$8 sps:$4 sm:$0xff]   ;;  %v14612_v53 = vld [vmem:[#allocation20 + $0x4e4] ss:$8 sps:$4 sm:$0xff]   ;;  %v7613_v41 = vadd.f32 %v7568_v62, %v15991_v52  ;;  %v14613_v22 = vld [vmem:[#allocation20 + $0x4f0] ss:$8 sps:$4 sm:$0xff]  }
 0xab6   :  { %9231 = vmatprep.subr.bf16.mxu1 %v14570_v8  ;;  %v14610_v48 = vld [vmem:[#allocation20 + $0x4e0] ss:$8 sps:$4 sm:$0xff]   ;;  %v14615_v8 = vld [vmem:[#allocation20 + $0x4f4] ss:$8 sps:$4 sm:$0xff]   ;;  %v14652_v60 = vld [vmem:[#allocation20 + $0x564] ss:$8 sps:$4 sm:$0xff]  }
 0xab7   :  { %8826 = vmatprep.mubr.bf16.mxu1 %v8620_v11  ;;  %v9019_v38 = vmul.f32 %v9018_v58, %v7613_v41  ;;  %vm9016_vm1 = vcmp.ge.f32.partialorder %v7613_v41, 0.0  ;;  %v14631_v52 = vld [vmem:[#allocation23 + $0xb8] sm:$0xff]   ;;  %v14650_v45 = vld [vmem:[#allocation20 + $0x560] ss:$8 sps:$4 sm:$0xff]  }
 0xab8   :  { %8827 = vmatmul.mubr.bf16.vlgmr.msra.gmra.mrb[88].mxu1 %v8619_v17  ;;  %12933 = vmatpush3.bf16.msra.mxu0 %v14627_v39  ;;  %v14634_v17 = vld [vmem:[#allocation20 + $0x504] ss:$8 sps:$4 sm:$0xff]   ;;  %v14659_v62 = vld [vmem:[#allocation20 + $0x590] ss:$8 sps:$4 sm:$0xff]  }
 0xab9   :  { %9232 = vmatpush1.bf16.msra.mxu1 %v14568_v57  ;;  %9263 = vmatprep.mubr.bf16.mxu1 %v9057_v10  ;;  %v9021_v54 = vsel %vm9016_vm1, %v7613_v41, %v9019_v38  ;;  %v14630_v57 = vld [vmem:[#allocation23 + $0xf8] sm:$0xff]   ;;  %v14668_v38 = vld [vmem:[#allocation20 + $0x5c0] ss:$8 sps:$4 sm:$0xff]   ;;  %vm11099_vm1 = vcmp.ge.f32.partialorder %v16011_v36, 0.0 }
 0xaba   :  { %9233 = vmatprep.subr.bf16.mxu1 %v14573_v7  ;;  %v9056_v11 = vpack.c.bf16 %v9021_v54, %v9021_v54  ;;  %12934 = vmatprep.subr.bf16.mxu0 %v14628_v63  ;;  %v14658_v39 = vld [vmem:[#allocation20 + $0x584] ss:$8 sps:$4 sm:$0xff]   ;;  %v14667_v41 = vld [vmem:[#allocation20 + $0x5b4] ss:$8 sps:$4 sm:$0xff]   ;;  %v9059_v63 = vld [vmem:[#allocation21 + $0x8] sm:$0x3] }
 0xabb   :  { %v16051_v54 = vld [vmem:[#allocation17] sm:$0xff] }
 0xabc   :  { %12935 = vmatpush3.bf16.msra.mxu0 %v14629_v15  ;;  %v14671_v15 = vld [vmem:[#allocation20 + $0x5d0] ss:$8 sps:$4 sm:$0xff]  }
 0xabd   :  { %9234 = vmatpush1.bf16.msra.mxu1 %v14571_v13  ;;  %12936 = vmatprep.subr.bf16.mxu0 %v14630_v57  ;;  %v14676_v57 = vld [vmem:[#allocation20 + $0x5e4] ss:$8 sps:$4 sm:$0xff]  }
 0xabe   :  { %9235 = vmatprep.subr.bf16.mxu1 %v14576_v49 }
 0xac0   :  { %12937 = vmatpush3.bf16.msra.mxu0 %v14631_v52  ;;  %v9064_v52 = vrot.slane %v9059_v63, %v15709_v50 }
 0xac1   :  { %9236 = vmatpush1.bf16.msra.mxu1 %v14574_v19  ;;  %9488 = vmatprep.subr.bf16.mxu0 %v14634_v17  ;;  %v8622_v19 = vld [vmem:[#allocation21 + $0x6] sm:$0x3] }
 0xac2   :  { %9237 = vmatprep.subr.bf16.mxu1 %v14579_v24  ;;  %v8627_v24 = vrot.slane %v8622_v19, %v15709_v50 }
 0xac5   :  { %9238 = vmatpush1.bf16.msra.mxu1 %v14577_v27  ;;  %v8631_v27 = vrot.slane %v8622_v19, %v15712_v51  ;;  %v9275_v19 = vstv %s12634_s5 }
 0xac6   :  { %9239 = vmatprep.subr.bf16.mxu1 %v14582_v28 }
 0xac9   :  { %9240 = vmatpush1.bf16.msra.mxu1 %v14580_v23  ;;  %v8838_v23 = vstv %s12584_s25 }
 0xaca   :  { %9241 = vmatprep.subr.bf16.mxu1 %v14585_v30 }
 0xacd   :  { %9242 = vmatpush1.bf16.msra.mxu1 %v14583_v0 }
 0xace   :  { %9243 = vmatprep.subr.bf16.mxu1 %v14588_v25 }
 0xad1   :  { %9244 = vmatpush1.bf16.msra.mxu1 %v14586_v6 }
 0xad2   :  { %9245 = vmatprep.subr.bf16.mxu1 %v14591_v56 }
 0xad5   :  { %9246 = vmatpush1.bf16.msra.mxu1 %v14589_v33 }
 0xad6   :  { %9247 = vmatprep.subr.bf16.mxu1 %v14594_v31 }
 0xad9   :  { %9248 = vmatpush1.bf16.msra.mxu1 %v14592_v55  ;;  %v14637_v55 = vld [vmem:[#allocation20 + $0x514] ss:$8 sps:$4 sm:$0xff]  }
 0xada   :  { %9249 = vmatprep.subr.bf16.mxu1 %v14597_v21  ;;  %v14635_v21 = vld [vmem:[#allocation20 + $0x510] ss:$8 sps:$4 sm:$0xff]  }
 0xadd   :  { %9250 = vmatpush1.bf16.msra.mxu1 %v14595_v1  ;;  %v14643_v1 = vld [vmem:[#allocation20 + $0x534] ss:$8 sps:$4 sm:$0xff]  }
 0xade   :  { %9251 = vmatprep.subr.bf16.mxu1 %v14600_v42  ;;  %v14641_v42 = vld [vmem:[#allocation20 + $0x530] ss:$8 sps:$4 sm:$0xff]  }
 0xae1   :  { %9252 = vmatpush1.bf16.msra.mxu1 %v14598_v20  ;;  %v14649_v20 = vld [vmem:[#allocation20 + $0x554] ss:$8 sps:$4 sm:$0xff]  }
 0xae2   :  { %9253 = vmatprep.subr.bf16.mxu1 %v14603_v4  ;;  %v14647_v4 = vld [vmem:[#allocation20 + $0x550] ss:$8 sps:$4 sm:$0xff]  }
 0xae5   :  { %9254 = vmatpush1.bf16.msra.mxu1 %v14601_v14  ;;  %v14655_v14 = vld [vmem:[#allocation20 + $0x574] ss:$8 sps:$4 sm:$0xff]  }
 0xae6   :  { %9255 = vmatprep.subr.bf16.mxu1 %v14606_v61  ;;  %v14653_v61 = vld [vmem:[#allocation20 + $0x570] ss:$8 sps:$4 sm:$0xff]  }
 0xae9   :  { %9256 = vmatpush1.bf16.msra.mxu1 %v14604_v46  ;;  %v14656_v46 = vld [vmem:[#allocation20 + $0x580] ss:$8 sps:$4 sm:$0xff]  }
 0xaea   :  { %9257 = vmatprep.subr.bf16.mxu1 %v14609_v59  ;;  %v14661_v59 = vld [vmem:[#allocation20 + $0x594] ss:$8 sps:$4 sm:$0xff]  }
 0xaed   :  { %9258 = vmatpush1.bf16.msra.mxu1 %v14607_v47  ;;  %v14664_v47 = vld [vmem:[#allocation20 + $0x5a4] ss:$8 sps:$4 sm:$0xff]  }
 0xaee   :  { %9259 = vmatprep.subr.bf16.mxu1 %v14612_v53  ;;  %v14662_v53 = vld [vmem:[#allocation20 + $0x5a0] ss:$8 sps:$4 sm:$0xff]  }
 0xaf1   :  { %9260 = vmatpush1.bf16.msra.mxu1 %v14610_v48  ;;  %v14665_v48 = vld [vmem:[#allocation20 + $0x5b0] ss:$8 sps:$4 sm:$0xff]  }
 0xaf2   :  { %9261 = vmatprep.subr.bf16.mxu1 %v14615_v8  ;;  %v14670_v8 = vld [vmem:[#allocation20 + $0x5c4] ss:$8 sps:$4 sm:$0xff]  }
 0xaf5   :  { %9262 = vmatpush1.bf16.msra.mxu1 %v14613_v22  ;;  %v14673_v22 = vld [vmem:[#allocation20 + $0x5d4] ss:$8 sps:$4 sm:$0xff]  }
 0xaf8   :  { %9264 = vmatmul.mubr.bf16.vlgmr.msra.gmra.mrb[92].mxu1 %v9056_v11  ;;  %v7580_v11 = vrot.slane %v16051_v54, %v15741_v37 }
 0xafa   :  { %v7616_v17 = vadd.f32 %v7580_v11, %v15997_v43  ;;  %v14677_v43 = vld [vmem:[#allocation20 + $0x5f0] ss:$8 sps:$4 sm:$0xff]   ;;  %v14712_v11 = vld [vmem:[#allocation20 + $0x6a4] ss:$8 sps:$4 sm:$0xff]  }
 0xafc   :  { %vm9711_vm5 = vcmp.ge.f32.partialorder %v7616_v17, 0.0 }
 0xb4b   :  { %v12916_v7 = vpop.f32.mrb[84].mxu1 }
 0xb4c   :  { %v12917_v58 = vpop.f32.mrb[85].mxu1 }
 0xb4d   :  { %v16045_v10 = vadd.f32 %v12917_v58, %v12916_v7  ;;  %v12919_v13 = vpop.f32.mrb[86].mxu1  ;;  %v9068_v7 = vrot.slane %v9059_v63, %v15712_v51  ;;  %v9712_v58 = vstv %s16049_s29  ;;  %v14735_v63 = vld [vmem:[#allocation23 + $0x118] sm:$0xff]  }
 0xb4e   :  { %v12920_v49 = vpop.f32.mrb[87].mxu1  ;;  %v14674_v13 = vld [vmem:[#allocation20 + $0x5e0] ss:$8 sps:$4 sm:$0xff]  }
 0xb8b   :  { %v8828_v28 = vpop.f32.mrb[88].mxu1 }
 0xb8c   :  { %v8829_v30 = vadd.f32 %v8828_v28, %v8627_v24  ;;  %v8830_v0 = vpop.f32.mrb[89].mxu1  ;;  %v14679_v24 = vld [vmem:[#allocation20 + $0x5f4] ss:$8 sps:$4 sm:$0xff]  }
 0xb8d   :  { %v8831_v25 = vadd.f32 %v8830_v0, %v8631_v27  ;;  %v8832_v6 = vpop.f32.mrb[90].mxu1 }
 0xb8e   :  { %vm8836_vm2 = vcmp.ge.f32.partialorder %v8829_v30, 0.0  ;;  %v8839_v56 = vmul.f32 %v8838_v23, %v8829_v30  ;;  %v8833_v32 = vpop.f32.mrb[91].mxu1 }
 0xb8f   :  { %vm8837_vm3 = vcmp.ge.f32.partialorder %v8831_v25, 0.0  ;;  %v8840_v34 = vmul.f32 %v8838_v23, %v8831_v25 }
 0xb90   :  { %v8841_v3 = vsel %vm8836_vm2, %v8829_v30, %v8839_v56  ;;  %v9714_v30 = vmul.f32 %v9712_v58, %v7616_v17  ;;  %v14682_v56 = vld [vmem:[#allocation20 + $0x604] ss:$8 sps:$4 sm:$0xff]  }
 0xb91   :  { %v8842_v33 = vsel %vm8837_vm3, %v8831_v25, %v8840_v34  ;;  %v8876_v18 = vpack.c.bf16 %v8841_v3, %v8841_v3  ;;  %vm11098_vm3 = vcmp.ge.f32.partialorder %v16009_v29, 0.0 }
 0xb92   :  { %v8877_v31 = vpack.c.bf16 %v8842_v33, %v8842_v33  ;;  %v9716_v3 = vsel %vm9711_vm5, %v7616_v17, %v9714_v30  ;;  %v14737_v17 = vld [vmem:[#allocation23 + $0x120] sm:$0xff]  }
 0xb94   :  { %9006 = vmatprep.mubr.bf16.mxu0 %v8877_v31  ;;  %v14680_v31 = vld [vmem:[#allocation20 + $0x600] ss:$8 sps:$4 sm:$0xff]  }
 0xb95   :  { %9007 = vmatmul.mubr.bf16.vlgmr.msra.gmra.mrb[84].mxu0 %v8876_v18  ;;  %v14685_v18 = vld [vmem:[#allocation20 + $0x614] ss:$8 sps:$4 sm:$0xff]  }
 0xb96   :  { %9489 = vmatpush1.bf16.msra.mxu0 %v14632_v5 }
 0xb97   :  { %9490 = vmatprep.subr.bf16.mxu0 %v14637_v55  ;;  %v9751_v55 = vpack.c.bf16 %v9716_v3, %v9716_v3  ;;  %v14746_v3 = vld [vmem:[#allocation20 + $0x704] ss:$8 sps:$4 sm:$0xff]  }
 0xb9a   :  { %9491 = vmatpush1.bf16.msra.mxu0 %v14635_v21  ;;  %v14683_v21 = vld [vmem:[#allocation20 + $0x610] ss:$8 sps:$4 sm:$0xff]  }
 0xb9b   :  { %9492 = vmatprep.subr.bf16.mxu0 %v14640_v16  ;;  %v14688_v16 = vld [vmem:[#allocation20 + $0x624] ss:$8 sps:$4 sm:$0xff]  }
 0xb9e   :  { %9493 = vmatpush1.bf16.msra.mxu0 %v14638_v26  ;;  %v14686_v26 = vld [vmem:[#allocation20 + $0x620] ss:$8 sps:$4 sm:$0xff]  }
 0xb9f   :  { %9494 = vmatprep.subr.bf16.mxu0 %v14643_v1  ;;  %v14691_v1 = vld [vmem:[#allocation20 + $0x634] ss:$8 sps:$4 sm:$0xff]  }
 0xba2   :  { %9495 = vmatpush1.bf16.msra.mxu0 %v14641_v42  ;;  %v14689_v42 = vld [vmem:[#allocation20 + $0x630] ss:$8 sps:$4 sm:$0xff]  }
 0xba3   :  { %9496 = vmatprep.subr.bf16.mxu0 %v14646_v44  ;;  %v14694_v44 = vld [vmem:[#allocation20 + $0x644] ss:$8 sps:$4 sm:$0xff]  }
 0xba6   :  { %9497 = vmatpush1.bf16.msra.mxu0 %v14644_v2  ;;  %v14692_v2 = vld [vmem:[#allocation20 + $0x640] ss:$8 sps:$4 sm:$0xff]  }
 0xba7   :  { %9498 = vmatprep.subr.bf16.mxu0 %v14649_v20  ;;  %v14697_v20 = vld [vmem:[#allocation20 + $0x654] ss:$8 sps:$4 sm:$0xff]  }
 0xbaa   :  { %9499 = vmatpush1.bf16.msra.mxu0 %v14647_v4  ;;  %v14695_v4 = vld [vmem:[#allocation20 + $0x650] ss:$8 sps:$4 sm:$0xff]  }
 0xbab   :  { %9500 = vmatprep.subr.bf16.mxu0 %v14652_v60  ;;  %v14700_v60 = vld [vmem:[#allocation20 + $0x664] ss:$8 sps:$4 sm:$0xff]  }
 0xbae   :  { %9501 = vmatpush1.bf16.msra.mxu0 %v14650_v45  ;;  %v14698_v45 = vld [vmem:[#allocation20 + $0x660] ss:$8 sps:$4 sm:$0xff]  }
 0xbaf   :  { %9502 = vmatprep.subr.bf16.mxu0 %v14655_v14  ;;  %v14703_v14 = vld [vmem:[#allocation20 + $0x674] ss:$8 sps:$4 sm:$0xff]  }
 0xbb2   :  { %9503 = vmatpush1.bf16.msra.mxu0 %v14653_v61  ;;  %v14728_v61 = vld [vmem:[#allocation23 + $0x140] sm:$0xff]  }
 0xbb3   :  { %9504 = vmatprep.subr.bf16.mxu0 %v14658_v39  ;;  %v14729_v39 = vld [vmem:[#allocation23 + $0x100] sm:$0xff]   ;;  %12944 = vmatprep.subr.bf16.mxu1 %v14728_v61 }
 0xbb4   :  { %12945 = vmatpush3.bf16.msra.mxu1 %v14729_v39 }
 0xbb6   :  { %9505 = vmatpush1.bf16.msra.mxu0 %v14656_v46  ;;  %v14730_v46 = vld [vmem:[#allocation23 + $0x148] sm:$0xff]  }
 0xbb7   :  { %9506 = vmatprep.subr.bf16.mxu0 %v14661_v59  ;;  %v14701_v59 = vld [vmem:[#allocation20 + $0x670] ss:$8 sps:$4 sm:$0xff]   ;;  %12946 = vmatprep.subr.bf16.mxu1 %v14730_v46 }
 0xbba   :  { %9507 = vmatpush1.bf16.msra.mxu0 %v14659_v62  ;;  %v14706_v62 = vld [vmem:[#allocation20 + $0x684] ss:$8 sps:$4 sm:$0xff]  }
 0xbbb   :  { %9508 = vmatprep.subr.bf16.mxu0 %v14664_v47  ;;  %v14731_v47 = vld [vmem:[#allocation23 + $0x108] sm:$0xff]  }
 0xbbc   :  { %12947 = vmatpush3.bf16.msra.mxu1 %v14731_v47 }
 0xbbe   :  { %9509 = vmatpush1.bf16.msra.mxu0 %v14662_v53  ;;  %v14732_v53 = vld [vmem:[#allocation23 + $0x150] sm:$0xff]  }
 0xbbf   :  { %9510 = vmatprep.subr.bf16.mxu0 %v14667_v41  ;;  %v14704_v41 = vld [vmem:[#allocation20 + $0x680] ss:$8 sps:$4 sm:$0xff]   ;;  %12948 = vmatprep.subr.bf16.mxu1 %v14732_v53 }
 0xbc0   :  { %v14744_v53 = vld [vmem:[#allocation20 + $0x700] ss:$8 sps:$4 sm:$0xff]  }
 0xbc2   :  { %9511 = vmatpush1.bf16.msra.mxu0 %v14665_v48  ;;  %v14709_v48 = vld [vmem:[#allocation20 + $0x694] ss:$8 sps:$4 sm:$0xff]  }
 0xbc3   :  { %9512 = vmatprep.subr.bf16.mxu0 %v14670_v8  ;;  %v14733_v8 = vld [vmem:[#allocation23 + $0x110] sm:$0xff]  }
 0xbc4   :  { %12949 = vmatpush3.bf16.msra.mxu1 %v14733_v8  ;;  %v14747_v8 = vld [vmem:[#allocation20 + $0x710] ss:$8 sps:$4 sm:$0xff]  }
 0xbc6   :  { %9513 = vmatpush1.bf16.msra.mxu0 %v14668_v38  ;;  %v14734_v38 = vld [vmem:[#allocation23 + $0x158] sm:$0xff]  }
 0xbc7   :  { %9514 = vmatprep.subr.bf16.mxu0 %v14673_v22  ;;  %v14707_v22 = vld [vmem:[#allocation20 + $0x690] ss:$8 sps:$4 sm:$0xff]   ;;  %12950 = vmatprep.subr.bf16.mxu1 %v14734_v38  ;;  %v14752_v38 = vld [vmem:[#allocation20 + $0x724] ss:$8 sps:$4 sm:$0xff]  }
 0xbc8   :  { %12951 = vmatpush3.bf16.msra.mxu1 %v14735_v63  ;;  %v14753_v63 = vld [vmem:[#allocation20 + $0x730] ss:$8 sps:$4 sm:$0xff]  }
 0xbca   :  { %9515 = vmatpush1.bf16.msra.mxu0 %v14671_v15  ;;  %v14736_v15 = vld [vmem:[#allocation23 + $0x160] sm:$0xff]  }
 0xbcb   :  { %v9265_v49 = vpop.f32.mrb[92].mxu1  ;;  %9516 = vmatprep.subr.bf16.mxu0 %v14676_v57  ;;  %v14710_v57 = vld [vmem:[#allocation20 + $0x6a0] ss:$8 sps:$4 sm:$0xff]   ;;  %12952 = vmatprep.subr.bf16.mxu1 %v14736_v15  ;;  %v14758_v15 = vld [vmem:[#allocation20 + $0x744] ss:$8 sps:$4 sm:$0xff]  }
 0xbcc   :  { %v9266_v37 = vadd.f32 %v9265_v49, %v9064_v52  ;;  %v9267_v27 = vpop.f32.mrb[93].mxu1  ;;  %v14715_v52 = vld [vmem:[#allocation20 + $0x6b4] ss:$8 sps:$4 sm:$0xff]   ;;  %v14718_v49 = vld [vmem:[#allocation20 + $0x6c4] ss:$8 sps:$4 sm:$0xff]   ;;  %12953 = vmatpush3.bf16.msra.mxu1 %v14737_v17 }
 0xbcd   :  { %v9268_v28 = vadd.f32 %v9267_v27, %v9068_v7  ;;  %v9269_v23 = vpop.f32.mrb[94].mxu1  ;;  %v14738_v7 = vld [vmem:[#allocation23 + $0x168] sm:$0xff]   ;;  %v7576_v27 = vrot.slane %v16051_v54, %v15770_v35  ;;  %v14740_v35 = vld [vmem:[#allocation23 + $0x170] sm:$0xff]   ;;  %v14759_v17 = vld [vmem:[#allocation20 + $0x750] ss:$8 sps:$4 sm:$0xff]  }
 0xbce   :  { %vm9273_vm4 = vcmp.ge.f32.partialorder %v9266_v37, 0.0  ;;  %v9276_v0 = vmul.f32 %v9275_v19, %v9266_v37  ;;  %9517 = vmatpush1.bf16.msra.mxu0 %v14674_v13  ;;  %v9270_v25 = vpop.f32.mrb[95].mxu1  ;;  %v14713_v13 = vld [vmem:[#allocation20 + $0x6b0] ss:$8 sps:$4 sm:$0xff]   ;;  %12954 = vmatprep.subr.bf16.mxu1 %v14738_v7  ;;  %v14724_v23 = vld [vmem:[#allocation20 + $0x6e4] ss:$8 sps:$4 sm:$0xff]  }
 0xbcf   :  { %vm9274_vm6 = vcmp.ge.f32.partialorder %v9268_v28, 0.0  ;;  %v9277_v6 = vmul.f32 %v9275_v19, %v9268_v28  ;;  %9518 = vmatprep.subr.bf16.mxu0 %v14679_v24  ;;  %v14739_v19 = vld [vmem:[#allocation23 + $0x128] sm:$0xff]   ;;  %v7615_v30 = vadd.f32 %v7576_v27, %v15993_v12  ;;  %v14741_v54 = vld [vmem:[#allocation23 + $0x130] sm:$0xff]   ;;  %v14743_v12 = vld [vmem:[#allocation23 + $0x138] sm:$0xff]  }
 0xbd0   :  { %v9278_v32 = vsel %vm9273_vm4, %v9266_v37, %v9276_v0  ;;  %v14716_v24 = vld [vmem:[#allocation20 + $0x6c0] ss:$8 sps:$4 sm:$0xff]   ;;  %v14721_v37 = vld [vmem:[#allocation20 + $0x6d4] ss:$8 sps:$4 sm:$0xff]   ;;  %12955 = vmatpush3.bf16.msra.mxu1 %v14739_v19  ;;  %v14764_v7 = vld [vmem:[#allocation20 + $0x764] ss:$8 sps:$4 sm:$0xff]  }
 0xbd1   :  { %v9279_v34 = vsel %vm9274_vm6, %v9268_v28, %v9277_v6  ;;  %v9313_v5 = vpack.c.bf16 %v9278_v32, %v9278_v32  ;;  %v14719_v28 = vld [vmem:[#allocation20 + $0x6d0] ss:$8 sps:$4 sm:$0xff]   ;;  %v14722_v0 = vld [vmem:[#allocation20 + $0x6e0] ss:$8 sps:$4 sm:$0xff]   ;;  %v14727_v25 = vld [vmem:[#allocation20 + $0x6f4] ss:$8 sps:$4 sm:$0xff]   ;;  %12956 = vmatprep.subr.bf16.mxu1 %v14740_v35 }
 0xbd2   :  { %9519 = vmatpush1.bf16.msra.mxu0 %v14677_v43  ;;  %v9314_v33 = vpack.c.bf16 %v9279_v34, %v9279_v34  ;;  %v9713_v43 = vmul.f32 %v9712_v58, %v7615_v30  ;;  %vm9710_vm7 = vcmp.ge.f32.partialorder %v7615_v30, 0.0  ;;  %v14725_v6 = vld [vmem:[#allocation20 + $0x6f0] ss:$8 sps:$4 sm:$0xff]   ;;  %v7621_v58 = vld [vmem:[%s16125_s3] sm:$0xff]  ;;  %v14773_v27 = vld [vmem:[#allocation20 + $0x794] ss:$8 sps:$4 sm:$0xff]  }
 0xbd3   :  { %9925 = vmatprep.subr.bf16.mxu0 %v14682_v56  ;;  %v14742_v34 = vld [vmem:[#allocation23 + $0x178] sm:$0xff]   ;;  %s16074_s3 = sld [smem:[#allocation2 + $0xd]] }
 0xbd4   :  { %9520 = vmatprep.mubr.bf16.mxu0 %v9314_v33  ;;  %v9715_v56 = vsel %vm9710_vm7, %v7615_v30, %v9713_v43  ;;  %12957 = vmatpush3.bf16.msra.mxu1 %v14741_v54  ;;  %v12434_v33 = vld [vmem:[#allocation24] ss:$0 sm:$0xff]  ;;  %v14765_v19 = vld [vmem:[#allocation20 + $0x770] ss:$8 sps:$4 sm:$0xff]   ;;  %v14774_v30 = vld [vmem:[#allocation20 + $0x7a0] ss:$8 sps:$4 sm:$0xff]  }
 0xbd5   :  { %9521 = vmatmul.mubr.bf16.vlgmr.msra.gmra.mrb[88].mxu0 %v9313_v5  ;;  %v9750_v32 = vpack.c.bf16 %v9715_v56, %v9715_v56  ;;  %12958 = vmatprep.subr.bf16.mxu1 %v14742_v34  ;;  %v14782_v43 = vld [vmem:[#allocation20 + $0x7c4] ss:$8 sps:$4 sm:$0xff]   ;;  %v14785_v56 = vld [vmem:[#allocation20 + $0x7d4] ss:$8 sps:$4 sm:$0xff]   ;;  %v14783_v34 = vld [vmem:[#allocation20 + $0x7d0] ss:$8 sps:$4 sm:$0xff]  }
 0xbd6   :  { %9926 = vmatpush1.bf16.msra.mxu0 %v14680_v31  ;;  %9957 = vmatprep.mubr.bf16.mxu0 %v9751_v55  ;;  %v7629_v31 = vadd.f32 %v12434_v33, %v7621_v58  ;;  %v9753_v54 = vld [vmem:[#allocation21 + $0xc] sm:$0x3] }
 0xbd7   :  { %9927 = vmatprep.subr.bf16.mxu0 %v14685_v18  ;;  %v9762_v33 = vrot.slane %v9753_v54, %v15712_v51 }
 0xbd8   :  { %12959 = vmatpush3.bf16.msra.mxu1 %v14743_v12  ;;  %v8320_v55 = vadd.f32 %v16045_v10, %v7629_v31  ;;  %v14788_v12 = vld [vmem:[#allocation20 + $0x7e4] ss:$8 sps:$4 sm:$0xff]  }
 0xbd9   :  { %10182 = vmatprep.subr.bf16.mxu1 %v14746_v3  ;;  %v9758_v3 = vrot.slane %v9753_v54, %v15709_v50  ;;  %v10406_v31 = vstv %s16074_s3  ;;  %v14827_v54 = vld [vmem:[#allocation20 + $0x8b4] ss:$8 sps:$4 sm:$0xff]  }
 0xbda   :  { %9928 = vmatpush1.bf16.msra.mxu0 %v14683_v21 }
 0xbdb   :  { %9929 = vmatprep.subr.bf16.mxu0 %v14688_v16 }
 0xbde   :  { %9930 = vmatpush1.bf16.msra.mxu0 %v14686_v26 }
 0xbdf   :  { %9931 = vmatprep.subr.bf16.mxu0 %v14691_v1 }
 0xbe2   :  { %9932 = vmatpush1.bf16.msra.mxu0 %v14689_v42  ;;  %v9316_v42 = vld [vmem:[#allocation21 + $0xa] sm:$0x3] }
 0xbe3   :  { %9933 = vmatprep.subr.bf16.mxu0 %v14694_v44  ;;  %v9321_v44 = vrot.slane %v9316_v42, %v15709_v50 }
 0xbe6   :  { %9934 = vmatpush1.bf16.msra.mxu0 %v14692_v2  ;;  %v9325_v2 = vrot.slane %v9316_v42, %v15712_v51 }
 0xbe7   :  { %9935 = vmatprep.subr.bf16.mxu0 %v14697_v20 }
 0xbea   :  { %9936 = vmatpush1.bf16.msra.mxu0 %v14695_v4  ;;  %v9532_v4 = vstv %s12667_s11 }
 0xbeb   :  { %9937 = vmatprep.subr.bf16.mxu0 %v14700_v60 }
 0xbee   :  { %9938 = vmatpush1.bf16.msra.mxu0 %v14698_v45 }
 0xbef   :  { %9939 = vmatprep.subr.bf16.mxu0 %v14703_v14 }
 0xbf2   :  { %9940 = vmatpush1.bf16.msra.mxu0 %v14701_v59 }
 0xbf3   :  { %9941 = vmatprep.subr.bf16.mxu0 %v14706_v62 }
 0xbf6   :  { %9942 = vmatpush1.bf16.msra.mxu0 %v14704_v41 }
 0xbf7   :  { %9943 = vmatprep.subr.bf16.mxu0 %v14709_v48  ;;  %v14749_v48 = vld [vmem:[#allocation20 + $0x714] ss:$8 sps:$4 sm:$0xff]  }
 0xbfa   :  { %9944 = vmatpush1.bf16.msra.mxu0 %v14707_v22  ;;  %v14750_v22 = vld [vmem:[#allocation20 + $0x720] ss:$8 sps:$4 sm:$0xff]  }
 0xbfb   :  { %9945 = vmatprep.subr.bf16.mxu0 %v14712_v11  ;;  %v14755_v11 = vld [vmem:[#allocation20 + $0x734] ss:$8 sps:$4 sm:$0xff]  }
 0xbfe   :  { %9946 = vmatpush1.bf16.msra.mxu0 %v14710_v57  ;;  %v14756_v57 = vld [vmem:[#allocation20 + $0x740] ss:$8 sps:$4 sm:$0xff]  }
 0xbff   :  { %9947 = vmatprep.subr.bf16.mxu0 %v14715_v52  ;;  %v14761_v52 = vld [vmem:[#allocation20 + $0x754] ss:$8 sps:$4 sm:$0xff]  }
 0xc02   :  { %9948 = vmatpush1.bf16.msra.mxu0 %v14713_v13  ;;  %v14762_v13 = vld [vmem:[#allocation20 + $0x760] ss:$8 sps:$4 sm:$0xff]  }
 0xc03   :  { %9949 = vmatprep.subr.bf16.mxu0 %v14718_v49  ;;  %v14767_v49 = vld [vmem:[#allocation20 + $0x774] ss:$8 sps:$4 sm:$0xff]  }
 0xc06   :  { %9950 = vmatpush1.bf16.msra.mxu0 %v14716_v24  ;;  %v14770_v24 = vld [vmem:[#allocation20 + $0x784] ss:$8 sps:$4 sm:$0xff]  }
 0xc07   :  { %9951 = vmatprep.subr.bf16.mxu0 %v14721_v37  ;;  %v14768_v37 = vld [vmem:[#allocation20 + $0x780] ss:$8 sps:$4 sm:$0xff]  }
 0xc0a   :  { %9952 = vmatpush1.bf16.msra.mxu0 %v14719_v28  ;;  %v14771_v28 = vld [vmem:[#allocation20 + $0x790] ss:$8 sps:$4 sm:$0xff]  }
 0xc0b   :  { %9953 = vmatprep.subr.bf16.mxu0 %v14724_v23  ;;  %v14776_v23 = vld [vmem:[#allocation20 + $0x7a4] ss:$8 sps:$4 sm:$0xff]  }
 0xc0e   :  { %9954 = vmatpush1.bf16.msra.mxu0 %v14722_v0  ;;  %v14779_v0 = vld [vmem:[#allocation20 + $0x7b4] ss:$8 sps:$4 sm:$0xff]  }
 0xc0f   :  { %9955 = vmatprep.subr.bf16.mxu0 %v14727_v25  ;;  %v14777_v25 = vld [vmem:[#allocation20 + $0x7b0] ss:$8 sps:$4 sm:$0xff]  }
 0xc12   :  { %9956 = vmatpush1.bf16.msra.mxu0 %v14725_v6  ;;  %v14780_v6 = vld [vmem:[#allocation20 + $0x7c0] ss:$8 sps:$4 sm:$0xff]  }
 0xc15   :  { %9958 = vmatmul.mubr.bf16.vlgmr.msra.gmra.mrb[92].mxu0 %v9750_v32  ;;  %v16076_v32 = vld [vmem:[#allocation17 + $0x8] sm:$0xf] }
 0xc16   :  { %v7588_v35 = vrot.slane %v16076_v32, %v15712_v51 }
 0xc18   :  { %v7618_v58 = vadd.f32 %v7588_v35, %v16007_v9  ;;  %v14789_v9 = vld [vmem:[#allocation20 + $0x7f0] ss:$8 sps:$4 sm:$0xff]   ;;  %v14822_v35 = vld [vmem:[#allocation20 + $0x8a0] ss:$8 sps:$4 sm:$0xff]  }
 0xc1a   :  { %vm10405_vm11 = vcmp.ge.f32.partialorder %v7618_v58, 0.0 }
 0xc68   :  { %v12938_v5 = vpop.f32.mrb[84].mxu0 }
 0xc69   :  { %v12939_v18 = vpop.f32.mrb[85].mxu0 }
 0xc6a   :  { %v12940_v21 = vadd.f32 %v12939_v18, %v12938_v5  ;;  %v12941_v16 = vpop.f32.mrb[86].mxu0  ;;  %v14786_v5 = vld [vmem:[#allocation20 + $0x7e0] ss:$8 sps:$4 sm:$0xff]  }
 0xc6b   :  { %v12942_v26 = vpop.f32.mrb[87].mxu0 }
 0xc6c   :  { %v16070_v1 = vadd.f32 %v12940_v21, %v8320_v55  ;;  %v9969_v55 = vstv %s12717_s27  ;;  %v14791_v21 = vld [vmem:[#allocation20 + $0x7f4] ss:$8 sps:$4 sm:$0xff]  }
 0xca8   :  { %v9522_v20 = vpop.f32.mrb[88].mxu0 }
 0xca9   :  { %v9523_v60 = vadd.f32 %v9522_v20, %v9321_v44  ;;  %v9524_v45 = vpop.f32.mrb[89].mxu0 }
 0xcaa   :  { %v9525_v14 = vadd.f32 %v9524_v45, %v9325_v2  ;;  %v9526_v61 = vpop.f32.mrb[90].mxu0  ;;  %v10408_v2 = vmul.f32 %v10406_v31, %v7618_v58  ;;  %v14794_v45 = vld [vmem:[#allocation20 + $0x804] ss:$8 sps:$4 sm:$0xff]  }
 0xcab   :  { %vm9530_vm8 = vcmp.ge.f32.partialorder %v9523_v60, 0.0  ;;  %v9533_v39 = vmul.f32 %v9532_v4, %v9523_v60  ;;  %v9527_v10 = vpop.f32.mrb[91].mxu0 }
 0xcac   :  { %vm9531_vm9 = vcmp.ge.f32.partialorder %v9525_v14, 0.0  ;;  %v9534_v46 = vmul.f32 %v9532_v4, %v9525_v14 }
 0xcad   :  { %v9535_v59 = vsel %vm9530_vm8, %v9523_v60, %v9533_v39  ;;  %v10410_v39 = vsel %vm10405_vm11, %v7618_v58, %v10408_v2  ;;  %v14830_v58 = vld [vmem:[#allocation20 + $0x8c4] ss:$8 sps:$4 sm:$0xff]  }
 0xcae   :  { %v9536_v62 = vsel %vm9531_vm9, %v9525_v14, %v9534_v46  ;;  %v9570_v41 = vpack.c.bf16 %v9535_v59, %v9535_v59  ;;  %v14792_v46 = vld [vmem:[#allocation20 + $0x800] ss:$8 sps:$4 sm:$0xff]  }
 0xcaf   :  { %v9571_v47 = vpack.c.bf16 %v9536_v62, %v9536_v62  ;;  %v14797_v62 = vld [vmem:[#allocation20 + $0x814] ss:$8 sps:$4 sm:$0xff]  }
 0xcb1   :  { %9700 = vmatprep.mubr.bf16.mxu1 %v9571_v47  ;;  %v10445_v47 = vpack.c.bf16 %v10410_v39, %v10410_v39 }
 0xcb2   :  { %9701 = vmatmul.mubr.bf16.vlgmr.msra.gmra.mrb[96].mxu1 %v9570_v41  ;;  %v14800_v41 = vld [vmem:[#allocation20 + $0x824] ss:$8 sps:$4 sm:$0xff]  }
 0xcb3   :  { %10183 = vmatpush1.bf16.msra.mxu1 %v14744_v53  ;;  %v14795_v53 = vld [vmem:[#allocation20 + $0x810] ss:$8 sps:$4 sm:$0xff]  }
 0xcb4   :  { %10184 = vmatprep.subr.bf16.mxu1 %v14749_v48  ;;  %v14798_v48 = vld [vmem:[#allocation20 + $0x820] ss:$8 sps:$4 sm:$0xff]  }
 0xcb7   :  { %10185 = vmatpush1.bf16.msra.mxu1 %v14747_v8  ;;  %v14803_v8 = vld [vmem:[#allocation20 + $0x834] ss:$8 sps:$4 sm:$0xff]  }
 0xcb8   :  { %10186 = vmatprep.subr.bf16.mxu1 %v14752_v38  ;;  %v14801_v38 = vld [vmem:[#allocation20 + $0x830] ss:$8 sps:$4 sm:$0xff]  }
 0xcbb   :  { %10187 = vmatpush1.bf16.msra.mxu1 %v14750_v22  ;;  %v14806_v22 = vld [vmem:[#allocation20 + $0x844] ss:$8 sps:$4 sm:$0xff]  }
 0xcbc   :  { %10188 = vmatprep.subr.bf16.mxu1 %v14755_v11  ;;  %v14804_v11 = vld [vmem:[#allocation20 + $0x840] ss:$8 sps:$4 sm:$0xff]  }
 0xcbf   :  { %10189 = vmatpush1.bf16.msra.mxu1 %v14753_v63  ;;  %v14809_v63 = vld [vmem:[#allocation20 + $0x854] ss:$8 sps:$4 sm:$0xff]  }
 0xcc0   :  { %10190 = vmatprep.subr.bf16.mxu1 %v14758_v15  ;;  %v14807_v15 = vld [vmem:[#allocation20 + $0x850] ss:$8 sps:$4 sm:$0xff]  }
 0xcc3   :  { %10191 = vmatpush1.bf16.msra.mxu1 %v14756_v57  ;;  %v14812_v57 = vld [vmem:[#allocation20 + $0x864] ss:$8 sps:$4 sm:$0xff]  }
 0xcc4   :  { %10192 = vmatprep.subr.bf16.mxu1 %v14761_v52  ;;  %v14810_v52 = vld [vmem:[#allocation20 + $0x860] ss:$8 sps:$4 sm:$0xff]  }
 0xcc7   :  { %10193 = vmatpush1.bf16.msra.mxu1 %v14759_v17  ;;  %v14815_v17 = vld [vmem:[#allocation20 + $0x874] ss:$8 sps:$4 sm:$0xff]  }
 0xcc8   :  { %10194 = vmatprep.subr.bf16.mxu1 %v14764_v7  ;;  %v14840_v7 = vld [vmem:[#allocation23 + $0x1c0] sm:$0xff]  }
 0xcc9   :  { %12966 = vmatprep.subr.bf16.mxu0 %v14840_v7  ;;  %v14856_v7 = vld [vmem:[#allocation20 + $0x900] ss:$8 sps:$4 sm:$0xff]  }
 0xccb   :  { %10195 = vmatpush1.bf16.msra.mxu1 %v14762_v13  ;;  %v14841_v13 = vld [vmem:[#allocation23 + $0x180] sm:$0xff]  }
 0xccc   :  { %10196 = vmatprep.subr.bf16.mxu1 %v14767_v49  ;;  %v14842_v49 = vld [vmem:[#allocation23 + $0x1c8] sm:$0xff]   ;;  %12967 = vmatpush3.bf16.msra.mxu0 %v14841_v13 }
 0xccd   :  { %12968 = vmatprep.subr.bf16.mxu0 %v14842_v49  ;;  %v14861_v49 = vld [vmem:[#allocation20 + $0x914] ss:$8 sps:$4 sm:$0xff]  }
 0xccf   :  { %10197 = vmatpush1.bf16.msra.mxu1 %v14765_v19  ;;  %v14813_v19 = vld [vmem:[#allocation20 + $0x870] ss:$8 sps:$4 sm:$0xff]  }
 0xcd0   :  { %10198 = vmatprep.subr.bf16.mxu1 %v14770_v24  ;;  %v14818_v24 = vld [vmem:[#allocation20 + $0x884] ss:$8 sps:$4 sm:$0xff]  }
 0xcd3   :  { %10199 = vmatpush1.bf16.msra.mxu1 %v14768_v37  ;;  %v14843_v37 = vld [vmem:[#allocation23 + $0x188] sm:$0xff]  }
 0xcd4   :  { %10200 = vmatprep.subr.bf16.mxu1 %v14773_v27  ;;  %v14844_v27 = vld [vmem:[#allocation23 + $0x1d0] sm:$0xff]   ;;  %12969 = vmatpush3.bf16.msra.mxu0 %v14843_v37 }
 0xcd5   :  { %12970 = vmatprep.subr.bf16.mxu0 %v14844_v27  ;;  %v14862_v37 = vld [vmem:[#allocation20 + $0x920] ss:$8 sps:$4 sm:$0xff]   ;;  %v14867_v27 = vld [vmem:[#allocation20 + $0x934] ss:$8 sps:$4 sm:$0xff]  }
 0xcd7   :  { %10201 = vmatpush1.bf16.msra.mxu1 %v14771_v28  ;;  %v14816_v28 = vld [vmem:[#allocation20 + $0x880] ss:$8 sps:$4 sm:$0xff]  }
 0xcd8   :  { %10202 = vmatprep.subr.bf16.mxu1 %v14776_v23  ;;  %v14821_v23 = vld [vmem:[#allocation20 + $0x894] ss:$8 sps:$4 sm:$0xff]  }
 0xcdb   :  { %10203 = vmatpush1.bf16.msra.mxu1 %v14774_v30  ;;  %v14845_v30 = vld [vmem:[#allocation23 + $0x190] sm:$0xff]  }
 0xcdc   :  { %10204 = vmatprep.subr.bf16.mxu1 %v14779_v0  ;;  %v14846_v0 = vld [vmem:[#allocation23 + $0x1d8] sm:$0xff]   ;;  %12971 = vmatpush3.bf16.msra.mxu0 %v14845_v30  ;;  %v14868_v30 = vld [vmem:[#allocation20 + $0x940] ss:$8 sps:$4 sm:$0xff]  }
 0xcdd   :  { %12972 = vmatprep.subr.bf16.mxu0 %v14846_v0  ;;  %v14873_v0 = vld [vmem:[#allocation20 + $0x954] ss:$8 sps:$4 sm:$0xff]  }
 0xcdf   :  { %10205 = vmatpush1.bf16.msra.mxu1 %v14777_v25  ;;  %v14819_v25 = vld [vmem:[#allocation20 + $0x890] ss:$8 sps:$4 sm:$0xff]  }
 0xce0   :  { %10206 = vmatprep.subr.bf16.mxu1 %v14782_v43  ;;  %v14824_v43 = vld [vmem:[#allocation20 + $0x8a4] ss:$8 sps:$4 sm:$0xff]  }
 0xce3   :  { %10207 = vmatpush1.bf16.msra.mxu1 %v14780_v6  ;;  %v14847_v6 = vld [vmem:[#allocation23 + $0x198] sm:$0xff]  }
 0xce4   :  { %10208 = vmatprep.subr.bf16.mxu1 %v14785_v56  ;;  %v14848_v56 = vld [vmem:[#allocation23 + $0x1e0] sm:$0xff]   ;;  %12973 = vmatpush3.bf16.msra.mxu0 %v14847_v6  ;;  %v14874_v6 = vld [vmem:[#allocation20 + $0x960] ss:$8 sps:$4 sm:$0xff]  }
 0xce5   :  { %12974 = vmatprep.subr.bf16.mxu0 %v14848_v56  ;;  %v14879_v56 = vld [vmem:[#allocation20 + $0x974] ss:$8 sps:$4 sm:$0xff]  }
 0xce7   :  { %10209 = vmatpush1.bf16.msra.mxu1 %v14783_v34  ;;  %v14849_v34 = vld [vmem:[#allocation23 + $0x1a0] sm:$0xff]  }
 0xce8   :  { %v9959_v18 = vpop.f32.mrb[92].mxu0  ;;  %10210 = vmatprep.subr.bf16.mxu1 %v14788_v12  ;;  %v14850_v12 = vld [vmem:[#allocation23 + $0x1e8] sm:$0xff]   ;;  %12975 = vmatpush3.bf16.msra.mxu0 %v14849_v34 }
 0xce9   :  { %v9960_v16 = vadd.f32 %v9959_v18, %v9758_v3  ;;  %v9961_v26 = vpop.f32.mrb[93].mxu0  ;;  %v14825_v3 = vld [vmem:[#allocation20 + $0x8b0] ss:$8 sps:$4 sm:$0xff]   ;;  %12976 = vmatprep.subr.bf16.mxu0 %v14850_v12  ;;  %v14833_v18 = vld [vmem:[#allocation20 + $0x8d4] ss:$8 sps:$4 sm:$0xff]  }
 0xcea   :  { %v9962_v42 = vadd.f32 %v9961_v26, %v9762_v33  ;;  %v9963_v44 = vpop.f32.mrb[94].mxu0  ;;  %v14851_v33 = vld [vmem:[#allocation23 + $0x1a8] sm:$0xff]  }
 0xceb   :  { %vm9967_vm10 = vcmp.ge.f32.partialorder %v9960_v16, 0.0  ;;  %v9970_v20 = vmul.f32 %v9969_v55, %v9960_v16  ;;  %v9964_v4 = vpop.f32.mrb[95].mxu0  ;;  %10211 = vmatpush1.bf16.msra.mxu1 %v14786_v5  ;;  %v14828_v5 = vld [vmem:[#allocation20 + $0x8c0] ss:$8 sps:$4 sm:$0xff]   ;;  %v14839_v44 = vld [vmem:[#allocation20 + $0x8f4] ss:$8 sps:$4 sm:$0xff]  }
 0xcec   :  { %vm9968_vm12 = vcmp.ge.f32.partialorder %v9962_v42, 0.0  ;;  %v9971_v60 = vmul.f32 %v9969_v55, %v9962_v42  ;;  %10212 = vmatprep.subr.bf16.mxu1 %v14791_v21  ;;  %12977 = vmatpush3.bf16.msra.mxu0 %v14851_v33  ;;  %v7584_v55 = vrot.slane %v16076_v32, %v15709_v50  ;;  %v14831_v21 = vld [vmem:[#allocation20 + $0x8d0] ss:$8 sps:$4 sm:$0xff]   ;;  %v14852_v32 = vld [vmem:[#allocation23 + $0x1f0] sm:$0xff]   ;;  %v14885_v12 = vld [vmem:[#allocation20 + $0x994] ss:$8 sps:$4 sm:$0xff]  }
 0xced   :  { %v9972_v14 = vsel %vm9967_vm10, %v9960_v16, %v9970_v20  ;;  %v14836_v16 = vld [vmem:[#allocation20 + $0x8e4] ss:$8 sps:$4 sm:$0xff]   ;;  %v14837_v20 = vld [vmem:[#allocation20 + $0x8f0] ss:$8 sps:$4 sm:$0xff]   ;;  %12978 = vmatprep.subr.bf16.mxu0 %v14852_v32  ;;  %v14880_v34 = vld [vmem:[#allocation20 + $0x980] ss:$8 sps:$4 sm:$0xff]  }
 0xcee   :  { %v9973_v61 = vsel %vm9968_vm12, %v9962_v42, %v9971_v60  ;;  %v10007_v59 = vpack.c.bf16 %v9972_v14, %v9972_v14  ;;  %v7617_v26 = vadd.f32 %v7584_v55, %v16004_v40  ;;  %v14834_v42 = vld [vmem:[#allocation20 + $0x8e0] ss:$8 sps:$4 sm:$0xff]   ;;  %v14855_v40 = vld [vmem:[#allocation23 + $0x1b8] sm:$0xff]  }
 0xcef   :  { %10213 = vmatpush1.bf16.msra.mxu1 %v14789_v9  ;;  %v10008_v10 = vpack.c.bf16 %v9973_v61, %v9973_v61  ;;  %v14853_v60 = vld [vmem:[#allocation23 + $0x1b0] sm:$0xff]  }
 0xcf0   :  { %10619 = vmatprep.subr.bf16.mxu1 %v14794_v45  ;;  %v10407_v2 = vmul.f32 %v10406_v31, %v7617_v26  ;;  %vm10404_vm13 = vcmp.ge.f32.partialorder %v7617_v26, 0.0  ;;  %v14854_v45 = vld [vmem:[#allocation23 + $0x1f8] sm:$0xff]   ;;  %12979 = vmatpush3.bf16.msra.mxu0 %v14853_v60  ;;  %v14886_v33 = vld [vmem:[#allocation20 + $0x9a0] ss:$8 sps:$4 sm:$0xff]   ;;  %v10663_v60 = vstv %s12800_s16 }
 0xcf1   :  { %10214 = vmatprep.mubr.bf16.mxu1 %v10008_v10  ;;  %12980 = vmatprep.subr.bf16.mxu0 %v14854_v45  ;;  %v14858_v14 = vld [vmem:[#allocation20 + $0x904] ss:$8 sps:$4 sm:$0xff]   ;;  %v14903_v45 = vld [vmem:[#allocation20 + $0x9f4] ss:$8 sps:$4 sm:$0xff]  }
 0xcf2   :  { %10215 = vmatmul.mubr.bf16.vlgmr.msra.gmra.mrb[100].mxu1 %v10007_v59  ;;  %v10409_v4 = vsel %vm10404_vm13, %v7617_v26, %v10407_v2  ;;  %v14894_v55 = vld [vmem:[#allocation20 + $0x9c4] ss:$8 sps:$4 sm:$0xff]   ;;  %v10447_v26 = vld [vmem:[#allocation21 + $0x10] sm:$0x3] }
 0xcf3   :  { %10620 = vmatpush1.bf16.msra.mxu1 %v14792_v46  ;;  %10651 = vmatprep.mubr.bf16.mxu1 %v10445_v47  ;;  %v10444_v9 = vpack.c.bf16 %v10409_v4, %v10409_v4  ;;  %v10452_v2 = vrot.slane %v10447_v26, %v15709_v50  ;;  %v11100_v4 = vstv %s16096_s8 }
 0xcf4   :  { %10621 = vmatprep.subr.bf16.mxu1 %v14797_v62  ;;  %12981 = vmatpush3.bf16.msra.mxu0 %v14855_v40  ;;  %v10010_v62 = vld [vmem:[#allocation21 + $0xe] sm:$0x3] }
 0xcf5   :  { %10876 = vmatprep.subr.bf16.mxu0 %v14858_v14  ;;  %v10015_v47 = vrot.slane %v10010_v62, %v15709_v50 }
 0xcf7   :  { %10622 = vmatpush1.bf16.msra.mxu1 %v14795_v53  ;;  %v10019_v53 = vrot.slane %v10010_v62, %v15712_v51  ;;  %v14901_v62 = vld [vmem:[#allocation20 + $0x9f0] ss:$8 sps:$4 sm:$0xff]  }
 0xcf8   :  { %10623 = vmatprep.subr.bf16.mxu1 %v14800_v41 }
 0xcfb   :  { %10624 = vmatpush1.bf16.msra.mxu1 %v14798_v48  ;;  %v10226_v48 = vstv %s12750_s1 }
 0xcfc   :  { %10625 = vmatprep.subr.bf16.mxu1 %v14803_v8 }
 0xcff   :  { %10626 = vmatpush1.bf16.msra.mxu1 %v14801_v38 }
 0xd00   :  { %10627 = vmatprep.subr.bf16.mxu1 %v14806_v22 }
 0xd03   :  { %10628 = vmatpush1.bf16.msra.mxu1 %v14804_v11 }
 0xd04   :  { %10629 = vmatprep.subr.bf16.mxu1 %v14809_v63 }
 0xd07   :  { %10630 = vmatpush1.bf16.msra.mxu1 %v14807_v15 }
 0xd08   :  { %10631 = vmatprep.subr.bf16.mxu1 %v14812_v57 }
 0xd0b   :  { %10632 = vmatpush1.bf16.msra.mxu1 %v14810_v52 }
 0xd0c   :  { %10633 = vmatprep.subr.bf16.mxu1 %v14815_v17 }
 0xd0f   :  { %10634 = vmatpush1.bf16.msra.mxu1 %v14813_v19  ;;  %v14859_v19 = vld [vmem:[#allocation20 + $0x910] ss:$8 sps:$4 sm:$0xff]  }
 0xd10   :  { %10635 = vmatprep.subr.bf16.mxu1 %v14818_v24  ;;  %v14864_v24 = vld [vmem:[#allocation20 + $0x924] ss:$8 sps:$4 sm:$0xff]  }
 0xd13   :  { %10636 = vmatpush1.bf16.msra.mxu1 %v14816_v28  ;;  %v14865_v28 = vld [vmem:[#allocation20 + $0x930] ss:$8 sps:$4 sm:$0xff]  }
 0xd14   :  { %10637 = vmatprep.subr.bf16.mxu1 %v14821_v23  ;;  %v14870_v23 = vld [vmem:[#allocation20 + $0x944] ss:$8 sps:$4 sm:$0xff]  }
 0xd17   :  { %10638 = vmatpush1.bf16.msra.mxu1 %v14819_v25  ;;  %v14871_v25 = vld [vmem:[#allocation20 + $0x950] ss:$8 sps:$4 sm:$0xff]  }
 0xd18   :  { %10639 = vmatprep.subr.bf16.mxu1 %v14824_v43  ;;  %v14876_v43 = vld [vmem:[#allocation20 + $0x964] ss:$8 sps:$4 sm:$0xff]  }
 0xd1b   :  { %10640 = vmatpush1.bf16.msra.mxu1 %v14822_v35  ;;  %v14877_v35 = vld [vmem:[#allocation20 + $0x970] ss:$8 sps:$4 sm:$0xff]  }
 0xd1c   :  { %10641 = vmatprep.subr.bf16.mxu1 %v14827_v54  ;;  %v14882_v54 = vld [vmem:[#allocation20 + $0x984] ss:$8 sps:$4 sm:$0xff]  }
 0xd1f   :  { %10642 = vmatpush1.bf16.msra.mxu1 %v14825_v3  ;;  %v14883_v3 = vld [vmem:[#allocation20 + $0x990] ss:$8 sps:$4 sm:$0xff]  }
 0xd20   :  { %10643 = vmatprep.subr.bf16.mxu1 %v14830_v58  ;;  %v14888_v58 = vld [vmem:[#allocation20 + $0x9a4] ss:$8 sps:$4 sm:$0xff]  }
 0xd23   :  { %10644 = vmatpush1.bf16.msra.mxu1 %v14828_v5  ;;  %v14891_v5 = vld [vmem:[#allocation20 + $0x9b4] ss:$8 sps:$4 sm:$0xff]  }
 0xd24   :  { %10645 = vmatprep.subr.bf16.mxu1 %v14833_v18  ;;  %v14889_v18 = vld [vmem:[#allocation20 + $0x9b0] ss:$8 sps:$4 sm:$0xff]  }
 0xd27   :  { %10646 = vmatpush1.bf16.msra.mxu1 %v14831_v21  ;;  %v14892_v21 = vld [vmem:[#allocation20 + $0x9c0] ss:$8 sps:$4 sm:$0xff]  }
 0xd28   :  { %10647 = vmatprep.subr.bf16.mxu1 %v14836_v16  ;;  %v14897_v16 = vld [vmem:[#allocation20 + $0x9d4] ss:$8 sps:$4 sm:$0xff]  }
 0xd2b   :  { %10648 = vmatpush1.bf16.msra.mxu1 %v14834_v42  ;;  %v14895_v42 = vld [vmem:[#allocation20 + $0x9d0] ss:$8 sps:$4 sm:$0xff]  }
 0xd2c   :  { %10649 = vmatprep.subr.bf16.mxu1 %v14839_v44  ;;  %v14900_v44 = vld [vmem:[#allocation20 + $0x9e4] ss:$8 sps:$4 sm:$0xff]  }
 0xd2f   :  { %10650 = vmatpush1.bf16.msra.mxu1 %v14837_v20  ;;  %v10456_v20 = vrot.slane %v10447_v26, %v15712_v51  ;;  %v14942_v26 = vld [vmem:[#allocation20 + $0xac4] ss:$8 sps:$4 sm:$0xff]  }
 0xd32   :  { %10652 = vmatmul.mubr.bf16.vlgmr.msra.gmra.mrb[104].mxu1 %v10444_v9  ;;  %v14898_v9 = vld [vmem:[#allocation20 + $0x9e0] ss:$8 sps:$4 sm:$0xff]  }
 0xd85   :  { %v12960_v61 = vpop.f32.mrb[96].mxu1 }
 0xd86   :  { %v12961_v31 = vpop.f32.mrb[97].mxu1 }
 0xd87   :  { %v12962_v39 = vadd.f32 %v12961_v31, %v12960_v61  ;;  %v12963_v10 = vpop.f32.mrb[98].mxu1 }
 0xd88   :  { %v12964_v46 = vpop.f32.mrb[99].mxu1 }
 0xd89   :  { %v16092_v59 = vadd.f32 %v12962_v39, %v16070_v1  ;;  %v11102_v39 = vmul.f32 %v11100_v4, %v16011_v36 }
 0xdc5   :  { %v10216_v41 = vpop.f32.mrb[100].mxu1 }
 0xdc6   :  { %v10217_v8 = vadd.f32 %v10216_v41, %v10015_v47  ;;  %v10218_v38 = vpop.f32.mrb[101].mxu1 }
 0xdc7   :  { %v10219_v22 = vadd.f32 %v10218_v38, %v10019_v53  ;;  %v10220_v11 = vpop.f32.mrb[102].mxu1  ;;  %v14906_v53 = vld [vmem:[#allocation20 + $0xa04] ss:$8 sps:$4 sm:$0xff]  }
 0xdc8   :  { %vm10224_vm14 = vcmp.ge.f32.partialorder %v10217_v8, 0.0  ;;  %v10227_v63 = vmul.f32 %v10226_v48, %v10217_v8  ;;  %v10221_v15 = vpop.f32.mrb[103].mxu1 }
 0xdc9   :  { %vm10225_vm15 = vcmp.ge.f32.partialorder %v10219_v22, 0.0  ;;  %v10228_v57 = vmul.f32 %v10226_v48, %v10219_v22 }
 0xdca   :  { %v10229_v52 = vsel %vm10224_vm14, %v10217_v8, %v10227_v63  ;;  %v11104_v8 = vsel %vm11099_vm1, %v16011_v36, %v11102_v39  ;;  %v14909_v63 = vld [vmem:[#allocation20 + $0xa14] ss:$8 sps:$4 sm:$0xff]   ;;  %v14913_v36 = vld [vmem:[#allocation20 + $0xa30] ss:$8 sps:$4 sm:$0xff]   ;;  %v14965_v39 = vld [vmem:[#allocation23 + $0x230] sm:$0xff]  }
 0xdcb   :  { %v10230_v1 = vsel %vm10225_vm15, %v10219_v22, %v10228_v57  ;;  %v10264_v13 = vpack.c.bf16 %v10229_v52, %v10229_v52  ;;  %v14904_v22 = vld [vmem:[#allocation20 + $0xa00] ss:$8 sps:$4 sm:$0xff]   ;;  %v11139_v15 = vpack.c.bf16 %v11104_v8, %v11104_v8  ;;  %v14907_v57 = vld [vmem:[#allocation20 + $0xa10] ss:$8 sps:$4 sm:$0xff]   ;;  %v14912_v52 = vld [vmem:[#allocation20 + $0xa24] ss:$8 sps:$4 sm:$0xff]  }
 0xdcc   :  { %v10265_v17 = vpack.c.bf16 %v10230_v1, %v10230_v1  ;;  %v14910_v1 = vld [vmem:[#allocation20 + $0xa20] ss:$8 sps:$4 sm:$0xff]   ;;  %v10704_v8 = vld [vmem:[#allocation21 + $0x12] sm:$0x3] }
 0xdce   :  { %10394 = vmatprep.mubr.bf16.mxu0 %v10265_v17  ;;  %v14915_v17 = vld [vmem:[#allocation20 + $0xa34] ss:$8 sps:$4 sm:$0xff]  }
 0xdcf   :  { %10395 = vmatmul.mubr.bf16.vlgmr.msra.gmra.mrb[96].mxu0 %v10264_v13  ;;  %v14916_v13 = vld [vmem:[#allocation20 + $0xa40] ss:$8 sps:$4 sm:$0xff]  }
 0xdd0   :  { %10877 = vmatpush1.bf16.msra.mxu0 %v14856_v7  ;;  %v14918_v7 = vld [vmem:[#allocation20 + $0xa44] ss:$8 sps:$4 sm:$0xff]  }
 0xdd1   :  { %10878 = vmatprep.subr.bf16.mxu0 %v14861_v49  ;;  %v14921_v49 = vld [vmem:[#allocation20 + $0xa54] ss:$8 sps:$4 sm:$0xff]  }
 0xdd4   :  { %10879 = vmatpush1.bf16.msra.mxu0 %v14859_v19  ;;  %v14919_v19 = vld [vmem:[#allocation20 + $0xa50] ss:$8 sps:$4 sm:$0xff]  }
 0xdd5   :  { %10880 = vmatprep.subr.bf16.mxu0 %v14864_v24  ;;  %v14924_v24 = vld [vmem:[#allocation20 + $0xa64] ss:$8 sps:$4 sm:$0xff]  }
 0xdd8   :  { %10881 = vmatpush1.bf16.msra.mxu0 %v14862_v37  ;;  %v14922_v37 = vld [vmem:[#allocation20 + $0xa60] ss:$8 sps:$4 sm:$0xff]  }
 0xdd9   :  { %10882 = vmatprep.subr.bf16.mxu0 %v14867_v27  ;;  %v14927_v27 = vld [vmem:[#allocation20 + $0xa74] ss:$8 sps:$4 sm:$0xff]  }
 0xddc   :  { %10883 = vmatpush1.bf16.msra.mxu0 %v14865_v28  ;;  %v14952_v28 = vld [vmem:[#allocation23 + $0x240] sm:$0xff]  }
 0xddd   :  { %10884 = vmatprep.subr.bf16.mxu0 %v14870_v23  ;;  %v14953_v23 = vld [vmem:[#allocation23 + $0x200] sm:$0xff]   ;;  %12988 = vmatprep.subr.bf16.mxu1 %v14952_v28  ;;  %v14972_v28 = vld [vmem:[#allocation23 + $0x2d0] sm:$0xff]  }
 0xdde   :  { %12989 = vmatpush3.bf16.msra.mxu1 %v14953_v23  ;;  %v14973_v23 = vld [vmem:[#allocation23 + $0x290] sm:$0xff]  }
 0xde0   :  { %10885 = vmatpush1.bf16.msra.mxu0 %v14868_v30  ;;  %v14954_v30 = vld [vmem:[#allocation23 + $0x248] sm:$0xff]  }
 0xde1   :  { %10886 = vmatprep.subr.bf16.mxu0 %v14873_v0  ;;  %v14925_v0 = vld [vmem:[#allocation20 + $0xa70] ss:$8 sps:$4 sm:$0xff]   ;;  %12990 = vmatprep.subr.bf16.mxu1 %v14954_v30 }
 0xde2   :  { %v14974_v30 = vld [vmem:[#allocation23 + $0x2d8] sm:$0xff]  }
 0xde4   :  { %10887 = vmatpush1.bf16.msra.mxu0 %v14871_v25  ;;  %v14930_v25 = vld [vmem:[#allocation20 + $0xa84] ss:$8 sps:$4 sm:$0xff]  }
 0xde5   :  { %10888 = vmatprep.subr.bf16.mxu0 %v14876_v43  ;;  %v14955_v43 = vld [vmem:[#allocation23 + $0x208] sm:$0xff]  }
 0xde6   :  { %12991 = vmatpush3.bf16.msra.mxu1 %v14955_v43  ;;  %v14977_v43 = vld [vmem:[#allocation23 + $0x2a0] sm:$0xff]  }
 0xde8   :  { %10889 = vmatpush1.bf16.msra.mxu0 %v14874_v6  ;;  %v14956_v6 = vld [vmem:[#allocation23 + $0x250] sm:$0xff]  }
 0xde9   :  { %10890 = vmatprep.subr.bf16.mxu0 %v14879_v56  ;;  %v14928_v56 = vld [vmem:[#allocation20 + $0xa80] ss:$8 sps:$4 sm:$0xff]   ;;  %12992 = vmatprep.subr.bf16.mxu1 %v14956_v6 }
 0xdea   :  { %v14978_v6 = vld [vmem:[#allocation23 + $0x2e8] sm:$0xff]  }
 0xdec   :  { %10891 = vmatpush1.bf16.msra.mxu0 %v14877_v35  ;;  %v14933_v35 = vld [vmem:[#allocation20 + $0xa94] ss:$8 sps:$4 sm:$0xff]  }
 0xded   :  { %10892 = vmatprep.subr.bf16.mxu0 %v14882_v54  ;;  %v14957_v54 = vld [vmem:[#allocation23 + $0x210] sm:$0xff]  }
 0xdee   :  { %12993 = vmatpush3.bf16.msra.mxu1 %v14957_v54  ;;  %v14981_v54 = vld [vmem:[#allocation23 + $0x2b0] sm:$0xff]  }
 0xdf0   :  { %10893 = vmatpush1.bf16.msra.mxu0 %v14880_v34  ;;  %v14958_v34 = vld [vmem:[#allocation23 + $0x258] sm:$0xff]  }
 0xdf1   :  { %10894 = vmatprep.subr.bf16.mxu0 %v14885_v12  ;;  %v14931_v12 = vld [vmem:[#allocation20 + $0xa90] ss:$8 sps:$4 sm:$0xff]   ;;  %12994 = vmatprep.subr.bf16.mxu1 %v14958_v34 }
 0xdf2   :  { %v14982_v34 = vld [vmem:[#allocation23 + $0x2f8] sm:$0xff]  }
 0xdf4   :  { %10895 = vmatpush1.bf16.msra.mxu0 %v14883_v3  ;;  %v14936_v3 = vld [vmem:[#allocation20 + $0xaa4] ss:$8 sps:$4 sm:$0xff]  }
 0xdf5   :  { %10896 = vmatprep.subr.bf16.mxu0 %v14888_v58  ;;  %v14959_v58 = vld [vmem:[#allocation23 + $0x218] sm:$0xff]  }
 0xdf6   :  { %12995 = vmatpush3.bf16.msra.mxu1 %v14959_v58 }
 0xdf8   :  { %10897 = vmatpush1.bf16.msra.mxu0 %v14886_v33  ;;  %v14960_v33 = vld [vmem:[#allocation23 + $0x260] sm:$0xff]  }
 0xdf9   :  { %10898 = vmatprep.subr.bf16.mxu0 %v14891_v5  ;;  %v14934_v5 = vld [vmem:[#allocation20 + $0xaa0] ss:$8 sps:$4 sm:$0xff]   ;;  %12996 = vmatprep.subr.bf16.mxu1 %v14960_v33 }
 0xdfc   :  { %10899 = vmatpush1.bf16.msra.mxu0 %v14889_v18  ;;  %v14939_v18 = vld [vmem:[#allocation20 + $0xab4] ss:$8 sps:$4 sm:$0xff]  }
 0xdfd   :  { %10900 = vmatprep.subr.bf16.mxu0 %v14894_v55  ;;  %v14961_v55 = vld [vmem:[#allocation23 + $0x220] sm:$0xff]  }
 0xdfe   :  { %12997 = vmatpush3.bf16.msra.mxu1 %v14961_v55 }
 0xe00   :  { %10901 = vmatpush1.bf16.msra.mxu0 %v14892_v21  ;;  %v14962_v21 = vld [vmem:[#allocation23 + $0x268] sm:$0xff]  }
 0xe01   :  { %10902 = vmatprep.subr.bf16.mxu0 %v14897_v16  ;;  %v14937_v16 = vld [vmem:[#allocation20 + $0xab0] ss:$8 sps:$4 sm:$0xff]   ;;  %12998 = vmatprep.subr.bf16.mxu1 %v14962_v21 }
 0xe04   :  { %10903 = vmatpush1.bf16.msra.mxu0 %v14895_v42  ;;  %v14963_v42 = vld [vmem:[#allocation23 + $0x228] sm:$0xff]  }
 0xe05   :  { %v10653_v32 = vpop.f32.mrb[104].mxu1  ;;  %10904 = vmatprep.subr.bf16.mxu0 %v14900_v44  ;;  %v14940_v44 = vld [vmem:[#allocation20 + $0xac0] ss:$8 sps:$4 sm:$0xff]   ;;  %12999 = vmatpush3.bf16.msra.mxu1 %v14963_v42 }
 0xe06   :  { %v10654_v40 = vadd.f32 %v10653_v32, %v10452_v2  ;;  %v10655_v14 = vpop.f32.mrb[105].mxu1  ;;  %v14945_v2 = vld [vmem:[#allocation20 + $0xad4] ss:$8 sps:$4 sm:$0xff]   ;;  %v14946_v32 = vld [vmem:[#allocation20 + $0xae0] ss:$8 sps:$4 sm:$0xff]  }
 0xe07   :  { %v10656_v61 = vadd.f32 %v10655_v14, %v10456_v20  ;;  %v10657_v31 = vpop.f32.mrb[106].mxu1  ;;  %v14943_v20 = vld [vmem:[#allocation20 + $0xad0] ss:$8 sps:$4 sm:$0xff]  }
 0xe08   :  { %vm10661_vm0 = vcmp.ge.f32.partialorder %v10654_v40, 0.0  ;;  %v10664_v10 = vmul.f32 %v10663_v60, %v10654_v40  ;;  %10905 = vmatpush1.bf16.msra.mxu0 %v14898_v9  ;;  %v10658_v46 = vpop.f32.mrb[107].mxu1  ;;  %v14948_v9 = vld [vmem:[#allocation20 + $0xae4] ss:$8 sps:$4 sm:$0xff]  }
 0xe09   :  { %vm10662_vm2 = vcmp.ge.f32.partialorder %v10656_v61, 0.0  ;;  %v10665_v47 = vmul.f32 %v10663_v60, %v10656_v61  ;;  %10906 = vmatprep.subr.bf16.mxu0 %v14903_v45  ;;  %v14951_v60 = vld [vmem:[#allocation20 + $0xaf4] ss:$8 sps:$4 sm:$0xff]   ;;  %v11101_v45 = vmul.f32 %v11100_v4, %v16009_v29  ;;  %v14964_v31 = vld [vmem:[#allocation23 + $0x270] sm:$0xff]  }
 0xe0a   :  { %v10666_v41 = vsel %vm10661_vm0, %v10654_v40, %v10664_v10  ;;  %v14949_v40 = vld [vmem:[#allocation20 + $0xaf0] ss:$8 sps:$4 sm:$0xff]   ;;  %13000 = vmatprep.subr.bf16.mxu1 %v14964_v31 }
 0xe0b   :  { %v10667_v48 = vsel %vm10662_vm2, %v10656_v61, %v10665_v47  ;;  %v10701_v11 = vpack.c.bf16 %v10666_v41, %v10666_v41  ;;  %v11103_v14 = vsel %vm11098_vm3, %v16009_v29, %v11101_v45  ;;  %v14966_v10 = vld [vmem:[#allocation23 + $0x278] sm:$0xff]   ;;  %13001 = vmatpush3.bf16.msra.mxu1 %v14965_v39 }
 0xe0c   :  { %10907 = vmatpush1.bf16.msra.mxu0 %v14901_v62  ;;  %v10702_v38 = vpack.c.bf16 %v10667_v48, %v10667_v48  ;;  %v11138_v61 = vpack.c.bf16 %v11103_v14, %v11103_v14  ;;  %v14967_v46 = vld [vmem:[#allocation23 + $0x238] sm:$0xff]   ;;  %13002 = vmatprep.subr.bf16.mxu1 %v14966_v10  ;;  %v14968_v62 = vld [vmem:[#allocation23 + $0x2c0] sm:$0xff]  }
 0xe0d   :  { %11313 = vmatprep.subr.bf16.mxu0 %v14906_v53 }
 0xe0e   :  { %10908 = vmatprep.mubr.bf16.mxu0 %v10702_v38  ;;  %v10709_v38 = vrot.slane %v10704_v8, %v15709_v50 }
 0xe0f   :  { %10909 = vmatmul.mubr.bf16.vlgmr.msra.gmra.mrb[100].mxu0 %v10701_v11  ;;  %13003 = vmatpush3.bf16.msra.mxu1 %v14967_v46 }
 0xe10   :  { %11314 = vmatpush1.bf16.msra.mxu0 %v14904_v22  ;;  %11345 = vmatprep.mubr.bf16.mxu0 %v11139_v15  ;;  %v10713_v22 = vrot.slane %v10704_v8, %v15712_v51 }
 0xe11   :  { %11315 = vmatprep.subr.bf16.mxu0 %v14909_v63  ;;  %13010 = vmatprep.subr.bf16.mxu1 %v14968_v62  ;;  %v10920_v63 = vstv %s12833_s4 }
 0xe14   :  { %11316 = vmatpush1.bf16.msra.mxu0 %v14907_v57 }
 0xe15   :  { %11317 = vmatprep.subr.bf16.mxu0 %v14912_v52 }
 0xe18   :  { %11318 = vmatpush1.bf16.msra.mxu0 %v14910_v1 }
 0xe19   :  { %11319 = vmatprep.subr.bf16.mxu0 %v14915_v17 }
 0xe1c   :  { %11320 = vmatpush1.bf16.msra.mxu0 %v14913_v36 }
 0xe1d   :  { %11321 = vmatprep.subr.bf16.mxu0 %v14918_v7 }
 0xe20   :  { %11322 = vmatpush1.bf16.msra.mxu0 %v14916_v13 }
 0xe21   :  { %11323 = vmatprep.subr.bf16.mxu0 %v14921_v49 }
 0xe24   :  { %11324 = vmatpush1.bf16.msra.mxu0 %v14919_v19  ;;  %v14969_v19 = vld [vmem:[#allocation23 + $0x280] sm:$0xff]  }
 0xe25   :  { %11325 = vmatprep.subr.bf16.mxu0 %v14924_v24 }
 0xe28   :  { %11326 = vmatpush1.bf16.msra.mxu0 %v14922_v37  ;;  %v14970_v37 = vld [vmem:[#allocation23 + $0x2c8] sm:$0xff]  }
 0xe29   :  { %11327 = vmatprep.subr.bf16.mxu0 %v14927_v27  ;;  %v14971_v27 = vld [vmem:[#allocation23 + $0x288] sm:$0xff]  }
 0xe2c   :  { %11328 = vmatpush1.bf16.msra.mxu0 %v14925_v0  ;;  %v14975_v0 = vld [vmem:[#allocation23 + $0x298] sm:$0xff]  }
 0xe2d   :  { %11329 = vmatprep.subr.bf16.mxu0 %v14930_v25  ;;  %v14976_v25 = vld [vmem:[#allocation23 + $0x2e0] sm:$0xff]  }
 0xe30   :  { %11330 = vmatpush1.bf16.msra.mxu0 %v14928_v56  ;;  %v14979_v56 = vld [vmem:[#allocation23 + $0x2a8] sm:$0xff]  }
 0xe31   :  { %11331 = vmatprep.subr.bf16.mxu0 %v14933_v35  ;;  %v14980_v35 = vld [vmem:[#allocation23 + $0x2f0] sm:$0xff]  }
 0xe34   :  { %11332 = vmatpush1.bf16.msra.mxu0 %v14931_v12  ;;  %v14983_v12 = vld [vmem:[#allocation23 + $0x2b8] sm:$0xff]  }
 0xe35   :  { %11333 = vmatprep.subr.bf16.mxu0 %v14936_v3  ;;  %v11141_v3 = vld [vmem:[#allocation21 + $0x14] sm:$0x3] }
 0xe36   :  { %v11146_v58 = vrot.slane %v11141_v3, %v15709_v50  ;;  %v11150_v33 = vrot.slane %v11141_v3, %v15712_v51 }
 0xe38   :  { %11334 = vmatpush1.bf16.msra.mxu0 %v14934_v5 }
 0xe39   :  { %11335 = vmatprep.subr.bf16.mxu0 %v14939_v18  ;;  %v11357_v18 = vstv %s12883_s15 }
 0xe3c   :  { %11336 = vmatpush1.bf16.msra.mxu0 %v14937_v16 }
 0xe3d   :  { %11337 = vmatprep.subr.bf16.mxu0 %v14942_v26 }
 0xe40   :  { %11338 = vmatpush1.bf16.msra.mxu0 %v14940_v44 }
 0xe41   :  { %11339 = vmatprep.subr.bf16.mxu0 %v14945_v2 }
 0xe44   :  { %11340 = vmatpush1.bf16.msra.mxu0 %v14943_v20 }
 0xe45   :  { %11341 = vmatprep.subr.bf16.mxu0 %v14948_v9 }
 0xe48   :  { %11342 = vmatpush1.bf16.msra.mxu0 %v14946_v32 }
 0xe49   :  { %11343 = vmatprep.subr.bf16.mxu0 %v14951_v60 }
 0xe4c   :  { %11344 = vmatpush1.bf16.msra.mxu0 %v14949_v40 }
 0xe4f   :  { %11346 = vmatmul.mubr.bf16.vlgmr.msra.gmra.mrb[104].mxu0 %v11138_v61 }
 0xea2   :  { %v12982_v4 = vpop.f32.mrb[96].mxu0 }
 0xea3   :  { %v12983_v47 = vpop.f32.mrb[97].mxu0 }
 0xea4   :  { %v12984_v53 = vadd.f32 %v12983_v47, %v12982_v4  ;;  %v12985_v41 = vpop.f32.mrb[98].mxu0 }
 0xea5   :  { %v12986_v48 = vpop.f32.mrb[99].mxu0 }
 0xea6   :  { %v16112_v29 = vadd.f32 %v12984_v53, %v16092_v59 }
 0xee2   :  { %v10910_v11 = vpop.f32.mrb[100].mxu0 }
 0xee3   :  { %v10911_v15 = vadd.f32 %v10910_v11, %v10709_v38  ;;  %v10912_v57 = vpop.f32.mrb[101].mxu0 }
 0xee4   :  { %v10913_v52 = vadd.f32 %v10912_v57, %v10713_v22  ;;  %v10914_v1 = vpop.f32.mrb[102].mxu0 }
 0xee5   :  { %vm10918_vm4 = vcmp.ge.f32.partialorder %v10911_v15, 0.0  ;;  %v10921_v17 = vmul.f32 %v10920_v63, %v10911_v15  ;;  %v10915_v36 = vpop.f32.mrb[103].mxu0 }
 0xee6   :  { %vm10919_vm5 = vcmp.ge.f32.partialorder %v10913_v52, 0.0  ;;  %v10922_v7 = vmul.f32 %v10920_v63, %v10913_v52 }
 0xee7   :  { %v10923_v13 = vsel %vm10918_vm4, %v10911_v15, %v10921_v17 }
 0xee8   :  { %v10924_v59 = vsel %vm10919_vm5, %v10913_v52, %v10922_v7  ;;  %v10958_v24 = vpack.c.bf16 %v10923_v13, %v10923_v13 }
 0xee9   :  { %v10959_v49 = vpack.c.bf16 %v10924_v59, %v10924_v59 }
 0xeeb   :  { %11088 = vmatprep.mubr.bf16.mxu1 %v10959_v49 }
 0xeec   :  { %11089 = vmatmul.mubr.bf16.vlgmr.msra.gmra.mrb[108].mxu1 %v10958_v24 }
 0xeed   :  { %13011 = vmatpush3.bf16.msra.mxu1 %v14969_v19 }
 0xeee   :  { %13012 = vmatprep.subr.bf16.mxu1 %v14970_v37 }
 0xef1   :  { %13013 = vmatpush3.bf16.msra.mxu1 %v14971_v27 }
 0xef2   :  { %13014 = vmatprep.subr.bf16.mxu1 %v14972_v28 }
 0xef5   :  { %13015 = vmatpush3.bf16.msra.mxu1 %v14973_v23 }
 0xef6   :  { %13016 = vmatprep.subr.bf16.mxu1 %v14974_v30 }
 0xef9   :  { %13017 = vmatpush3.bf16.msra.mxu1 %v14975_v0 }
 0xefa   :  { %13018 = vmatprep.subr.bf16.mxu1 %v14976_v25 }
 0xefd   :  { %13019 = vmatpush3.bf16.msra.mxu1 %v14977_v43 }
 0xefe   :  { %13020 = vmatprep.subr.bf16.mxu1 %v14978_v6 }
 0xf01   :  { %13021 = vmatpush3.bf16.msra.mxu1 %v14979_v56 }
 0xf02   :  { %13022 = vmatprep.subr.bf16.mxu1 %v14980_v35 }
 0xf05   :  { %13023 = vmatpush3.bf16.msra.mxu1 %v14981_v54 }
 0xf06   :  { %13024 = vmatprep.subr.bf16.mxu1 %v14982_v34 }
 0xf09   :  { %13025 = vmatpush3.bf16.msra.mxu1 %v14983_v12 }
 0xf22   :  { %v11347_v5 = vpop.f32.mrb[104].mxu0 }
 0xf23   :  { %v11348_v55 = vadd.f32 %v11347_v5, %v11146_v58  ;;  %v11349_v21 = vpop.f32.mrb[105].mxu0 }
 0xf24   :  { %v11350_v16 = vadd.f32 %v11349_v21, %v11150_v33  ;;  %v11351_v26 = vpop.f32.mrb[106].mxu0 }
 0xf25   :  { %vm11355_vm6 = vcmp.ge.f32.partialorder %v11348_v55, 0.0  ;;  %v11358_v42 = vmul.f32 %v11357_v18, %v11348_v55  ;;  %v11352_v44 = vpop.f32.mrb[107].mxu0 }
 0xf26   :  { %vm11356_vm7 = vcmp.ge.f32.partialorder %v11350_v16, 0.0  ;;  %v11359_v2 = vmul.f32 %v11357_v18, %v11350_v16 }
 0xf27   :  { %v11360_v20 = vsel %vm11355_vm6, %v11348_v55, %v11358_v42 }
 0xf28   :  { %v11361_v9 = vsel %vm11356_vm7, %v11350_v16, %v11359_v2  ;;  %v11395_v60 = vpack.c.bf16 %v11360_v20, %v11360_v20 }
 0xf29   :  { %v11396_v32 = vpack.c.bf16 %v11361_v9, %v11361_v9 }
 0xf2b   :  { %11525 = vmatprep.mubr.bf16.mxu1 %v11396_v32 }
 0xf2c   :  { %11526 = vmatmul.mubr.bf16.vlgmr.msra.gmra.mrb[112].mxu1 %v11395_v60 }
 0xfbf   :  { %v13004_v50 = vpop.f32.mrb[108].mxu1 }
 0xfc0   :  { %v13005_v45 = vpop.f32.mrb[109].mxu1 }
 0xfc1   :  { %v13006_v51 = vadd.f32 %v13005_v45, %v13004_v50  ;;  %v13007_v40 = vpop.f32.mrb[110].mxu1 }
 0xfc2   :  { %v13008_v14 = vpop.f32.mrb[111].mxu1 }
 0xfc3   :  { %v11096_v61 = vadd.f32 %v13006_v51, %v16112_v29 }
 0xfff   :  { %v13026_v31 = vpop.f32.mrb[112].mxu1 }
0x1000   :  { %v13027_v39 = vpop.f32.mrb[113].mxu1 }
0x1001   :  { %v13028_v10 = vadd.f32 %v13027_v39, %v13026_v31  ;;  %v13029_v46 = vpop.f32.mrb[114].mxu1 }
0x1002   :  { %v13030_v62 = vpop.f32.mrb[115].mxu1 }
0x1003   :  { %v11533_v4 = vadd.f32 %v13028_v10, %v11096_v61 }
0x1005   :  { %11534 = vst [vmem:[%s16140_s18] sm:$0xff] %v11533_v4 }
0x1006   :  { %11539 = vsyncpa [#allocation3], 1 }
0x1007   :  { %11540 = vsyncpa [#allocation7], 1 }
0x1008   :  { %11541 = vsyncpa [#allocation10], 1 }
0x1009   :  { %11542 = vsyncpa [#allocation13], 1 }
0x100a   :  { %11543 = vsyncpa [#allocation16], 1 }
0x100b   :  { %11544 = vsyncpa [#allocation19], 1 }
0x100c   :  { %11545 = vsyncpa [#allocation22], 1 }
0x100d   :  { %11546 = vsyncpa [#allocation25], 1 }
0x100e   :  { %11547 = vsyncpa [#allocation4], 1 }

</bundles_post_ra>
